<compile_context>
chip_gen: v6e
topology: v6e:2x2x1
jax: 0.10.0
libtpu: 0.0.40
codegen_flags: <defaults>
</compile_context>

<pallas_src>
import functools

import jax
import jax.numpy as jnp
import numpy as np
from jax.experimental import pallas as pl
from jax.experimental.pallas import tpu as pltpu


# ---------------------------------------------------------------------------
# Fused BasicBlock kernel (one batch element per grid step)
# ---------------------------------------------------------------------------

def _basic_block_kernel(x_ref, w1_ref, s1_ref, b1_ref,
                        w2_ref, s2_ref, b2_ref,
                        *rest, has_projection: bool):
    """Fused BasicBlock forward for one batch element.

    x_ref : (1, H, W, Ci)        f32 block input
    w1_ref: (9*Ci, Cm)           bf16 im2col conv1 weight (row = (dy*3+dx)*Ci + ci)
    s1/b1 : (1, Cm)              f32 folded BN1 scale / bias
    w2_ref: (9*Cm, Co)           bf16 im2col conv2 weight
    s2/b2 : (1, Co)              f32 folded BN2 scale / bias
    [ws_ref: (Ci, Co) bf16, ss/bs: (1, Co)]  projection shortcut (only if Ci != Co)
    o_ref : (1, H, W, Co)
    scratch: xp_s (H+2, W+2, Ci) f32, slab1_s (H*W, 9*Ci) f32,
             y1p_s (H+2, W+2, Cm) f32, slab2_s (H*W, 9*Cm) f32
    """
    if has_projection:
        ws_ref, ss_ref, bs_ref, o_ref, xp_s, slab1_s, y1p_s, slab2_s = rest
    else:
        o_ref, xp_s, slab1_s, y1p_s, slab2_s = rest

    Hp, Wp, Ci = xp_s.shape
    H, W = Hp - 2, Wp - 2
    Cm = s1_ref.shape[-1]
    Co = o_ref.shape[-1]

    # ---- zero-pad x inside the kernel (VMEM scratch, no HBM round trip) ----
    xp_s[...] = jnp.zeros_like(xp_s)
    xp_s[1:H + 1, 1:W + 1, :] = x_ref[0]

    # ---- conv1: im2col slab + single K = 9*Ci MXU matmul, BN1 + ReLU ----
    for k in range(9):
        dy, dx = divmod(k, 3)
        slab1_s[:, k * Ci:(k + 1) * Ci] = (
            xp_s[dy:dy + H, dx:dx + W, :].reshape(H * W, Ci))
    h1 = jnp.dot(slab1_s[...].astype(jnp.bfloat16), w1_ref[...],
                 preferred_element_type=jnp.float32)
    y1 = jnp.maximum(h1 * s1_ref[...] + b1_ref[...], 0.0)        # (H*W, Cm) f32

    # ---- zero-pad relu(bn1(conv1(x))) in VMEM for conv2 ----
    y1p_s[...] = jnp.zeros_like(y1p_s)
    y1p_s[1:H + 1, 1:W + 1, :] = y1.reshape(H, W, Cm)

    # ---- conv2: im2col slab + single K = 9*Cm MXU matmul, BN2 ----
    for k in range(9):
        dy, dx = divmod(k, 3)
        slab2_s[:, k * Cm:(k + 1) * Cm] = (
            y1p_s[dy:dy + H, dx:dx + W, :].reshape(H * W, Cm))
    out = jnp.dot(slab2_s[...].astype(jnp.bfloat16), w2_ref[...],
                  preferred_element_type=jnp.float32)
    out = out * s2_ref[...] + b2_ref[...]                         # (H*W, Co) f32

    # ---- shortcut ----
    x_flat = x_ref[...].reshape(H * W, Ci)
    if has_projection:
        sc = jnp.dot(x_flat.astype(jnp.bfloat16), ws_ref[...],
                     preferred_element_type=jnp.float32)
        sc = sc * ss_ref[...] + bs_ref[...]
    else:
        # identity shortcut: plain f32 VPU add (no eye matmul, no weight DMA)
        sc = x_flat

    o_ref[...] = jnp.maximum(out + sc, 0.0).reshape(1, H, W, Co)


# ---------------------------------------------------------------------------
# pallas_call wrapper
# ---------------------------------------------------------------------------

def basic_block(x, p):
    """Fused BasicBlock forward. x: (N, H, W, Ci) f32 NHWC -> (N, H, W, Co) f32."""
    N, H, W, Ci = x.shape
    Cm = p["s1"].shape[-1]
    Co = p["s2"].shape[-1]
    has_projection = "ws" in p

    kernel = functools.partial(_basic_block_kernel, has_projection=has_projection)

    def full_spec(shape):
        # whole-array block, constant index -> DMA'd once, reused across grid steps
        return pl.BlockSpec(shape, lambda n: tuple(0 for _ in shape))

    in_specs = [
        pl.BlockSpec((1, H, W, Ci), lambda n: (n, 0, 0, 0)),
        full_spec((9 * Ci, Cm)),
        full_spec((1, Cm)), full_spec((1, Cm)),
        full_spec((9 * Cm, Co)),
        full_spec((1, Co)), full_spec((1, Co)),
    ]
    args = [x, p["w1"], p["s1"], p["b1"], p["w2"], p["s2"], p["b2"]]
    if has_projection:
        in_specs += [full_spec((Ci, Co)), full_spec((1, Co)), full_spec((1, Co))]
        args += [p["ws"], p["ss"], p["bs"]]

    return pl.pallas_call(
        kernel,
        grid=(N,),
        in_specs=in_specs,
        out_specs=pl.BlockSpec((1, H, W, Co), lambda n: (n, 0, 0, 0)),
        out_shape=jax.ShapeDtypeStruct((N, H, W, Co), jnp.float32),
        scratch_shapes=[
            pltpu.VMEM((H + 2, W + 2, Ci), jnp.float32),   # padded x
            pltpu.VMEM((H * W, 9 * Ci), jnp.float32),      # im2col slab for conv1
            pltpu.VMEM((H + 2, W + 2, Cm), jnp.float32),   # padded relu(bn1(conv1))
            pltpu.VMEM((H * W, 9 * Cm), jnp.float32),      # im2col slab for conv2
        ],
        compiler_params=pltpu.CompilerParams(
            dimension_semantics=("parallel",)),            # batch sharded across TCs (v7x)
    )(*args)


# ---------------------------------------------------------------------------
# Synthetic, deterministic parameters (eval-mode BN folded into scale/bias)
# ---------------------------------------------------------------------------

_BN_EPS = 1e-5


def _fold_bn(gamma, beta, mean, var):
    scale = gamma / jnp.sqrt(var + _BN_EPS)
    bias = beta - mean * scale
    return (scale.reshape(1, -1).astype(jnp.float32),
            bias.reshape(1, -1).astype(jnp.float32))


def _init_bn(key, c):
    k1, k2, k3, k4 = jax.random.split(key, 4)
    gamma = 1.0 + 0.1 * jax.random.normal(k1, (c,), jnp.float32)
    beta = 0.1 * jax.random.normal(k2, (c,), jnp.float32)
    mean = 0.1 * jax.random.normal(k3, (c,), jnp.float32)
    var = 1.0 + 0.1 * jnp.abs(jax.random.normal(k4, (c,), jnp.float32))
    return _fold_bn(gamma, beta, mean, var)


def init_block_params(key, in_planes, planes):
    """Weights stored in im2col layout (9*Ci, Co); conv/shortcut weights in bf16."""
    ks = jax.random.split(key, 6)
    w1 = ((2.0 / (9 * in_planes)) ** 0.5
          * jax.random.normal(ks[0], (9 * in_planes, planes), jnp.float32))
    s1, b1 = _init_bn(ks[1], planes)
    w2 = ((2.0 / (9 * planes)) ** 0.5
          * jax.random.normal(ks[2], (9 * planes, planes), jnp.float32))
    s2, b2 = _init_bn(ks[3], planes)
    p = dict(w1=w1.astype(jnp.bfloat16), s1=s1, b1=b1,
             w2=w2.astype(jnp.bfloat16), s2=s2, b2=b2)
    if in_planes != planes:
        ws = ((2.0 / in_planes) ** 0.5
              * jax.random.normal(ks[4], (in_planes, planes), jnp.float32))
        ss, bs = _init_bn(ks[5], planes)
        p.update(ws=ws.astype(jnp.bfloat16), ss=ss, bs=bs)
    return p


# ---------------------------------------------------------------------------
# Pure-JAX reference (f32) for validation
# ---------------------------------------------------------------------------

def basic_block_reference(x, p):
    def conv3x3(inp, w):
        ci, co = inp.shape[-1], w.shape[-1]
        wk = w.astype(jnp.float32).reshape(3, 3, ci, co)     # HWIO
        return jax.lax.conv_general_dilated(
            inp, wk, window_strides=(1, 1), padding=((1, 1), (1, 1)),
            dimension_numbers=("NHWC", "HWIO", "NHWC"))

    y1 = jnp.maximum(conv3x3(x, p["w1"]) * p["s1"] + p["b1"], 0.0)
    out = conv3x3(y1, p["w2"]) * p["s2"] + p["b2"]
    if "ws" in p:
        sc = jnp.einsum("nhwc,cd->nhwd", x, p["ws"].astype(jnp.float32))
        sc = sc * p["ss"] + p["bs"]
    else:
        sc = x
    return jnp.maximum(out + sc, 0.0)


# ---------------------------------------------------------------------------
# Demo / smoke test
# ---------------------------------------------------------------------------

if __name__ == "__main__":
    key = jax.random.PRNGKey(0)
    k_proj, k_id, k_x = jax.random.split(key, 3)

    # Small CIFAR-style shapes: batch=2, 64 input channels, 16x16 spatial.
    N, Ci, H, W = 2, 64, 16, 16
    params_proj = init_block_params(k_proj, 64, 128)   # projection shortcut (1x1 conv + BN)
    params_id = init_block_params(k_id, 128, 128)      # identity shortcut (plain add)

    x_nchw = jax.random.normal(k_x, (N, Ci, H, W), jnp.float32)
    x = jnp.transpose(x_nchw, (0, 2, 3, 1))            # NCHW (PyTorch) -> NHWC (kernel)

    fwd = jax.jit(lambda xx, pa, pb: basic_block(basic_block(xx, pa), pb))
    out = fwd(x, params_proj, params_id)
    jax.block_until_ready(out)
    assert out.shape == (N, H, W, 128), out.shape

    # bf16 MXU inputs shift results by ~1e-2 relative vs. the f32 reference.
    ref = basic_block_reference(basic_block_reference(x, params_proj), params_id)
    np.testing.assert_allclose(np.asarray(out), np.asarray(ref), rtol=1e-1, atol=1e-1)

    print("KERNEL_OK")
</pallas_src>

<mosaic_0001>
module attributes {stable_mosaic.version = 11 : i64} {
  func.func @_basic_block_kernel(%arg0: i32, %arg1: memref<1x16x16x128xf32, #tpu.memory_space<vmem>>, %arg2: memref<1152x128xbf16, #tpu.memory_space<vmem>>, %arg3: memref<1x128xf32, #tpu.memory_space<vmem>>, %arg4: memref<1x128xf32, #tpu.memory_space<vmem>>, %arg5: memref<1152x128xbf16, #tpu.memory_space<vmem>>, %arg6: memref<1x128xf32, #tpu.memory_space<vmem>>, %arg7: memref<1x128xf32, #tpu.memory_space<vmem>>, %arg8: memref<1x16x16x128xf32, #tpu.memory_space<vmem>>, %arg9: memref<18x18x128xf32, #tpu.memory_space<vmem>>, %arg10: memref<256x1152xf32, #tpu.memory_space<vmem>>, %arg11: memref<18x18x128xf32, #tpu.memory_space<vmem>>, %arg12: memref<256x1152xf32, #tpu.memory_space<vmem>>) attributes {dimension_semantics = [#tpu.dimension_semantics<parallel>], iteration_bounds = array<i64: 2>, scalar_prefetch = 0 : i64, scratch_operands = 4 : i64, tpu.core_type = #tpu.core_type<tc>, window_params = [{transform_indices = @transform_0, window_bounds = array<i64: 1, 16, 16, 128>}, {pipeline_mode = #tpu.pipeline_mode<synchronous>, transform_indices = @transform_1, window_bounds = array<i64: 1152, 128>}, {pipeline_mode = #tpu.pipeline_mode<synchronous>, transform_indices = @transform_2, window_bounds = array<i64: 1, 128>}, {pipeline_mode = #tpu.pipeline_mode<synchronous>, transform_indices = @transform_3, window_bounds = array<i64: 1, 128>}, {pipeline_mode = #tpu.pipeline_mode<synchronous>, transform_indices = @transform_4, window_bounds = array<i64: 1152, 128>}, {pipeline_mode = #tpu.pipeline_mode<synchronous>, transform_indices = @transform_5, window_bounds = array<i64: 1, 128>}, {pipeline_mode = #tpu.pipeline_mode<synchronous>, transform_indices = @transform_6, window_bounds = array<i64: 1, 128>}, {transform_indices = @transform_7, window_bounds = array<i64: 1, 16, 16, 128>}]} {
    %cst = arith.constant 0.000000e+00 : f32
    %0 = vector.broadcast %cst : f32 to vector<18x18x128xf32>
    %c0 = arith.constant 0 : index
    %c0_0 = arith.constant 0 : index
    %c0_1 = arith.constant 0 : index
    %1 = vector.load %arg9[%c0, %c0_0, %c0_1] : memref<18x18x128xf32, #tpu.memory_space<vmem>>, vector<18x18x128xf32>
    tpu.vector_store %arg9[%c0, %c0_0, %c0_1], %0 {strides = array<i32>} : memref<18x18x128xf32, #tpu.memory_space<vmem>>, vector<18x18x128xf32>,
    %c0_2 = arith.constant 0 : index
    %c0_3 = arith.constant 0 : index
    %c0_4 = arith.constant 0 : index
    %c0_5 = arith.constant 0 : index
    %2 = vector.load %arg1[%c0_2, %c0_3, %c0_4, %c0_5] : memref<1x16x16x128xf32, #tpu.memory_space<vmem>>, vector<1x16x16x128xf32>
    %3 = vector.shape_cast %2 : vector<1x16x16x128xf32> to vector<16x16x128xf32>
    %c1 = arith.constant 1 : index
    %c1_6 = arith.constant 1 : index
    %c0_7 = arith.constant 0 : index
    %4 = vector.load %arg9[%c1, %c1_6, %c0_7] : memref<18x18x128xf32, #tpu.memory_space<vmem>>, vector<16x16x128xf32>
    tpu.vector_store %arg9[%c1, %c1_6, %c0_7], %3 {strides = array<i32>} : memref<18x18x128xf32, #tpu.memory_space<vmem>>, vector<16x16x128xf32>,
    %c0_8 = arith.constant 0 : index
    %c0_9 = arith.constant 0 : index
    %c0_10 = arith.constant 0 : index
    %5 = vector.load %arg9[%c0_8, %c0_9, %c0_10] : memref<18x18x128xf32, #tpu.memory_space<vmem>>, vector<16x16x128xf32>
    %6 = vector.shape_cast %5 : vector<16x16x128xf32> to vector<256x128xf32>
    %c0_11 = arith.constant 0 : index
    %c0_12 = arith.constant 0 : index
    %7 = vector.load %arg10[%c0_11, %c0_12] : memref<256x1152xf32, #tpu.memory_space<vmem>>, vector<256x128xf32>
    tpu.vector_store %arg10[%c0_11, %c0_12], %6 {strides = array<i32>} : memref<256x1152xf32, #tpu.memory_space<vmem>>, vector<256x128xf32>,
    %c0_13 = arith.constant 0 : index
    %c1_14 = arith.constant 1 : index
    %c0_15 = arith.constant 0 : index
    %8 = vector.load %arg9[%c0_13, %c1_14, %c0_15] : memref<18x18x128xf32, #tpu.memory_space<vmem>>, vector<16x16x128xf32>
    %9 = vector.shape_cast %8 : vector<16x16x128xf32> to vector<256x128xf32>
    %c0_16 = arith.constant 0 : index
    %c128 = arith.constant 128 : index
    %10 = vector.load %arg10[%c0_16, %c128] : memref<256x1152xf32, #tpu.memory_space<vmem>>, vector<256x128xf32>
    tpu.vector_store %arg10[%c0_16, %c128], %9 {strides = array<i32>} : memref<256x1152xf32, #tpu.memory_space<vmem>>, vector<256x128xf32>,
    %c0_17 = arith.constant 0 : index
    %c2 = arith.constant 2 : index
    %c0_18 = arith.constant 0 : index
    %11 = vector.load %arg9[%c0_17, %c2, %c0_18] : memref<18x18x128xf32, #tpu.memory_space<vmem>>, vector<16x16x128xf32>
    %12 = vector.shape_cast %11 : vector<16x16x128xf32> to vector<256x128xf32>
    %c0_19 = arith.constant 0 : index
    %c256 = arith.constant 256 : index
    %13 = vector.load %arg10[%c0_19, %c256] : memref<256x1152xf32, #tpu.memory_space<vmem>>, vector<256x128xf32>
    tpu.vector_store %arg10[%c0_19, %c256], %12 {strides = array<i32>} : memref<256x1152xf32, #tpu.memory_space<vmem>>, vector<256x128xf32>,
    %c1_20 = arith.constant 1 : index
    %c0_21 = arith.constant 0 : index
    %c0_22 = arith.constant 0 : index
    %14 = vector.load %arg9[%c1_20, %c0_21, %c0_22] : memref<18x18x128xf32, #tpu.memory_space<vmem>>, vector<16x16x128xf32>
    %15 = vector.shape_cast %14 : vector<16x16x128xf32> to vector<256x128xf32>
    %c0_23 = arith.constant 0 : index
    %c384 = arith.constant 384 : index
    %16 = vector.load %arg10[%c0_23, %c384] : memref<256x1152xf32, #tpu.memory_space<vmem>>, vector<256x128xf32>
    tpu.vector_store %arg10[%c0_23, %c384], %15 {strides = array<i32>} : memref<256x1152xf32, #tpu.memory_space<vmem>>, vector<256x128xf32>,
    %c1_24 = arith.constant 1 : index
    %c1_25 = arith.constant 1 : index
    %c0_26 = arith.constant 0 : index
    %17 = vector.load %arg9[%c1_24, %c1_25, %c0_26] : memref<18x18x128xf32, #tpu.memory_space<vmem>>, vector<16x16x128xf32>
    %18 = vector.shape_cast %17 : vector<16x16x128xf32> to vector<256x128xf32>
    %c0_27 = arith.constant 0 : index
    %c512 = arith.constant 512 : index
    %19 = vector.load %arg10[%c0_27, %c512] : memref<256x1152xf32, #tpu.memory_space<vmem>>, vector<256x128xf32>
    tpu.vector_store %arg10[%c0_27, %c512], %18 {strides = array<i32>} : memref<256x1152xf32, #tpu.memory_space<vmem>>, vector<256x128xf32>,
    %c1_28 = arith.constant 1 : index
    %c2_29 = arith.constant 2 : index
    %c0_30 = arith.constant 0 : index
    %20 = vector.load %arg9[%c1_28, %c2_29, %c0_30] : memref<18x18x128xf32, #tpu.memory_space<vmem>>, vector<16x16x128xf32>
    %21 = vector.shape_cast %20 : vector<16x16x128xf32> to vector<256x128xf32>
    %c0_31 = arith.constant 0 : index
    %c640 = arith.constant 640 : index
    %22 = vector.load %arg10[%c0_31, %c640] : memref<256x1152xf32, #tpu.memory_space<vmem>>, vector<256x128xf32>
    tpu.vector_store %arg10[%c0_31, %c640], %21 {strides = array<i32>} : memref<256x1152xf32, #tpu.memory_space<vmem>>, vector<256x128xf32>,
    %c2_32 = arith.constant 2 : index
    %c0_33 = arith.constant 0 : index
    %c0_34 = arith.constant 0 : index
    %23 = vector.load %arg9[%c2_32, %c0_33, %c0_34] : memref<18x18x128xf32, #tpu.memory_space<vmem>>, vector<16x16x128xf32>
    %24 = vector.shape_cast %23 : vector<16x16x128xf32> to vector<256x128xf32>
    %c0_35 = arith.constant 0 : index
    %c768 = arith.constant 768 : index
    %25 = vector.load %arg10[%c0_35, %c768] : memref<256x1152xf32, #tpu.memory_space<vmem>>, vector<256x128xf32>
    tpu.vector_store %arg10[%c0_35, %c768], %24 {strides = array<i32>} : memref<256x1152xf32, #tpu.memory_space<vmem>>, vector<256x128xf32>,
    %c2_36 = arith.constant 2 : index
    %c1_37 = arith.constant 1 : index
    %c0_38 = arith.constant 0 : index
    %26 = vector.load %arg9[%c2_36, %c1_37, %c0_38] : memref<18x18x128xf32, #tpu.memory_space<vmem>>, vector<16x16x128xf32>
    %27 = vector.shape_cast %26 : vector<16x16x128xf32> to vector<256x128xf32>
    %c0_39 = arith.constant 0 : index
    %c896 = arith.constant 896 : index
    %28 = vector.load %arg10[%c0_39, %c896] : memref<256x1152xf32, #tpu.memory_space<vmem>>, vector<256x128xf32>
    tpu.vector_store %arg10[%c0_39, %c896], %27 {strides = array<i32>} : memref<256x1152xf32, #tpu.memory_space<vmem>>, vector<256x128xf32>,
    %c2_40 = arith.constant 2 : index
    %c2_41 = arith.constant 2 : index
    %c0_42 = arith.constant 0 : index
    %29 = vector.load %arg9[%c2_40, %c2_41, %c0_42] : memref<18x18x128xf32, #tpu.memory_space<vmem>>, vector<16x16x128xf32>
    %30 = vector.shape_cast %29 : vector<16x16x128xf32> to vector<256x128xf32>
    %c0_43 = arith.constant 0 : index
    %c1024 = arith.constant 1024 : index
    %31 = vector.load %arg10[%c0_43, %c1024] : memref<256x1152xf32, #tpu.memory_space<vmem>>, vector<256x128xf32>
    tpu.vector_store %arg10[%c0_43, %c1024], %30 {strides = array<i32>} : memref<256x1152xf32, #tpu.memory_space<vmem>>, vector<256x128xf32>,
    %c0_44 = arith.constant 0 : index
    %c0_45 = arith.constant 0 : index
    %32 = vector.load %arg10[%c0_44, %c0_45] : memref<256x1152xf32, #tpu.memory_space<vmem>>, vector<256x1152xf32>
    %33 = arith.truncf %32 : vector<256x1152xf32> to vector<256x1152xbf16>
    %c0_46 = arith.constant 0 : index
    %c0_47 = arith.constant 0 : index
    %34 = vector.load %arg2[%c0_46, %c0_47] : memref<1152x128xbf16, #tpu.memory_space<vmem>>, vector<1152x128xbf16>
    %cst_48 = arith.constant dense<0.000000e+00> : vector<256x128xf32>
    %35 = tpu.matmul %33, %34, %cst_48 {dimension_numbers = #tpu.dot_dimension_numbers<[1], [0], [0], [1], [0, 0, 1, 1], [], []>} : vector<256x1152xbf16>, vector<1152x128xbf16>, vector<256x128xf32> -> vector<256x128xf32>
    %c0_49 = arith.constant 0 : index
    %c0_50 = arith.constant 0 : index
    %36 = vector.load %arg3[%c0_49, %c0_50] : memref<1x128xf32, #tpu.memory_space<vmem>>, vector<1x128xf32>
    %37 = vector.broadcast %36 : vector<1x128xf32> to vector<256x128xf32>
    %38 = arith.mulf %35, %37 : vector<256x128xf32>
    %c0_51 = arith.constant 0 : index
    %c0_52 = arith.constant 0 : index
    %39 = vector.load %arg4[%c0_51, %c0_52] : memref<1x128xf32, #tpu.memory_space<vmem>>, vector<1x128xf32>
    %40 = vector.broadcast %39 : vector<1x128xf32> to vector<256x128xf32>
    %41 = arith.addf %38, %40 : vector<256x128xf32>
    %cst_53 = arith.constant 0.000000e+00 : f32
    %42 = vector.broadcast %cst_53 : f32 to vector<256x128xf32>
    %43 = arith.maximumf %41, %42 : vector<256x128xf32>
    %cst_54 = arith.constant 0.000000e+00 : f32
    %44 = vector.broadcast %cst_54 : f32 to vector<18x18x128xf32>
    %c0_55 = arith.constant 0 : index
    %c0_56 = arith.constant 0 : index
    %c0_57 = arith.constant 0 : index
    %45 = vector.load %arg11[%c0_55, %c0_56, %c0_57] : memref<18x18x128xf32, #tpu.memory_space<vmem>>, vector<18x18x128xf32>
    tpu.vector_store %arg11[%c0_55, %c0_56, %c0_57], %44 {strides = array<i32>} : memref<18x18x128xf32, #tpu.memory_space<vmem>>, vector<18x18x128xf32>,
    %46 = vector.shape_cast %43 : vector<256x128xf32> to vector<16x16x128xf32>
    %c1_58 = arith.constant 1 : index
    %c1_59 = arith.constant 1 : index
    %c0_60 = arith.constant 0 : index
    %47 = vector.load %arg11[%c1_58, %c1_59, %c0_60] : memref<18x18x128xf32, #tpu.memory_space<vmem>>, vector<16x16x128xf32>
    tpu.vector_store %arg11[%c1_58, %c1_59, %c0_60], %46 {strides = array<i32>} : memref<18x18x128xf32, #tpu.memory_space<vmem>>, vector<16x16x128xf32>,
    %c0_61 = arith.constant 0 : index
    %c0_62 = arith.constant 0 : index
    %c0_63 = arith.constant 0 : index
    %48 = vector.load %arg11[%c0_61, %c0_62, %c0_63] : memref<18x18x128xf32, #tpu.memory_space<vmem>>, vector<16x16x128xf32>
    %49 = vector.shape_cast %48 : vector<16x16x128xf32> to vector<256x128xf32>
    %c0_64 = arith.constant 0 : index
    %c0_65 = arith.constant 0 : index
    %50 = vector.load %arg12[%c0_64, %c0_65] : memref<256x1152xf32, #tpu.memory_space<vmem>>, vector<256x128xf32>
    tpu.vector_store %arg12[%c0_64, %c0_65], %49 {strides = array<i32>} : memref<256x1152xf32, #tpu.memory_space<vmem>>, vector<256x128xf32>,
    %c0_66 = arith.constant 0 : index
    %c1_67 = arith.constant 1 : index
    %c0_68 = arith.constant 0 : index
    %51 = vector.load %arg11[%c0_66, %c1_67, %c0_68] : memref<18x18x128xf32, #tpu.memory_space<vmem>>, vector<16x16x128xf32>
    %52 = vector.shape_cast %51 : vector<16x16x128xf32> to vector<256x128xf32>
    %c0_69 = arith.constant 0 : index
    %c128_70 = arith.constant 128 : index
    %53 = vector.load %arg12[%c0_69, %c128_70] : memref<256x1152xf32, #tpu.memory_space<vmem>>, vector<256x128xf32>
    tpu.vector_store %arg12[%c0_69, %c128_70], %52 {strides = array<i32>} : memref<256x1152xf32, #tpu.memory_space<vmem>>, vector<256x128xf32>,
    %c0_71 = arith.constant 0 : index
    %c2_72 = arith.constant 2 : index
    %c0_73 = arith.constant 0 : index
    %54 = vector.load %arg11[%c0_71, %c2_72, %c0_73] : memref<18x18x128xf32, #tpu.memory_space<vmem>>, vector<16x16x128xf32>
    %55 = vector.shape_cast %54 : vector<16x16x128xf32> to vector<256x128xf32>
    %c0_74 = arith.constant 0 : index
    %c256_75 = arith.constant 256 : index
    %56 = vector.load %arg12[%c0_74, %c256_75] : memref<256x1152xf32, #tpu.memory_space<vmem>>, vector<256x128xf32>
    tpu.vector_store %arg12[%c0_74, %c256_75], %55 {strides = array<i32>} : memref<256x1152xf32, #tpu.memory_space<vmem>>, vector<256x128xf32>,
    %c1_76 = arith.constant 1 : index
    %c0_77 = arith.constant 0 : index
    %c0_78 = arith.constant 0 : index
    %57 = vector.load %arg11[%c1_76, %c0_77, %c0_78] : memref<18x18x128xf32, #tpu.memory_space<vmem>>, vector<16x16x128xf32>
    %58 = vector.shape_cast %57 : vector<16x16x128xf32> to vector<256x128xf32>
    %c0_79 = arith.constant 0 : index
    %c384_80 = arith.constant 384 : index
    %59 = vector.load %arg12[%c0_79, %c384_80] : memref<256x1152xf32, #tpu.memory_space<vmem>>, vector<256x128xf32>
    tpu.vector_store %arg12[%c0_79, %c384_80], %58 {strides = array<i32>} : memref<256x1152xf32, #tpu.memory_space<vmem>>, vector<256x128xf32>,
    %c1_81 = arith.constant 1 : index
    %c1_82 = arith.constant 1 : index
    %c0_83 = arith.constant 0 : index
    %60 = vector.load %arg11[%c1_81, %c1_82, %c0_83] : memref<18x18x128xf32, #tpu.memory_space<vmem>>, vector<16x16x128xf32>
    %61 = vector.shape_cast %60 : vector<16x16x128xf32> to vector<256x128xf32>
    %c0_84 = arith.constant 0 : index
    %c512_85 = arith.constant 512 : index
    %62 = vector.load %arg12[%c0_84, %c512_85] : memref<256x1152xf32, #tpu.memory_space<vmem>>, vector<256x128xf32>
    tpu.vector_store %arg12[%c0_84, %c512_85], %61 {strides = array<i32>} : memref<256x1152xf32, #tpu.memory_space<vmem>>, vector<256x128xf32>,
    %c1_86 = arith.constant 1 : index
    %c2_87 = arith.constant 2 : index
    %c0_88 = arith.constant 0 : index
    %63 = vector.load %arg11[%c1_86, %c2_87, %c0_88] : memref<18x18x128xf32, #tpu.memory_space<vmem>>, vector<16x16x128xf32>
    %64 = vector.shape_cast %63 : vector<16x16x128xf32> to vector<256x128xf32>
    %c0_89 = arith.constant 0 : index
    %c640_90 = arith.constant 640 : index
    %65 = vector.load %arg12[%c0_89, %c640_90] : memref<256x1152xf32, #tpu.memory_space<vmem>>, vector<256x128xf32>
    tpu.vector_store %arg12[%c0_89, %c640_90], %64 {strides = array<i32>} : memref<256x1152xf32, #tpu.memory_space<vmem>>, vector<256x128xf32>,
    %c2_91 = arith.constant 2 : index
    %c0_92 = arith.constant 0 : index
    %c0_93 = arith.constant 0 : index
    %66 = vector.load %arg11[%c2_91, %c0_92, %c0_93] : memref<18x18x128xf32, #tpu.memory_space<vmem>>, vector<16x16x128xf32>
    %67 = vector.shape_cast %66 : vector<16x16x128xf32> to vector<256x128xf32>
    %c0_94 = arith.constant 0 : index
    %c768_95 = arith.constant 768 : index
    %68 = vector.load %arg12[%c0_94, %c768_95] : memref<256x1152xf32, #tpu.memory_space<vmem>>, vector<256x128xf32>
    tpu.vector_store %arg12[%c0_94, %c768_95], %67 {strides = array<i32>} : memref<256x1152xf32, #tpu.memory_space<vmem>>, vector<256x128xf32>,
    %c2_96 = arith.constant 2 : index
    %c1_97 = arith.constant 1 : index
    %c0_98 = arith.constant 0 : index
    %69 = vector.load %arg11[%c2_96, %c1_97, %c0_98] : memref<18x18x128xf32, #tpu.memory_space<vmem>>, vector<16x16x128xf32>
    %70 = vector.shape_cast %69 : vector<16x16x128xf32> to vector<256x128xf32>
    %c0_99 = arith.constant 0 : index
    %c896_100 = arith.constant 896 : index
    %71 = vector.load %arg12[%c0_99, %c896_100] : memref<256x1152xf32, #tpu.memory_space<vmem>>, vector<256x128xf32>
    tpu.vector_store %arg12[%c0_99, %c896_100], %70 {strides = array<i32>} : memref<256x1152xf32, #tpu.memory_space<vmem>>, vector<256x128xf32>,
    %c2_101 = arith.constant 2 : index
    %c2_102 = arith.constant 2 : index
    %c0_103 = arith.constant 0 : index
    %72 = vector.load %arg11[%c2_101, %c2_102, %c0_103] : memref<18x18x128xf32, #tpu.memory_space<vmem>>, vector<16x16x128xf32>
    %73 = vector.shape_cast %72 : vector<16x16x128xf32> to vector<256x128xf32>
    %c0_104 = arith.constant 0 : index
    %c1024_105 = arith.constant 1024 : index
    %74 = vector.load %arg12[%c0_104, %c1024_105] : memref<256x1152xf32, #tpu.memory_space<vmem>>, vector<256x128xf32>
    tpu.vector_store %arg12[%c0_104, %c1024_105], %73 {strides = array<i32>} : memref<256x1152xf32, #tpu.memory_space<vmem>>, vector<256x128xf32>,
    %c0_106 = arith.constant 0 : index
    %c0_107 = arith.constant 0 : index
    %75 = vector.load %arg12[%c0_106, %c0_107] : memref<256x1152xf32, #tpu.memory_space<vmem>>, vector<256x1152xf32>
    %76 = arith.truncf %75 : vector<256x1152xf32> to vector<256x1152xbf16>
    %c0_108 = arith.constant 0 : index
    %c0_109 = arith.constant 0 : index
    %77 = vector.load %arg5[%c0_108, %c0_109] : memref<1152x128xbf16, #tpu.memory_space<vmem>>, vector<1152x128xbf16>
    %cst_110 = arith.constant dense<0.000000e+00> : vector<256x128xf32>
    %78 = tpu.matmul %76, %77, %cst_110 {dimension_numbers = #tpu.dot_dimension_numbers<[1], [0], [0], [1], [0, 0, 1, 1], [], []>} : vector<256x1152xbf16>, vector<1152x128xbf16>, vector<256x128xf32> -> vector<256x128xf32>
    %c0_111 = arith.constant 0 : index
    %c0_112 = arith.constant 0 : index
    %79 = vector.load %arg6[%c0_111, %c0_112] : memref<1x128xf32, #tpu.memory_space<vmem>>, vector<1x128xf32>
    %80 = vector.broadcast %79 : vector<1x128xf32> to vector<256x128xf32>
    %81 = arith.mulf %78, %80 : vector<256x128xf32>
    %c0_113 = arith.constant 0 : index
    %c0_114 = arith.constant 0 : index
    %82 = vector.load %arg7[%c0_113, %c0_114] : memref<1x128xf32, #tpu.memory_space<vmem>>, vector<1x128xf32>
    %83 = vector.broadcast %82 : vector<1x128xf32> to vector<256x128xf32>
    %84 = arith.addf %81, %83 : vector<256x128xf32>
    %c0_115 = arith.constant 0 : index
    %c0_116 = arith.constant 0 : index
    %c0_117 = arith.constant 0 : index
    %c0_118 = arith.constant 0 : index
    %85 = vector.load %arg1[%c0_115, %c0_116, %c0_117, %c0_118] : memref<1x16x16x128xf32, #tpu.memory_space<vmem>>, vector<1x16x16x128xf32>
    %86 = vector.shape_cast %85 : vector<1x16x16x128xf32> to vector<256x128xf32>
    %87 = arith.addf %84, %86 : vector<256x128xf32>
    %cst_119 = arith.constant 0.000000e+00 : f32
    %88 = vector.broadcast %cst_119 : f32 to vector<256x128xf32>
    %89 = arith.maximumf %87, %88 : vector<256x128xf32>
    %90 = vector.shape_cast %89 : vector<256x128xf32> to vector<1x16x16x128xf32>
    %c0_120 = arith.constant 0 : index
    %c0_121 = arith.constant 0 : index
    %c0_122 = arith.constant 0 : index
    %c0_123 = arith.constant 0 : index
    %91 = vector.load %arg8[%c0_120, %c0_121, %c0_122, %c0_123] : memref<1x16x16x128xf32, #tpu.memory_space<vmem>>, vector<1x16x16x128xf32>
    tpu.vector_store %arg8[%c0_120, %c0_121, %c0_122, %c0_123], %90 {strides = array<i32>} : memref<1x16x16x128xf32, #tpu.memory_space<vmem>>, vector<1x16x16x128xf32>,
    return
  }
  func.func @transform_0(%arg0: i32) -> (i32, i32, i32, i32) {
    %c0_i32 = arith.constant 0 : i32
    %c0_i32_0 = arith.constant 0 : i32
    %c0_i32_1 = arith.constant 0 : i32
    %c0_i32_2 = arith.constant 0 : i32
    return %arg0, %c0_i32, %c0_i32_0, %c0_i32_1 : i32, i32, i32, i32
  }
  func.func @transform_1(%arg0: i32) -> (i32, i32) {
    %c0_i32 = arith.constant 0 : i32
    %c0_i32_0 = arith.constant 0 : i32
    %c0_i32_1 = arith.constant 0 : i32
    return %c0_i32, %c0_i32_0 : i32, i32
  }
  func.func @transform_2(%arg0: i32) -> (i32, i32) {
    %c0_i32 = arith.constant 0 : i32
    %c0_i32_0 = arith.constant 0 : i32
    %c0_i32_1 = arith.constant 0 : i32
    return %c0_i32, %c0_i32_0 : i32, i32
  }
  func.func @transform_3(%arg0: i32) -> (i32, i32) {
    %c0_i32 = arith.constant 0 : i32
    %c0_i32_0 = arith.constant 0 : i32
    %c0_i32_1 = arith.constant 0 : i32
    return %c0_i32, %c0_i32_0 : i32, i32
  }
  func.func @transform_4(%arg0: i32) -> (i32, i32) {
    %c0_i32 = arith.constant 0 : i32
    %c0_i32_0 = arith.constant 0 : i32
    %c0_i32_1 = arith.constant 0 : i32
    return %c0_i32, %c0_i32_0 : i32, i32
  }
  func.func @transform_5(%arg0: i32) -> (i32, i32) {
    %c0_i32 = arith.constant 0 : i32
    %c0_i32_0 = arith.constant 0 : i32
    %c0_i32_1 = arith.constant 0 : i32
    return %c0_i32, %c0_i32_0 : i32, i32
  }
  func.func @transform_6(%arg0: i32) -> (i32, i32) {
    %c0_i32 = arith.constant 0 : i32
    %c0_i32_0 = arith.constant 0 : i32
    %c0_i32_1 = arith.constant 0 : i32
    return %c0_i32, %c0_i32_0 : i32, i32
  }
  func.func @transform_7(%arg0: i32) -> (i32, i32, i32, i32) {
    %c0_i32 = arith.constant 0 : i32
    %c0_i32_0 = arith.constant 0 : i32
    %c0_i32_1 = arith.constant 0 : i32
    %c0_i32_2 = arith.constant 0 : i32
    return %arg0, %c0_i32, %c0_i32_0, %c0_i32_1 : i32, i32, i32, i32
  }
}

module attributes {stable_mosaic.version = 11 : i64} {
  func.func @_basic_block_kernel(%arg0: i32, %arg1: memref<1x16x16x64xf32, #tpu.memory_space<vmem>>, %arg2: memref<576x128xbf16, #tpu.memory_space<vmem>>, %arg3: memref<1x128xf32, #tpu.memory_space<vmem>>, %arg4: memref<1x128xf32, #tpu.memory_space<vmem>>, %arg5: memref<1152x128xbf16, #tpu.memory_space<vmem>>, %arg6: memref<1x128xf32, #tpu.memory_space<vmem>>, %arg7: memref<1x128xf32, #tpu.memory_space<vmem>>, %arg8: memref<64x128xbf16, #tpu.memory_space<vmem>>, %arg9: memref<1x128xf32, #tpu.memory_space<vmem>>, %arg10: memref<1x128xf32, #tpu.memory_space<vmem>>, %arg11: memref<1x16x16x128xf32, #tpu.memory_space<vmem>>, %arg12: memref<18x18x64xf32, #tpu.memory_space<vmem>>, %arg13: memref<256x576xf32, #tpu.memory_space<vmem>>, %arg14: memref<18x18x128xf32, #tpu.memory_space<vmem>>, %arg15: memref<256x1152xf32, #tpu.memory_space<vmem>>) attributes {dimension_semantics = [#tpu.dimension_semantics<parallel>], iteration_bounds = array<i64: 2>, scalar_prefetch = 0 : i64, scratch_operands = 4 : i64, tpu.core_type = #tpu.core_type<tc>, window_params = [{transform_indices = @transform_0, window_bounds = array<i64: 1, 16, 16, 64>}, {pipeline_mode = #tpu.pipeline_mode<synchronous>, transform_indices = @transform_1, window_bounds = array<i64: 576, 128>}, {pipeline_mode = #tpu.pipeline_mode<synchronous>, transform_indices = @transform_2, window_bounds = array<i64: 1, 128>}, {pipeline_mode = #tpu.pipeline_mode<synchronous>, transform_indices = @transform_3, window_bounds = array<i64: 1, 128>}, {pipeline_mode = #tpu.pipeline_mode<synchronous>, transform_indices = @transform_4, window_bounds = array<i64: 1152, 128>}, {pipeline_mode = #tpu.pipeline_mode<synchronous>, transform_indices = @transform_5, window_bounds = array<i64: 1, 128>}, {pipeline_mode = #tpu.pipeline_mode<synchronous>, transform_indices = @transform_6, window_bounds = array<i64: 1, 128>}, {pipeline_mode = #tpu.pipeline_mode<synchronous>, transform_indices = @transform_7, window_bounds = array<i64: 64, 128>}, {pipeline_mode = #tpu.pipeline_mode<synchronous>, transform_indices = @transform_8, window_bounds = array<i64: 1, 128>}, {pipeline_mode = #tpu.pipeline_mode<synchronous>, transform_indices = @transform_9, window_bounds = array<i64: 1, 128>}, {transform_indices = @transform_10, window_bounds = array<i64: 1, 16, 16, 128>}]} {
    %cst = arith.constant 0.000000e+00 : f32
    %0 = vector.broadcast %cst : f32 to vector<18x18x64xf32>
    %c0 = arith.constant 0 : index
    %c0_0 = arith.constant 0 : index
    %c0_1 = arith.constant 0 : index
    %1 = vector.load %arg12[%c0, %c0_0, %c0_1] : memref<18x18x64xf32, #tpu.memory_space<vmem>>, vector<18x18x64xf32>
    tpu.vector_store %arg12[%c0, %c0_0, %c0_1], %0 {strides = array<i32>} : memref<18x18x64xf32, #tpu.memory_space<vmem>>, vector<18x18x64xf32>,
    %c0_2 = arith.constant 0 : index
    %c0_3 = arith.constant 0 : index
    %c0_4 = arith.constant 0 : index
    %c0_5 = arith.constant 0 : index
    %2 = vector.load %arg1[%c0_2, %c0_3, %c0_4, %c0_5] : memref<1x16x16x64xf32, #tpu.memory_space<vmem>>, vector<1x16x16x64xf32>
    %3 = vector.shape_cast %2 : vector<1x16x16x64xf32> to vector<16x16x64xf32>
    %c1 = arith.constant 1 : index
    %c1_6 = arith.constant 1 : index
    %c0_7 = arith.constant 0 : index
    %4 = vector.load %arg12[%c1, %c1_6, %c0_7] : memref<18x18x64xf32, #tpu.memory_space<vmem>>, vector<16x16x64xf32>
    tpu.vector_store %arg12[%c1, %c1_6, %c0_7], %3 {strides = array<i32>} : memref<18x18x64xf32, #tpu.memory_space<vmem>>, vector<16x16x64xf32>,
    %c0_8 = arith.constant 0 : index
    %c0_9 = arith.constant 0 : index
    %c0_10 = arith.constant 0 : index
    %5 = vector.load %arg12[%c0_8, %c0_9, %c0_10] : memref<18x18x64xf32, #tpu.memory_space<vmem>>, vector<16x16x64xf32>
    %6 = vector.shape_cast %5 : vector<16x16x64xf32> to vector<256x64xf32>
    %c0_11 = arith.constant 0 : index
    %c0_12 = arith.constant 0 : index
    %7 = vector.load %arg13[%c0_11, %c0_12] : memref<256x576xf32, #tpu.memory_space<vmem>>, vector<256x64xf32>
    tpu.vector_store %arg13[%c0_11, %c0_12], %6 {strides = array<i32>} : memref<256x576xf32, #tpu.memory_space<vmem>>, vector<256x64xf32>,
    %c0_13 = arith.constant 0 : index
    %c1_14 = arith.constant 1 : index
    %c0_15 = arith.constant 0 : index
    %8 = vector.load %arg12[%c0_13, %c1_14, %c0_15] : memref<18x18x64xf32, #tpu.memory_space<vmem>>, vector<16x16x64xf32>
    %9 = vector.shape_cast %8 : vector<16x16x64xf32> to vector<256x64xf32>
    %c0_16 = arith.constant 0 : index
    %c64 = arith.constant 64 : index
    %10 = vector.load %arg13[%c0_16, %c64] : memref<256x576xf32, #tpu.memory_space<vmem>>, vector<256x64xf32>
    tpu.vector_store %arg13[%c0_16, %c64], %9 {strides = array<i32>} : memref<256x576xf32, #tpu.memory_space<vmem>>, vector<256x64xf32>,
    %c0_17 = arith.constant 0 : index
    %c2 = arith.constant 2 : index
    %c0_18 = arith.constant 0 : index
    %11 = vector.load %arg12[%c0_17, %c2, %c0_18] : memref<18x18x64xf32, #tpu.memory_space<vmem>>, vector<16x16x64xf32>
    %12 = vector.shape_cast %11 : vector<16x16x64xf32> to vector<256x64xf32>
    %c0_19 = arith.constant 0 : index
    %c128 = arith.constant 128 : index
    %13 = vector.load %arg13[%c0_19, %c128] : memref<256x576xf32, #tpu.memory_space<vmem>>, vector<256x64xf32>
    tpu.vector_store %arg13[%c0_19, %c128], %12 {strides = array<i32>} : memref<256x576xf32, #tpu.memory_space<vmem>>, vector<256x64xf32>,
    %c1_20 = arith.constant 1 : index
    %c0_21 = arith.constant 0 : index
    %c0_22 = arith.constant 0 : index
    %14 = vector.load %arg12[%c1_20, %c0_21, %c0_22] : memref<18x18x64xf32, #tpu.memory_space<vmem>>, vector<16x16x64xf32>
    %15 = vector.shape_cast %14 : vector<16x16x64xf32> to vector<256x64xf32>
    %c0_23 = arith.constant 0 : index
    %c192 = arith.constant 192 : index
    %16 = vector.load %arg13[%c0_23, %c192] : memref<256x576xf32, #tpu.memory_space<vmem>>, vector<256x64xf32>
    tpu.vector_store %arg13[%c0_23, %c192], %15 {strides = array<i32>} : memref<256x576xf32, #tpu.memory_space<vmem>>, vector<256x64xf32>,
    %c1_24 = arith.constant 1 : index
    %c1_25 = arith.constant 1 : index
    %c0_26 = arith.constant 0 : index
    %17 = vector.load %arg12[%c1_24, %c1_25, %c0_26] : memref<18x18x64xf32, #tpu.memory_space<vmem>>, vector<16x16x64xf32>
    %18 = vector.shape_cast %17 : vector<16x16x64xf32> to vector<256x64xf32>
    %c0_27 = arith.constant 0 : index
    %c256 = arith.constant 256 : index
    %19 = vector.load %arg13[%c0_27, %c256] : memref<256x576xf32, #tpu.memory_space<vmem>>, vector<256x64xf32>
    tpu.vector_store %arg13[%c0_27, %c256], %18 {strides = array<i32>} : memref<256x576xf32, #tpu.memory_space<vmem>>, vector<256x64xf32>,
    %c1_28 = arith.constant 1 : index
    %c2_29 = arith.constant 2 : index
    %c0_30 = arith.constant 0 : index
    %20 = vector.load %arg12[%c1_28, %c2_29, %c0_30] : memref<18x18x64xf32, #tpu.memory_space<vmem>>, vector<16x16x64xf32>
    %21 = vector.shape_cast %20 : vector<16x16x64xf32> to vector<256x64xf32>
    %c0_31 = arith.constant 0 : index
    %c320 = arith.constant 320 : index
    %22 = vector.load %arg13[%c0_31, %c320] : memref<256x576xf32, #tpu.memory_space<vmem>>, vector<256x64xf32>
    tpu.vector_store %arg13[%c0_31, %c320], %21 {strides = array<i32>} : memref<256x576xf32, #tpu.memory_space<vmem>>, vector<256x64xf32>,
    %c2_32 = arith.constant 2 : index
    %c0_33 = arith.constant 0 : index
    %c0_34 = arith.constant 0 : index
    %23 = vector.load %arg12[%c2_32, %c0_33, %c0_34] : memref<18x18x64xf32, #tpu.memory_space<vmem>>, vector<16x16x64xf32>
    %24 = vector.shape_cast %23 : vector<16x16x64xf32> to vector<256x64xf32>
    %c0_35 = arith.constant 0 : index
    %c384 = arith.constant 384 : index
    %25 = vector.load %arg13[%c0_35, %c384] : memref<256x576xf32, #tpu.memory_space<vmem>>, vector<256x64xf32>
    tpu.vector_store %arg13[%c0_35, %c384], %24 {strides = array<i32>} : memref<256x576xf32, #tpu.memory_space<vmem>>, vector<256x64xf32>,
    %c2_36 = arith.constant 2 : index
    %c1_37 = arith.constant 1 : index
    %c0_38 = arith.constant 0 : index
    %26 = vector.load %arg12[%c2_36, %c1_37, %c0_38] : memref<18x18x64xf32, #tpu.memory_space<vmem>>, vector<16x16x64xf32>
    %27 = vector.shape_cast %26 : vector<16x16x64xf32> to vector<256x64xf32>
    %c0_39 = arith.constant 0 : index
    %c448 = arith.constant 448 : index
    %28 = vector.load %arg13[%c0_39, %c448] : memref<256x576xf32, #tpu.memory_space<vmem>>, vector<256x64xf32>
    tpu.vector_store %arg13[%c0_39, %c448], %27 {strides = array<i32>} : memref<256x576xf32, #tpu.memory_space<vmem>>, vector<256x64xf32>,
    %c2_40 = arith.constant 2 : index
    %c2_41 = arith.constant 2 : index
    %c0_42 = arith.constant 0 : index
    %29 = vector.load %arg12[%c2_40, %c2_41, %c0_42] : memref<18x18x64xf32, #tpu.memory_space<vmem>>, vector<16x16x64xf32>
    %30 = vector.shape_cast %29 : vector<16x16x64xf32> to vector<256x64xf32>
    %c0_43 = arith.constant 0 : index
    %c512 = arith.constant 512 : index
    %31 = vector.load %arg13[%c0_43, %c512] : memref<256x576xf32, #tpu.memory_space<vmem>>, vector<256x64xf32>
    tpu.vector_store %arg13[%c0_43, %c512], %30 {strides = array<i32>} : memref<256x576xf32, #tpu.memory_space<vmem>>, vector<256x64xf32>,
    %c0_44 = arith.constant 0 : index
    %c0_45 = arith.constant 0 : index
    %32 = vector.load %arg13[%c0_44, %c0_45] : memref<256x576xf32, #tpu.memory_space<vmem>>, vector<256x576xf32>
    %33 = arith.truncf %32 : vector<256x576xf32> to vector<256x576xbf16>
    %c0_46 = arith.constant 0 : index
    %c0_47 = arith.constant 0 : index
    %34 = vector.load %arg2[%c0_46, %c0_47] : memref<576x128xbf16, #tpu.memory_space<vmem>>, vector<576x128xbf16>
    %cst_48 = arith.constant dense<0.000000e+00> : vector<256x128xf32>
    %35 = tpu.matmul %33, %34, %cst_48 {dimension_numbers = #tpu.dot_dimension_numbers<[1], [0], [0], [1], [0, 0, 1, 1], [], []>} : vector<256x576xbf16>, vector<576x128xbf16>, vector<256x128xf32> -> vector<256x128xf32>
    %c0_49 = arith.constant 0 : index
    %c0_50 = arith.constant 0 : index
    %36 = vector.load %arg3[%c0_49, %c0_50] : memref<1x128xf32, #tpu.memory_space<vmem>>, vector<1x128xf32>
    %37 = vector.broadcast %36 : vector<1x128xf32> to vector<256x128xf32>
    %38 = arith.mulf %35, %37 : vector<256x128xf32>
    %c0_51 = arith.constant 0 : index
    %c0_52 = arith.constant 0 : index
    %39 = vector.load %arg4[%c0_51, %c0_52] : memref<1x128xf32, #tpu.memory_space<vmem>>, vector<1x128xf32>
    %40 = vector.broadcast %39 : vector<1x128xf32> to vector<256x128xf32>
    %41 = arith.addf %38, %40 : vector<256x128xf32>
    %cst_53 = arith.constant 0.000000e+00 : f32
    %42 = vector.broadcast %cst_53 : f32 to vector<256x128xf32>
    %43 = arith.maximumf %41, %42 : vector<256x128xf32>
    %cst_54 = arith.constant 0.000000e+00 : f32
    %44 = vector.broadcast %cst_54 : f32 to vector<18x18x128xf32>
    %c0_55 = arith.constant 0 : index
    %c0_56 = arith.constant 0 : index
    %c0_57 = arith.constant 0 : index
    %45 = vector.load %arg14[%c0_55, %c0_56, %c0_57] : memref<18x18x128xf32, #tpu.memory_space<vmem>>, vector<18x18x128xf32>
    tpu.vector_store %arg14[%c0_55, %c0_56, %c0_57], %44 {strides = array<i32>} : memref<18x18x128xf32, #tpu.memory_space<vmem>>, vector<18x18x128xf32>,
    %46 = vector.shape_cast %43 : vector<256x128xf32> to vector<16x16x128xf32>
    %c1_58 = arith.constant 1 : index
    %c1_59 = arith.constant 1 : index
    %c0_60 = arith.constant 0 : index
    %47 = vector.load %arg14[%c1_58, %c1_59, %c0_60] : memref<18x18x128xf32, #tpu.memory_space<vmem>>, vector<16x16x128xf32>
    tpu.vector_store %arg14[%c1_58, %c1_59, %c0_60], %46 {strides = array<i32>} : memref<18x18x128xf32, #tpu.memory_space<vmem>>, vector<16x16x128xf32>,
    %c0_61 = arith.constant 0 : index
    %c0_62 = arith.constant 0 : index
    %c0_63 = arith.constant 0 : index
    %48 = vector.load %arg14[%c0_61, %c0_62, %c0_63] : memref<18x18x128xf32, #tpu.memory_space<vmem>>, vector<16x16x128xf32>
    %49 = vector.shape_cast %48 : vector<16x16x128xf32> to vector<256x128xf32>
    %c0_64 = arith.constant 0 : index
    %c0_65 = arith.constant 0 : index
    %50 = vector.load %arg15[%c0_64, %c0_65] : memref<256x1152xf32, #tpu.memory_space<vmem>>, vector<256x128xf32>
    tpu.vector_store %arg15[%c0_64, %c0_65], %49 {strides = array<i32>} : memref<256x1152xf32, #tpu.memory_space<vmem>>, vector<256x128xf32>,
    %c0_66 = arith.constant 0 : index
    %c1_67 = arith.constant 1 : index
    %c0_68 = arith.constant 0 : index
    %51 = vector.load %arg14[%c0_66, %c1_67, %c0_68] : memref<18x18x128xf32, #tpu.memory_space<vmem>>, vector<16x16x128xf32>
    %52 = vector.shape_cast %51 : vector<16x16x128xf32> to vector<256x128xf32>
    %c0_69 = arith.constant 0 : index
    %c128_70 = arith.constant 128 : index
    %53 = vector.load %arg15[%c0_69, %c128_70] : memref<256x1152xf32, #tpu.memory_space<vmem>>, vector<256x128xf32>
    tpu.vector_store %arg15[%c0_69, %c128_70], %52 {strides = array<i32>} : memref<256x1152xf32, #tpu.memory_space<vmem>>, vector<256x128xf32>,
    %c0_71 = arith.constant 0 : index
    %c2_72 = arith.constant 2 : index
    %c0_73 = arith.constant 0 : index
    %54 = vector.load %arg14[%c0_71, %c2_72, %c0_73] : memref<18x18x128xf32, #tpu.memory_space<vmem>>, vector<16x16x128xf32>
    %55 = vector.shape_cast %54 : vector<16x16x128xf32> to vector<256x128xf32>
    %c0_74 = arith.constant 0 : index
    %c256_75 = arith.constant 256 : index
    %56 = vector.load %arg15[%c0_74, %c256_75] : memref<256x1152xf32, #tpu.memory_space<vmem>>, vector<256x128xf32>
    tpu.vector_store %arg15[%c0_74, %c256_75], %55 {strides = array<i32>} : memref<256x1152xf32, #tpu.memory_space<vmem>>, vector<256x128xf32>,
    %c1_76 = arith.constant 1 : index
    %c0_77 = arith.constant 0 : index
    %c0_78 = arith.constant 0 : index
    %57 = vector.load %arg14[%c1_76, %c0_77, %c0_78] : memref<18x18x128xf32, #tpu.memory_space<vmem>>, vector<16x16x128xf32>
    %58 = vector.shape_cast %57 : vector<16x16x128xf32> to vector<256x128xf32>
    %c0_79 = arith.constant 0 : index
    %c384_80 = arith.constant 384 : index
    %59 = vector.load %arg15[%c0_79, %c384_80] : memref<256x1152xf32, #tpu.memory_space<vmem>>, vector<256x128xf32>
    tpu.vector_store %arg15[%c0_79, %c384_80], %58 {strides = array<i32>} : memref<256x1152xf32, #tpu.memory_space<vmem>>, vector<256x128xf32>,
    %c1_81 = arith.constant 1 : index
    %c1_82 = arith.constant 1 : index
    %c0_83 = arith.constant 0 : index
    %60 = vector.load %arg14[%c1_81, %c1_82, %c0_83] : memref<18x18x128xf32, #tpu.memory_space<vmem>>, vector<16x16x128xf32>
    %61 = vector.shape_cast %60 : vector<16x16x128xf32> to vector<256x128xf32>
    %c0_84 = arith.constant 0 : index
    %c512_85 = arith.constant 512 : index
    %62 = vector.load %arg15[%c0_84, %c512_85] : memref<256x1152xf32, #tpu.memory_space<vmem>>, vector<256x128xf32>
    tpu.vector_store %arg15[%c0_84, %c512_85], %61 {strides = array<i32>} : memref<256x1152xf32, #tpu.memory_space<vmem>>, vector<256x128xf32>,
    %c1_86 = arith.constant 1 : index
    %c2_87 = arith.constant 2 : index
    %c0_88 = arith.constant 0 : index
    %63 = vector.load %arg14[%c1_86, %c2_87, %c0_88] : memref<18x18x128xf32, #tpu.memory_space<vmem>>, vector<16x16x128xf32>
    %64 = vector.shape_cast %63 : vector<16x16x128xf32> to vector<256x128xf32>
    %c0_89 = arith.constant 0 : index
    %c640 = arith.constant 640 : index
    %65 = vector.load %arg15[%c0_89, %c640] : memref<256x1152xf32, #tpu.memory_space<vmem>>, vector<256x128xf32>
    tpu.vector_store %arg15[%c0_89, %c640], %64 {strides = array<i32>} : memref<256x1152xf32, #tpu.memory_space<vmem>>, vector<256x128xf32>,
    %c2_90 = arith.constant 2 : index
    %c0_91 = arith.constant 0 : index
    %c0_92 = arith.constant 0 : index
    %66 = vector.load %arg14[%c2_90, %c0_91, %c0_92] : memref<18x18x128xf32, #tpu.memory_space<vmem>>, vector<16x16x128xf32>
    %67 = vector.shape_cast %66 : vector<16x16x128xf32> to vector<256x128xf32>
    %c0_93 = arith.constant 0 : index
    %c768 = arith.constant 768 : index
    %68 = vector.load %arg15[%c0_93, %c768] : memref<256x1152xf32, #tpu.memory_space<vmem>>, vector<256x128xf32>
    tpu.vector_store %arg15[%c0_93, %c768], %67 {strides = array<i32>} : memref<256x1152xf32, #tpu.memory_space<vmem>>, vector<256x128xf32>,
    %c2_94 = arith.constant 2 : index
    %c1_95 = arith.constant 1 : index
    %c0_96 = arith.constant 0 : index
    %69 = vector.load %arg14[%c2_94, %c1_95, %c0_96] : memref<18x18x128xf32, #tpu.memory_space<vmem>>, vector<16x16x128xf32>
    %70 = vector.shape_cast %69 : vector<16x16x128xf32> to vector<256x128xf32>
    %c0_97 = arith.constant 0 : index
    %c896 = arith.constant 896 : index
    %71 = vector.load %arg15[%c0_97, %c896] : memref<256x1152xf32, #tpu.memory_space<vmem>>, vector<256x128xf32>
    tpu.vector_store %arg15[%c0_97, %c896], %70 {strides = array<i32>} : memref<256x1152xf32, #tpu.memory_space<vmem>>, vector<256x128xf32>,
    %c2_98 = arith.constant 2 : index
    %c2_99 = arith.constant 2 : index
    %c0_100 = arith.constant 0 : index
    %72 = vector.load %arg14[%c2_98, %c2_99, %c0_100] : memref<18x18x128xf32, #tpu.memory_space<vmem>>, vector<16x16x128xf32>
    %73 = vector.shape_cast %72 : vector<16x16x128xf32> to vector<256x128xf32>
    %c0_101 = arith.constant 0 : index
    %c1024 = arith.constant 1024 : index
    %74 = vector.load %arg15[%c0_101, %c1024] : memref<256x1152xf32, #tpu.memory_space<vmem>>, vector<256x128xf32>
    tpu.vector_store %arg15[%c0_101, %c1024], %73 {strides = array<i32>} : memref<256x1152xf32, #tpu.memory_space<vmem>>, vector<256x128xf32>,
    %c0_102 = arith.constant 0 : index
    %c0_103 = arith.constant 0 : index
    %75 = vector.load %arg15[%c0_102, %c0_103] : memref<256x1152xf32, #tpu.memory_space<vmem>>, vector<256x1152xf32>
    %76 = arith.truncf %75 : vector<256x1152xf32> to vector<256x1152xbf16>
    %c0_104 = arith.constant 0 : index
    %c0_105 = arith.constant 0 : index
    %77 = vector.load %arg5[%c0_104, %c0_105] : memref<1152x128xbf16, #tpu.memory_space<vmem>>, vector<1152x128xbf16>
    %cst_106 = arith.constant dense<0.000000e+00> : vector<256x128xf32>
    %78 = tpu.matmul %76, %77, %cst_106 {dimension_numbers = #tpu.dot_dimension_numbers<[1], [0], [0], [1], [0, 0, 1, 1], [], []>} : vector<256x1152xbf16>, vector<1152x128xbf16>, vector<256x128xf32> -> vector<256x128xf32>
    %c0_107 = arith.constant 0 : index
    %c0_108 = arith.constant 0 : index
    %79 = vector.load %arg6[%c0_107, %c0_108] : memref<1x128xf32, #tpu.memory_space<vmem>>, vector<1x128xf32>
    %80 = vector.broadcast %79 : vector<1x128xf32> to vector<256x128xf32>
    %81 = arith.mulf %78, %80 : vector<256x128xf32>
    %c0_109 = arith.constant 0 : index
    %c0_110 = arith.constant 0 : index
    %82 = vector.load %arg7[%c0_109, %c0_110] : memref<1x128xf32, #tpu.memory_space<vmem>>, vector<1x128xf32>
    %83 = vector.broadcast %82 : vector<1x128xf32> to vector<256x128xf32>
    %84 = arith.addf %81, %83 : vector<256x128xf32>
    %c0_111 = arith.constant 0 : index
    %c0_112 = arith.constant 0 : index
    %c0_113 = arith.constant 0 : index
    %c0_114 = arith.constant 0 : index
    %85 = vector.load %arg1[%c0_111, %c0_112, %c0_113, %c0_114] : memref<1x16x16x64xf32, #tpu.memory_space<vmem>>, vector<1x16x16x64xf32>
    %86 = vector.shape_cast %85 : vector<1x16x16x64xf32> to vector<256x64xf32>
    %87 = arith.truncf %86 : vector<256x64xf32> to vector<256x64xbf16>
    %c0_115 = arith.constant 0 : index
    %c0_116 = arith.constant 0 : index
    %88 = vector.load %arg8[%c0_115, %c0_116] : memref<64x128xbf16, #tpu.memory_space<vmem>>, vector<64x128xbf16>
    %cst_117 = arith.constant dense<0.000000e+00> : vector<256x128xf32>
    %89 = tpu.matmul %87, %88, %cst_117 {dimension_numbers = #tpu.dot_dimension_numbers<[1], [0], [0], [1], [0, 0, 1, 1], [], []>} : vector<256x64xbf16>, vector<64x128xbf16>, vector<256x128xf32> -> vector<256x128xf32>
    %c0_118 = arith.constant 0 : index
    %c0_119 = arith.constant 0 : index
    %90 = vector.load %arg9[%c0_118, %c0_119] : memref<1x128xf32, #tpu.memory_space<vmem>>, vector<1x128xf32>
    %91 = vector.broadcast %90 : vector<1x128xf32> to vector<256x128xf32>
    %92 = arith.mulf %89, %91 : vector<256x128xf32>
    %c0_120 = arith.constant 0 : index
    %c0_121 = arith.constant 0 : index
    %93 = vector.load %arg10[%c0_120, %c0_121] : memref<1x128xf32, #tpu.memory_space<vmem>>, vector<1x128xf32>
    %94 = vector.broadcast %93 : vector<1x128xf32> to vector<256x128xf32>
    %95 = arith.addf %92, %94 : vector<256x128xf32>
    %96 = arith.addf %84, %95 : vector<256x128xf32>
    %cst_122 = arith.constant 0.000000e+00 : f32
    %97 = vector.broadcast %cst_122 : f32 to vector<256x128xf32>
    %98 = arith.maximumf %96, %97 : vector<256x128xf32>
    %99 = vector.shape_cast %98 : vector<256x128xf32> to vector<1x16x16x128xf32>
    %c0_123 = arith.constant 0 : index
    %c0_124 = arith.constant 0 : index
    %c0_125 = arith.constant 0 : index
    %c0_126 = arith.constant 0 : index
    %100 = vector.load %arg11[%c0_123, %c0_124, %c0_125, %c0_126] : memref<1x16x16x128xf32, #tpu.memory_space<vmem>>, vector<1x16x16x128xf32>
    tpu.vector_store %arg11[%c0_123, %c0_124, %c0_125, %c0_126], %99 {strides = array<i32>} : memref<1x16x16x128xf32, #tpu.memory_space<vmem>>, vector<1x16x16x128xf32>,
    return
  }
  func.func @transform_0(%arg0: i32) -> (i32, i32, i32, i32) {
    %c0_i32 = arith.constant 0 : i32
    %c0_i32_0 = arith.constant 0 : i32
    %c0_i32_1 = arith.constant 0 : i32
    %c0_i32_2 = arith.constant 0 : i32
    return %arg0, %c0_i32, %c0_i32_0, %c0_i32_1 : i32, i32, i32, i32
  }
  func.func @transform_1(%arg0: i32) -> (i32, i32) {
    %c0_i32 = arith.constant 0 : i32
    %c0_i32_0 = arith.constant 0 : i32
    %c0_i32_1 = arith.constant 0 : i32
    return %c0_i32, %c0_i32_0 : i32, i32
  }
  func.func @transform_2(%arg0: i32) -> (i32, i32) {
    %c0_i32 = arith.constant 0 : i32
    %c0_i32_0 = arith.constant 0 : i32
    %c0_i32_1 = arith.constant 0 : i32
    return %c0_i32, %c0_i32_0 : i32, i32
  }
  func.func @transform_3(%arg0: i32) -> (i32, i32) {
    %c0_i32 = arith.constant 0 : i32
    %c0_i32_0 = arith.constant 0 : i32
    %c0_i32_1 = arith.constant 0 : i32
    return %c0_i32, %c0_i32_0 : i32, i32
  }
  func.func @transform_4(%arg0: i32) -> (i32, i32) {
    %c0_i32 = arith.constant 0 : i32
    %c0_i32_0 = arith.constant 0 : i32
    %c0_i32_1 = arith.constant 0 : i32
    return %c0_i32, %c0_i32_0 : i32, i32
  }
  func.func @transform_5(%arg0: i32) -> (i32, i32) {
    %c0_i32 = arith.constant 0 : i32
    %c0_i32_0 = arith.constant 0 : i32
    %c0_i32_1 = arith.constant 0 : i32
    return %c0_i32, %c0_i32_0 : i32, i32
  }
  func.func @transform_6(%arg0: i32) -> (i32, i32) {
    %c0_i32 = arith.constant 0 : i32
    %c0_i32_0 = arith.constant 0 : i32
    %c0_i32_1 = arith.constant 0 : i32
    return %c0_i32, %c0_i32_0 : i32, i32
  }
  func.func @transform_7(%arg0: i32) -> (i32, i32) {
    %c0_i32 = arith.constant 0 : i32
    %c0_i32_0 = arith.constant 0 : i32
    %c0_i32_1 = arith.constant 0 : i32
    return %c0_i32, %c0_i32_0 : i32, i32
  }
  func.func @transform_8(%arg0: i32) -> (i32, i32) {
    %c0_i32 = arith.constant 0 : i32
    %c0_i32_0 = arith.constant 0 : i32
    %c0_i32_1 = arith.constant 0 : i32
    return %c0_i32, %c0_i32_0 : i32, i32
  }
  func.func @transform_9(%arg0: i32) -> (i32, i32) {
    %c0_i32 = arith.constant 0 : i32
    %c0_i32_0 = arith.constant 0 : i32
    %c0_i32_1 = arith.constant 0 : i32
    return %c0_i32, %c0_i32_0 : i32, i32
  }
  func.func @transform_10(%arg0: i32) -> (i32, i32, i32, i32) {
    %c0_i32 = arith.constant 0 : i32
    %c0_i32_0 = arith.constant 0 : i32
    %c0_i32_1 = arith.constant 0 : i32
    %c0_i32_2 = arith.constant 0 : i32
    return %arg0, %c0_i32, %c0_i32_0, %c0_i32_1 : i32, i32, i32, i32
  }
}

</mosaic_0001>

<bundles_post_ra>
// kernel: _lambda_.2
= control target key start
LH: loop header
LB: loop body
LE: loop exit
PB: predicated region body
PF: predicated region fallthrough
CT: control target
= control target key end

     0   :  { %15 = vsyncpa [#allocation7], 0  ;;  %s9343_s0 = inlined_call_operand.hbm [shape: f32[2,16,16,64], index: 0, kind: input, shape index: {}]   ;;  %s9344_s1 = inlined_call_operand.hbm [shape: bf16[576,128], index: 1, kind: input, shape index: {}]   ;;  %s9345_s2 = inlined_call_operand.vmem [shape: f32[1,128], index: 2, kind: input, shape index: {}]   ;;  %s9346_s3 = inlined_call_operand.hbm [shape: f32[1,128], index: 3, kind: input, shape index: {}]   ;;  %s9347_s4 = inlined_call_operand.hbm [shape: bf16[1152,128], index: 4, kind: input, shape index: {}]   ;;  %s9348_s5 = inlined_call_operand.vmem [shape: f32[1,128], index: 5, kind: input, shape index: {}]   ;;  %s9349_s6 = inlined_call_operand.vmem [shape: f32[1,128], index: 6, kind: input, shape index: {}]   ;;  %s9350_s7 = inlined_call_operand.hbm [shape: bf16[64,128], index: 7, kind: input, shape index: {}]   ;;  %s9351_s8 = inlined_call_operand.vmem [shape: f32[1,128], index: 8, kind: input, shape index: {}]   ;;  %s9352_s9 = inlined_call_operand.vmem [shape: f32[1,128], index: 9, kind: input, shape index: {}]   ;;  %s9353_s10 = inlined_call_operand.vmem [shape: f32[2,16,16,128], index: 10, kind: output, shape index: {}]  }
   0x1   :  { %17 = vsyncpa [#allocation7 + $0x1], 0 }
   0x2   :  { %18 = vsyncpa [#allocation9], 0 }
   0x3   :  { %19 = vsyncpa [#allocation12], 0  ;;  %s7442_s13 = smov 0   ;;  %s7444_s14 = smov 0  }
   0x4   :  { %s7446_s15 = smov 0   ;;  %s7448_s16 = smov 0  }
   0x5 LB: > { %s7461_s17 = sadd.s32 4294967295, %s7374_s16   ;;  %p45_p0 = scmp.ne.s32.totalorder %s7366_s14, %s7362_s13  ;;  %s7374_s16 = sphi %s7448_s16, %s9381_s16   ;;  %s7370_s15 = sphi %s7446_s15, %s9380_s15   ;;  %s7366_s14 = sphi %s7444_s14, %s9379_s14   ;;  %s7362_s13 = sphi %s7442_s13, %s9378_s13  }
   0x6   : > { %p9354_p1 = scmp.eq.s32.totalorder %s7461_s17, 0  ;;  %p5941_p2 = scmp.ge.s32.totalorder %s7374_s16, 1 }
   0x7   : > { %p271_p3 = scmp.lt.s32.totalorder %s7374_s16, 3  ;;  %s7376_s20 = smov [#allocation8]  }
   0x8   : > { %p7469_p4 = por %p9354_p1, %p45_p0  ;;  %s283_s21 = sshll.u32 %s7376_s20, 4  ;;  %s284_s21 = int_to_ptr.vmem [resolvable:$true] %s283_s21 }
   0x9   : > { %p7473_p5 = pnand %p5941_p2, %p271_p3  ;;  %s7377_s23 = smov [#allocation11]  }
   0xa   : > { %s9357_s18 = scalar_select %p7469_p4, 1, 0 }
   0xb   : > { %s9358_s19 = scalar_select %p7473_p5, 1, 0 }
   0xc   : > { %p7010_p6 = pneg %p7473_p5  ;;  %s310_s24 = sshll.u32 %s7377_s23, 4  ;;  %s311_s24 = int_to_ptr.vmem [resolvable:$true] %s310_s24 }
   0xd   : > { %s7378_s25 = smov [#allocation10]   ;;  %s7211_s27 = scalar_lea.vmem %s284_s21, 4608 }
   0xe   : > { %p7481_p7 = pnand %p7010_p6, %p9354_p1  ;;  %s300_s26 = sshll.u32 %s7378_s25, 4  ;;  %s301_s26 = int_to_ptr.vmem [resolvable:$true] %s300_s26 }
   0xf   : > { %p7212_p9 = scmp.ne.s32.totalorder %s284_s21, %s7211_s27  ;;  %p7219_p12 = scmp.lt.s32.totalorder %s284_s21, %s284_s21 }
  0x10   : > { %p7202_p8 = pneg %p7481_p7  ;;  %p7220_p13 = scmp.lt.s32.totalorder %s7211_s27, %s7211_s27 }
  0x12   : > { %p7214_p10 = pnand %p7212_p9, %p7202_p8  ;;  %p7221_p0 = por %p7220_p13, %p7219_p12 }
  0x14   : > { %p7215_p11 = pneg %p7214_p10 }
  0x16   : > { %p7222_p2 = pnand %p7221_p0, %p7215_p11 }
  0x18   : > { %7225 = shalt.err (!%p7222_p2)
}
  0x19   : > { %s7379_s28 = smov 64   ;;  %s7380_s29 = smov 4  }
  0x1a   : > { %7013 = dma.hbm_to_vmem [thread:$0]  (!%p7481_p7), %s9344_s1, 4608, %s284_s21, [#allocation9], %s7379_s28, %s7379_s28, %s7380_s29  }
  0x1b   : > { %s7237_s12 = scalar_lea.vmem %s311_s24, 9216  ;;  %p7245_p10 = scmp.lt.s32.totalorder %s311_s24, %s311_s24 }
  0x1c   : > { %p7238_p3 = scmp.ne.s32.totalorder %s311_s24, %s7237_s12  ;;  %p7246_p11 = scmp.lt.s32.totalorder %s7237_s12, %s7237_s12 }
  0x1e   : > { %p7240_p6 = pnand %p7238_p3, %p7202_p8  ;;  %p7247_p12 = por %p7246_p11, %p7245_p10 }
  0x20   : > { %p7241_p9 = pneg %p7240_p6 }
  0x22   : > { %p7248_p13 = pnand %p7247_p12, %p7241_p9 }
  0x24   : > { %7251 = shalt.err (!%p7248_p13)
}
  0x25   : > { %7019 = dma.hbm_to_vmem [thread:$0]  (!%p7481_p7), %s9347_s4, 9216, %s311_s24, [#allocation12], %s7379_s28, %s7379_s28, %s7380_s29  }
  0x26   : > { %s7263_s21 = scalar_lea.vmem %s301_s26, 16  ;;  %s7270_s23 = scalar_lea.vmem %s301_s26, 32 }
  0x27   : > { %p7264_p0 = scmp.ne.s32.totalorder %s301_s26, %s7263_s21  ;;  %p7271_p6 = scmp.lt.s32.totalorder %s301_s26, %s301_s26 }
  0x28   : > { %p7272_p9 = scmp.lt.s32.totalorder %s7270_s23, %s7263_s21 }
  0x29   : > { %p7266_p2 = pnand %p7264_p0, %p7202_p8 }
  0x2a   : > { %p7273_p10 = por %p7272_p9, %p7271_p6 }
  0x2b   : > { %p7267_p3 = pneg %p7266_p2 }
  0x2d   : > { %p7274_p11 = pnand %p7273_p10, %p7267_p3 }
  0x2f   : > { %7277 = shalt.err (!%p7274_p11)
}
  0x30   : > { %7016 = dma.hbm_to_vmem [thread:$0]  (!%p7481_p7), %s9346_s3, 16, %s301_s26, [#allocation9]  }
  0x31   : > { %s7381_s24 = smov [#allocation13]  }
  0x32   : > { %s329_s30 = sshll.u32 %s7381_s24, 4  ;;  %s330_s30 = int_to_ptr.vmem [resolvable:$true] %s329_s30 }
  0x33   : > { %s7289_s11 = scalar_lea.vmem %s330_s30, 512  ;;  %p7297_p2 = scmp.lt.s32.totalorder %s330_s30, %s330_s30 }
  0x34   : > { %p7290_p12 = scmp.ne.s32.totalorder %s330_s30, %s7289_s11  ;;  %p7298_p6 = scmp.lt.s32.totalorder %s7289_s11, %s7289_s11 }
  0x36   : > { %p7292_p13 = pnand %p7290_p12, %p7202_p8  ;;  %p7299_p3 = por %p7298_p6, %p7297_p2 }
  0x38   : > { %p7293_p0 = pneg %p7292_p13 }
  0x3a   : > { %p7300_p9 = pnand %p7299_p3, %p7293_p0 }
  0x3c   : > { %7303 = shalt.err (!%p7300_p9)
}
  0x3d   : > { %7022 = dma.hbm_to_vmem [thread:$0]  (!%p7481_p7), %s9350_s7, 512, %s330_s30, [#allocation12], %s7379_s28, %s7379_s28, %s7380_s29  }
  0x3e   : > { %s7529_s13 = sadd.s32 1, %s7374_s16   ;;  %s32_s22 = sadd.s32 1, %s7370_s15 }
  0x3f   : > { %s29_s20 = ssub.s32 %s7374_s16, %s7529_s13  ;;  %p39_p8 = scmp.ne.s32.totalorder %s7370_s15, %s7366_s14 }
  0x40   : > { %p30_p10 = scmp.eq.s32.totalorder %s29_s20, 0  ;;  %p40_p11 = scmp.eq.s32.totalorder %s7374_s16, 0 }
  0x41   : > { %p7031_p12 = scmp.lt.s32.totalorder %s7374_s16, 2  ;;  %s349_s21 = sand.u32 1, %s7370_s15  }
  0x42   : > { %s7540_s23 = scalar_select %p30_p10, %s7370_s15, %s32_s22  }
  0x43   : > { %p41_p13 = por %p40_p11, %p39_p8  ;;  %s5947_s25 = sshll.u32 %s349_s21, 8 }
  0x44   : > { %s6110_s27 = sshll.u32 %s7374_s16, 12  ;;  %s353_s28 = scalar_lea.vmem [#allocation6], %s5947_s25 }
  0x45   : > { %s7546_s26 = scalar_lea.hbm %s9343_s0, %s6110_s27  ;;  %s360_s29 = sshll.u32 %s353_s28, 4  ;;  %s7552_s29 = int_to_ptr.vmem [resolvable:$true] %s360_s29 }
  0x46   : > { %p7548_p7 = pnand %p7031_p12, %p41_p13  ;;  %s7554_s12 = scalar_lea.sflag [#allocation7], %s349_s21 }
  0x47   : > { %s7304_s16 = scalar_lea.hbm %s7546_s26, 4096  ;;  %s7309_s25 = scalar_lea.hbm %s9343_s0, 8192 }
  0x48   : > { %p7305_p0 = scmp.ne.s32.totalorder %s7546_s26, %s7304_s16  ;;  %p7306_p2 = pneg %p7548_p7 }
  0x49   : > { %p7310_p9 = scmp.lt.s32.totalorder %s7546_s26, %s9343_s0  ;;  %p7311_p8 = scmp.lt.s32.totalorder %s7309_s25, %s7304_s16 }
  0x4a   : > { %p7307_p6 = pnand %p7306_p2, %p7305_p0 }
  0x4b   : > { %p7312_p10 = por %p7311_p8, %p7310_p9 }
  0x4c   : > { %p7308_p3 = pneg %p7307_p6 }
  0x4e   : > { %p7313_p11 = pnand %p7312_p10, %p7308_p3 }
  0x50   : > { %7316 = shalt.err (!%p7313_p11)
}
  0x51   : > { %s7317_s21 = scalar_lea.vmem %s7552_s29, 4096  ;;  %s7382_s11 = smov [#allocation6]  }
  0x52   : > { %p7318_p12 = scmp.ne.s32.totalorder %s7552_s29, %s7317_s21  ;;  %s7322_s28 = sshll.u32 %s7382_s11, 4  ;;  %s7323_s28 = int_to_ptr.vmem [resolvable:$false] %s7322_s28 }
  0x53   : > { %s7324_s22 = scalar_lea.vmem %s7323_s28, 8192  ;;  %p7325_p6 = scmp.lt.s32.totalorder %s7552_s29, %s7323_s28 }
  0x54   : > { %p7320_p13 = pnand %p7318_p12, %p7306_p2  ;;  %p7326_p1 = scmp.lt.s32.totalorder %s7324_s22, %s7317_s21 }
  0x56   : > { %p7321_p0 = pneg %p7320_p13  ;;  %p7327_p4 = por %p7326_p1, %p7325_p6 }
  0x58   : > { %p7328_p5 = pnand %p7327_p4, %p7321_p0 }
  0x5a   : > { %7331 = shalt.err (!%p7328_p5)
}
  0x5b   : > { %s7383_s16 = smov 128   ;;  %s7384_s20 = smov 8  }
  0x5c   : > { %7026 = dma.hbm_to_vmem [thread:$0]  (!%p7548_p7), %s7546_s26, 4096, %s7552_s29, %s7554_s12, %s7383_s16, %s7383_s16, %s7384_s20  }
  0x5d   : > { %p9361_p2 = scmp.ne.s32.totalorder %s9358_s19, 0 }
  0x5f   : > { %372 = sbr.rel (%p9361_p2) target bundleno = 1173 (0x495), region = 60 }
  0x64   : > { %s374_s25 = sand.u32 1, %s7366_s14   ;;  %p9362_p1 = scmp.ne.s32.totalorder %s9357_s18, 0 }
  0x65   : > { %s5951_s27 = sshll.u32 %s374_s25, 8  ;;  %s375_s24 = scalar_lea.sflag [#allocation7], %s374_s25 }
  0x66   : > { %s7578_s21 = scalar_lea.vmem [#allocation6], %s5951_s27 }
  0x67   : > { %7349 = dma.done.wait (%p9362_p1), %s375_s24, 4096  }
  0x68   : > { %7351 = vsyncadd (%p9362_p1), %s375_s24, 4294963200  ;;  %p9363_p4 = scmp.eq.s32.totalorder %s7461_s17, 0 }
  0x6a   : > { %7353 = dma.done.wait (%p9363_p4), [#allocation9], 4624   ;;  %p9364_p5 = pmov %p9363_p4 }
  0x6b   : > { %p9365_p7 = pmov %p9363_p4 }
  0x6c   : > { %7355 = vsyncadd (%p9364_p5), [#allocation9], 4294962672 }
  0x6d   : > { %7357 = dma.done.wait (%p9365_p7), [#allocation12], 9728   ;;  %p9366_p3 = pmov %p9363_p4 }
  0x6e   : > { %vm437_vm0 = vcmask 523264   ;;  %vm440_vm1 = vcmask 517120   ;;  %v7385_v0 = vmov 0.0   ;;  %v493_v1 = vld [vmem:[%s7578_s21] sm:$0xff]  ;;  %v494_v2 = vld [vmem:[%s7578_s21 + $0x8] sm:$0xff]  ;;  %v495_v3 = vld [vmem:[%s7578_s21 + $0x10] sm:$0xff] }
  0x6f   : > { %7359 = vsyncadd (%p9366_p3), [#allocation12], 4294957568  ;;  %438 = vst.msk [vmem:[#allocation2] sm:$0xff] %vm437_vm0, %v7385_v0  ;;  %v496_v6 = vld [vmem:[%s7578_s21 + $0x18] sm:$0xff]  ;;  %s7386_s18 = smov 64   ;;  %v497_v7 = vld [vmem:[%s7578_s21 + $0x20] sm:$0xff] }
  0x70   : > { %439 = vst.msk [vmem:[#allocation2 + $0x8] sm:$0xff] %vm437_vm0, %v7385_v0  ;;  %442 = vst.msk [vmem:[#allocation2 + $0x18] sm:$0xff] %vm437_vm0, %v7385_v0  ;;  %v498_v8 = vld [vmem:[%s7578_s21 + $0x28] sm:$0xff]  ;;  %v499_v9 = vld [vmem:[%s7578_s21 + $0x30] sm:$0xff]  ;;  %vm782_vm2 = vcmask 1048064   ;;  %p431_p9 = scmp.lt.s32.totalorder %s7461_s17, 1 }
  0x71   : > { %443 = vst.msk [vmem:[#allocation2 + $0x20] sm:$0xff] %vm437_vm0, %v7385_v0  ;;  %445 = vst.msk [vmem:[#allocation2 + $0x30] sm:$0xff] %vm437_vm0, %v7385_v0  ;;  %v500_v10 = vld [vmem:[%s7578_s21 + $0x38] sm:$0xff]  ;;  %v501_v11 = vld [vmem:[%s7578_s21 + $0x40] sm:$0xff] }
  0x72   : > { %446 = vst.msk [vmem:[#allocation2 + $0x38] sm:$0xff] %vm437_vm0, %v7385_v0  ;;  %448 = vst.msk [vmem:[#allocation2 + $0x48] sm:$0xff] %vm437_vm0, %v7385_v0  ;;  %v502_v12 = vld [vmem:[%s7578_s21 + $0x48] sm:$0xff]  ;;  %v503_v13 = vld [vmem:[%s7578_s21 + $0x50] sm:$0xff]  ;;  %s9383_s17 = smov (!%p431_p9, %s7461_s17), 1 }
  0x73   : > { %449 = vst.msk [vmem:[#allocation2 + $0x50] sm:$0xff] %vm437_vm0, %v7385_v0  ;;  %451 = vst.msk [vmem:[#allocation2 + $0x60] sm:$0xff] %vm437_vm0, %v7385_v0  ;;  %v504_v14 = vld [vmem:[%s7578_s21 + $0x58] sm:$0xff]  ;;  %v505_v15 = vld [vmem:[%s7578_s21 + $0x60] sm:$0xff]  ;;  %s6111_s24 = sshll.u32 %s9383_s17, 8 }
  0x74   : > { %452 = vst.msk [vmem:[#allocation2 + $0x68] sm:$0xff] %vm437_vm0, %v7385_v0  ;;  %454 = vst.msk [vmem:[#allocation2 + $0x78] sm:$0xff] %vm437_vm0, %v7385_v0  ;;  %v506_v16 = vld [vmem:[%s7578_s21 + $0x68] sm:$0xff]  ;;  %v507_v17 = vld [vmem:[%s7578_s21 + $0x70] sm:$0xff] }
  0x75   : > { %455 = vst.msk [vmem:[#allocation2 + $0x80] sm:$0xff] %vm437_vm0, %v7385_v0  ;;  %457 = vst.msk [vmem:[#allocation2 + $0x90] sm:$0xff] %vm437_vm0, %v7385_v0  ;;  %v508_v18 = vld [vmem:[%s7578_s21 + $0x78] sm:$0xff]  ;;  %v517_v19 = vld [vmem:[%s7578_s21 + $0xc0] sm:$0xff] }
  0x76   : > { %458 = vst.msk [vmem:[#allocation2 + $0x98] sm:$0xff] %vm437_vm0, %v7385_v0  ;;  %460 = vst.msk [vmem:[#allocation2 + $0xa8] sm:$0xff] %vm437_vm0, %v7385_v0  ;;  %v518_v20 = vld [vmem:[%s7578_s21 + $0xc8] sm:$0xff]  ;;  %v515_v21 = vld [vmem:[%s7578_s21 + $0xb0] sm:$0xff] }
  0x77   : > { %461 = vst.msk [vmem:[#allocation2 + $0xb0] sm:$0xff] %vm437_vm0, %v7385_v0  ;;  %463 = vst.msk [vmem:[#allocation2 + $0xc0] sm:$0xff] %vm437_vm0, %v7385_v0  ;;  %v622_v4 = vld [vmem:[#allocation2 + $0x1] sm:$0xff]  ;;  %v516_v22 = vld [vmem:[%s7578_s21 + $0xb8] sm:$0xff] }
  0x78   : > { %464 = vst.msk [vmem:[#allocation2 + $0xc8] sm:$0xff] %vm437_vm0, %v7385_v0  ;;  %466 = vst.msk [vmem:[#allocation2 + $0xd8] sm:$0xff] %vm437_vm0, %v7385_v0  ;;  %686 = vrot.lane.b32.xlu1 %v622_v4, %s7386_s18  ;;  %v509_v23 = vld [vmem:[%s7578_s21 + $0x80] sm:$0xff]  ;;  %v510_v24 = vld [vmem:[%s7578_s21 + $0x88] sm:$0xff] }
  0x79   : > { %467 = vst.msk [vmem:[#allocation2 + $0xe0] sm:$0xff] %vm437_vm0, %v7385_v0  ;;  %469 = vst.msk [vmem:[#allocation2 + $0xf0] sm:$0xff] %vm437_vm0, %v7385_v0  ;;  %v519_v46 = vld [vmem:[%s7578_s21 + $0xd0] sm:$0xff]  ;;  %v520_v47 = vld [vmem:[%s7578_s21 + $0xd8] sm:$0xff] }
  0x7a   : > { %470 = vst.msk [vmem:[#allocation2 + $0xf8] sm:$0xff] %vm437_vm0, %v7385_v0  ;;  %472 = vst.msk [vmem:[#allocation2 + $0x108] sm:$0xff] %vm437_vm0, %v7385_v0  ;;  %v511_v48 = vld [vmem:[%s7578_s21 + $0x90] sm:$0xff]  ;;  %v512_v49 = vld [vmem:[%s7578_s21 + $0x98] sm:$0xff] }
  0x7b   : > { %473 = vst.msk [vmem:[#allocation2 + $0x110] sm:$0xff] %vm437_vm0, %v7385_v0  ;;  %475 = vst.msk [vmem:[#allocation2 + $0x120] sm:$0xff] %vm437_vm0, %v7385_v0  ;;  %v521_v50 = vld [vmem:[%s7578_s21 + $0xe0] sm:$0xff]  ;;  %v522_v51 = vld [vmem:[%s7578_s21 + $0xe8] sm:$0xff] }
  0x7c   : > { %476 = vst.msk [vmem:[#allocation2 + $0x128] sm:$0xff] %vm437_vm0, %v7385_v0  ;;  %478 = vst.msk [vmem:[#allocation2 + $0x138] sm:$0xff] %vm437_vm0, %v7385_v0  ;;  %v7078_v53 = vld [vmem:[#allocation8 + $0x78] sm:$0xff]   ;;  %v7080_v56 = vld [vmem:[#allocation8 + $0x70] sm:$0xff]  }
  0x7d   : > { %479 = vst.msk [vmem:[#allocation2 + $0x140] sm:$0xff] %vm437_vm0, %v7385_v0  ;;  %481 = vst.msk [vmem:[#allocation2 + $0x150] sm:$0xff] %vm437_vm0, %v7385_v0  ;;  %v7079_v55 = vld [vmem:[#allocation8 + $0x38] sm:$0xff]   ;;  %6112 = vmatprep.subr.bf16.mxu0 %v7078_v53  ;;  %v7081_v57 = vld [vmem:[#allocation8 + $0x30] sm:$0xff]   ;;  %6976 = vmatprep.subr.bf16.mxu1 %v7078_v53 }
  0x7e   : > { %482 = vst.msk [vmem:[#allocation2 + $0x158] sm:$0xff] %vm437_vm0, %v7385_v0  ;;  %484 = vst.msk [vmem:[#allocation2 + $0x168] sm:$0xff] %vm437_vm0, %v7385_v0  ;;  %6113 = vmatpush3.bf16.msra.mxu0 %v7079_v55  ;;  %v513_v58 = vld [vmem:[%s7578_s21 + $0xa0] sm:$0xff]  ;;  %6984 = vmatpush3.bf16.msra.mxu1 %v7079_v55  ;;  %v514_v59 = vld [vmem:[%s7578_s21 + $0xa8] sm:$0xff] }
  0x7f   : > { %485 = vst.msk [vmem:[#allocation2 + $0x170] sm:$0xff] %vm437_vm0, %v7385_v0  ;;  %487 = vst.msk [vmem:[#allocation2 + $0x180] sm:$0xff] %vm437_vm0, %v7385_v0  ;;  %6114 = vmatprep.subr.bf16.mxu0 %v7080_v56  ;;  %6977 = vmatprep.subr.bf16.mxu1 %v7080_v56  ;;  %v7082_v60 = vld [vmem:[#allocation8 + $0x68] sm:$0xff]   ;;  %v524_v4 = vld [vmem:[%s7578_s21 + $0xf8] sm:$0xff] }
  0x80   : > { %488 = vst.msk [vmem:[#allocation2 + $0x188] sm:$0xff] %vm437_vm0, %v7385_v0  ;;  %490 = vst.msk [vmem:[#allocation2 + $0x198] sm:$0xff] %vm437_vm0, %v7385_v0  ;;  %v7083_v63 = vld [vmem:[#allocation8 + $0x28] sm:$0xff]  }
  0x81   : > { %491 = vst.msk [vmem:[#allocation2 + $0x1a0] sm:$0xff] %vm437_vm0, %v7385_v0  ;;  %2817 = vst [vmem:[#allocation4] sm:$0xff] %v7385_v0 }
  0x82   : > { %2818 = vst [vmem:[#allocation4 + $0x8] sm:$0xff] %v7385_v0  ;;  %2819 = vst [vmem:[#allocation4 + $0x10] sm:$0x3] %v7385_v0  ;;  %6115 = vmatpush3.bf16.msra.mxu0 %v7081_v57  ;;  %6985 = vmatpush3.bf16.msra.mxu1 %v7081_v57 }
  0x83   : > { %2820 = vst [vmem:[#allocation4 + $0x18] sm:$0xff] %v7385_v0  ;;  %2821 = vst [vmem:[#allocation4 + $0x20] sm:$0xff] %v7385_v0  ;;  %6116 = vmatprep.subr.bf16.mxu0 %v7082_v60  ;;  %6978 = vmatprep.subr.bf16.mxu1 %v7082_v60 }
  0x84   : > { %2822 = vst [vmem:[#allocation4 + $0x28] sm:$0x3] %v7385_v0  ;;  %2823 = vst [vmem:[#allocation4 + $0x30] sm:$0xff] %v7385_v0 }
  0x85   : > { %2824 = vst [vmem:[#allocation4 + $0x38] sm:$0xff] %v7385_v0  ;;  %2825 = vst [vmem:[#allocation4 + $0x40] sm:$0x3] %v7385_v0 }
  0x86   : > { %2826 = vst [vmem:[#allocation4 + $0x48] sm:$0xff] %v7385_v0  ;;  %2827 = vst [vmem:[#allocation4 + $0x50] sm:$0xff] %v7385_v0  ;;  %6117 = vmatpush3.bf16.msra.mxu0 %v7083_v63  ;;  %6986 = vmatpush3.bf16.msra.mxu1 %v7083_v63 }
  0x87   : > { %2828 = vst [vmem:[#allocation4 + $0x58] sm:$0x3] %v7385_v0  ;;  %2829 = vst [vmem:[#allocation4 + $0x60] sm:$0xff] %v7385_v0 }
  0x88   : > { %2830 = vst [vmem:[#allocation4 + $0x68] sm:$0xff] %v7385_v0  ;;  %2831 = vst [vmem:[#allocation4 + $0x70] sm:$0x3] %v7385_v0 }
  0x89   : > { %2832 = vst [vmem:[#allocation4 + $0x78] sm:$0xff] %v7385_v0  ;;  %2833 = vst [vmem:[#allocation4 + $0x80] sm:$0xff] %v7385_v0 }
  0x8a   : > { %2834 = vst [vmem:[#allocation4 + $0x88] sm:$0x3] %v7385_v0  ;;  %2835 = vst [vmem:[#allocation4 + $0x90] sm:$0xff] %v7385_v0 }
  0x8b   : > { %2836 = vst [vmem:[#allocation4 + $0x98] sm:$0xff] %v7385_v0  ;;  %2837 = vst [vmem:[#allocation4 + $0xa0] sm:$0x3] %v7385_v0 }
  0x8c   : > { %2838 = vst [vmem:[#allocation4 + $0xa8] sm:$0xff] %v7385_v0  ;;  %2839 = vst [vmem:[#allocation4 + $0xb0] sm:$0xff] %v7385_v0 }
  0x8d   : > { %2840 = vst [vmem:[#allocation4 + $0xb8] sm:$0x3] %v7385_v0  ;;  %2841 = vst [vmem:[#allocation4 + $0xc0] sm:$0xff] %v7385_v0 }
  0x8e   : > { %2842 = vst [vmem:[#allocation4 + $0xc8] sm:$0xff] %v7385_v0  ;;  %2843 = vst [vmem:[#allocation4 + $0xd0] sm:$0x3] %v7385_v0 }
  0x8f   : > { %2844 = vst [vmem:[#allocation4 + $0xd8] sm:$0xff] %v7385_v0  ;;  %2845 = vst [vmem:[#allocation4 + $0xe0] sm:$0xff] %v7385_v0 }
  0x90   : > { %2846 = vst [vmem:[#allocation4 + $0xe8] sm:$0x3] %v7385_v0  ;;  %2847 = vst [vmem:[#allocation4 + $0xf0] sm:$0xff] %v7385_v0 }
  0x91   : > { %2848 = vst [vmem:[#allocation4 + $0xf8] sm:$0xff] %v7385_v0  ;;  %2849 = vst [vmem:[#allocation4 + $0x100] sm:$0x3] %v7385_v0 }
  0x92   : > { %2850 = vst [vmem:[#allocation4 + $0x108] sm:$0xff] %v7385_v0  ;;  %2851 = vst [vmem:[#allocation4 + $0x110] sm:$0xff] %v7385_v0 }
  0x93   : > { %2852 = vst [vmem:[#allocation4 + $0x118] sm:$0x3] %v7385_v0  ;;  %2853 = vst [vmem:[#allocation4 + $0x120] sm:$0xff] %v7385_v0 }
  0x94   : > { %2854 = vst [vmem:[#allocation4 + $0x128] sm:$0xff] %v7385_v0  ;;  %2855 = vst [vmem:[#allocation4 + $0x130] sm:$0x3] %v7385_v0 }
  0x95   : > { %2856 = vst [vmem:[#allocation4 + $0x138] sm:$0xff] %v7385_v0  ;;  %2857 = vst [vmem:[#allocation4 + $0x140] sm:$0xff] %v7385_v0 }
  0x96   : > { %2858 = vst [vmem:[#allocation4 + $0x148] sm:$0x3] %v7385_v0  ;;  %2859 = vst [vmem:[#allocation4 + $0x150] sm:$0xff] %v7385_v0 }
  0x97   : > { %2860 = vst [vmem:[#allocation4 + $0x158] sm:$0xff] %v7385_v0  ;;  %2861 = vst [vmem:[#allocation4 + $0x160] sm:$0x3] %v7385_v0 }
  0x98   : > { %2862 = vst [vmem:[#allocation4 + $0x168] sm:$0xff] %v7385_v0  ;;  %2863 = vst [vmem:[#allocation4 + $0x170] sm:$0xff] %v7385_v0 }
  0x99   : > { %2864 = vst [vmem:[#allocation4 + $0x178] sm:$0x3] %v7385_v0  ;;  %2865 = vst [vmem:[#allocation4 + $0x180] sm:$0xff] %v7385_v0 }
  0x9a   : > { %2866 = vst [vmem:[#allocation4 + $0x188] sm:$0xff] %v7385_v0  ;;  %2867 = vst [vmem:[#allocation4 + $0x190] sm:$0x3] %v7385_v0 }
  0x9b   : > { %2868 = vst [vmem:[#allocation4 + $0x198] sm:$0xff] %v7385_v0  ;;  %2869 = vst [vmem:[#allocation4 + $0x1a0] sm:$0xff] %v7385_v0 }
  0x9c   : > { %2870 = vst [vmem:[#allocation4 + $0x1a8] sm:$0x3] %v7385_v0  ;;  %441 = vst.msk [vmem:[#allocation2 + $0x10] sm:$0x3] %vm440_vm1, %v7385_v0 }
  0x9d   : > { %444 = vst.msk [vmem:[#allocation2 + $0x28] sm:$0x3] %vm440_vm1, %v7385_v0  ;;  %447 = vst.msk [vmem:[#allocation2 + $0x40] sm:$0x3] %vm440_vm1, %v7385_v0 }
  0x9e   : > { %450 = vst.msk [vmem:[#allocation2 + $0x58] sm:$0x3] %vm440_vm1, %v7385_v0  ;;  %453 = vst.msk [vmem:[#allocation2 + $0x70] sm:$0x3] %vm440_vm1, %v7385_v0 }
  0x9f   : > { %456 = vst.msk [vmem:[#allocation2 + $0x88] sm:$0x3] %vm440_vm1, %v7385_v0  ;;  %459 = vst.msk [vmem:[#allocation2 + $0xa0] sm:$0x3] %vm440_vm1, %v7385_v0 }
  0xa0   : > { %462 = vst.msk [vmem:[#allocation2 + $0xb8] sm:$0x3] %vm440_vm1, %v7385_v0  ;;  %465 = vst.msk [vmem:[#allocation2 + $0xd0] sm:$0x3] %vm440_vm1, %v7385_v0 }
  0xa1   : > { %468 = vst.msk [vmem:[#allocation2 + $0xe8] sm:$0x3] %vm440_vm1, %v7385_v0  ;;  %471 = vst.msk [vmem:[#allocation2 + $0x100] sm:$0x3] %vm440_vm1, %v7385_v0 }
  0xa2   : > { %474 = vst.msk [vmem:[#allocation2 + $0x118] sm:$0x3] %vm440_vm1, %v7385_v0  ;;  %477 = vst.msk [vmem:[#allocation2 + $0x130] sm:$0x3] %vm440_vm1, %v7385_v0 }
  0xa3   : > { %480 = vst.msk [vmem:[#allocation2 + $0x148] sm:$0x3] %vm440_vm1, %v7385_v0  ;;  %483 = vst.msk [vmem:[#allocation2 + $0x160] sm:$0x3] %vm440_vm1, %v7385_v0  ;;  %v623_v5 = vld [vmem:[#allocation2 + $0x9] sm:$0xff] }
  0xa4   : > { %486 = vst.msk [vmem:[#allocation2 + $0x178] sm:$0x3] %vm440_vm1, %v7385_v0  ;;  %489 = vst.msk [vmem:[#allocation2 + $0x190] sm:$0x3] %vm440_vm1, %v7385_v0  ;;  %688 = vrot.lane.b32.xlu1 %v623_v5, %s7386_s18  ;;  %v7086_v5 = vld [vmem:[#allocation8 + $0x58] sm:$0xff]  }
  0xa5   : > { %492 = vst.msk [vmem:[#allocation2 + $0x1a8] sm:$0x3] %vm440_vm1, %v7385_v0  ;;  %v7084_v0 = vld [vmem:[#allocation8 + $0x60] sm:$0xff]  }
  0xa6   : > { %526 = vst.msk [vmem:[#allocation2 + $0x19] sm:$0xff] %vm437_vm0, %v493_v1  ;;  %527 = vst.msk [vmem:[#allocation2 + $0x21] sm:$0xff] %vm437_vm0, %v494_v2  ;;  %v558_v1 = vld [vmem:[#allocation2] sm:$0xff]  ;;  %6118 = vmatprep.subr.bf16.mxu0 %v7084_v0  ;;  %6979 = vmatprep.subr.bf16.mxu1 %v7084_v0 }
  0xa7   : > { %528 = vst.msk [vmem:[#allocation2 + $0x31] sm:$0xff] %vm437_vm0, %v495_v3  ;;  %529 = vst.msk [vmem:[#allocation2 + $0x39] sm:$0xff] %vm437_vm0, %v496_v6  ;;  %v7085_v2 = vld [vmem:[#allocation8 + $0x20] sm:$0xff]   ;;  %v523_v3 = vld [vmem:[%s7578_s21 + $0xf0] sm:$0xff] }
  0xa8   : > { %530 = vst.msk [vmem:[#allocation2 + $0x49] sm:$0xff] %vm437_vm0, %v497_v7  ;;  %531 = vst.msk [vmem:[#allocation2 + $0x51] sm:$0xff] %vm437_vm0, %v498_v8  ;;  %v815_v6 = vld [vmem:[#allocation2 + $0x2] sm:$0xff]  ;;  %6119 = vmatpush3.bf16.msra.mxu0 %v7085_v2  ;;  %6987 = vmatpush3.bf16.msra.mxu1 %v7085_v2 }
  0xa9   : > { %532 = vst.msk [vmem:[#allocation2 + $0x61] sm:$0xff] %vm437_vm0, %v499_v9  ;;  %533 = vst.msk [vmem:[#allocation2 + $0x69] sm:$0xff] %vm437_vm0, %v500_v10  ;;  %v559_v7 = vld [vmem:[#allocation2 + $0x8] sm:$0xff]  ;;  %6120 = vmatprep.subr.bf16.mxu0 %v7086_v5  ;;  %v7087_v9 = vld [vmem:[#allocation8 + $0x18] sm:$0xff]   ;;  %6980 = vmatprep.subr.bf16.mxu1 %v7086_v5 }
  0xaa   : > { %534 = vst.msk [vmem:[#allocation2 + $0x79] sm:$0xff] %vm437_vm0, %v501_v11  ;;  %535 = vst.msk [vmem:[#allocation2 + $0x81] sm:$0xff] %vm437_vm0, %v502_v12  ;;  %v7088_v11 = vld [vmem:[#allocation8 + $0x50] sm:$0xff]  }
  0xab   : > { %536 = vst.msk [vmem:[#allocation2 + $0x91] sm:$0xff] %vm437_vm0, %v503_v13  ;;  %537 = vst.msk [vmem:[#allocation2 + $0x99] sm:$0xff] %vm437_vm0, %v504_v14  ;;  %v816_v12 = vld [vmem:[#allocation2 + $0xa] sm:$0xff] }
  0xac   : > { %538 = vst.msk [vmem:[#allocation2 + $0xa9] sm:$0xff] %vm437_vm0, %v505_v15  ;;  %539 = vst.msk [vmem:[#allocation2 + $0xb1] sm:$0xff] %vm437_vm0, %v506_v16  ;;  %6121 = vmatpush3.bf16.msra.mxu0 %v7087_v9  ;;  %v7089_v13 = vld [vmem:[#allocation8 + $0x10] sm:$0xff]   ;;  %6988 = vmatpush3.bf16.msra.mxu1 %v7087_v9  ;;  %v7090_v16 = vld [vmem:[#allocation8 + $0x48] sm:$0xff]  }
  0xad   : > { %540 = vst.msk [vmem:[#allocation2 + $0xc1] sm:$0xff] %vm437_vm0, %v507_v17  ;;  %541 = vst.msk [vmem:[#allocation2 + $0xc9] sm:$0xff] %vm437_vm0, %v508_v18  ;;  %v879_v25 = vld [vmem:[#allocation2 + $0x18] sm:$0xff]  ;;  %v880_v26 = vld [vmem:[#allocation2 + $0x20] sm:$0xff]  ;;  %6122 = vmatprep.subr.bf16.mxu0 %v7088_v11  ;;  %6981 = vmatprep.subr.bf16.mxu1 %v7088_v11 }
  0xae   : > { %550 = vst.msk [vmem:[#allocation2 + $0x139] sm:$0xff] %vm437_vm0, %v517_v19  ;;  %551 = vst.msk [vmem:[#allocation2 + $0x141] sm:$0xff] %vm437_vm0, %v518_v20  ;;  %v881_v27 = vld [vmem:[#allocation2 + $0x30] sm:$0xff]  ;;  %943 = vrot.lane.b32.xlu0 %v879_v25, %s7386_s18  ;;  %v882_v28 = vld [vmem:[#allocation2 + $0x38] sm:$0xff] }
  0xaf   : > { %548 = vst.msk [vmem:[#allocation2 + $0x121] sm:$0xff] %vm437_vm0, %v515_v21  ;;  %549 = vst.msk [vmem:[#allocation2 + $0x129] sm:$0xff] %vm437_vm0, %v516_v22  ;;  %949 = vrot.lane.b32.xlu1 %v882_v28, %s7386_s18  ;;  %v883_v29 = vld [vmem:[#allocation2 + $0x48] sm:$0xff]  ;;  %v884_v30 = vld [vmem:[#allocation2 + $0x50] sm:$0xff] }
  0xb0   : > { %542 = vst.msk [vmem:[#allocation2 + $0xd9] sm:$0xff] %vm437_vm0, %v509_v23  ;;  %543 = vst.msk [vmem:[#allocation2 + $0xe1] sm:$0xff] %vm437_vm0, %v510_v24  ;;  %v625_v31 = vld [vmem:[#allocation2 + $0x21] sm:$0xff]  ;;  %v624_v42 = vld [vmem:[#allocation2 + $0x19] sm:$0xff]  ;;  %6123 = vmatpush3.bf16.msra.mxu0 %v7089_v13  ;;  %6989 = vmatpush3.bf16.msra.mxu1 %v7089_v13 }
  0xb1   : > { %592 = vst.msk [vmem:[#allocation3 + $0x50] sm:$0xff] %vm437_vm0, %v879_v25  ;;  %593 = vst.msk [vmem:[#allocation3 + $0x78] sm:$0xff] %vm437_vm0, %v880_v26  ;;  %v7806_v32 = vld [vmem:[#allocation2 + $0x60] sm:$0xff]  ;;  %v886_v33 = vld [vmem:[#allocation2 + $0x68] sm:$0xff]  ;;  %6124 = vmatprep.subr.bf16.mxu0 %v7090_v16  ;;  %6982 = vmatprep.subr.bf16.mxu1 %v7090_v16 }
  0xb2   : > { %594 = vst.msk [vmem:[#allocation3 + $0xa0] sm:$0xff] %vm437_vm0, %v881_v27  ;;  %595 = vst.msk [vmem:[#allocation3 + $0xc8] sm:$0xff] %vm437_vm0, %v882_v28  ;;  %v7810_v34 = vld [vmem:[#allocation2 + $0x78] sm:$0xff]  ;;  %945 = vrot.lane.b32.xlu0 %v880_v26, %s7386_s18  ;;  %v7816_v35 = vld [vmem:[#allocation2 + $0x80] sm:$0xff] }
  0xb3   : > { %596 = vst.msk [vmem:[#allocation3 + $0xf0] sm:$0xff] %vm437_vm0, %v883_v29  ;;  %597 = vst.msk [vmem:[#allocation3 + $0x118] sm:$0xff] %vm437_vm0, %v884_v30  ;;  %692 = vrot.lane.b32.xlu1 %v625_v31, %s7386_s18  ;;  %v7821_v36 = vld [vmem:[#allocation2 + $0x90] sm:$0xff]  ;;  %v7823_v37 = vld [vmem:[#allocation2 + $0x98] sm:$0xff] }
  0xb4   : > { %598 = vst.msk [vmem:[#allocation3 + $0x140] sm:$0xff] %vm437_vm0, %v7806_v32  ;;  %599 = vst.msk [vmem:[#allocation3 + $0x168] sm:$0xff] %vm437_vm0, %v886_v33  ;;  %v7827_v38 = vld [vmem:[#allocation2 + $0xa8] sm:$0xff]  ;;  %v7829_v39 = vld [vmem:[#allocation2 + $0xb0] sm:$0xff] }
  0xb5   : > { %600 = vst.msk [vmem:[#allocation3 + $0x190] sm:$0xff] %vm437_vm0, %v7810_v34  ;;  %601 = vst.msk [vmem:[#allocation3 + $0x1b8] sm:$0xff] %vm437_vm0, %v7816_v35  ;;  %v7835_v40 = vld [vmem:[#allocation2 + $0xc0] sm:$0xff]  ;;  %v7842_v41 = vld [vmem:[#allocation2 + $0xc8] sm:$0xff] }
  0xb6   : > { %602 = vst.msk [vmem:[#allocation3 + $0x1e0] sm:$0xff] %vm437_vm0, %v7821_v36  ;;  %603 = vst.msk [vmem:[#allocation3 + $0x208] sm:$0xff] %vm437_vm0, %v7823_v37  ;;  %947 = vrot.lane.b32.xlu0 %v881_v27, %s7386_s18  ;;  %v7847_v43 = vld [vmem:[#allocation2 + $0x138] sm:$0xff]  ;;  %v7849_v44 = vld [vmem:[#allocation2 + $0x140] sm:$0xff] }
  0xb7   : > { %604 = vst.msk [vmem:[#allocation3 + $0x230] sm:$0xff] %vm437_vm0, %v7827_v38  ;;  %605 = vst.msk [vmem:[#allocation3 + $0x258] sm:$0xff] %vm437_vm0, %v7829_v39  ;;  %953 = vrot.lane.b32.xlu1 %v884_v30, %s7386_s18  ;;  %v7853_v45 = vld [vmem:[#allocation2 + $0x39] sm:$0xff]  ;;  %v7872_v52 = vld [vmem:[#allocation2 + $0x31] sm:$0xff] }
  0xb8   : > { %606 = vst.msk [vmem:[#allocation3 + $0x280] sm:$0xff] %vm437_vm0, %v7835_v40  ;;  %607 = vst.msk [vmem:[#allocation3 + $0x2a8] sm:$0xff] %vm437_vm0, %v7842_v41  ;;  %v7877_v54 = vld [vmem:[#allocation2 + $0x51] sm:$0xff]  ;;  %v628_v61 = vld [vmem:[#allocation2 + $0x49] sm:$0xff] }
  0xb9   : > { %616 = vst.msk [vmem:[#allocation3 + $0x410] sm:$0xff] %vm437_vm0, %v7847_v43  ;;  %617 = vst.msk [vmem:[#allocation3 + $0x438] sm:$0xff] %vm437_vm0, %v7849_v44  ;;  %v631_v62 = vld [vmem:[#allocation2 + $0x69] sm:$0xff]  ;;  %v630_v8 = vld [vmem:[#allocation2 + $0x61] sm:$0xff] }
  0xba   : > { %690 = vrot.lane.b32.xlu0 %v624_v42, %s7386_s18  ;;  %552 = vst.msk [vmem:[#allocation2 + $0x151] sm:$0xff] %vm437_vm0, %v519_v46  ;;  %553 = vst.msk [vmem:[#allocation2 + $0x159] sm:$0xff] %vm437_vm0, %v520_v47  ;;  %v633_v10 = vld [vmem:[#allocation2 + $0x81] sm:$0xff]  ;;  %v632_v20 = vld [vmem:[#allocation2 + $0x79] sm:$0xff] }
  0xbb   : > { %696 = vrot.lane.b32.xlu1 %v7853_v45, %s7386_s18  ;;  %544 = vst.msk [vmem:[#allocation2 + $0xf1] sm:$0xff] %vm437_vm0, %v511_v48  ;;  %545 = vst.msk [vmem:[#allocation2 + $0xf9] sm:$0xff] %vm437_vm0, %v512_v49  ;;  %v7906_v14 = vld [vmem:[#allocation2 + $0x120] sm:$0xff]  ;;  %v7908_v15 = vld [vmem:[#allocation2 + $0x128] sm:$0xff] }
  0xbc   : > { %554 = vst.msk [vmem:[#allocation2 + $0x169] sm:$0xff] %vm437_vm0, %v521_v50  ;;  %555 = vst.msk [vmem:[#allocation2 + $0x171] sm:$0xff] %vm437_vm0, %v522_v51  ;;  %v7915_v17 = vld [vmem:[#allocation2 + $0x1a] sm:$0xff]  ;;  %v7920_v18 = vld [vmem:[#allocation2 + $0x22] sm:$0xff] }
  0xbd   : > { %546 = vst.msk [vmem:[#allocation2 + $0x109] sm:$0xff] %vm437_vm0, %v513_v58  ;;  %547 = vst.msk [vmem:[#allocation2 + $0x111] sm:$0xff] %vm437_vm0, %v514_v59  ;;  %v7091_v19 = vld [vmem:[#allocation8 + $0x8] sm:$0xff]   ;;  %v7092_v21 = vld [vmem:[#allocation8 + $0x40] sm:$0xff]  }
  0xbe   : > { %951 = vrot.lane.b32.xlu0 %v883_v29, %s7386_s18  ;;  %590 = vst.msk [vmem:[#allocation3] sm:$0xff] %vm437_vm0, %v558_v1  ;;  %556 = vst.msk [vmem:[#allocation2 + $0x181] sm:$0xff] %vm437_vm0, %v523_v3  ;;  %v635_v22 = vld [vmem:[#allocation2 + $0x99] sm:$0xff]  ;;  %v7932_v26 = vld [vmem:[#allocation2 + $0x4a] sm:$0xff]  ;;  %6125 = vmatpush3.bf16.msra.mxu0 %v7091_v19 }
  0xbf   : > { %957 = vrot.lane.b32.xlu1 %v886_v33, %s7386_s18  ;;  %557 = vst.msk [vmem:[#allocation2 + $0x189] sm:$0xff] %vm437_vm0, %v524_v4  ;;  %847 = vst.msk [vmem:[#allocation3 + $0x8] sm:$0xff] %vm437_vm0, %v815_v6  ;;  %v7093_v23 = vld [vmem:[#allocation8] sm:$0xff]   ;;  %v7928_v24 = vld [vmem:[#allocation2 + $0x32] sm:$0xff]  ;;  %6126 = vmatprep.subr.bf16.mxu0 %v7092_v21 }
  0xc0   : > { %591 = vst.msk [vmem:[#allocation3 + $0x28] sm:$0xff] %vm437_vm0, %v559_v7  ;;  %848 = vst.msk [vmem:[#allocation3 + $0x30] sm:$0xff] %vm437_vm0, %v816_v12  ;;  %v7930_v25 = vld [vmem:[#allocation2 + $0x3a] sm:$0xff]  ;;  %v7940_v27 = vld [vmem:[#allocation2 + $0x52] sm:$0xff]  ;;  %6990 = vmatpush3.bf16.msra.mxu1 %v7091_v19 }
  0xc1   : > { %614 = vst.msk [vmem:[#allocation3 + $0x3c0] sm:$0xff] %vm437_vm0, %v7906_v14  ;;  %615 = vst.msk [vmem:[#allocation3 + $0x3e8] sm:$0xff] %vm437_vm0, %v7908_v15  ;;  %v7942_v28 = vld [vmem:[#allocation2 + $0x62] sm:$0xff]  ;;  %v7944_v29 = vld [vmem:[#allocation2 + $0x6a] sm:$0xff]  ;;  %6983 = vmatprep.subr.bf16.mxu1 %v7092_v21 }
  0xc2   : > { %694 = vrot.lane.b32.xlu0 %v7872_v52, %s7386_s18  ;;  %849 = vst.msk [vmem:[#allocation3 + $0x58] sm:$0xff] %vm437_vm0, %v7915_v17  ;;  %850 = vst.msk [vmem:[#allocation3 + $0x80] sm:$0xff] %vm437_vm0, %v7920_v18  ;;  %v7952_v30 = vld [vmem:[#allocation2 + $0x7a] sm:$0xff]  ;;  %v7954_v31 = vld [vmem:[#allocation2 + $0x82] sm:$0xff]  ;;  %6127 = vmatpush3.bf16.msra.mxu0 %v7093_v23 }
  0xc3   : > { %700 = vrot.lane.b32.xlu1 %v7877_v54, %s7386_s18  ;;  %851 = vst.msk [vmem:[#allocation3 + $0xa8] sm:$0xff] %vm437_vm0, %v7928_v24  ;;  %852 = vst.msk [vmem:[#allocation3 + $0xd0] sm:$0xff] %vm437_vm0, %v7930_v25  ;;  %v7965_v33 = vld [vmem:[#allocation2 + $0x9a] sm:$0xff]  ;;  %v7987_v42 = vld [vmem:[#allocation2 + $0x122] sm:$0xff] }
  0xc4   : > { %853 = vst.msk [vmem:[#allocation3 + $0xf8] sm:$0xff] %vm437_vm0, %v7932_v26  ;;  %854 = vst.msk [vmem:[#allocation3 + $0x120] sm:$0xff] %vm437_vm0, %v7940_v27  ;;  %6991 = vmatpush3.bf16.msra.mxu1 %v7093_v23  ;;  %v7993_v46 = vld [vmem:[#allocation2 + $0x12a] sm:$0xff]  ;;  %v8005_v47 = vld [vmem:[#allocation2 + $0xc2] sm:$0xff] }
  0xc5   : > { %855 = vst.msk [vmem:[#allocation3 + $0x148] sm:$0xff] %vm437_vm0, %v7942_v28  ;;  %856 = vst.msk [vmem:[#allocation3 + $0x170] sm:$0xff] %vm437_vm0, %v7944_v29  ;;  %v8011_v48 = vld [vmem:[#allocation2 + $0xca] sm:$0xff]  ;;  %v896_v49 = vld [vmem:[#allocation2 + $0xe0] sm:$0xff] }
  0xc6   : > { %955 = vrot.lane.b32.xlu0 %v7806_v32, %s7386_s18  ;;  %v7956_v32 = vld [vmem:[#allocation2 + $0x92] sm:$0xff]  ;;  %857 = vst.msk [vmem:[#allocation3 + $0x198] sm:$0xff] %vm437_vm0, %v7952_v30  ;;  %858 = vst.msk [vmem:[#allocation3 + $0x1c0] sm:$0xff] %vm437_vm0, %v7954_v31  ;;  %v8020_v50 = vld [vmem:[#allocation2 + $0xc9] sm:$0xff] }
  0xc7   : > { %961 = vrot.lane.b32.xlu1 %v7816_v35, %s7386_s18  ;;  %859 = vst.msk [vmem:[#allocation3 + $0x1e8] sm:$0xff] %vm437_vm0, %v7956_v32  ;;  %860 = vst.msk [vmem:[#allocation3 + $0x210] sm:$0xff] %vm437_vm0, %v7965_v33  ;;  %v7972_v35 = vld [vmem:[#allocation2 + $0xaa] sm:$0xff]  ;;  %v8025_v51 = vld [vmem:[#allocation2 + $0x142] sm:$0xff] }
  0xc8   : > { %861 = vst.msk [vmem:[#allocation3 + $0x238] sm:$0xff] %vm437_vm0, %v7972_v35  ;;  %871 = vst.msk [vmem:[#allocation3 + $0x3c8] sm:$0xff] %vm437_vm0, %v7987_v42  ;;  %v895_v53 = vld [vmem:[#allocation2 + $0xd8] sm:$0xff]  ;;  %v8033_v56 = vld [vmem:[#allocation2 + $0xe2] sm:$0xff] }
  0xc9   : > { %872 = vst.msk [vmem:[#allocation3 + $0x3f0] sm:$0xff] %vm437_vm0, %v7993_v46  ;;  %863 = vst.msk [vmem:[#allocation3 + $0x288] sm:$0xff] %vm437_vm0, %v8005_v47  ;;  %v8031_v55 = vld [vmem:[#allocation2 + $0xda] sm:$0xff]  ;;  %v905_v59 = vld [vmem:[#allocation2 + $0x150] sm:$0xff] }
  0xca   : > { %698 = vrot.lane.b32.xlu0 %v628_v61, %s7386_s18  ;;  %864 = vst.msk [vmem:[#allocation3 + $0x2b0] sm:$0xff] %vm437_vm0, %v8011_v48  ;;  %874 = vst.msk [vmem:[#allocation3 + $0x440] sm:$0xff] %vm437_vm0, %v8025_v51  ;;  %v8042_v57 = vld [vmem:[#allocation2 + $0xc1] sm:$0xff]  ;;  %v8046_v60 = vld [vmem:[#allocation2 + $0xf2] sm:$0xff] }
  0xcb   : > { %704 = vrot.lane.b32.xlu1 %v631_v62, %s7386_s18  ;;  %865 = vst.msk [vmem:[#allocation3 + $0x2d8] sm:$0xff] %vm437_vm0, %v8031_v55  ;;  %866 = vst.msk [vmem:[#allocation3 + $0x300] sm:$0xff] %vm437_vm0, %v8033_v56  ;;  %v649_v58 = vld [vmem:[#allocation2 + $0x141] sm:$0xff]  ;;  %v898_v62 = vld [vmem:[#allocation2 + $0xf8] sm:$0xff] }
  0xcc   : > { %v8048_v61 = vld [vmem:[#allocation2 + $0xfa] sm:$0xff]  ;;  %867 = vst.msk [vmem:[#allocation3 + $0x328] sm:$0xff] %vm437_vm0, %v8046_v60  ;;  %v8065_v3 = vld [vmem:[#allocation2 + $0x152] sm:$0xff]  ;;  %v8073_v6 = vld [vmem:[#allocation2 + $0x10a] sm:$0xff] }
  0xcd   : > { %868 = vst.msk [vmem:[#allocation3 + $0x350] sm:$0xff] %vm437_vm0, %v8048_v61  ;;  %v576_v63 = vld [vmem:[#allocation2 + $0xd8] sm:$0xff]  ;;  %v577_v0 = vld [vmem:[#allocation2 + $0xe0] sm:$0xff]  ;;  %875 = vst.msk [vmem:[#allocation3 + $0x468] sm:$0xff] %vm437_vm0, %v8065_v3 }
  0xce   : > { %959 = vrot.lane.b32.xlu0 %v7810_v34, %s7386_s18  ;;  %v7970_v34 = vld [vmem:[#allocation8 + $0x118] sm:$0xff]   ;;  %608 = vst.msk [vmem:[#allocation3 + $0x2d0] sm:$0xff] %vm437_vm0, %v576_v63  ;;  %609 = vst.msk [vmem:[#allocation3 + $0x2f8] sm:$0xff] %vm437_vm0, %v577_v0  ;;  %v8062_v2 = vld [vmem:[#allocation2 + $0xe1] sm:$0xff] }
  0xcf   : > { %965 = vrot.lane.b32.xlu1 %v7823_v37, %s7386_s18  ;;  %v7980_v37 = vld [vmem:[#allocation2 + $0x91] sm:$0xff]  ;;  %6848 = vmatprep.subr.bf16.mxu0 %v7970_v34  ;;  %1374 = vst.msk [vmem:[#allocation3 + $0x248] sm:$0xff] %vm437_vm0, %v576_v63  ;;  %1375 = vst.msk [vmem:[#allocation3 + $0x270] sm:$0xff] %vm437_vm0, %v577_v0  ;;  %v648_v1 = vld [vmem:[#allocation2 + $0x139] sm:$0xff] }
  0xd0   : > { %v8067_v4 = vld [vmem:[#allocation2 + $0x15a] sm:$0xff]  ;;  %v897_v5 = vld [vmem:[#allocation2 + $0xf0] sm:$0xff]  ;;  %869 = vst.msk [vmem:[#allocation3 + $0x378] sm:$0xff] %vm437_vm0, %v8073_v6  ;;  %v907_v13 = vld [vmem:[#allocation2 + $0x168] sm:$0xff] }
  0xd1   : > { %876 = vst.msk [vmem:[#allocation3 + $0x490] sm:$0xff] %vm437_vm0, %v8067_v4  ;;  %v8075_v7 = vld [vmem:[#allocation2 + $0x112] sm:$0xff]  ;;  %v909_v0 = vld [vmem:[#allocation2 + $0x180] sm:$0xff] }
  0xd2   : > { %702 = vrot.lane.b32.xlu0 %v630_v8, %s7386_s18  ;;  %v908_v8 = vld [vmem:[#allocation2 + $0x170] sm:$0xff]  ;;  %870 = vst.msk [vmem:[#allocation3 + $0x3a0] sm:$0xff] %vm437_vm0, %v8075_v7  ;;  %v8086_v11 = vld [vmem:[#allocation2 + $0xd9] sm:$0xff] }
  0xd3   : > { %708 = vrot.lane.b32.xlu1 %v633_v10, %s7386_s18  ;;  %v586_v9 = vld [vmem:[#allocation2 + $0x150] sm:$0xff]  ;;  %v587_v10 = vld [vmem:[#allocation2 + $0x158] sm:$0xff] }
  0xd4   : > { %618 = vst.msk [vmem:[#allocation3 + $0x460] sm:$0xff] %vm437_vm0, %v586_v9  ;;  %619 = vst.msk [vmem:[#allocation3 + $0x488] sm:$0xff] %vm437_vm0, %v587_v10  ;;  %v651_v12 = vld [vmem:[#allocation2 + $0x159] sm:$0xff]  ;;  %v900_v16 = vld [vmem:[#allocation2 + $0x110] sm:$0xff] }
  0xd5   : > { %v578_v19 = vld [vmem:[#allocation2 + $0xf0] sm:$0xff]  ;;  %v8098_v23 = vld [vmem:[#allocation2 + $0xf9] sm:$0xff] }
  0xd6   : > { %963 = vrot.lane.b32.xlu0 %v7821_v36, %s7386_s18  ;;  %v7974_v36 = vld [vmem:[#allocation2 + $0xb2] sm:$0xff]  ;;  %610 = vst.msk [vmem:[#allocation3 + $0x320] sm:$0xff] %vm437_vm0, %v578_v19  ;;  %1376 = vst.msk [vmem:[#allocation3 + $0x298] sm:$0xff] %vm437_vm0, %v578_v19  ;;  %v652_v9 = vld [vmem:[#allocation2 + $0x169] sm:$0xff] }
  0xd7   : > { %969 = vrot.lane.b32.xlu1 %v7829_v39, %s7386_s18  ;;  %862 = vst.msk [vmem:[#allocation3 + $0x260] sm:$0xff] %vm437_vm0, %v7974_v36  ;;  %v7985_v39 = vld [vmem:[#allocation2 + $0xb1] sm:$0xff] }
  0xd8   : > { %v650_v21 = vld [vmem:[#allocation2 + $0x151] sm:$0xff] }
  0xd9   : > { %v8128_v10 = vld [vmem:[#allocation2 + $0x111] sm:$0xff] }
  0xda   : > { %706 = vrot.lane.b32.xlu0 %v632_v20, %s7386_s18  ;;  %v579_v20 = vld [vmem:[#allocation2 + $0xf8] sm:$0xff] }
  0xdb   : > { %712 = vrot.lane.b32.xlu1 %v635_v22, %s7386_s18  ;;  %611 = vst.msk [vmem:[#allocation3 + $0x348] sm:$0xff] %vm437_vm0, %v579_v20  ;;  %1377 = vst.msk [vmem:[#allocation3 + $0x2c0] sm:$0xff] %vm437_vm0, %v579_v20  ;;  %v7097_v22 = vld [vmem:[#allocation8 + $0xf8] sm:$0xff]  }
  0xdc   : > { %6224 = vmatprep.subr.bf16.mxu1 %v7097_v22  ;;  %v1071_v20 = vld [vmem:[#allocation2 + $0x19] sm:$0xff] }
  0xdd   : > { %1103 = vst.msk [vmem:[#allocation3 + $0x10] sm:$0xff] %vm437_vm0, %v1071_v20 }
  0xde   : > { %967 = vrot.lane.b32.xlu0 %v7827_v38, %s7386_s18  ;;  %v8001_v38 = vld [vmem:[#allocation2 + $0xa9] sm:$0xff] }
  0xdf   : > { %973 = vrot.lane.b32.xlu1 %v7842_v41, %s7386_s18  ;;  %v647_v41 = vld [vmem:[#allocation2 + $0x129] sm:$0xff] }
  0xe2   : > { %710 = vrot.lane.b32.xlu0 %v7980_v37, %s7386_s18 }
  0xe3   : > { %716 = vrot.lane.b32.xlu1 %v7985_v39, %s7386_s18 }
  0xe6   : > { %971 = vrot.lane.b32.xlu0 %v7835_v40, %s7386_s18  ;;  %v646_v40 = vld [vmem:[#allocation2 + $0x121] sm:$0xff] }
  0xe7   : > { %993 = vrot.lane.b32.xlu1 %v7849_v44, %s7386_s18  ;;  %v8023_v44 = vld [vmem:[#allocation2 + $0x13a] sm:$0xff] }
  0xe8   : > { %873 = vst.msk [vmem:[#allocation3 + $0x418] sm:$0xff] %vm437_vm0, %v8023_v44 }
  0xea   : > { %714 = vrot.lane.b32.xlu0 %v8001_v38, %s7386_s18  ;;  %v687_v63 = vpop.permute.xlu1 %686 }
  0xeb   : > { %736 = vrot.lane.b32.xlu1 %v647_v41, %s7386_s18  ;;  %v8101_v41 = vld [vmem:[#allocation2 + $0x16a] sm:$0xff]  ;;  %783 = vst.msk [vmem:[#allocation3] sm:$0xff] %vm782_vm2, %v687_v63 }
  0xec   : > { %877 = vst.msk [vmem:[#allocation3 + $0x4b8] sm:$0xff] %vm437_vm0, %v8101_v41  ;;  %v1330_v63 = vld [vmem:[#allocation2 + $0x48] sm:$0xff] }
  0xed   : > { %1362 = vst.msk [vmem:[#allocation3 + $0x68] sm:$0xff] %vm437_vm0, %v1330_v63 }
  0xee   : > { %991 = vrot.lane.b32.xlu0 %v7847_v43, %s7386_s18  ;;  %v906_v43 = vld [vmem:[#allocation2 + $0x158] sm:$0xff] }
  0xef   : > { %977 = vrot.lane.b32.xlu1 %v896_v49, %s7386_s18  ;;  %v8103_v49 = vld [vmem:[#allocation2 + $0x172] sm:$0xff] }
  0xf0   : > { %878 = vst.msk [vmem:[#allocation3 + $0x4e0] sm:$0xff] %vm437_vm0, %v8103_v49 }
  0xf2   : > { %734 = vrot.lane.b32.xlu0 %v646_v40, %s7386_s18  ;;  %v899_v40 = vld [vmem:[#allocation2 + $0x108] sm:$0xff] }
  0xf3   : > { %720 = vrot.lane.b32.xlu1 %v8020_v50, %s7386_s18 }
  0xf6   : > { %975 = vrot.lane.b32.xlu0 %v895_v53, %s7386_s18  ;;  %v910_v53 = vld [vmem:[#allocation2 + $0x188] sm:$0xff] }
  0xf7   : > { %997 = vrot.lane.b32.xlu1 %v906_v43, %s7386_s18  ;;  %v588_v43 = vld [vmem:[#allocation2 + $0x168] sm:$0xff] }
  0xf8   : > { %620 = vst.msk [vmem:[#allocation3 + $0x4b0] sm:$0xff] %vm437_vm0, %v588_v43  ;;  %v1587_v43 = vld [vmem:[#allocation2 + $0x52] sm:$0xff] }
  0xf9   : > { %1619 = vst.msk [vmem:[#allocation3 + $0x98] sm:$0xff] %vm437_vm0, %v1587_v43 }
  0xfa   : > { %718 = vrot.lane.b32.xlu0 %v8042_v57, %s7386_s18 }
  0xfb   : > { %740 = vrot.lane.b32.xlu1 %v649_v58, %s7386_s18  ;;  %v589_v58 = vld [vmem:[#allocation2 + $0x170] sm:$0xff] }
  0xfc   : > { %621 = vst.msk [vmem:[#allocation3 + $0x4d8] sm:$0xff] %vm437_vm0, %v589_v58 }
  0xfe   : > { %995 = vrot.lane.b32.xlu0 %v905_v59, %s7386_s18  ;;  %v8114_v59 = vld [vmem:[#allocation2 + $0xf1] sm:$0xff] }
  0xff   : > { %981 = vrot.lane.b32.xlu1 %v898_v62, %s7386_s18  ;;  %v653_v62 = vld [vmem:[#allocation2 + $0x171] sm:$0xff] }
 0x102   : > { %738 = vrot.lane.b32.xlu0 %v648_v1, %s7386_s18  ;;  %v580_v1 = vld [vmem:[#allocation2 + $0x108] sm:$0xff] }
 0x103   : > { %724 = vrot.lane.b32.xlu1 %v8062_v2, %s7386_s18  ;;  %612 = vst.msk [vmem:[#allocation3 + $0x370] sm:$0xff] %vm437_vm0, %v580_v1  ;;  %1378 = vst.msk [vmem:[#allocation3 + $0x2e8] sm:$0xff] %vm437_vm0, %v580_v1 }
 0x106   : > { %979 = vrot.lane.b32.xlu0 %v897_v5, %s7386_s18  ;;  %v581_v5 = vld [vmem:[#allocation2 + $0x110] sm:$0xff] }
 0x107   : > { %1001 = vrot.lane.b32.xlu1 %v908_v8, %s7386_s18  ;;  %613 = vst.msk [vmem:[#allocation3 + $0x398] sm:$0xff] %vm437_vm0, %v581_v5  ;;  %1379 = vst.msk [vmem:[#allocation3 + $0x310] sm:$0xff] %vm437_vm0, %v581_v5 }
 0x10a   : > { %722 = vrot.lane.b32.xlu0 %v8086_v11, %s7386_s18 }
 0x10b   : > { %744 = vrot.lane.b32.xlu1 %v651_v12, %s7386_s18  ;;  %v1328_v12 = vld [vmem:[#allocation2 + $0x30] sm:$0xff] }
 0x10c   : > { %1360 = vst.msk [vmem:[#allocation3 + $0x18] sm:$0xff] %vm437_vm0, %v1328_v12 }
 0x10e   : > { %999 = vrot.lane.b32.xlu0 %v907_v13, %s7386_s18  ;;  %v1329_v13 = vld [vmem:[#allocation2 + $0x38] sm:$0xff] }
 0x10f   : > { %985 = vrot.lane.b32.xlu1 %v900_v16, %s7386_s18  ;;  %1361 = vst.msk [vmem:[#allocation3 + $0x40] sm:$0xff] %vm437_vm0, %v1329_v13 }
 0x112   : > { %742 = vrot.lane.b32.xlu0 %v650_v21, %s7386_s18  ;;  %v1072_v21 = vld [vmem:[#allocation2 + $0x21] sm:$0xff] }
 0x113   : > { %728 = vrot.lane.b32.xlu1 %v8098_v23, %s7386_s18  ;;  %1104 = vst.msk [vmem:[#allocation3 + $0x38] sm:$0xff] %vm437_vm0, %v1072_v21 }
 0x116   : > { %983 = vrot.lane.b32.xlu0 %v899_v40, %s7386_s18  ;;  %v689_v8 = vpop.permute.xlu1 %688  ;;  %v1585_v40 = vld [vmem:[#allocation2 + $0x3a] sm:$0xff] }
 0x117   : > { %1005 = vrot.lane.b32.xlu1 %v910_v53, %s7386_s18  ;;  %784 = vst.msk [vmem:[#allocation3 + $0x28] sm:$0xff] %vm782_vm2, %v689_v8  ;;  %v1586_v53 = vld [vmem:[#allocation2 + $0x4a] sm:$0xff] }
 0x118   : > { %1617 = vst.msk [vmem:[#allocation3 + $0x48] sm:$0xff] %vm437_vm0, %v1585_v40  ;;  %1618 = vst.msk [vmem:[#allocation3 + $0x70] sm:$0xff] %vm437_vm0, %v1586_v53  ;;  %v1333_v40 = vld [vmem:[#allocation2 + $0x68] sm:$0xff] }
 0x119   : > { %1365 = vst.msk [vmem:[#allocation3 + $0xe0] sm:$0xff] %vm437_vm0, %v1333_v40 }
 0x11a   : > { %726 = vrot.lane.b32.xlu0 %v8114_v59, %s7386_s18 }
 0x11b   : > { %748 = vrot.lane.b32.xlu1 %v653_v62, %s7386_s18  ;;  %v8148_v62 = vld [vmem:[#allocation2 + $0x109] sm:$0xff] }
 0x11e   : > { %1003 = vrot.lane.b32.xlu0 %v909_v0, %s7386_s18  ;;  %v1331_v0 = vld [vmem:[#allocation2 + $0x50] sm:$0xff]  ;;  %v1653_v8 = vld [vmem:[#allocation3 + $0x28] sm:$0xff] }
 0x11f   : > { %989 = vrot.lane.b32.xlu1 %v7908_v15, %s7386_s18  ;;  %v1584_v15 = vld [vmem:[#allocation2 + $0x32] sm:$0xff]  ;;  %1363 = vst.msk [vmem:[#allocation3 + $0x90] sm:$0xff] %vm437_vm0, %v1331_v0 }
 0x120   : > { %v944_v16 = vpop.permute.xlu0 %943  ;;  %1616 = vst.msk [vmem:[#allocation3 + $0x20] sm:$0xff] %vm437_vm0, %v1584_v15  ;;  %v7095_v15 = vld [vmem:[#allocation8 + $0x110] sm:$0xff]  }
 0x121   : > { %1039 = vst.msk [vmem:[#allocation3 + $0x8] sm:$0xff] %vm782_vm2, %v944_v16  ;;  %v950_v19 = vpop.permute.xlu1 %949 }
 0x122   : > { %746 = vrot.lane.b32.xlu0 %v652_v9, %s7386_s18  ;;  %1042 = vst.msk [vmem:[#allocation3 + $0x80] sm:$0xff] %vm782_vm2, %v950_v19  ;;  %v1074_v9 = vld [vmem:[#allocation2 + $0x39] sm:$0xff] }
 0x123   : > { %732 = vrot.lane.b32.xlu1 %v8128_v10, %s7386_s18  ;;  %1106 = vst.msk [vmem:[#allocation3 + $0x88] sm:$0xff] %vm437_vm0, %v1074_v9  ;;  %v7104_v9 = vld [vmem:[#allocation8 + $0x100] sm:$0xff]  }
 0x124   : > { %v946_v22 = vpop.permute.xlu0 %945 }
 0x125   : > { %1040 = vst.msk [vmem:[#allocation3 + $0x30] sm:$0xff] %vm782_vm2, %v946_v22  ;;  %v693_v58 = vpop.permute.xlu1 %692 }
 0x126   : > { %987 = vrot.lane.b32.xlu0 %v7906_v14, %s7386_s18  ;;  %786 = vst.msk [vmem:[#allocation3 + $0x78] sm:$0xff] %vm782_vm2, %v693_v58  ;;  %v1648_v14 = vld [vmem:[#allocation3] sm:$0xff]  ;;  %v7096_v58 = vld [vmem:[#allocation8 + $0x108] sm:$0xff]  }
 0x127   : > { %1458 = vrot.lane.b32.xlu1 %v7853_v45, %s7386_s18  ;;  %v1073_v45 = vld [vmem:[#allocation2 + $0x31] sm:$0xff]  ;;  %v1808_v22 = vpack.c.bf16 %v1653_v8, %v1648_v14  ;;  %v1591_v14 = vld [vmem:[#allocation2 + $0x82] sm:$0xff] }
 0x128   : > { %v948_v1 = vpop.permute.xlu0 %947  ;;  %v1649_v13 = vld [vmem:[#allocation3 + $0x8] sm:$0xff]  ;;  %1105 = vst.msk [vmem:[#allocation3 + $0x60] sm:$0xff] %vm437_vm0, %v1073_v45  ;;  %v1075_v8 = vld [vmem:[#allocation2 + $0x49] sm:$0xff]  ;;  %1623 = vst.msk [vmem:[#allocation3 + $0x138] sm:$0xff] %vm437_vm0, %v1591_v14 }
 0x129   : > { %1041 = vst.msk [vmem:[#allocation3 + $0x58] sm:$0xff] %vm782_vm2, %v948_v1  ;;  %v954_v5 = vpop.permute.xlu1 %953  ;;  %v1664_v20 = vld [vmem:[#allocation3 + $0x80] sm:$0xff]  ;;  %v1588_v1 = vld [vmem:[#allocation2 + $0x62] sm:$0xff]  ;;  %v1337_v14 = vld [vmem:[#allocation2 + $0x98] sm:$0xff] }
 0x12a   : > { %730 = vrot.lane.b32.xlu0 %v8148_v62, %s7386_s18  ;;  %1044 = vst.msk [vmem:[#allocation3 + $0xd0] sm:$0xff] %vm782_vm2, %v954_v5  ;;  %v1589_v5 = vld [vmem:[#allocation2 + $0x6a] sm:$0xff] }
 0x12b   : > { %1201 = vrot.lane.b32.xlu1 %v7920_v18, %s7386_s18  ;;  %v1332_v18 = vld [vmem:[#allocation2 + $0x60] sm:$0xff]  ;;  %1620 = vst.msk [vmem:[#allocation3 + $0xc0] sm:$0xff] %vm437_vm0, %v1588_v1  ;;  %1621 = vst.msk [vmem:[#allocation3 + $0xe8] sm:$0xff] %vm437_vm0, %v1589_v5 }
 0x12c   : > { %v691_v12 = vpop.permute.xlu0 %690  ;;  %v1654_v16 = vld [vmem:[#allocation3 + $0x30] sm:$0xff]  ;;  %1364 = vst.msk [vmem:[#allocation3 + $0xb8] sm:$0xff] %vm437_vm0, %v1332_v18  ;;  %1107 = vst.msk [vmem:[#allocation3 + $0xb0] sm:$0xff] %vm437_vm0, %v1075_v8 }
 0x12d   : > { %785 = vst.msk [vmem:[#allocation3 + $0x50] sm:$0xff] %vm782_vm2, %v691_v12  ;;  %v1809_v19 = vpack.c.bf16 %v1654_v16, %v1649_v13  ;;  %v697_v21 = vpop.permute.xlu1 %696  ;;  %v1663_v0 = vld [vmem:[#allocation3 + $0x78] sm:$0xff] }
 0x12e   : > { %1456 = vrot.lane.b32.xlu0 %v7872_v52, %s7386_s18  ;;  %788 = vst.msk [vmem:[#allocation3 + $0xc8] sm:$0xff] %vm782_vm2, %v697_v21  ;;  %v1335_v21 = vld [vmem:[#allocation2 + $0x80] sm:$0xff] }
 0x12f   : > { %2256 = vmatprep.mubr.bf16.mxu0 %v1809_v19  ;;  %1462 = vrot.lane.b32.xlu1 %v7877_v54, %s7386_s18  ;;  %v1590_v54 = vld [vmem:[#allocation2 + $0x7a] sm:$0xff]  ;;  %v7191_v19 = vld [vmem:[#allocation2 + $0x69] sm:$0xff]  ;;  %1367 = vst.msk [vmem:[#allocation3 + $0x130] sm:$0xff] %vm437_vm0, %v1335_v21  ;;  %1369 = vst.msk [vmem:[#allocation3 + $0x180] sm:$0xff] %vm437_vm0, %v1337_v14 }
 0x130   : > { %v952_v53 = vpop.permute.xlu0 %951  ;;  %2257 = vmatmul.mubr.bf16.vlgmr.msra.gmra.mxu0 %v1808_v22  ;;  %v1659_v43 = vld [vmem:[#allocation3 + $0x58] sm:$0xff]  ;;  %1622 = vst.msk [vmem:[#allocation3 + $0x110] sm:$0xff] %vm437_vm0, %v1590_v54  ;;  %v1336_v54 = vld [vmem:[#allocation2 + $0x90] sm:$0xff] }
 0x131   : > { %1043 = vst.msk [vmem:[#allocation3 + $0xa8] sm:$0xff] %vm782_vm2, %v952_v53  ;;  %v1814_v52 = vpack.c.bf16 %v1664_v20, %v1659_v43  ;;  %v958_v63 = vpop.permute.xlu1 %957  ;;  %6849 = vmatpush3.bf16.msra.mxu0 %v7970_v34  ;;  %v1076_v34 = vld [vmem:[#allocation2 + $0x51] sm:$0xff]  ;;  %v1674_v13 = vld [vmem:[#allocation3 + $0xd0] sm:$0xff] }
 0x132   : > { %1199 = vrot.lane.b32.xlu0 %v7915_v17, %s7386_s18  ;;  %1046 = vst.msk [vmem:[#allocation3 + $0x120] sm:$0xff] %vm782_vm2, %v958_v63  ;;  %6850 = vmatprep.subr.bf16.mxu0 %v7095_v15  ;;  %v1334_v20 = vld [vmem:[#allocation2 + $0x78] sm:$0xff]  ;;  %v1077_v43 = vld [vmem:[#allocation2 + $0x61] sm:$0xff] }
 0x133   : > { %2264 = vmatprep.mubr.bf16.mxu0 %v1814_v52  ;;  %1205 = vrot.lane.b32.xlu1 %v7930_v25, %s7386_s18  ;;  %1108 = vst.msk [vmem:[#allocation3 + $0xd8] sm:$0xff] %vm437_vm0, %v1076_v34  ;;  %v7190_v25 = vld [vmem:[#allocation2 + $0x49] sm:$0xff]  ;;  %1366 = vst.msk [vmem:[#allocation3 + $0x108] sm:$0xff] %vm437_vm0, %v1334_v20  ;;  %v7192_v1 = vld [vmem:[#allocation2 + $0x61] sm:$0xff] }
 0x134   : > { %v695_v17 = vpop.permute.xlu0 %694  ;;  %v1658_v45 = vld [vmem:[#allocation3 + $0x50] sm:$0xff]  ;;  %v1078_v52 = vld [vmem:[#allocation2 + $0x69] sm:$0xff]  ;;  %1109 = vst.msk [vmem:[#allocation3 + $0x100] sm:$0xff] %vm437_vm0, %v1077_v43  ;;  %1368 = vst.msk [vmem:[#allocation3 + $0x158] sm:$0xff] %vm437_vm0, %v1336_v54 }
 0x135   : > { %787 = vst.msk [vmem:[#allocation3 + $0xa0] sm:$0xff] %vm782_vm2, %v695_v17  ;;  %v1813_v12 = vpack.c.bf16 %v1663_v0, %v1658_v45  ;;  %v701_v16 = vpop.permute.xlu1 %700  ;;  %6851 = vmatpush3.bf16.msra.mxu0 %v7095_v15  ;;  %v1673_v53 = vld [vmem:[#allocation3 + $0xc8] sm:$0xff]  ;;  %v1080_v20 = vld [vmem:[#allocation2 + $0x81] sm:$0xff]  ;;  %v1339_v43 = vld [vmem:[#allocation2 + $0xb0] sm:$0xff] }
 0x136   : > { %1460 = vrot.lane.b32.xlu0 %v7190_v25, %s7386_s18  ;;  %790 = vst.msk [vmem:[#allocation3 + $0x118] sm:$0xff] %vm782_vm2, %v701_v16  ;;  %6852 = vmatprep.subr.bf16.mxu0 %v7096_v58  ;;  %v1594_v16 = vld [vmem:[#allocation2 + $0xaa] sm:$0xff]  ;;  %v1595_v25 = vld [vmem:[#allocation2 + $0xb2] sm:$0xff] }
 0x137   : > { %1466 = vrot.lane.b32.xlu1 %v7191_v19, %s7386_s18  ;;  %1110 = vst.msk [vmem:[#allocation3 + $0x128] sm:$0xff] %vm437_vm0, %v1078_v52  ;;  %v1079_v19 = vld [vmem:[#allocation2 + $0x79] sm:$0xff]  ;;  %1626 = vst.msk [vmem:[#allocation3 + $0x1b0] sm:$0xff] %vm437_vm0, %v1594_v16 }
 0x138   : > { %v956_v22 = vpop.permute.xlu0 %955  ;;  %2265 = vmatmul.mubr.bf16.gmra.mxu0 %v1813_v12  ;;  %v1669_v18 = vld [vmem:[#allocation3 + $0xa8] sm:$0xff]  ;;  %1627 = vst.msk [vmem:[#allocation3 + $0x1d8] sm:$0xff] %vm437_vm0, %v1595_v25  ;;  %1111 = vst.msk [vmem:[#allocation3 + $0x150] sm:$0xff] %vm437_vm0, %v1079_v19  ;;  %v1599_v25 = vld [vmem:[#allocation2 + $0xe2] sm:$0xff] }
 0x139   : > { %1045 = vst.msk [vmem:[#allocation3 + $0xf8] sm:$0xff] %vm782_vm2, %v956_v22  ;;  %v1819_v15 = vpack.c.bf16 %v1674_v13, %v1669_v18  ;;  %v962_v40 = vpop.permute.xlu1 %961  ;;  %6853 = vmatpush3.bf16.msra.mxu0 %v7096_v58  ;;  %v1684_v5 = vld [vmem:[#allocation3 + $0x120] sm:$0xff]  ;;  %v1593_v12 = vld [vmem:[#allocation2 + $0x9a] sm:$0xff] }
 0x13a   : > { %1203 = vrot.lane.b32.xlu0 %v7928_v24, %s7386_s18  ;;  %1048 = vst.msk [vmem:[#allocation3 + $0x170] sm:$0xff] %vm782_vm2, %v962_v40  ;;  %6854 = vmatprep.subr.bf16.mxu0 %v7104_v9  ;;  %v7195_v40 = vld [vmem:[#allocation2 + $0x99] sm:$0xff]  ;;  %v1083_v19 = vld [vmem:[#allocation2 + $0xa9] sm:$0xff] }
 0x13b   : > { %2272 = vmatprep.mubr.bf16.mxu0 %v1819_v15  ;;  %1209 = vrot.lane.b32.xlu1 %v7940_v27, %s7386_s18  ;;  %v7193_v27 = vld [vmem:[#allocation2 + $0x81] sm:$0xff]  ;;  %1625 = vst.msk [vmem:[#allocation3 + $0x188] sm:$0xff] %vm437_vm0, %v1593_v12  ;;  %1112 = vst.msk [vmem:[#allocation3 + $0x178] sm:$0xff] %vm437_vm0, %v1080_v20  ;;  %v7194_v15 = vld [vmem:[#allocation2 + $0x79] sm:$0xff] }
 0x13c   : > { %v699_v63 = vpop.permute.xlu0 %698  ;;  %v1668_v0 = vld [vmem:[#allocation3 + $0xa0] sm:$0xff]  ;;  %1371 = vst.msk [vmem:[#allocation3 + $0x1d0] sm:$0xff] %vm437_vm0, %v1339_v43  ;;  %v1598_v16 = vld [vmem:[#allocation2 + $0xda] sm:$0xff]  ;;  %1631 = vst.msk [vmem:[#allocation3 + $0x278] sm:$0xff] %vm437_vm0, %v1599_v25 }
 0x13d   : > { %789 = vst.msk [vmem:[#allocation3 + $0xf0] sm:$0xff] %vm782_vm2, %v699_v63  ;;  %v1818_v58 = vpack.c.bf16 %v1673_v53, %v1668_v0  ;;  %v705_v24 = vpop.permute.xlu1 %704  ;;  %6855 = vmatpush3.bf16.msra.mxu0 %v7104_v9  ;;  %v1592_v9 = vld [vmem:[#allocation2 + $0x92] sm:$0xff]  ;;  %v1683_v13 = vld [vmem:[#allocation3 + $0x118] sm:$0xff] }
 0x13e   : > { %1464 = vrot.lane.b32.xlu0 %v7192_v1, %s7386_s18  ;;  %792 = vst.msk [vmem:[#allocation3 + $0x168] sm:$0xff] %vm782_vm2, %v705_v24  ;;  %v1338_v53 = vld [vmem:[#allocation2 + $0xa8] sm:$0xff]  ;;  %v1081_v1 = vld [vmem:[#allocation2 + $0x91] sm:$0xff] }
 0x13f   : > { %1470 = vrot.lane.b32.xlu1 %v7193_v27, %s7386_s18  ;;  %1624 = vst.msk [vmem:[#allocation3 + $0x160] sm:$0xff] %vm437_vm0, %v1592_v9  ;;  %1370 = vst.msk [vmem:[#allocation3 + $0x1a8] sm:$0xff] %vm437_vm0, %v1338_v53  ;;  %v1084_v20 = vld [vmem:[#allocation2 + $0xb1] sm:$0xff]  ;;  %v1086_v43 = vld [vmem:[#allocation2 + $0xc9] sm:$0xff] }
 0x140   : > { %v960_v8 = vpop.permute.xlu0 %959  ;;  %2273 = vmatmul.mubr.bf16.gmra.mxu0 %v1818_v58  ;;  %v1679_v34 = vld [vmem:[#allocation3 + $0xf8] sm:$0xff]  ;;  %1113 = vst.msk [vmem:[#allocation3 + $0x1a0] sm:$0xff] %vm437_vm0, %v1081_v1  ;;  %1630 = vst.msk [vmem:[#allocation3 + $0x250] sm:$0xff] %vm437_vm0, %v1598_v16  ;;  %v7098_v16 = vld [vmem:[#allocation8 + $0xb8] sm:$0xff]  }
 0x141   : > { %1047 = vst.msk [vmem:[#allocation3 + $0x148] sm:$0xff] %vm782_vm2, %v960_v8  ;;  %v1824_v17 = vpack.c.bf16 %v1684_v5, %v1679_v34  ;;  %v966_v45 = vpop.permute.xlu1 %965  ;;  %v1082_v5 = vld [vmem:[#allocation2 + $0x99] sm:$0xff]  ;;  %v1341_v34 = vld [vmem:[#allocation2 + $0xc8] sm:$0xff] }
 0x142   : > { %1207 = vrot.lane.b32.xlu0 %v7932_v26, %s7386_s18  ;;  %1050 = vst.msk [vmem:[#allocation3 + $0x1c0] sm:$0xff] %vm782_vm2, %v966_v45 }
 0x143   : > { %2280 = vmatprep.mubr.bf16.mxu0 %v1824_v17  ;;  %1213 = vrot.lane.b32.xlu1 %v7944_v29, %s7386_s18  ;;  %v1694_v29 = vld [vmem:[#allocation3 + $0x170] sm:$0xff]  ;;  %1114 = vst.msk [vmem:[#allocation3 + $0x1c8] sm:$0xff] %vm437_vm0, %v1082_v5  ;;  %1373 = vst.msk [vmem:[#allocation3 + $0x220] sm:$0xff] %vm437_vm0, %v1341_v34  ;;  %v1600_v5 = vld [vmem:[#allocation2 + $0xf2] sm:$0xff] }
 0x144   : > { %v703_v26 = vpop.permute.xlu0 %702  ;;  %v1678_v21 = vld [vmem:[#allocation3 + $0xf0] sm:$0xff]  ;;  %1115 = vst.msk [vmem:[#allocation3 + $0x1f0] sm:$0xff] %vm437_vm0, %v1083_v19  ;;  %1116 = vst.msk [vmem:[#allocation3 + $0x218] sm:$0xff] %vm437_vm0, %v1084_v20  ;;  %v7099_v19 = vld [vmem:[#allocation8 + $0xf0] sm:$0xff]  }
 0x145   : > { %791 = vst.msk [vmem:[#allocation3 + $0x140] sm:$0xff] %vm782_vm2, %v703_v26  ;;  %v1823_v22 = vpack.c.bf16 %v1683_v13, %v1678_v21  ;;  %v709_v18 = vpop.permute.xlu1 %708  ;;  %v1693_v24 = vld [vmem:[#allocation3 + $0x168] sm:$0xff]  ;;  %v1597_v13 = vld [vmem:[#allocation2 + $0xca] sm:$0xff] }
 0x146   : > { %1468 = vrot.lane.b32.xlu0 %v7194_v15, %s7386_s18  ;;  %794 = vst.msk [vmem:[#allocation3 + $0x1b8] sm:$0xff] %vm782_vm2, %v709_v18 }
 0x147   : > { %1474 = vrot.lane.b32.xlu1 %v7195_v40, %s7386_s18  ;;  %1629 = vst.msk [vmem:[#allocation3 + $0x228] sm:$0xff] %vm437_vm0, %v1597_v13  ;;  %1118 = vst.msk [vmem:[#allocation3 + $0x268] sm:$0xff] %vm437_vm0, %v1086_v43  ;;  %v1090_v13 = vld [vmem:[#allocation2 + $0xf9] sm:$0xff]  ;;  %v1092_v43 = vld [vmem:[#allocation2 + $0x111] sm:$0xff] }
 0x148   : > { %v964_v52 = vpop.permute.xlu0 %963  ;;  %2281 = vmatmul.mubr.bf16.gmra.mxu0 %v1823_v22  ;;  %v1689_v63 = vld [vmem:[#allocation3 + $0x148] sm:$0xff]  ;;  %1632 = vst.msk [vmem:[#allocation3 + $0x2a0] sm:$0xff] %vm437_vm0, %v1600_v5  ;;  %1122 = vst.msk [vmem:[#allocation3 + $0x308] sm:$0xff] %vm437_vm0, %v1090_v13  ;;  %v7109_v13 = vld [vmem:[#allocation8 + $0x90] sm:$0xff]  }
 0x149   : > { %1049 = vst.msk [vmem:[#allocation3 + $0x198] sm:$0xff] %vm782_vm2, %v964_v52  ;;  %v1829_v0 = vpack.c.bf16 %v1694_v29, %v1689_v63  ;;  %v970_v58 = vpop.permute.xlu1 %969 }
 0x14a   : > { %1211 = vrot.lane.b32.xlu0 %v7942_v28, %s7386_s18  ;;  %1052 = vst.msk [vmem:[#allocation3 + $0x210] sm:$0xff] %vm782_vm2, %v970_v58  ;;  %v1704_v28 = vld [vmem:[#allocation3 + $0x1c0] sm:$0xff] }
 0x14b   : > { %2288 = vmatprep.mubr.bf16.mxu0 %v1829_v0  ;;  %1217 = vrot.lane.b32.xlu1 %v7954_v31, %s7386_s18  ;;  %v1340_v31 = vld [vmem:[#allocation2 + $0xc0] sm:$0xff]  ;;  %1124 = vst.msk [vmem:[#allocation3 + $0x358] sm:$0xff] %vm437_vm0, %v1092_v43 }
 0x14c   : > { %v707_v27 = vpop.permute.xlu0 %706  ;;  %v1688_v54 = vld [vmem:[#allocation3 + $0x140] sm:$0xff]  ;;  %1372 = vst.msk [vmem:[#allocation3 + $0x1f8] sm:$0xff] %vm437_vm0, %v1340_v31  ;;  %v7113_v43 = vld [vmem:[#allocation8 + $0x80] sm:$0xff]  }
 0x14d   : > { %793 = vst.msk [vmem:[#allocation3 + $0x190] sm:$0xff] %vm782_vm2, %v707_v27  ;;  %v1828_v14 = vpack.c.bf16 %v1693_v24, %v1688_v54  ;;  %v713_v8 = vpop.permute.xlu1 %712  ;;  %v1601_v27 = vld [vmem:[#allocation2 + $0xfa] sm:$0xff]  ;;  %v1603_v54 = vld [vmem:[#allocation2 + $0x112] sm:$0xff] }
 0x14e   : > { %1472 = vrot.lane.b32.xlu0 %v7980_v37, %s7386_s18  ;;  %796 = vst.msk [vmem:[#allocation3 + $0x208] sm:$0xff] %vm782_vm2, %v713_v8  ;;  %v1596_v37 = vld [vmem:[#allocation2 + $0xc2] sm:$0xff] }
 0x14f   : > { %1478 = vrot.lane.b32.xlu1 %v7985_v39, %s7386_s18  ;;  %v1703_v39 = vld [vmem:[#allocation3 + $0x1b8] sm:$0xff]  ;;  %1628 = vst.msk [vmem:[#allocation3 + $0x200] sm:$0xff] %vm437_vm0, %v1596_v37  ;;  %1633 = vst.msk [vmem:[#allocation3 + $0x2c8] sm:$0xff] %vm437_vm0, %v1601_v27  ;;  %v7105_v27 = vld [vmem:[#allocation8 + $0xa0] sm:$0xff]  }
 0x150   : > { %v968_v17 = vpop.permute.xlu0 %967  ;;  %2289 = vmatmul.mubr.bf16.gmra.mxu0 %v1828_v14  ;;  %v1699_v45 = vld [vmem:[#allocation3 + $0x198] sm:$0xff]  ;;  %v1087_v14 = vld [vmem:[#allocation2 + $0xd9] sm:$0xff]  ;;  %1635 = vst.msk [vmem:[#allocation3 + $0x318] sm:$0xff] %vm437_vm0, %v1603_v54 }
 0x151   : > { %1051 = vst.msk [vmem:[#allocation3 + $0x1e8] sm:$0xff] %vm782_vm2, %v968_v17  ;;  %v1834_v9 = vpack.c.bf16 %v1704_v28, %v1699_v45  ;;  %v974_v12 = vpop.permute.xlu1 %973  ;;  %v1088_v8 = vld [vmem:[#allocation2 + $0xe1] sm:$0xff] }
 0x152   : > { %1215 = vrot.lane.b32.xlu0 %v7952_v30, %s7386_s18  ;;  %1054 = vst.msk [vmem:[#allocation3 + $0x260] sm:$0xff] %vm782_vm2, %v974_v12 }
 0x153   : > { %2296 = vmatprep.mubr.bf16.mxu0 %v1834_v9  ;;  %1221 = vrot.lane.b32.xlu1 %v7965_v33, %s7386_s18  ;;  %v1714_v33 = vld [vmem:[#allocation3 + $0x210] sm:$0xff]  ;;  %1119 = vst.msk [vmem:[#allocation3 + $0x290] sm:$0xff] %vm437_vm0, %v1087_v14  ;;  %1120 = vst.msk [vmem:[#allocation3 + $0x2b8] sm:$0xff] %vm437_vm0, %v1088_v8 }
 0x154   : > { %v711_v30 = vpop.permute.xlu0 %710  ;;  %v1698_v26 = vld [vmem:[#allocation3 + $0x190] sm:$0xff] }
 0x155   : > { %795 = vst.msk [vmem:[#allocation3 + $0x1e0] sm:$0xff] %vm782_vm2, %v711_v30  ;;  %v1833_v21 = vpack.c.bf16 %v1703_v39, %v1698_v26  ;;  %v717_v22 = vpop.permute.xlu1 %716  ;;  %v1713_v53 = vld [vmem:[#allocation3 + $0x208] sm:$0xff]  ;;  %v1349_v30 = vld [vmem:[#allocation2 + $0x128] sm:$0xff] }
 0x156   : > { %1476 = vrot.lane.b32.xlu0 %v8001_v38, %s7386_s18  ;;  %798 = vst.msk [vmem:[#allocation3 + $0x258] sm:$0xff] %vm782_vm2, %v717_v22  ;;  %v1085_v38 = vld [vmem:[#allocation2 + $0xc1] sm:$0xff]  ;;  %v7100_v22 = vld [vmem:[#allocation8 + $0xb0] sm:$0xff]  }
 0x157   : > { %1482 = vrot.lane.b32.xlu1 %v8020_v50, %s7386_s18  ;;  %1117 = vst.msk [vmem:[#allocation3 + $0x240] sm:$0xff] %vm437_vm0, %v1085_v38  ;;  %1381 = vst.msk [vmem:[#allocation3 + $0x360] sm:$0xff] %vm437_vm0, %v1349_v30  ;;  %v1091_v38 = vld [vmem:[#allocation2 + $0x109] sm:$0xff]  ;;  %v1412_v14 = vld [vmem:[#allocation2 + $0x121] sm:$0xff] }
 0x158   : > { %v972_v18 = vpop.permute.xlu0 %971  ;;  %2297 = vmatmul.mubr.bf16.gmra.mxu0 %v1833_v21  ;;  %v1709_v15 = vld [vmem:[#allocation3 + $0x1e8] sm:$0xff]  ;;  %1123 = vst.msk [vmem:[#allocation3 + $0x330] sm:$0xff] %vm437_vm0, %v1091_v38  ;;  %v1093_v8 = vld [vmem:[#allocation2 + $0x121] sm:$0xff] }
 0x159   : > { %1053 = vst.msk [vmem:[#allocation3 + $0x238] sm:$0xff] %vm782_vm2, %v972_v18  ;;  %v1839_v29 = vpack.c.bf16 %v1714_v33, %v1709_v15  ;;  %v994_v40 = vpop.permute.xlu1 %993  ;;  %v7101_v18 = vld [vmem:[#allocation8 + $0xe8] sm:$0xff]   ;;  %v1414_v30 = vld [vmem:[#allocation2 + $0x139] sm:$0xff] }
 0x15a   : > { %1219 = vrot.lane.b32.xlu0 %v7956_v32, %s7386_s18  ;;  %1064 = vst.msk [vmem:[#allocation3 + $0x3f0] sm:$0xff] %vm782_vm2, %v994_v40  ;;  %v1724_v32 = vld [vmem:[#allocation3 + $0x260] sm:$0xff]  ;;  %v1604_v15 = vld [vmem:[#allocation2 + $0x122] sm:$0xff]  ;;  %v1606_v40 = vld [vmem:[#allocation2 + $0x13a] sm:$0xff] }
 0x15b   : > { %2304 = vmatprep.mubr.bf16.mxu0 %v1839_v29  ;;  %1225 = vrot.lane.b32.xlu1 %v7974_v36, %s7386_s18  ;;  %v1605_v29 = vld [vmem:[#allocation2 + $0x12a] sm:$0xff]  ;;  %1636 = vst.msk [vmem:[#allocation3 + $0x340] sm:$0xff] %vm437_vm0, %v1604_v15  ;;  %1638 = vst.msk [vmem:[#allocation3 + $0x390] sm:$0xff] %vm437_vm0, %v1606_v40 }
 0x15c   : > { %v715_v50 = vpop.permute.xlu0 %714  ;;  %v1708_v52 = vld [vmem:[#allocation3 + $0x1e0] sm:$0xff]  ;;  %1637 = vst.msk [vmem:[#allocation3 + $0x368] sm:$0xff] %vm437_vm0, %v1605_v29  ;;  %1125 = vst.msk [vmem:[#allocation3 + $0x380] sm:$0xff] %vm437_vm0, %v1093_v8 }
 0x15d   : > { %797 = vst.msk [vmem:[#allocation3 + $0x230] sm:$0xff] %vm782_vm2, %v715_v50  ;;  %v1838_v63 = vpack.c.bf16 %v1713_v53, %v1708_v52  ;;  %v737_v0 = vpop.permute.xlu1 %736  ;;  %v1607_v53 = vld [vmem:[#allocation2 + $0x142] sm:$0xff]  ;;  %v1355_v40 = vld [vmem:[#allocation2 + $0x170] sm:$0xff] }
 0x15e   : > { %1480 = vrot.lane.b32.xlu0 %v8042_v57, %s7386_s18  ;;  %808 = vst.msk [vmem:[#allocation3 + $0x3e8] sm:$0xff] %vm782_vm2, %v737_v0  ;;  %v1723_v57 = vld [vmem:[#allocation3 + $0x258] sm:$0xff] }
 0x15f   : > { %1486 = vrot.lane.b32.xlu1 %v8062_v2, %s7386_s18  ;;  %v1602_v2 = vld [vmem:[#allocation2 + $0x10a] sm:$0xff]  ;;  %1639 = vst.msk [vmem:[#allocation3 + $0x3b8] sm:$0xff] %vm437_vm0, %v1607_v53  ;;  %1387 = vst.msk [vmem:[#allocation3 + $0x450] sm:$0xff] %vm437_vm0, %v1355_v40 }
 0x160   : > { %v992_v36 = vpop.permute.xlu0 %991  ;;  %2305 = vmatmul.mubr.bf16.gmra.mxu0 %v1838_v63  ;;  %v1719_v58 = vld [vmem:[#allocation3 + $0x238] sm:$0xff]  ;;  %1634 = vst.msk [vmem:[#allocation3 + $0x2f0] sm:$0xff] %vm437_vm0, %v1602_v2  ;;  %v7106_v2 = vld [vmem:[#allocation8 + $0xd8] sm:$0xff]  }
 0x161   : > { %1063 = vst.msk [vmem:[#allocation3 + $0x3c8] sm:$0xff] %vm782_vm2, %v992_v36  ;;  %v1844_v24 = vpack.c.bf16 %v1724_v32, %v1719_v58  ;;  %v978_v1 = vpop.permute.xlu1 %977  ;;  %v1413_v52 = vld [vmem:[#allocation2 + $0x129] sm:$0xff]  ;;  %v1350_v58 = vld [vmem:[#allocation2 + $0x138] sm:$0xff] }
 0x162   : > { %1223 = vrot.lane.b32.xlu0 %v7972_v35, %s7386_s18  ;;  %1056 = vst.msk [vmem:[#allocation3 + $0x2b0] sm:$0xff] %vm782_vm2, %v978_v1  ;;  %v7102_v63 = vld [vmem:[#allocation8 + $0xa8] sm:$0xff]  }
 0x163   : > { %2312 = vmatprep.mubr.bf16.mxu0 %v1844_v24  ;;  %1229 = vrot.lane.b32.xlu1 %v8011_v48, %s7386_s18  ;;  %v1774_v48 = vld [vmem:[#allocation3 + $0x3f0] sm:$0xff]  ;;  %1382 = vst.msk [vmem:[#allocation3 + $0x388] sm:$0xff] %vm437_vm0, %v1350_v58  ;;  %v1419_v58 = vld [vmem:[#allocation2 + $0x171] sm:$0xff] }
 0x164   : > { %v735_v35 = vpop.permute.xlu0 %734  ;;  %v1718_v28 = vld [vmem:[#allocation3 + $0x230] sm:$0xff]  ;;  %v1613_v8 = vld [vmem:[#allocation2 + $0x18a] sm:$0xff] }
 0x165   : > { %807 = vst.msk [vmem:[#allocation3 + $0x3c0] sm:$0xff] %vm782_vm2, %v735_v35  ;;  %v1843_v31 = vpack.c.bf16 %v1723_v57, %v1718_v28  ;;  %v721_v34 = vpop.permute.xlu1 %720  ;;  %v1773_v37 = vld [vmem:[#allocation3 + $0x3e8] sm:$0xff]  ;;  %v1351_v24 = vld [vmem:[#allocation2 + $0x140] sm:$0xff]  ;;  %v1094_v35 = vld [vmem:[#allocation2 + $0x129] sm:$0xff] }
 0x166   : > { %1484 = vrot.lane.b32.xlu0 %v8086_v11, %s7386_s18  ;;  %800 = vst.msk [vmem:[#allocation3 + $0x2a8] sm:$0xff] %vm782_vm2, %v721_v34  ;;  %v1089_v11 = vld [vmem:[#allocation2 + $0xf1] sm:$0xff]  ;;  %v1415_v34 = vld [vmem:[#allocation2 + $0x141] sm:$0xff] }
 0x167   : > { %1490 = vrot.lane.b32.xlu1 %v8098_v23, %s7386_s18  ;;  %1121 = vst.msk [vmem:[#allocation3 + $0x2e0] sm:$0xff] %vm437_vm0, %v1089_v11  ;;  %1383 = vst.msk [vmem:[#allocation3 + $0x3b0] sm:$0xff] %vm437_vm0, %v1351_v24  ;;  %v1098_v24 = vld [vmem:[#allocation2 + $0x159] sm:$0xff] }
 0x168   : > { %v976_v17 = vpop.permute.xlu0 %975  ;;  %2313 = vmatmul.mubr.bf16.gmra.mxu0 %v1843_v31  ;;  %v1769_v45 = vld [vmem:[#allocation3 + $0x3c8] sm:$0xff]  ;;  %1126 = vst.msk [vmem:[#allocation3 + $0x3a8] sm:$0xff] %vm437_vm0, %v1094_v35  ;;  %1130 = vst.msk [vmem:[#allocation3 + $0x448] sm:$0xff] %vm437_vm0, %v1098_v24 }
 0x169   : > { %1055 = vst.msk [vmem:[#allocation3 + $0x288] sm:$0xff] %vm782_vm2, %v976_v17  ;;  %v1869_v9 = vpack.c.bf16 %v1774_v48, %v1769_v45  ;;  %v998_v12 = vpop.permute.xlu1 %997  ;;  %v1734_v20 = vld [vmem:[#allocation3 + $0x2b0] sm:$0xff]  ;;  %v7107_v48 = vld [vmem:[#allocation8 + $0x98] sm:$0xff]   ;;  %v7108_v45 = vld [vmem:[#allocation8 + $0xd0] sm:$0xff]  }
 0x16a   : > { %1227 = vrot.lane.b32.xlu0 %v8005_v47, %s7386_s18  ;;  %1066 = vst.msk [vmem:[#allocation3 + $0x440] sm:$0xff] %vm782_vm2, %v998_v12  ;;  %v1353_v12 = vld [vmem:[#allocation2 + $0x158] sm:$0xff] }
 0x16b   : > { %2352 = vmatprep.mubr.bf16.mxu1 %v1869_v9  ;;  %1233 = vrot.lane.b32.xlu1 %v8033_v56, %s7386_s18  ;;  %v1348_v56 = vld [vmem:[#allocation2 + $0x120] sm:$0xff]  ;;  %v1352_v9 = vld [vmem:[#allocation2 + $0x150] sm:$0xff]  ;;  %1385 = vst.msk [vmem:[#allocation3 + $0x400] sm:$0xff] %vm437_vm0, %v1353_v12  ;;  %1645 = vst.msk [vmem:[#allocation3 + $0x4a8] sm:$0xff] %vm437_vm0, %v1613_v8 }
 0x16c   : > { %v719_v23 = vpop.permute.xlu0 %718  ;;  %v1768_v39 = vld [vmem:[#allocation3 + $0x3c0] sm:$0xff]  ;;  %1380 = vst.msk [vmem:[#allocation3 + $0x338] sm:$0xff] %vm437_vm0, %v1348_v56  ;;  %1384 = vst.msk [vmem:[#allocation3 + $0x3d8] sm:$0xff] %vm437_vm0, %v1352_v9  ;;  %v1358_v12 = vld [vmem:[#allocation2 + $0x198] sm:$0xff] }
 0x16d   : > { %799 = vst.msk [vmem:[#allocation3 + $0x280] sm:$0xff] %vm782_vm2, %v719_v23  ;;  %v1868_v25 = vpack.c.bf16 %v1773_v37, %v1768_v39  ;;  %v741_v47 = vpop.permute.xlu1 %740  ;;  %v1611_v56 = vld [vmem:[#allocation2 + $0x172] sm:$0xff] }
 0x16e   : > { %1488 = vrot.lane.b32.xlu0 %v8114_v59, %s7386_s18  ;;  %810 = vst.msk [vmem:[#allocation3 + $0x438] sm:$0xff] %vm782_vm2, %v741_v47  ;;  %v1609_v47 = vld [vmem:[#allocation2 + $0x15a] sm:$0xff] }
 0x16f   : > { %2353 = vmatmul.mubr.bf16.vlgmr.msra.gmra.mxu1 %v1868_v25  ;;  %1494 = vrot.lane.b32.xlu1 %v8128_v10, %s7386_s18  ;;  %v1733_v10 = vld [vmem:[#allocation3 + $0x2a8] sm:$0xff]  ;;  %1641 = vst.msk [vmem:[#allocation3 + $0x408] sm:$0xff] %vm437_vm0, %v1609_v47  ;;  %1643 = vst.msk [vmem:[#allocation3 + $0x458] sm:$0xff] %vm437_vm0, %v1611_v56  ;;  %v1101_v47 = vld [vmem:[#allocation2 + $0x181] sm:$0xff] }
 0x170   : > { %v996_v26 = vpop.permute.xlu0 %995  ;;  %v1729_v21 = vld [vmem:[#allocation3 + $0x288] sm:$0xff]  ;;  %6225 = vmatpush3.bf16.msra.mxu1 %v7098_v16  ;;  %v7110_v16 = vld [vmem:[#allocation8 + $0xc8] sm:$0xff]   ;;  %1390 = vst.msk [vmem:[#allocation3 + $0x4c8] sm:$0xff] %vm437_vm0, %v1358_v12  ;;  %1133 = vst.msk [vmem:[#allocation3 + $0x4c0] sm:$0xff] %vm437_vm0, %v1101_v47 }
 0x171   : > { %1065 = vst.msk [vmem:[#allocation3 + $0x418] sm:$0xff] %vm782_vm2, %v996_v26  ;;  %v1849_v59 = vpack.c.bf16 %v1734_v20, %v1729_v21  ;;  %v982_v33 = vpop.permute.xlu1 %981  ;;  %6226 = vmatprep.subr.bf16.mxu1 %v7099_v19  ;;  %v1784_v36 = vld [vmem:[#allocation3 + $0x440] sm:$0xff]  ;;  %v1095_v26 = vld [vmem:[#allocation2 + $0x139] sm:$0xff]  ;;  %v1096_v21 = vld [vmem:[#allocation2 + $0x141] sm:$0xff] }
 0x172   : > { %1231 = vrot.lane.b32.xlu0 %v8031_v55, %s7386_s18  ;;  %1058 = vst.msk [vmem:[#allocation3 + $0x300] sm:$0xff] %vm782_vm2, %v982_v33  ;;  %v1608_v25 = vld [vmem:[#allocation2 + $0x152] sm:$0xff]  ;;  %v1610_v20 = vld [vmem:[#allocation2 + $0x16a] sm:$0xff]  ;;  %v1423_v56 = vld [vmem:[#allocation2 + $0x1a1] sm:$0xff] }
 0x173   : > { %2320 = vmatprep.mubr.bf16.mxu0 %v1849_v59  ;;  %1237 = vrot.lane.b32.xlu1 %v8048_v61, %s7386_s18  ;;  %v7103_v61 = vld [vmem:[#allocation8 + $0xe0] sm:$0xff]   ;;  %1640 = vst.msk [vmem:[#allocation3 + $0x3e0] sm:$0xff] %vm437_vm0, %v1608_v25  ;;  %1642 = vst.msk [vmem:[#allocation3 + $0x430] sm:$0xff] %vm437_vm0, %v1610_v20  ;;  %v7111_v33 = vld [vmem:[#allocation8 + $0x88] sm:$0xff]  }
 0x174   : > { %v739_v55 = vpop.permute.xlu0 %738  ;;  %v1728_v50 = vld [vmem:[#allocation3 + $0x280] sm:$0xff]  ;;  %6227 = vmatpush3.bf16.msra.mxu1 %v7100_v22  ;;  %v1417_v59 = vld [vmem:[#allocation2 + $0x159] sm:$0xff]  ;;  %1127 = vst.msk [vmem:[#allocation3 + $0x3d0] sm:$0xff] %vm437_vm0, %v1095_v26  ;;  %1128 = vst.msk [vmem:[#allocation3 + $0x3f8] sm:$0xff] %vm437_vm0, %v1096_v21 }
 0x175   : > { %809 = vst.msk [vmem:[#allocation3 + $0x410] sm:$0xff] %vm782_vm2, %v739_v55  ;;  %v1848_v0 = vpack.c.bf16 %v1733_v10, %v1728_v50  ;;  %v725_v32 = vpop.permute.xlu1 %724  ;;  %6228 = vmatprep.subr.bf16.mxu1 %v7101_v18  ;;  %v1783_v54 = vld [vmem:[#allocation3 + $0x438] sm:$0xff] }
 0x176   : > { %1492 = vrot.lane.b32.xlu0 %v8148_v62, %s7386_s18  ;;  %802 = vst.msk [vmem:[#allocation3 + $0x2f8] sm:$0xff] %vm782_vm2, %v725_v32  ;;  %v1354_v10 = vld [vmem:[#allocation2 + $0x168] sm:$0xff]  ;;  %v1097_v32 = vld [vmem:[#allocation2 + $0x151] sm:$0xff] }
 0x177   : > { %2321 = vmatmul.mubr.bf16.gmra.mxu0 %v1848_v0  ;;  %1498 = vrot.lane.b32.xlu1 %v1413_v52, %s7386_s18  ;;  %1386 = vst.msk [vmem:[#allocation3 + $0x428] sm:$0xff] %vm437_vm0, %v1354_v10  ;;  %v7114_v0 = vld [vmem:[#allocation11 + $0x78] sm:$0xff]   ;;  %1129 = vst.msk [vmem:[#allocation3 + $0x420] sm:$0xff] %vm437_vm0, %v1097_v32  ;;  %v1707_v47 = vld [vmem:[#allocation3 + $0x1d8] sm:$0xff] }
 0x178   : > { %v980_v1 = vpop.permute.xlu0 %979  ;;  %v1779_v5 = vld [vmem:[#allocation3 + $0x418] sm:$0xff]  ;;  %6229 = vmatpush3.bf16.msra.mxu1 %v7102_v63  ;;  %v1416_v63 = vld [vmem:[#allocation2 + $0x151] sm:$0xff] }
 0x179   : > { %1057 = vst.msk [vmem:[#allocation3 + $0x2d8] sm:$0xff] %vm782_vm2, %v980_v1  ;;  %v1874_v57 = vpack.c.bf16 %v1784_v36, %v1779_v5  ;;  %v1002_v62 = vpop.permute.xlu1 %1001  ;;  %6230 = vmatprep.subr.bf16.mxu1 %v7103_v61  ;;  %v1420_v25 = vld [vmem:[#allocation2 + $0x181] sm:$0xff] }
 0x17a   : > { %1235 = vrot.lane.b32.xlu0 %v8046_v60, %s7386_s18  ;;  %1068 = vst.msk [vmem:[#allocation3 + $0x490] sm:$0xff] %vm782_vm2, %v1002_v62 }
 0x17b   : > { %2360 = vmatprep.mubr.bf16.mxu1 %v1874_v57  ;;  %1241 = vrot.lane.b32.xlu1 %v8075_v7, %s7386_s18  ;;  %v1744_v7 = vld [vmem:[#allocation3 + $0x300] sm:$0xff] }
 0x17c   : > { %v723_v28 = vpop.permute.xlu0 %722  ;;  %v1778_v31 = vld [vmem:[#allocation3 + $0x410] sm:$0xff]  ;;  %6231 = vmatpush3.bf16.msra.mxu1 %v7105_v27  ;;  %v1357_v27 = vld [vmem:[#allocation2 + $0x188] sm:$0xff] }
 0x17d   : > { %801 = vst.msk [vmem:[#allocation3 + $0x2d0] sm:$0xff] %vm782_vm2, %v723_v28  ;;  %v1873_v60 = vpack.c.bf16 %v1783_v54, %v1778_v31  ;;  %v745_v17 = vpop.permute.xlu1 %744  ;;  %6232 = vmatprep.subr.bf16.mxu1 %v7106_v2  ;;  %v1743_v19 = vld [vmem:[#allocation3 + $0x2f8] sm:$0xff]  ;;  %v1614_v28 = vld [vmem:[#allocation2 + $0x19a] sm:$0xff] }
 0x17e   : > { %1496 = vrot.lane.b32.xlu0 %v1412_v14, %s7386_s18  ;;  %812 = vst.msk [vmem:[#allocation3 + $0x488] sm:$0xff] %vm782_vm2, %v745_v17  ;;  %v1612_v14 = vld [vmem:[#allocation2 + $0x182] sm:$0xff] }
 0x17f   : > { %2361 = vmatmul.mubr.bf16.gmra.mxu1 %v1873_v60  ;;  %1502 = vrot.lane.b32.xlu1 %v1415_v34, %s7386_s18  ;;  %1389 = vst.msk [vmem:[#allocation3 + $0x4a0] sm:$0xff] %vm437_vm0, %v1357_v27  ;;  %1644 = vst.msk [vmem:[#allocation3 + $0x480] sm:$0xff] %vm437_vm0, %v1612_v14  ;;  %v1615_v31 = vld [vmem:[#allocation2 + $0x1a2] sm:$0xff]  ;;  %v1100_v60 = vld [vmem:[#allocation2 + $0x171] sm:$0xff] }
 0x180   : > { %v1000_v37 = vpop.permute.xlu0 %999  ;;  %v1739_v11 = vld [vmem:[#allocation3 + $0x2d8] sm:$0xff]  ;;  %6233 = vmatpush3.bf16.msra.mxu1 %v7107_v48  ;;  %1646 = vst.msk [vmem:[#allocation3 + $0x4d0] sm:$0xff] %vm437_vm0, %v1614_v28  ;;  %1647 = vst.msk [vmem:[#allocation3 + $0x4f8] sm:$0xff] %vm437_vm0, %v1615_v31  ;;  %v7115_v27 = vld [vmem:[#allocation11 + $0x38] sm:$0xff]  }
 0x181   : > { %1067 = vst.msk [vmem:[#allocation3 + $0x468] sm:$0xff] %vm782_vm2, %v1000_v37  ;;  %v1854_v23 = vpack.c.bf16 %v1744_v7, %v1739_v11  ;;  %v986_v39 = vpop.permute.xlu1 %985  ;;  %6234 = vmatprep.subr.bf16.mxu1 %v7108_v45  ;;  %v1794_v29 = vld [vmem:[#allocation3 + $0x490] sm:$0xff]  ;;  %v1418_v34 = vld [vmem:[#allocation2 + $0x169] sm:$0xff]  ;;  %v7117_v31 = vld [vmem:[#allocation11 + $0x30] sm:$0xff]  }
 0x182   : > { %1239 = vrot.lane.b32.xlu0 %v8073_v6, %s7386_s18  ;;  %1060 = vst.msk [vmem:[#allocation3 + $0x350] sm:$0xff] %vm782_vm2, %v986_v39  ;;  %v1099_v48 = vld [vmem:[#allocation2 + $0x169] sm:$0xff]  ;;  %v1359_v37 = vld [vmem:[#allocation2 + $0x1a0] sm:$0xff] }
 0x183   : > { %2328 = vmatprep.mubr.bf16.mxu0 %v1854_v23  ;;  %1245 = vrot.lane.b32.xlu1 %v7993_v46, %s7386_s18  ;;  %v7112_v46 = vld [vmem:[#allocation8 + $0xc0] sm:$0xff]   ;;  %v1421_v45 = vld [vmem:[#allocation2 + $0x189] sm:$0xff]  ;;  %1131 = vst.msk [vmem:[#allocation3 + $0x470] sm:$0xff] %vm437_vm0, %v1099_v48  ;;  %1132 = vst.msk [vmem:[#allocation3 + $0x498] sm:$0xff] %vm437_vm0, %v1100_v60 }
 0x184   : > { %v743_v6 = vpop.permute.xlu0 %742  ;;  %v1738_v22 = vld [vmem:[#allocation3 + $0x2d0] sm:$0xff]  ;;  %6235 = vmatpush3.bf16.msra.mxu1 %v7109_v13  ;;  %1391 = vst.msk [vmem:[#allocation3 + $0x4f0] sm:$0xff] %vm437_vm0, %v1359_v37  ;;  %v1687_v28 = vld [vmem:[#allocation3 + $0x138] sm:$0xff]  ;;  %v1692_v60 = vld [vmem:[#allocation3 + $0x160] sm:$0xff] }
 0x185   : > { %811 = vst.msk [vmem:[#allocation3 + $0x460] sm:$0xff] %vm782_vm2, %v743_v6  ;;  %v1853_v18 = vpack.c.bf16 %v1743_v19, %v1738_v22  ;;  %v729_v15 = vpop.permute.xlu1 %728  ;;  %6236 = vmatprep.subr.bf16.mxu1 %v7110_v16  ;;  %v1793_v52 = vld [vmem:[#allocation3 + $0x488] sm:$0xff]  ;;  %v1166_v22 = vld [vmem:[#allocation2 + $0x18a] sm:$0xff]  ;;  %v1682_v14 = vld [vmem:[#allocation3 + $0x110] sm:$0xff] }
 0x186   : > { %1500 = vrot.lane.b32.xlu0 %v1414_v30, %s7386_s18  ;;  %804 = vst.msk [vmem:[#allocation3 + $0x348] sm:$0xff] %vm782_vm2, %v729_v15  ;;  %v1102_v30 = vld [vmem:[#allocation2 + $0x189] sm:$0xff]  ;;  %v1657_v15 = vld [vmem:[#allocation3 + $0x48] sm:$0xff] }
 0x187   : > { %2329 = vmatmul.mubr.bf16.gmra.mxu0 %v1853_v18  ;;  %1506 = vrot.lane.b32.xlu1 %v1417_v59, %s7386_s18  ;;  %1134 = vst.msk [vmem:[#allocation3 + $0x4e8] sm:$0xff] %vm437_vm0, %v1102_v30  ;;  %v1652_v18 = vld [vmem:[#allocation3 + $0x20] sm:$0xff]  ;;  %v1717_v30 = vld [vmem:[#allocation3 + $0x228] sm:$0xff] }
 0x188   : > { %v984_v53 = vpop.permute.xlu0 %983  ;;  %v1789_v38 = vld [vmem:[#allocation3 + $0x468] sm:$0xff]  ;;  %6237 = vmatpush3.bf16.msra.mxu1 %v7111_v33  ;;  %v7119_v37 = vld [vmem:[#allocation11 + $0x28] sm:$0xff]  }
 0x189   : > { %1059 = vst.msk [vmem:[#allocation3 + $0x328] sm:$0xff] %vm782_vm2, %v984_v53  ;;  %v1879_v55 = vpack.c.bf16 %v1794_v29, %v1789_v38  ;;  %v1006_v50 = vpop.permute.xlu1 %1005  ;;  %6238 = vmatprep.subr.bf16.mxu1 %v7112_v46  ;;  %v1754_v5 = vld [vmem:[#allocation3 + $0x350] sm:$0xff]  ;;  %v1812_v53 = vpack.c.bf16 %v1657_v15, %v1652_v18 }
 0x18a   : > { %1243 = vrot.lane.b32.xlu0 %v7987_v42, %s7386_s18  ;;  %1070 = vst.msk [vmem:[#allocation3 + $0x4e0] sm:$0xff] %vm782_vm2, %v1006_v50  ;;  %v1422_v29 = vld [vmem:[#allocation2 + $0x199] sm:$0xff] }
 0x18b   : > { %2368 = vmatprep.mubr.bf16.mxu1 %v1879_v55  ;;  %1249 = vrot.lane.b32.xlu1 %v8025_v51, %s7386_s18  ;;  %v1356_v51 = vld [vmem:[#allocation2 + $0x180] sm:$0xff] }
 0x18c   : > { %v727_v61 = vpop.permute.xlu0 %726  ;;  %v1788_v36 = vld [vmem:[#allocation3 + $0x460] sm:$0xff]  ;;  %6239 = vmatpush3.bf16.msra.mxu1 %v7113_v43  ;;  %1388 = vst.msk [vmem:[#allocation3 + $0x478] sm:$0xff] %vm437_vm0, %v1356_v51 }
 0x18d   : > { %803 = vst.msk [vmem:[#allocation3 + $0x320] sm:$0xff] %vm782_vm2, %v727_v61  ;;  %v1878_v42 = vpack.c.bf16 %v1793_v52, %v1788_v36  ;;  %v749_v1 = vpop.permute.xlu1 %748  ;;  %6356 = vmatprep.subr.bf16.mxu1 %v7114_v0  ;;  %v1753_v35 = vld [vmem:[#allocation3 + $0x348] sm:$0xff]  ;;  %v1667_v0 = vld [vmem:[#allocation3 + $0x98] sm:$0xff]  ;;  %v1672_v36 = vld [vmem:[#allocation3 + $0xc0] sm:$0xff] }
 0x18e   : > { %1504 = vrot.lane.b32.xlu0 %v1416_v63, %s7386_s18  ;;  %814 = vst.msk [vmem:[#allocation3 + $0x4d8] sm:$0xff] %vm782_vm2, %v749_v1  ;;  %v1662_v63 = vld [vmem:[#allocation3 + $0x70] sm:$0xff] }
 0x18f   : > { %2369 = vmatmul.mubr.bf16.gmra.mxu1 %v1878_v42  ;;  %1510 = vrot.lane.b32.xlu1 %v1419_v58, %s7386_s18  ;;  %v1677_v58 = vld [vmem:[#allocation3 + $0xe8] sm:$0xff]  ;;  %v1817_v42 = vpack.c.bf16 %v1667_v0, %v1662_v63 }
 0x190   : > { %v1004_v57 = vpop.permute.xlu0 %1003  ;;  %v1749_v62 = vld [vmem:[#allocation3 + $0x328] sm:$0xff]  ;;  %v1822_v51 = vpack.c.bf16 %v1677_v58, %v1672_v36 }
 0x191   : > { %1069 = vst.msk [vmem:[#allocation3 + $0x4b8] sm:$0xff] %vm782_vm2, %v1004_v57  ;;  %v1859_v2 = vpack.c.bf16 %v1754_v5, %v1749_v62  ;;  %v990_v54 = vpop.permute.xlu1 %989 }
 0x192   : > { %1247 = vrot.lane.b32.xlu0 %v8023_v44, %s7386_s18  ;;  %1062 = vst.msk [vmem:[#allocation3 + $0x3a0] sm:$0xff] %vm782_vm2, %v990_v54 }
 0x193   : > { %2336 = vmatprep.mubr.bf16.mxu0 %v1859_v2  ;;  %1253 = vrot.lane.b32.xlu1 %v8067_v4, %s7386_s18  ;;  %v1804_v4 = vld [vmem:[#allocation3 + $0x4e0] sm:$0xff] }
 0x194   : > { %v747_v44 = vpop.permute.xlu0 %746  ;;  %v1748_v17 = vld [vmem:[#allocation3 + $0x320] sm:$0xff] }
 0x195   : > { %813 = vst.msk [vmem:[#allocation3 + $0x4b0] sm:$0xff] %vm782_vm2, %v747_v44  ;;  %v1858_v7 = vpack.c.bf16 %v1753_v35, %v1748_v17  ;;  %v733_v9 = vpop.permute.xlu1 %732  ;;  %v1803_v16 = vld [vmem:[#allocation3 + $0x4d8] sm:$0xff]  ;;  %v7116_v2 = vld [vmem:[#allocation11 + $0x70] sm:$0xff]  }
 0x196   : > { %1508 = vrot.lane.b32.xlu0 %v1418_v34, %s7386_s18  ;;  %806 = vst.msk [vmem:[#allocation3 + $0x398] sm:$0xff] %vm782_vm2, %v733_v9  ;;  %v1697_v44 = vld [vmem:[#allocation3 + $0x188] sm:$0xff]  ;;  %v7118_v17 = vld [vmem:[#allocation11 + $0x68] sm:$0xff]  }
 0x197   : > { %2337 = vmatmul.mubr.bf16.gmra.mxu0 %v1858_v7  ;;  %1514 = vrot.lane.b32.xlu1 %v1421_v45, %s7386_s18  ;;  %v1827_v7 = vpack.c.bf16 %v1687_v28, %v1682_v14  ;;  %v1832_v12 = vpack.c.bf16 %v1697_v44, %v1692_v60  ;;  %v7123_v14 = vld [vmem:[#allocation11 + $0x18] sm:$0xff]  }
 0x198   : > { %v988_v11 = vpop.permute.xlu0 %987  ;;  %v1799_v13 = vld [vmem:[#allocation3 + $0x4b8] sm:$0xff]  ;;  %v7125_v44 = vld [vmem:[#allocation11 + $0xb8] sm:$0xff]  }
 0x199   : > { %1061 = vst.msk [vmem:[#allocation3 + $0x378] sm:$0xff] %vm782_vm2, %v988_v11  ;;  %v1884_v23 = vpack.c.bf16 %v1804_v4, %v1799_v13  ;;  %v1459_v39 = vpop.permute.xlu1 %1458 }
 0x19a   : > { %1251 = vrot.lane.b32.xlu0 %v8065_v3, %s7386_s18  ;;  %1553 = vst.msk [vmem:[#allocation3 + $0x40] sm:$0xff] %vm782_vm2, %v1459_v39  ;;  %v1764_v3 = vld [vmem:[#allocation3 + $0x3a0] sm:$0xff] }
 0x19b   : > { %2376 = vmatprep.mubr.bf16.mxu1 %v1884_v23  ;;  %1257 = vrot.lane.b32.xlu1 %v8103_v49, %s7386_s18 }
 0x19c   : > { %v731_v19 = vpop.permute.xlu0 %730  ;;  %v1798_v20 = vld [vmem:[#allocation3 + $0x4b0] sm:$0xff] }
 0x19d   : > { %805 = vst.msk [vmem:[#allocation3 + $0x370] sm:$0xff] %vm782_vm2, %v731_v19  ;;  %v1883_v26 = vpack.c.bf16 %v1803_v16, %v1798_v20  ;;  %v1202_v21 = vpop.permute.xlu1 %1201  ;;  %v1763_v46 = vld [vmem:[#allocation3 + $0x398] sm:$0xff] }
 0x19e   : > { %1512 = vrot.lane.b32.xlu0 %v1420_v25, %s7386_s18  ;;  %1296 = vst.msk [vmem:[#allocation3 + $0x38] sm:$0xff] %vm782_vm2, %v1202_v21  ;;  %v1702_v25 = vld [vmem:[#allocation3 + $0x1b0] sm:$0xff] }
 0x19f   : > { %2377 = vmatmul.mubr.bf16.gmra.mxu1 %v1883_v26  ;;  %1518 = vrot.lane.b32.xlu1 %v1423_v56, %s7386_s18  ;;  %v1712_v56 = vld [vmem:[#allocation3 + $0x200] sm:$0xff]  ;;  %v7120_v21 = vld [vmem:[#allocation11 + $0x60] sm:$0xff]  }
 0x1a0   : > { %v1457_v49 = vpop.permute.xlu0 %1456  ;;  %v1759_v6 = vld [vmem:[#allocation3 + $0x378] sm:$0xff] }
 0x1a1   : > { %1552 = vst.msk [vmem:[#allocation3 + $0x18] sm:$0xff] %vm782_vm2, %v1457_v49  ;;  %v1864_v59 = vpack.c.bf16 %v1764_v3, %v1759_v6  ;;  %v1463_v33 = vpop.permute.xlu1 %1462  ;;  %v1656_v55 = vld [vmem:[#allocation3 + $0x40] sm:$0xff]  ;;  %v1837_v3 = vpack.c.bf16 %v1707_v47, %v1702_v25  ;;  %v7121_v49 = vld [vmem:[#allocation11 + $0x20] sm:$0xff]  }
 0x1a2   : > { %1255 = vrot.lane.b32.xlu0 %v8101_v41, %s7386_s18  ;;  %1555 = vst.msk [vmem:[#allocation3 + $0x90] sm:$0xff] %vm782_vm2, %v1463_v33  ;;  %v1165_v41 = vld [vmem:[#allocation2 + $0x182] sm:$0xff] }
 0x1a3   : > { %2344 = vmatprep.mubr.bf16.mxu0 %v1864_v59  ;;  %1261 = vrot.lane.b32.xlu1 %v1166_v22, %s7386_s18  ;;  %v1842_v59 = vpack.c.bf16 %v1717_v30, %v1712_v56  ;;  %v7127_v30 = vld [vmem:[#allocation11 + $0xb0] sm:$0xff]  }
 0x1a4   : > { %v1200_v10 = vpop.permute.xlu0 %1199  ;;  %v1758_v40 = vld [vmem:[#allocation3 + $0x370] sm:$0xff] }
 0x1a5   : > { %1295 = vst.msk [vmem:[#allocation3 + $0x10] sm:$0xff] %vm782_vm2, %v1200_v10  ;;  %v1863_v38 = vpack.c.bf16 %v1763_v46, %v1758_v40  ;;  %v1206_v43 = vpop.permute.xlu1 %1205  ;;  %v1655_v24 = vld [vmem:[#allocation3 + $0x38] sm:$0xff]  ;;  %v1722_v10 = vld [vmem:[#allocation3 + $0x250] sm:$0xff] }
 0x1a6   : > { %1516 = vrot.lane.b32.xlu0 %v1422_v29, %s7386_s18  ;;  %1298 = vst.msk [vmem:[#allocation3 + $0x88] sm:$0xff] %vm782_vm2, %v1206_v43  ;;  %v1727_v40 = vld [vmem:[#allocation3 + $0x278] sm:$0xff]  ;;  %v1732_v43 = vld [vmem:[#allocation3 + $0x2a0] sm:$0xff] }
 0x1a7   : > { %2345 = vmatmul.mubr.bf16.gmra.mxu0 %v1863_v38 }
 0x1a8   : > { %v1461_v50 = vpop.permute.xlu0 %1460  ;;  %v1651_v52 = vld [vmem:[#allocation3 + $0x18] sm:$0xff]  ;;  %6856 = vmatprep.mubr.msk.bf16.mxu0 %vm437_vm0, %v1812_v53 }
 0x1a9   : > { %1554 = vst.msk [vmem:[#allocation3 + $0x68] sm:$0xff] %vm782_vm2, %v1461_v50  ;;  %v1811_v32 = vpack.c.bf16 %v1656_v55, %v1651_v52  ;;  %v1467_v61 = vpop.permute.xlu1 %1466  ;;  %v1666_v54 = vld [vmem:[#allocation3 + $0x90] sm:$0xff]  ;;  %v1737_v55 = vld [vmem:[#allocation3 + $0x2c8] sm:$0xff]  ;;  %v1847_v50 = vpack.c.bf16 %v1727_v40, %v1722_v10  ;;  %v7130_v10 = vld [vmem:[#allocation11 + $0xe8] sm:$0xff]  }
 0x1aa   : > { %1259 = vrot.lane.b32.xlu0 %v1165_v41, %s7386_s18  ;;  %1557 = vst.msk [vmem:[#allocation3 + $0xe0] sm:$0xff] %vm782_vm2, %v1467_v61  ;;  %v1852_v0 = vpack.c.bf16 %v1737_v55, %v1732_v43  ;;  %s9147_s18 = scalar_lea.vmem %s9353_s10, %s6111_s24 }
 0x1ab   : > { %2417 = vmatprep.mubr.bf16.mxu1 %v1811_v32 }
 0x1ac   : > { %v1204_v1 = vpop.permute.xlu0 %1203  ;;  %v1650_v5 = vld [vmem:[#allocation3 + $0x10] sm:$0xff] }
 0x1ad   : > { %1297 = vst.msk [vmem:[#allocation3 + $0x60] sm:$0xff] %vm782_vm2, %v1204_v1  ;;  %v1810_v57 = vpack.c.bf16 %v1655_v24, %v1650_v5  ;;  %v1210_v62 = vpop.permute.xlu1 %1209  ;;  %v1665_v45 = vld [vmem:[#allocation3 + $0x88] sm:$0xff]  ;;  %v1747_v1 = vld [vmem:[#allocation3 + $0x318] sm:$0xff] }
 0x1ae   : > { %1300 = vst.msk [vmem:[#allocation3 + $0xd8] sm:$0xff] %vm782_vm2, %v1210_v62 }
 0x1af   : > { %2418 = vmatmul.mubr.bf16.vlgmr.msra.gmra.mxu1 %v1810_v57  ;;  %6857 = vmatmul.mubr.msk.bf16.vlgmr.msra.gmra.mxu0 %vm437_vm0, %v1817_v42  ;;  %v1742_v42 = vld [vmem:[#allocation3 + $0x2f0] sm:$0xff]  ;;  %v1757_v57 = vld [vmem:[#allocation3 + $0x368] sm:$0xff] }
 0x1b0   : > { %v1465_v8 = vpop.permute.xlu0 %1464  ;;  %v1661_v35 = vld [vmem:[#allocation3 + $0x68] sm:$0xff]  ;;  %6860 = vmatprep.mubr.msk.bf16.mxu0 %vm437_vm0, %v1822_v51  ;;  %6357 = vmatpush3.bf16.msra.mxu1 %v7115_v27  ;;  %v1752_v27 = vld [vmem:[#allocation3 + $0x340] sm:$0xff] }
 0x1b1   : > { %1556 = vst.msk [vmem:[#allocation3 + $0xb8] sm:$0xff] %vm782_vm2, %v1465_v8  ;;  %v1816_v34 = vpack.c.bf16 %v1666_v54, %v1661_v35  ;;  %v1471_v48 = vpop.permute.xlu1 %1470  ;;  %6358 = vmatprep.subr.bf16.mxu1 %v7116_v2  ;;  %v1676_v23 = vld [vmem:[#allocation3 + $0xe0] sm:$0xff]  ;;  %v7122_v2 = vld [vmem:[#allocation11 + $0x58] sm:$0xff]   ;;  %v1857_v54 = vpack.c.bf16 %v1747_v1, %v1742_v42  ;;  %v7132_v42 = vld [vmem:[#allocation11 + $0xe0] sm:$0xff]  }
 0x1b2   : > { %1559 = vst.msk [vmem:[#allocation3 + $0x130] sm:$0xff] %vm782_vm2, %v1471_v48  ;;  %v7124_v8 = vld [vmem:[#allocation11 + $0xf8] sm:$0xff]  }
 0x1b3   : > { %2425 = vmatprep.mubr.bf16.mxu1 %v1816_v34  ;;  %6468 = vmatprep.subr.bf16.mxu0 %v7124_v8 }
 0x1b4   : > { %v1208_v9 = vpop.permute.xlu0 %1207  ;;  %v1660_v4 = vld [vmem:[#allocation3 + $0x60] sm:$0xff]  ;;  %6359 = vmatpush3.bf16.msra.mxu1 %v7117_v31  ;;  %v1862_v31 = vpack.c.bf16 %v1757_v57, %v1752_v27  ;;  %6469 = vmatpush3.bf16.msra.mxu0 %v7125_v44 }
 0x1b5   : > { %1299 = vst.msk [vmem:[#allocation3 + $0xb0] sm:$0xff] %vm782_vm2, %v1208_v9  ;;  %v1815_v11 = vpack.c.bf16 %v1665_v45, %v1660_v4  ;;  %v1214_v13 = vpop.permute.xlu1 %1213  ;;  %6360 = vmatprep.subr.bf16.mxu1 %v7118_v17  ;;  %v1675_v26 = vld [vmem:[#allocation3 + $0xd8] sm:$0xff] }
 0x1b6   : > { %1302 = vst.msk [vmem:[#allocation3 + $0x128] sm:$0xff] %vm782_vm2, %v1214_v13  ;;  %v1767_v9 = vld [vmem:[#allocation3 + $0x3b8] sm:$0xff] }
 0x1b7   : > { %2426 = vmatmul.mubr.bf16.gmra.mxu1 %v1815_v11  ;;  %6861 = vmatmul.mubr.msk.bf16.gmra.mxu0 %vm437_vm0, %v1827_v7  ;;  %v1762_v7 = vld [vmem:[#allocation3 + $0x390] sm:$0xff]  ;;  %v1777_v11 = vld [vmem:[#allocation3 + $0x408] sm:$0xff] }
 0x1b8   : > { %v1469_v39 = vpop.permute.xlu0 %1468  ;;  %v1671_v16 = vld [vmem:[#allocation3 + $0xb8] sm:$0xff]  ;;  %6864 = vmatprep.mubr.msk.bf16.mxu0 %vm437_vm0, %v1832_v12  ;;  %6361 = vmatpush3.bf16.msra.mxu1 %v7119_v37  ;;  %v1772_v37 = vld [vmem:[#allocation3 + $0x3e0] sm:$0xff] }
 0x1b9   : > { %1558 = vst.msk [vmem:[#allocation3 + $0x108] sm:$0xff] %vm782_vm2, %v1469_v39  ;;  %v1821_v19 = vpack.c.bf16 %v1676_v23, %v1671_v16  ;;  %v1475_v20 = vpop.permute.xlu1 %1474  ;;  %6362 = vmatprep.subr.bf16.mxu1 %v7120_v21  ;;  %v1686_v15 = vld [vmem:[#allocation3 + $0x130] sm:$0xff]  ;;  %v1867_v23 = vpack.c.bf16 %v1767_v9, %v1762_v7  ;;  %v7126_v39 = vld [vmem:[#allocation11 + $0xf0] sm:$0xff]   ;;  %v1872_v47 = vpack.c.bf16 %v1777_v11, %v1772_v37 }
 0x1ba   : > { %1561 = vst.msk [vmem:[#allocation3 + $0x180] sm:$0xff] %vm782_vm2, %v1475_v20  ;;  %6470 = vmatprep.subr.bf16.mxu0 %v7126_v39  ;;  %v7137_v7 = vld [vmem:[#allocation11 + $0x98] sm:$0xff]  }
 0x1bb   : > { %2433 = vmatprep.mubr.bf16.mxu1 %v1821_v19  ;;  %6471 = vmatpush3.bf16.msra.mxu0 %v7127_v30 }
 0x1bc   : > { %v1212_v6 = vpop.permute.xlu0 %1211  ;;  %v1670_v22 = vld [vmem:[#allocation3 + $0xb0] sm:$0xff]  ;;  %6363 = vmatpush3.bf16.msra.mxu1 %v7121_v49  ;;  %v1787_v49 = vld [vmem:[#allocation3 + $0x458] sm:$0xff]  ;;  %6472 = vmatprep.subr.bf16.mxu0 %v7130_v10 }
 0x1bd   : > { %1301 = vst.msk [vmem:[#allocation3 + $0x100] sm:$0xff] %vm782_vm2, %v1212_v6  ;;  %v1820_v33 = vpack.c.bf16 %v1675_v26, %v1670_v22  ;;  %v1218_v18 = vpop.permute.xlu1 %1217  ;;  %v1685_v41 = vld [vmem:[#allocation3 + $0x128] sm:$0xff]  ;;  %6364 = vmatprep.subr.bf16.mxu1 %v7122_v2 }
 0x1be   : > { %1304 = vst.msk [vmem:[#allocation3 + $0x178] sm:$0xff] %vm782_vm2, %v1218_v18 }
 0x1bf   : > { %2434 = vmatmul.mubr.bf16.gmra.mxu1 %v1820_v33  ;;  %6865 = vmatmul.mubr.msk.bf16.gmra.mxu0 %vm437_vm0, %v1837_v3  ;;  %v1782_v3 = vld [vmem:[#allocation3 + $0x430] sm:$0xff]  ;;  %v1797_v33 = vld [vmem:[#allocation3 + $0x4a8] sm:$0xff] }
 0x1c0   : > { %v1473_v46 = vpop.permute.xlu0 %1472  ;;  %v1681_v29 = vld [vmem:[#allocation3 + $0x108] sm:$0xff]  ;;  %6868 = vmatprep.mubr.msk.bf16.mxu0 %vm437_vm0, %v1842_v59  ;;  %6365 = vmatpush3.bf16.msra.mxu1 %v7123_v14  ;;  %v1792_v59 = vld [vmem:[#allocation3 + $0x480] sm:$0xff] }
 0x1c1   : > { %1560 = vst.msk [vmem:[#allocation3 + $0x158] sm:$0xff] %vm782_vm2, %v1473_v46  ;;  %v1826_v53 = vpack.c.bf16 %v1686_v15, %v1681_v29  ;;  %v1479_v38 = vpop.permute.xlu1 %1478  ;;  %v1696_v36 = vld [vmem:[#allocation3 + $0x180] sm:$0xff]  ;;  %v1877_v46 = vpack.c.bf16 %v1787_v49, %v1782_v3 }
 0x1c2   : > { %1563 = vst.msk [vmem:[#allocation3 + $0x1d0] sm:$0xff] %vm782_vm2, %v1479_v38  ;;  %v7128_v15 = vld [vmem:[#allocation11 + $0x50] sm:$0xff]   ;;  %v1882_v38 = vpack.c.bf16 %v1797_v33, %v1792_v59 }
 0x1c3   : > { %2441 = vmatprep.mubr.bf16.mxu1 %v1826_v53  ;;  %v7129_v29 = vld [vmem:[#allocation11 + $0x10] sm:$0xff]   ;;  %6366 = vmatprep.subr.bf16.mxu1 %v7128_v15 }
 0x1c4   : > { %v1216_v52 = vpop.permute.xlu0 %1215  ;;  %v1680_v63 = vld [vmem:[#allocation3 + $0x100] sm:$0xff]  ;;  %6367 = vmatpush3.bf16.msra.mxu1 %v7129_v29 }
 0x1c5   : > { %1303 = vst.msk [vmem:[#allocation3 + $0x150] sm:$0xff] %vm782_vm2, %v1216_v52  ;;  %v1825_v32 = vpack.c.bf16 %v1685_v41, %v1680_v63  ;;  %v1222_v61 = vpop.permute.xlu1 %1221  ;;  %v1695_v62 = vld [vmem:[#allocation3 + $0x178] sm:$0xff] }
 0x1c6   : > { %1306 = vst.msk [vmem:[#allocation3 + $0x1c8] sm:$0xff] %vm782_vm2, %v1222_v61 }
 0x1c7   : > { %2442 = vmatmul.mubr.bf16.gmra.mxu1 %v1825_v32  ;;  %6869 = vmatmul.mubr.msk.bf16.gmra.mxu0 %vm437_vm0, %v1847_v50  ;;  %v7131_v50 = vld [vmem:[#allocation11 + $0xa8] sm:$0xff]  }
 0x1c8   : > { %v1477_v58 = vpop.permute.xlu0 %1476  ;;  %v1691_v24 = vld [vmem:[#allocation3 + $0x158] sm:$0xff]  ;;  %6872 = vmatprep.mubr.msk.bf16.mxu0 %vm437_vm0, %v1852_v0  ;;  %v1802_v0 = vld [vmem:[#allocation3 + $0x4d0] sm:$0xff]  ;;  %6473 = vmatpush3.bf16.msra.mxu0 %v7131_v50 }
 0x1c9   : > { %1562 = vst.msk [vmem:[#allocation3 + $0x1a8] sm:$0xff] %vm782_vm2, %v1477_v58  ;;  %v1831_v5 = vpack.c.bf16 %v1696_v36, %v1691_v24  ;;  %v1483_v51 = vpop.permute.xlu1 %1482  ;;  %v1706_v60 = vld [vmem:[#allocation3 + $0x1d0] sm:$0xff]  ;;  %v1807_v32 = vld [vmem:[#allocation3 + $0x4f8] sm:$0xff]  ;;  %6474 = vmatprep.subr.bf16.mxu0 %v7132_v42 }
 0x1ca   : > { %1565 = vst.msk [vmem:[#allocation3 + $0x220] sm:$0xff] %vm782_vm2, %v1483_v51  ;;  %v1887_v24 = vpack.c.bf16 %v1807_v32, %v1802_v0 }
 0x1cb   : > { %2449 = vmatprep.mubr.bf16.mxu1 %v1831_v5 }
 0x1cc   : > { %v1220_v35 = vpop.permute.xlu0 %1219  ;;  %v1690_v28 = vld [vmem:[#allocation3 + $0x150] sm:$0xff] }
 0x1cd   : > { %1305 = vst.msk [vmem:[#allocation3 + $0x1a0] sm:$0xff] %vm782_vm2, %v1220_v35  ;;  %v1830_v34 = vpack.c.bf16 %v1695_v62, %v1690_v28  ;;  %v1226_v48 = vpop.permute.xlu1 %1225  ;;  %v1705_v13 = vld [vmem:[#allocation3 + $0x1c8] sm:$0xff]  ;;  %v7133_v62 = vld [vmem:[#allocation11 + $0xa0] sm:$0xff]   ;;  %v7134_v28 = vld [vmem:[#allocation11 + $0x48] sm:$0xff]  }
 0x1ce   : > { %1308 = vst.msk [vmem:[#allocation3 + $0x218] sm:$0xff] %vm782_vm2, %v1226_v48  ;;  %6475 = vmatpush3.bf16.msra.mxu0 %v7133_v62  ;;  %6368 = vmatprep.subr.bf16.mxu1 %v7134_v28  ;;  %v7145_v28 = vld [vmem:[#allocation11 + $0x80] sm:$0xff]  }
 0x1cf   : > { %2450 = vmatmul.mubr.bf16.gmra.mxu1 %v1830_v34  ;;  %6873 = vmatmul.mubr.msk.bf16.gmra.mxu0 %vm437_vm0, %v1857_v54  ;;  %v7136_v34 = vld [vmem:[#allocation11 + $0xd8] sm:$0xff]  }
 0x1d0   : > { %v1481_v17 = vpop.permute.xlu0 %1480  ;;  %v1701_v45 = vld [vmem:[#allocation3 + $0x1a8] sm:$0xff]  ;;  %6876 = vmatprep.mubr.msk.bf16.mxu0 %vm437_vm0, %v1862_v31  ;;  %v7135_v31 = vld [vmem:[#allocation11 + $0x8] sm:$0xff]   ;;  %6476 = vmatprep.subr.bf16.mxu0 %v7136_v34 }
 0x1d1   : > { %1564 = vst.msk [vmem:[#allocation3 + $0x1f8] sm:$0xff] %vm782_vm2, %v1481_v17  ;;  %v1836_v4 = vpack.c.bf16 %v1706_v60, %v1701_v45  ;;  %v1487_v12 = vpop.permute.xlu1 %1486  ;;  %v1716_v56 = vld [vmem:[#allocation3 + $0x220] sm:$0xff]  ;;  %6369 = vmatpush3.bf16.msra.mxu1 %v7135_v31 }
 0x1d2   : > { %1567 = vst.msk [vmem:[#allocation3 + $0x270] sm:$0xff] %vm782_vm2, %v1487_v12  ;;  %6477 = vmatpush3.bf16.msra.mxu0 %v7137_v7 }
 0x1d3   : > { %2457 = vmatprep.mubr.bf16.mxu1 %v1836_v4 }
 0x1d4   : > { %v1224_v16 = vpop.permute.xlu0 %1223  ;;  %v1700_v25 = vld [vmem:[#allocation3 + $0x1a0] sm:$0xff] }
 0x1d5   : > { %1307 = vst.msk [vmem:[#allocation3 + $0x1f0] sm:$0xff] %vm782_vm2, %v1224_v16  ;;  %v1835_v19 = vpack.c.bf16 %v1705_v13, %v1700_v25  ;;  %v1230_v20 = vpop.permute.xlu1 %1229  ;;  %v1715_v18 = vld [vmem:[#allocation3 + $0x218] sm:$0xff] }
 0x1d6   : > { %1310 = vst.msk [vmem:[#allocation3 + $0x268] sm:$0xff] %vm782_vm2, %v1230_v20 }
 0x1d7   : > { %2458 = vmatmul.mubr.bf16.gmra.mxu1 %v1835_v19  ;;  %6877 = vmatmul.mubr.msk.bf16.gmra.mxu0 %vm437_vm0, %v1867_v23 }
 0x1d8   : > { %v1485_v26 = vpop.permute.xlu0 %1484  ;;  %v1711_v21 = vld [vmem:[#allocation3 + $0x1f8] sm:$0xff]  ;;  %6880 = vmatprep.mubr.msk.bf16.mxu0 %vm437_vm0, %v1872_v47 }
 0x1d9   : > { %1566 = vst.msk [vmem:[#allocation3 + $0x248] sm:$0xff] %vm782_vm2, %v1485_v26  ;;  %v1841_v6 = vpack.c.bf16 %v1716_v56, %v1711_v21  ;;  %v1491_v22 = vpop.permute.xlu1 %1490  ;;  %v1726_v41 = vld [vmem:[#allocation3 + $0x270] sm:$0xff] }
 0x1da   : > { %1569 = vst.msk [vmem:[#allocation3 + $0x2c0] sm:$0xff] %vm782_vm2, %v1491_v22 }
 0x1db   : > { %2465 = vmatprep.mubr.bf16.mxu1 %v1841_v6 }
 0x1dc   : > { %v1228_v40 = vpop.permute.xlu0 %1227  ;;  %v1710_v53 = vld [vmem:[#allocation3 + $0x1f0] sm:$0xff] }
 0x1dd   : > { %1309 = vst.msk [vmem:[#allocation3 + $0x240] sm:$0xff] %vm782_vm2, %v1228_v40  ;;  %v1840_v43 = vpack.c.bf16 %v1715_v18, %v1710_v53  ;;  %v1234_v55 = vpop.permute.xlu1 %1233  ;;  %v1725_v58 = vld [vmem:[#allocation3 + $0x268] sm:$0xff]  ;;  %v7140_v40 = vld [vmem:[#allocation11 + $0x40] sm:$0xff]  }
 0x1de   : > { %1312 = vst.msk [vmem:[#allocation3 + $0x2b8] sm:$0xff] %vm782_vm2, %v1234_v55  ;;  %v7141_v55 = vld [vmem:[#allocation11] sm:$0xff]   ;;  %6370 = vmatprep.subr.bf16.mxu1 %v7140_v40 }
 0x1df   : > { %2466 = vmatmul.mubr.bf16.gmra.mxu1 %v1840_v43  ;;  %6881 = vmatmul.mubr.msk.bf16.gmra.mxu0 %vm437_vm0, %v1877_v46  ;;  %v7138_v43 = vld [vmem:[#allocation11 + $0xd0] sm:$0xff]  }
 0x1e0   : > { %v1489_v52 = vpop.permute.xlu0 %1488  ;;  %v1721_v63 = vld [vmem:[#allocation3 + $0x248] sm:$0xff]  ;;  %6884 = vmatprep.mubr.msk.bf16.mxu0 %vm437_vm0, %v1882_v38  ;;  %6478 = vmatprep.subr.bf16.mxu0 %v7138_v43 }
 0x1e1   : > { %1568 = vst.msk [vmem:[#allocation3 + $0x298] sm:$0xff] %vm782_vm2, %v1489_v52  ;;  %v1846_v61 = vpack.c.bf16 %v1726_v41, %v1721_v63  ;;  %v1495_v36 = vpop.permute.xlu1 %1494  ;;  %v1736_v57 = vld [vmem:[#allocation3 + $0x2c0] sm:$0xff]  ;;  %6371 = vmatpush3.bf16.msra.mxu1 %v7141_v55 }
 0x1e2   : > { %1571 = vst.msk [vmem:[#allocation3 + $0x310] sm:$0xff] %vm782_vm2, %v1495_v36  ;;  %v7139_v63 = vld [vmem:[#allocation11 + $0x90] sm:$0xff]  }
 0x1e3   : > { %2473 = vmatprep.mubr.bf16.mxu1 %v1846_v61  ;;  %6479 = vmatpush3.bf16.msra.mxu0 %v7139_v63 }
 0x1e4   : > { %v1232_v1 = vpop.permute.xlu0 %1231  ;;  %v1720_v5 = vld [vmem:[#allocation3 + $0x240] sm:$0xff] }
 0x1e5   : > { %1311 = vst.msk [vmem:[#allocation3 + $0x290] sm:$0xff] %vm782_vm2, %v1232_v1  ;;  %v1845_v51 = vpack.c.bf16 %v1725_v58, %v1720_v5  ;;  %v1238_v27 = vpop.permute.xlu1 %1237  ;;  %v1735_v35 = vld [vmem:[#allocation3 + $0x2b8] sm:$0xff] }
 0x1e6   : > { %1314 = vst.msk [vmem:[#allocation3 + $0x308] sm:$0xff] %vm782_vm2, %v1238_v27 }
 0x1e7   : > { %2474 = vmatmul.mubr.bf16.gmra.mxu1 %v1845_v51  ;;  %6885 = vmatmul.mubr.msk.bf16.gmra.mxu0 %vm437_vm0, %v1887_v24  ;;  %v7142_v24 = vld [vmem:[#allocation11 + $0xc8] sm:$0xff]  }
 0x1e8   : > { %v1493_v2 = vpop.permute.xlu0 %1492  ;;  %v1731_v54 = vld [vmem:[#allocation3 + $0x298] sm:$0xff]  ;;  %6480 = vmatprep.subr.bf16.mxu0 %v7142_v24 }
 0x1e9   : > { %1570 = vst.msk [vmem:[#allocation3 + $0x2e8] sm:$0xff] %vm782_vm2, %v1493_v2  ;;  %v1851_v14 = vpack.c.bf16 %v1736_v57, %v1731_v54  ;;  %v1499_v8 = vpop.permute.xlu1 %1498  ;;  %v1746_v45 = vld [vmem:[#allocation3 + $0x310] sm:$0xff]  ;;  %v7143_v51 = vld [vmem:[#allocation11 + $0x88] sm:$0xff]  }
 0x1ea   : > { %1573 = vst.msk [vmem:[#allocation3 + $0x360] sm:$0xff] %vm782_vm2, %v1499_v8  ;;  %6481 = vmatpush3.bf16.msra.mxu0 %v7143_v51  ;;  %v7144_v54 = vld [vmem:[#allocation11 + $0xc0] sm:$0xff]   ;;  %v2969_v51 = vld [vmem:[#allocation4 + $0x9] sm:$0xff] }
 0x1eb   : > { %2481 = vmatprep.mubr.bf16.mxu1 %v1851_v14  ;;  %6482 = vmatprep.subr.bf16.mxu0 %v7144_v54 }
 0x1ec   : > { %v1236_v48 = vpop.permute.xlu0 %1235  ;;  %v1730_v60 = vld [vmem:[#allocation3 + $0x290] sm:$0xff] }
 0x1ed   : > { %1313 = vst.msk [vmem:[#allocation3 + $0x2e0] sm:$0xff] %vm782_vm2, %v1236_v48  ;;  %v1850_v44 = vpack.c.bf16 %v1735_v35, %v1730_v60  ;;  %v1242_v17 = vpop.permute.xlu1 %1241  ;;  %v1745_v23 = vld [vmem:[#allocation3 + $0x308] sm:$0xff] }
 0x1ee   : > { %1316 = vst.msk [vmem:[#allocation3 + $0x358] sm:$0xff] %vm782_vm2, %v1242_v17  ;;  %6483 = vmatpush3.bf16.msra.mxu0 %v7145_v28 }
 0x1ef   : > { %2482 = vmatmul.mubr.bf16.gmra.mxu1 %v1850_v44 }
 0x1f0   : > { %v1497_v9 = vpop.permute.xlu0 %1496  ;;  %v6128_v4 = vpop.f32.mrf.mxu0  ;;  %v1741_v12 = vld [vmem:[#allocation3 + $0x2e8] sm:$0xff] }
 0x1f1   : > { %1572 = vst.msk [vmem:[#allocation3 + $0x338] sm:$0xff] %vm782_vm2, %v1497_v9  ;;  %v1856_v37 = vpack.c.bf16 %v1746_v45, %v1741_v12  ;;  %v1503_v11 = vpop.permute.xlu1 %1502  ;;  %v1756_v30 = vld [vmem:[#allocation3 + $0x360] sm:$0xff] }
 0x1f2   : > { %v6129_v13 = vpop.f32.mrf.mxu0  ;;  %1575 = vst.msk [vmem:[#allocation3 + $0x3b0] sm:$0xff] %vm782_vm2, %v1503_v11 }
 0x1f3   : > { %v8462_v39 = vadd.f32 %v6129_v13, %v6128_v4  ;;  %2489 = vmatprep.mubr.bf16.mxu1 %v1856_v37 }
 0x1f4   : > { %v1240_v16 = vpop.permute.xlu0 %1239  ;;  %v8464_v25 = vpop.f32.mrf.mxu0  ;;  %v1740_v47 = vld [vmem:[#allocation3 + $0x2e0] sm:$0xff] }
 0x1f5   : > { %1315 = vst.msk [vmem:[#allocation3 + $0x330] sm:$0xff] %vm782_vm2, %v1240_v16  ;;  %v1855_v19 = vpack.c.bf16 %v1745_v23, %v1740_v47  ;;  %v1246_v20 = vpop.permute.xlu1 %1245  ;;  %v1755_v59 = vld [vmem:[#allocation3 + $0x358] sm:$0xff] }
 0x1f6   : > { %v8467_v56 = vpop.f32.mrf.mxu0  ;;  %1318 = vst.msk [vmem:[#allocation3 + $0x3a8] sm:$0xff] %vm782_vm2, %v1246_v20 }
 0x1f7   : > { %2490 = vmatmul.mubr.bf16.gmra.mxu1 %v1855_v19 }
 0x1f8   : > { %v1501_v26 = vpop.permute.xlu0 %1500  ;;  %v6134_v21 = vpop.f32.mrf.mxu0  ;;  %v1751_v3 = vld [vmem:[#allocation3 + $0x338] sm:$0xff] }
 0x1f9   : > { %1574 = vst.msk [vmem:[#allocation3 + $0x388] sm:$0xff] %vm782_vm2, %v1501_v26  ;;  %v1861_v49 = vpack.c.bf16 %v1756_v30, %v1751_v3  ;;  %v1507_v6 = vpop.permute.xlu1 %1506  ;;  %v1766_v38 = vld [vmem:[#allocation3 + $0x3b0] sm:$0xff] }
 0x1fa   : > { %v6135_v22 = vpop.f32.mrf.mxu0  ;;  %1577 = vst.msk [vmem:[#allocation3 + $0x400] sm:$0xff] %vm782_vm2, %v1507_v6 }
 0x1fb   : > { %v8472_v33 = vadd.f32 %v6135_v22, %v6134_v21  ;;  %2497 = vmatprep.mubr.bf16.mxu1 %v1861_v49 }
 0x1fc   : > { %v1244_v18 = vpop.permute.xlu0 %1243  ;;  %v8474_v15 = vpop.f32.mrf.mxu0  ;;  %v1750_v46 = vld [vmem:[#allocation3 + $0x330] sm:$0xff] }
 0x1fd   : > { %1317 = vst.msk [vmem:[#allocation3 + $0x380] sm:$0xff] %vm782_vm2, %v1244_v18  ;;  %v1860_v29 = vpack.c.bf16 %v1755_v59, %v1750_v46  ;;  %v1250_v10 = vpop.permute.xlu1 %1249  ;;  %v1765_v36 = vld [vmem:[#allocation3 + $0x3a8] sm:$0xff] }
 0x1fe   : > { %v8477_v53 = vpop.f32.mrf.mxu0  ;;  %1320 = vst.msk [vmem:[#allocation3 + $0x3f8] sm:$0xff] %vm782_vm2, %v1250_v10  ;;  %v7146_v18 = vld [vmem:[#allocation11 + $0x178] sm:$0xff]  }
 0x1ff   : > { %2498 = vmatmul.mubr.bf16.gmra.mxu1 %v1860_v29  ;;  %v7148_v46 = vld [vmem:[#allocation11 + $0x1f8] sm:$0xff]   ;;  %6580 = vmatprep.subr.bf16.mxu1 %v7146_v18 }
 0x200   : > { %v1505_v41 = vpop.permute.xlu0 %1504  ;;  %v6140_v50 = vpop.f32.mrf.mxu0  ;;  %v1761_v52 = vld [vmem:[#allocation3 + $0x388] sm:$0xff]  ;;  %6692 = vmatprep.subr.bf16.mxu0 %v7148_v46 }
 0x201   : > { %1576 = vst.msk [vmem:[#allocation3 + $0x3d8] sm:$0xff] %vm782_vm2, %v1505_v41  ;;  %v1866_v0 = vpack.c.bf16 %v1766_v38, %v1761_v52  ;;  %v1511_v32 = vpop.permute.xlu1 %1510  ;;  %v1776_v2 = vld [vmem:[#allocation3 + $0x400] sm:$0xff] }
 0x202   : > { %v6141_v61 = vpop.f32.mrf.mxu0  ;;  %1579 = vst.msk [vmem:[#allocation3 + $0x450] sm:$0xff] %vm782_vm2, %v1511_v32 }
 0x203   : > { %v8482_v58 = vadd.f32 %v6141_v61, %v6140_v50  ;;  %2505 = vmatprep.mubr.bf16.mxu1 %v1866_v0 }
 0x204   : > { %v1248_v42 = vpop.permute.xlu0 %1247  ;;  %v8484_v1 = vpop.f32.mrf.mxu0  ;;  %v1760_v5 = vld [vmem:[#allocation3 + $0x380] sm:$0xff] }
 0x205   : > { %1319 = vst.msk [vmem:[#allocation3 + $0x3d0] sm:$0xff] %vm782_vm2, %v1248_v42  ;;  %v1865_v27 = vpack.c.bf16 %v1765_v36, %v1760_v5  ;;  %v1254_v57 = vpop.permute.xlu1 %1253  ;;  %v1775_v60 = vld [vmem:[#allocation3 + $0x3f8] sm:$0xff]  ;;  %v2968_v5 = vld [vmem:[#allocation4 + $0x1] sm:$0xff] }
 0x206   : > { %v8487_v62 = vpop.f32.mrf.mxu0  ;;  %1322 = vst.msk [vmem:[#allocation3 + $0x448] sm:$0xff] %vm782_vm2, %v1254_v57 }
 0x207   : > { %2506 = vmatmul.mubr.bf16.gmra.mxu1 %v1865_v27 }
 0x208   : > { %v1509_v14 = vpop.permute.xlu0 %1508  ;;  %v6146_v8 = vpop.f32.mrf.mxu0  ;;  %v1771_v35 = vld [vmem:[#allocation3 + $0x3d8] sm:$0xff] }
 0x209   : > { %1578 = vst.msk [vmem:[#allocation3 + $0x428] sm:$0xff] %vm782_vm2, %v1509_v14  ;;  %v1871_v31 = vpack.c.bf16 %v1776_v2, %v1771_v35  ;;  %v1515_v34 = vpop.permute.xlu1 %1514  ;;  %v1786_v37 = vld [vmem:[#allocation3 + $0x450] sm:$0xff] }
 0x20a   : > { %v6147_v48 = vpop.f32.mrf.mxu0  ;;  %1581 = vst.msk [vmem:[#allocation3 + $0x4a0] sm:$0xff] %vm782_vm2, %v1515_v34 }
 0x20b   : > { %v8492_v44 = vadd.f32 %v6147_v48, %v6146_v8  ;;  %2513 = vmatprep.mubr.bf16.mxu1 %v1871_v31  ;;  %v3770_v8 = vpack.c.bf16 %v2969_v51, %v2968_v5  ;;  %v7162_v51 = vld [vmem:[#allocation11 + $0x158] sm:$0xff]  }
 0x20c   : > { %v1252_v17 = vpop.permute.xlu0 %1251  ;;  %v8494_v45 = vpop.f32.mrf.mxu0  ;;  %v1770_v7 = vld [vmem:[#allocation3 + $0x3d0] sm:$0xff] }
 0x20d   : > { %1321 = vst.msk [vmem:[#allocation3 + $0x420] sm:$0xff] %vm782_vm2, %v1252_v17  ;;  %v1870_v9 = vpack.c.bf16 %v1775_v60, %v1770_v7  ;;  %v1258_v4 = vpop.permute.xlu1 %1257  ;;  %v1785_v20 = vld [vmem:[#allocation3 + $0x448] sm:$0xff]  ;;  %v7196_v60 = vld [vmem:[#allocation4] sm:$0xff] }
 0x20e   : > { %v8497_v12 = vpop.f32.mrf.mxu0  ;;  %1324 = vst.msk [vmem:[#allocation3 + $0x498] sm:$0xff] %vm782_vm2, %v1258_v4  ;;  %v3769_v17 = vpack.c.bf16 %v7196_v60, %v7196_v60  ;;  %v7147_v7 = vld [vmem:[#allocation11 + $0x138] sm:$0xff]  }
 0x20f   : > { %2514 = vmatmul.mubr.bf16.gmra.mxu1 %v1870_v9  ;;  %v7150_v9 = vld [vmem:[#allocation11 + $0x170] sm:$0xff]  }
 0x210   : > { %v1513_v11 = vpop.permute.xlu0 %1512  ;;  %v6152_v13 = vpop.f32.mrf.mxu0  ;;  %v1781_v23 = vld [vmem:[#allocation3 + $0x428] sm:$0xff] }
 0x211   : > { %1580 = vst.msk [vmem:[#allocation3 + $0x478] sm:$0xff] %vm782_vm2, %v1513_v11  ;;  %v1876_v16 = vpack.c.bf16 %v1786_v37, %v1781_v23  ;;  %v1519_v47 = vpop.permute.xlu1 %1518  ;;  %v1796_v59 = vld [vmem:[#allocation3 + $0x4a0] sm:$0xff] }
 0x212   : > { %v6153_v19 = vpop.f32.mrf.mxu0  ;;  %1583 = vst.msk [vmem:[#allocation3 + $0x4f0] sm:$0xff] %vm782_vm2, %v1519_v47  ;;  %v7151_v37 = vld [vmem:[#allocation11 + $0x130] sm:$0xff]   ;;  %v7154_v47 = vld [vmem:[#allocation11 + $0x168] sm:$0xff]  }
 0x213   : > { %v8502_v30 = vadd.f32 %v6153_v19, %v6152_v13  ;;  %2521 = vmatprep.mubr.bf16.mxu1 %v1876_v16  ;;  %v7155_v19 = vld [vmem:[#allocation11 + $0x128] sm:$0xff]  }
 0x214   : > { %v1256_v26 = vpop.permute.xlu0 %1255  ;;  %v8504_v21 = vpop.f32.mrf.mxu0  ;;  %v1780_v3 = vld [vmem:[#allocation3 + $0x420] sm:$0xff] }
 0x215   : > { %1323 = vst.msk [vmem:[#allocation3 + $0x470] sm:$0xff] %vm782_vm2, %v1256_v26  ;;  %v1875_v49 = vpack.c.bf16 %v1785_v20, %v1780_v3  ;;  %v1262_v6 = vpop.permute.xlu1 %1261  ;;  %v1795_v55 = vld [vmem:[#allocation3 + $0x498] sm:$0xff] }
 0x216   : > { %v8507_v22 = vpop.f32.mrf.mxu0  ;;  %1326 = vst.msk [vmem:[#allocation3 + $0x4e8] sm:$0xff] %vm782_vm2, %v1262_v6 }
 0x217   : > { %2522 = vmatmul.mubr.bf16.gmra.mxu1 %v1875_v49 }
 0x218   : > { %v1517_v29 = vpop.permute.xlu0 %1516  ;;  %v6158_v10 = vpop.f32.mrf.mxu0  ;;  %v1791_v40 = vld [vmem:[#allocation3 + $0x478] sm:$0xff] }
 0x219   : > { %1582 = vst.msk [vmem:[#allocation3 + $0x4c8] sm:$0xff] %vm782_vm2, %v1517_v29  ;;  %v1881_v38 = vpack.c.bf16 %v1796_v59, %v1791_v40  ;;  %v1806_v61 = vld [vmem:[#allocation3 + $0x4f0] sm:$0xff] }
 0x21a   : > { %v6159_v43 = vpop.f32.mrf.mxu0  ;;  %v7158_v40 = vld [vmem:[#allocation11 + $0x160] sm:$0xff]  }
 0x21b   : > { %v8511_v41 = vadd.f32 %v6159_v43, %v6158_v10  ;;  %2529 = vmatprep.mubr.bf16.mxu1 %v1881_v38  ;;  %v7159_v38 = vld [vmem:[#allocation11 + $0x120] sm:$0xff]  }
 0x21c   : > { %v1260_v50 = vpop.permute.xlu0 %1259  ;;  %v8513_v52 = vpop.f32.mrf.mxu0  ;;  %v1790_v63 = vld [vmem:[#allocation3 + $0x470] sm:$0xff] }
 0x21d   : > { %1325 = vst.msk [vmem:[#allocation3 + $0x4c0] sm:$0xff] %vm782_vm2, %v1260_v50  ;;  %v1880_v0 = vpack.c.bf16 %v1795_v55, %v1790_v63  ;;  %v1805_v57 = vld [vmem:[#allocation3 + $0x4e8] sm:$0xff] }
 0x21e   : > { %v8516_v32 = vpop.f32.mrf.mxu0 }
 0x21f   : > { %2530 = vmatmul.mubr.bf16.gmra.mxu1 %v1880_v0 }
 0x220   : > { %v6164_v36 = vpop.f32.mrf.mxu0  ;;  %v1801_v24 = vld [vmem:[#allocation3 + $0x4c8] sm:$0xff] }
 0x221   : > { %v1886_v42 = vpack.c.bf16 %v1806_v61, %v1801_v24 }
 0x222   : > { %v6165_v27 = vpop.f32.mrf.mxu0 }
 0x223   : > { %v8518_v2 = vadd.f32 %v6165_v27, %v6164_v36  ;;  %2537 = vmatprep.mubr.bf16.mxu1 %v1886_v42  ;;  %v7163_v27 = vld [vmem:[#allocation11 + $0x118] sm:$0xff]  }
 0x224   : > { %v8520_v54 = vpop.f32.mrf.mxu0  ;;  %v1800_v14 = vld [vmem:[#allocation3 + $0x4c0] sm:$0xff] }
 0x225   : > { %v1885_v35 = vpack.c.bf16 %v1805_v57, %v1800_v14 }
 0x226   : > { %v8522_v28 = vpop.f32.mrf.mxu0 }
 0x227   : > { %2538 = vmatmul.mubr.bf16.gmra.mxu1 %v1885_v35 }
 0x228   : > { %v6170_v31 = vpop.f32.mrf.mxu0  ;;  %4521 = vmatprep.mubr.bf16.mxu1 %v3770_v8 }
 0x22a   : > { %v6171_v34 = vpop.f32.mrf.mxu0 }
 0x22b   : > { %v8524_v48 = vadd.f32 %v6171_v34, %v6170_v31 }
 0x22c   : > { %v8526_v11 = vpop.f32.mrf.mxu0 }
 0x22e   : > { %v8530_v16 = vpop.f32.mrf.mxu0 }
 0x22f   : > { %v6200_v4 = vpop.f32.mrf.mxu1  ;;  %4522 = vmatmul.mubr.bf16.vlgmr.msra.gmra.mxu1 %v3769_v17 }
 0x230   : > { %6581 = vmatpush3.bf16.msra.mxu1 %v7147_v7 }
 0x231   : > { %v6201_v13 = vpop.f32.mrf.mxu1  ;;  %6582 = vmatprep.subr.bf16.mxu1 %v7150_v9 }
 0x232   : > { %v8528_v23 = vadd.f32 %v6201_v13, %v6200_v4  ;;  %v7166_v4 = vld [vmem:[#allocation11 + $0x150] sm:$0xff]  }
 0x233   : > { %v8532_v26 = vpop.f32.mrf.mxu1 }
 0x234   : > { %6583 = vmatpush3.bf16.msra.mxu1 %v7151_v37  ;;  %v7167_v37 = vld [vmem:[#allocation11 + $0x110] sm:$0xff]  }
 0x235   : > { %6584 = vmatprep.subr.bf16.mxu1 %v7154_v47  ;;  %v8536_v6 = vpop.f32.mrf.mxu1 }
 0x237   : > { %v6176_v20 = vpop.f32.mrf.mxu0 }
 0x238   : > { %6585 = vmatpush3.bf16.msra.mxu1 %v7155_v19 }
 0x239   : > { %v6177_v3 = vpop.f32.mrf.mxu0  ;;  %6586 = vmatprep.subr.bf16.mxu1 %v7158_v40 }
 0x23a   : > { %v8534_v49 = vadd.f32 %v6177_v3, %v6176_v20 }
 0x23b   : > { %v8538_v18 = vpop.f32.mrf.mxu0 }
 0x23c   : > { %6587 = vmatpush3.bf16.msra.mxu1 %v7159_v38 }
 0x23d   : > { %v8542_v10 = vpop.f32.mrf.mxu0  ;;  %6588 = vmatprep.subr.bf16.mxu1 %v7162_v51 }
 0x23f   : > { %v6206_v59 = vpop.f32.mrf.mxu1 }
 0x240   : > { %6589 = vmatpush3.bf16.msra.mxu1 %v7163_v27  ;;  %v8582_v27 = vld [vmem:[%s9345_s2] ss:$0 sm:$0xff] }
 0x241   : > { %v6207_v46 = vpop.f32.mrf.mxu1  ;;  %6590 = vmatprep.subr.bf16.mxu1 %v7166_v4 }
 0x242   : > { %v8540_v29 = vadd.f32 %v6207_v46, %v6206_v59 }
 0x243   : > { %v8544_v55 = vpop.f32.mrf.mxu1 }
 0x244   : > { %6591 = vmatpush3.bf16.msra.mxu1 %v7167_v37  ;;  %v7170_v37 = vld [vmem:[#allocation11 + $0x148] sm:$0xff]  }
 0x245   : > { %v8548_v0 = vpop.f32.mrf.mxu1  ;;  %6592 = vmatprep.subr.bf16.mxu1 %v7170_v37 }
 0x247   : > { %v6182_v43 = vpop.f32.mrf.mxu0 }
 0x249   : > { %v6183_v50 = vpop.f32.mrf.mxu0 }
 0x24a   : > { %v8546_v63 = vadd.f32 %v6183_v50, %v6182_v43 }
 0x24b   : > { %v8550_v36 = vpop.f32.mrf.mxu0 }
 0x24d   : > { %v8554_v5 = vpop.f32.mrf.mxu0 }
 0x24f   : > { %v6212_v61 = vpop.f32.mrf.mxu1 }
 0x251   : > { %v6213_v24 = vpop.f32.mrf.mxu1 }
 0x252   : > { %v8552_v42 = vadd.f32 %v6213_v24, %v6212_v61 }
 0x253   : > { %v8556_v14 = vpop.f32.mrf.mxu1 }
 0x254   : > { %9367 = vst [vmem:[#allocation17_spill] sm:$0xff] %v8556_v14  ;;  %v7174_v14 = vld [vmem:[#allocation11 + $0x140] sm:$0xff]  }
 0x255   : > { %v8560_v31 = vpop.f32.mrf.mxu1 }
 0x256   : > { %9368 = vst [vmem:[#allocation18_spill] sm:$0xff] %v8560_v31 }
 0x257   : > { %v6188_v57 = vpop.f32.mrf.mxu0 }
 0x259   : > { %v6189_v8 = vpop.f32.mrf.mxu0 }
 0x25a   : > { %v8558_v35 = vadd.f32 %v6189_v8, %v6188_v57 }
 0x25b   : > { %v8562_v60 = vpop.f32.mrf.mxu0 }
 0x25d   : > { %v8566_v9 = vpop.f32.mrf.mxu0 }
 0x25f   : > { %v6218_v34 = vpop.f32.mrf.mxu1 }
 0x261   : > { %v6219_v17 = vpop.f32.mrf.mxu1 }
 0x262   : > { %v8564_v7 = vadd.f32 %v6219_v17, %v6218_v34  ;;  %v6133_v34 = vadd.f32 %v8467_v56, %v8464_v25  ;;  %v7175_v25 = vld [vmem:[#allocation11 + $0x100] sm:$0xff]  }
 0x263   : > { %v8568_v47 = vpop.f32.mrf.mxu1 }
 0x264   : > { %9369 = vst [vmem:[#allocation19_spill] sm:$0xff] %v8564_v7  ;;  %9370 = vst [vmem:[#allocation20_spill] sm:$0xff] %v8568_v47 }
 0x265   : > { %v8574_v59 = vpop.f32.mrf.mxu1 }
 0x266   : > { %9371 = vst [vmem:[#allocation21_spill] sm:$0xff] %v8574_v59 }
 0x267   : > { %v6194_v13 = vpop.f32.mrf.mxu0 }
 0x269   : > { %v6195_v19 = vpop.f32.mrf.mxu0 }
 0x26a   : > { %v8570_v20 = vadd.f32 %v6195_v19, %v6194_v13  ;;  %v7171_v13 = vld [vmem:[#allocation11 + $0x108] sm:$0xff]   ;;  %v8586_v19 = vld [vmem:[#allocation10] ss:$0 sm:$0xff] }
 0x26b   : > { %v8572_v3 = vpop.f32.mrf.mxu0  ;;  %6593 = vmatpush3.bf16.msra.mxu1 %v7171_v13 }
 0x26c   : > { %6594 = vmatprep.subr.bf16.mxu1 %v7174_v14 }
 0x26d   : > { %v8576_v46 = vpop.f32.mrf.mxu0 }
 0x26f   : > { %v6240_v40 = vpop.f32.mrf.mxu1  ;;  %v6858_v38 = vpop.f32.mrf.mxu0  ;;  %6595 = vmatpush3.bf16.msra.mxu1 %v7175_v25 }
 0x271   : > { %v6241_v43 = vpop.f32.mrf.mxu1  ;;  %v2580_v50 = vpop.f32.mrf.mxu0 }
 0x272   : > { %v6242_v61 = vadd.f32 %v6241_v43, %v6240_v40 }
 0x273   : > { %v6243_v24 = vpop.f32.mrf.mxu1  ;;  %v6859_v57 = vpop.f32.mrf.mxu0 }
 0x274   : > { %v2420_v51 = vadd.f32 %v6242_v61, %v8462_v39 }
 0x275   : > { %v6244_v8 = vpop.f32.mrf.mxu1  ;;  %v2583_v61 = vpop.f32.mrf.mxu0 }
 0x276   : > { %v2581_v17 = vadd.f32 %v2580_v50, %v2420_v51  ;;  %v6245_v4 = vadd.f32 %v6244_v8, %v6243_v24 }
 0x277   : > { %v6246_v40 = vpop.f32.mrf.mxu1 }
 0x278   : > { %v2714_v43 = vmul.f32 %v8582_v27, %v2581_v17  ;;  %v2423_v39 = vadd.f32 %v6245_v4, %v6133_v34  ;;  %v8592_v17 = vpop.f32.mrf.mxu0  ;;  %v6139_v34 = vadd.f32 %v8477_v53, %v8474_v15 }
 0x279   : > { %v6247_v59 = vpop.f32.mrf.mxu1 }
 0x27a   : > { %v2753_v47 = vadd.f32 %v8586_v19, %v2714_v43  ;;  %v2584_v7 = vadd.f32 %v2583_v61, %v2423_v39  ;;  %v6248_v31 = vadd.f32 %v6247_v59, %v6246_v40  ;;  %v2596_v43 = vpop.f32.mrf.mxu0 }
 0x27b   : > { %v6249_v56 = vpop.f32.mrf.mxu1 }
 0x27c   : > { %v2785_v50 = vmax.f32 %v2753_v47, 0.0  ;;  %v2715_v24 = vmul.f32 %v8582_v27, %v2584_v7  ;;  %v2428_v51 = vadd.f32 %v6248_v31, %v8472_v33 }
 0x27d   : > { %v6250_v8 = vpop.f32.mrf.mxu1 }
 0x27e   : > { %2872 = vst [vmem:[#allocation4 + $0x19] sm:$0xff] %v2785_v50  ;;  %v2754_v4 = vadd.f32 %v8586_v19, %v2715_v24  ;;  %v2589_v59 = vadd.f32 %v6858_v38, %v2428_v51  ;;  %v6251_v37 = vadd.f32 %v6250_v8, %v6249_v56  ;;  %v6863_v56 = vpop.f32.mrf.mxu0  ;;  %v6145_v51 = vadd.f32 %v8487_v62, %v8484_v1 }
 0x27f   : > { %v6252_v13 = vpop.f32.mrf.mxu1 }
 0x280   : > { %v2786_v40 = vmax.f32 %v2754_v4, 0.0  ;;  %v2716_v47 = vmul.f32 %v8582_v27, %v2589_v59  ;;  %v2431_v7 = vadd.f32 %v6251_v37, %v6139_v34  ;;  %v3033_v59 = vld [vmem:[#allocation4 + $0xa] sm:$0xff] }
 0x281   : > { %v6253_v33 = vpop.f32.mrf.mxu1 }
 0x282   : > { %2873 = vst [vmem:[#allocation4 + $0x21] sm:$0xff] %v2786_v40  ;;  %v2755_v14 = vadd.f32 %v8586_v19, %v2716_v47  ;;  %v2592_v31 = vadd.f32 %v6859_v57, %v2431_v7  ;;  %v6254_v39 = vadd.f32 %v6253_v33, %v6252_v13  ;;  %v3779_v61 = vpack.c.bf16 %v2786_v40, %v2785_v50  ;;  %v3032_v57 = vld [vmem:[#allocation4 + $0x2] sm:$0xff]  ;;  %v8604_v50 = vld [vmem:[#allocation11 + $0x238] sm:$0xff]   ;;  %v2599_v47 = vpop.f32.mrf.mxu0 }
 0x283   : > { %v6255_v25 = vpop.f32.mrf.mxu1  ;;  %6888 = vmatprep.subr.bf16.mxu1 %v8604_v50  ;;  %v3771_v62 = vpack.c.bf16 %v3033_v59, %v3032_v57  ;;  %v6151_v57 = vadd.f32 %v8497_v12, %v8494_v45 }
 0x284   : > { %v2787_v15 = vmax.f32 %v2755_v14, 0.0  ;;  %v2717_v53 = vmul.f32 %v8582_v27, %v2592_v31  ;;  %v2436_v38 = vadd.f32 %v6254_v39, %v8482_v58  ;;  %4529 = vmatprep.mubr.bf16.mxu1 %v3779_v61  ;;  %v7149_v61 = vld [vmem:[#allocation11 + $0x1b8] sm:$0xff]  }
 0x285   : > { %v6256_v24 = vpop.f32.mrf.mxu1  ;;  %v3096_v33 = vld [vmem:[#allocation4 + $0x18] sm:$0xff] }
 0x286   : > { %2874 = vst [vmem:[#allocation4 + $0x31] sm:$0xff] %v2787_v15  ;;  %v2756_v8 = vadd.f32 %v8586_v19, %v2717_v53  ;;  %v2597_v34 = vadd.f32 %v2596_v43, %v2436_v38  ;;  %v6257_v4 = vadd.f32 %v6256_v24, %v6255_v25  ;;  %v7152_v38 = vld [vmem:[#allocation11 + $0x1f0] sm:$0xff]  }
 0x287   : > { %v6258_v37 = vpop.f32.mrf.mxu1 }
 0x288   : > { %v2788_v13 = vmax.f32 %v2756_v8, 0.0  ;;  %v2718_v40 = vmul.f32 %v8582_v27, %v2597_v34  ;;  %v2439_v58 = vadd.f32 %v6257_v4, %v6145_v51  ;;  %v8611_v4 = vpop.f32.mrf.mxu0 }
 0x289   : > { %v6259_v7 = vpop.f32.mrf.mxu1  ;;  %v3097_v1 = vld [vmem:[#allocation4 + $0x20] sm:$0xff] }
 0x28a   : > { %2875 = vst [vmem:[#allocation4 + $0x39] sm:$0xff] %v2788_v13  ;;  %v2757_v43 = vadd.f32 %v8586_v19, %v2718_v40  ;;  %v2600_v14 = vadd.f32 %v2599_v47, %v2439_v58  ;;  %v6260_v31 = vadd.f32 %v6259_v7, %v6258_v37  ;;  %v3772_v39 = vpack.c.bf16 %v3097_v1, %v3096_v33  ;;  %v3034_v33 = vld [vmem:[#allocation4 + $0x1a] sm:$0xff]  ;;  %v3035_v1 = vld [vmem:[#allocation4 + $0x22] sm:$0xff] }
 0x28b   : > { %v6261_v25 = vpop.f32.mrf.mxu1  ;;  %v3788_v53 = vpack.c.bf16 %v2788_v13, %v2787_v15  ;;  %v7153_v13 = vld [vmem:[#allocation11 + $0x1b0] sm:$0xff]  }
 0x28c   : > { %v2789_v24 = vmax.f32 %v2757_v43, 0.0  ;;  %v2719_v51 = vmul.f32 %v8582_v27, %v2600_v14  ;;  %v2444_v8 = vadd.f32 %v6260_v31, %v8492_v44  ;;  %4682 = vmatprep.mubr.bf16.mxu0 %v3772_v39  ;;  %4530 = vmatmul.mubr.bf16.gmra.mxu1 %v3772_v39  ;;  %v7156_v44 = vld [vmem:[#allocation11 + $0x1e8] sm:$0xff]  }
 0x28d   : > { %v6262_v34 = vpop.f32.mrf.mxu1  ;;  %4683 = vmatmul.mubr.bf16.vlgmr.msra.gmra.mxu0 %v3771_v62  ;;  %4537 = vmatprep.mubr.bf16.mxu1 %v3788_v53  ;;  %v2612_v62 = vpop.f32.mrf.mxu0  ;;  %v3098_v45 = vld [vmem:[#allocation4 + $0x30] sm:$0xff]  ;;  %v3780_v53 = vpack.c.bf16 %v3035_v1, %v3034_v33 }
 0x28e   : > { %2876 = vst [vmem:[#allocation4 + $0x49] sm:$0xff] %v2789_v24  ;;  %v2758_v59 = vadd.f32 %v8586_v19, %v2719_v51  ;;  %v2605_v15 = vadd.f32 %v8592_v17, %v2444_v8  ;;  %v6263_v37 = vadd.f32 %v6262_v34, %v6261_v25  ;;  %6693 = vmatpush3.bf16.msra.mxu0 %v7149_v61  ;;  %v7157_v61 = vld [vmem:[#allocation11 + $0x1a8] sm:$0xff]   ;;  %v7160_v51 = vld [vmem:[#allocation11 + $0x1e0] sm:$0xff]  }
 0x28f   : > { %v6264_v40 = vpop.f32.mrf.mxu1  ;;  %6694 = vmatprep.subr.bf16.mxu0 %v7152_v38 }
 0x290   : > { %v2790_v58 = vmax.f32 %v2758_v59, 0.0  ;;  %v2720_v47 = vmul.f32 %v8582_v27, %v2605_v15  ;;  %v2447_v7 = vadd.f32 %v6263_v37, %v6151_v57  ;;  %v8621_v59 = vpop.f32.mrf.mxu0 }
 0x291   : > { %v6265_v43 = vpop.f32.mrf.mxu1  ;;  %v3099_v12 = vld [vmem:[#allocation4 + $0x38] sm:$0xff] }
 0x292   : > { %2877 = vst [vmem:[#allocation4 + $0x51] sm:$0xff] %v2790_v58  ;;  %v2759_v14 = vadd.f32 %v8586_v19, %v2720_v47  ;;  %v2608_v17 = vadd.f32 %v6863_v56, %v2447_v7  ;;  %v6266_v31 = vadd.f32 %v6265_v43, %v6264_v40  ;;  %v3781_v39 = vpack.c.bf16 %v3099_v12, %v3098_v45  ;;  %v7161_v40 = vld [vmem:[#allocation11 + $0x1a0] sm:$0xff]   ;;  %v3037_v1 = vld [vmem:[#allocation4 + $0x3a] sm:$0xff]  ;;  %v2615_v43 = vpop.f32.mrf.mxu0 }
 0x293   : > { %6695 = vmatpush3.bf16.msra.mxu0 %v7153_v13  ;;  %v6267_v25 = vpop.f32.mrf.mxu1  ;;  %v3797_v38 = vpack.c.bf16 %v2790_v58, %v2789_v24  ;;  %v6157_v56 = vadd.f32 %v8507_v22, %v8504_v21  ;;  %v3036_v33 = vld [vmem:[#allocation4 + $0x32] sm:$0xff] }
 0x294   : > { %6696 = vmatprep.subr.bf16.mxu0 %v7156_v44  ;;  %v2791_v8 = vmax.f32 %v2759_v14, 0.0  ;;  %v2721_v34 = vmul.f32 %v8582_v27, %v2608_v17  ;;  %v2452_v57 = vadd.f32 %v6266_v31, %v8502_v30  ;;  %4690 = vmatprep.mubr.bf16.mxu0 %v3781_v39  ;;  %v7164_v30 = vld [vmem:[#allocation11 + $0x1d8] sm:$0xff]  }
 0x295   : > { %4538 = vmatmul.mubr.bf16.gmra.mxu1 %v3781_v39  ;;  %v6268_v15 = vpop.f32.mrf.mxu1  ;;  %4691 = vmatmul.mubr.bf16.gmra.mxu0 %v3780_v53  ;;  %v3100_v12 = vld [vmem:[#allocation4 + $0x48] sm:$0xff] }
 0x296   : > { %4545 = vmatprep.mubr.bf16.mxu1 %v3797_v38  ;;  %2878 = vst [vmem:[#allocation4 + $0x61] sm:$0xff] %v2791_v8  ;;  %v2760_v24 = vadd.f32 %v8586_v19, %v2721_v34  ;;  %v2613_v37 = vadd.f32 %v2612_v62, %v2452_v57  ;;  %v6269_v13 = vadd.f32 %v6268_v15, %v6267_v25  ;;  %v7165_v31 = vld [vmem:[#allocation11 + $0x198] sm:$0xff]   ;;  %v7168_v53 = vld [vmem:[#allocation11 + $0x1d0] sm:$0xff]   ;;  %v8632_v15 = vpop.f32.mrf.mxu0 }
 0x297   : > { %6697 = vmatpush3.bf16.msra.mxu0 %v7157_v61  ;;  %v6270_v44 = vpop.f32.mrf.mxu1  ;;  %v8628_v61 = vpack.c.bf16 %v3037_v1, %v3036_v33 }
 0x298   : > { %6698 = vmatprep.subr.bf16.mxu0 %v7160_v51  ;;  %v2792_v58 = vmax.f32 %v2760_v24, 0.0  ;;  %v2722_v47 = vmul.f32 %v8582_v27, %v2613_v37  ;;  %v2455_v7 = vadd.f32 %v6269_v13, %v6157_v56  ;;  %v6163_v56 = vadd.f32 %v8516_v32, %v8513_v52  ;;  %v7169_v13 = vld [vmem:[#allocation11 + $0x190] sm:$0xff]   ;;  %v2628_v33 = vpop.f32.mrf.mxu0 }
 0x299   : > { %v6271_v45 = vpop.f32.mrf.mxu1  ;;  %v3101_v21 = vld [vmem:[#allocation4 + $0x50] sm:$0xff] }
 0x29a   : > { %2879 = vst [vmem:[#allocation4 + $0x69] sm:$0xff] %v2792_v58  ;;  %v2761_v22 = vadd.f32 %v8586_v19, %v2722_v47  ;;  %v2616_v62 = vadd.f32 %v2615_v43, %v2455_v7  ;;  %v6272_v14 = vadd.f32 %v6271_v45, %v6270_v44  ;;  %v3790_v17 = vpack.c.bf16 %v3101_v21, %v3100_v12  ;;  %v3038_v47 = vld [vmem:[#allocation4 + $0x4a] sm:$0xff]  ;;  %v3039_v7 = vld [vmem:[#allocation4 + $0x52] sm:$0xff]  ;;  %v7173_v21 = vld [vmem:[#allocation11 + $0x188] sm:$0xff]  }
 0x29b   : > { %6699 = vmatpush3.bf16.msra.mxu0 %v7161_v40  ;;  %v6273_v39 = vpop.f32.mrf.mxu1  ;;  %v3806_v25 = vpack.c.bf16 %v2792_v58, %v2791_v8  ;;  %v7172_v40 = vld [vmem:[#allocation11 + $0x1c8] sm:$0xff]  }
 0x29c   : > { %6700 = vmatprep.subr.bf16.mxu0 %v7164_v30  ;;  %v2793_v38 = vmax.f32 %v2761_v22, 0.0  ;;  %v2723_v51 = vmul.f32 %v8582_v27, %v2616_v62  ;;  %v2460_v34 = vadd.f32 %v6272_v14, %v8511_v41  ;;  %4698 = vmatprep.mubr.bf16.mxu0 %v3790_v17  ;;  %v8642_v62 = vpack.c.bf16 %v3039_v7, %v3038_v47 }
 0x29d   : > { %4546 = vmatmul.mubr.bf16.gmra.mxu1 %v3790_v17  ;;  %v6274_v57 = vpop.f32.mrf.mxu1  ;;  %4699 = vmatmul.mubr.bf16.gmra.mxu0 %v8628_v61  ;;  %v3102_v52 = vld [vmem:[#allocation4 + $0x60] sm:$0xff]  ;;  %v7176_v17 = vld [vmem:[#allocation11 + $0x1c0] sm:$0xff]  }
 0x29e   : > { %4553 = vmatprep.mubr.bf16.mxu1 %v3806_v25  ;;  %2880 = vst [vmem:[#allocation4 + $0x79] sm:$0xff] %v2793_v38  ;;  %v2762_v8 = vadd.f32 %v8586_v19, %v2723_v51  ;;  %v2621_v24 = vadd.f32 %v8611_v4, %v2460_v34  ;;  %v6275_v37 = vadd.f32 %v6274_v57, %v6273_v39 }
 0x29f   : > { %6701 = vmatpush3.bf16.msra.mxu0 %v7165_v31  ;;  %v6276_v41 = vpop.f32.mrf.mxu1 }
 0x2a0   : > { %6702 = vmatprep.subr.bf16.mxu0 %v7168_v53  ;;  %v2794_v44 = vmax.f32 %v2762_v8, 0.0  ;;  %v2724_v30 = vmul.f32 %v8582_v27, %v2621_v24  ;;  %v2463_v58 = vadd.f32 %v6275_v37, %v6163_v56  ;;  %v6871_v53 = vpop.f32.mrf.mxu0  ;;  %v7177_v56 = vld [vmem:[#allocation11 + $0x180] sm:$0xff]  }
 0x2a1   : > { %v6277_v1 = vpop.f32.mrf.mxu1  ;;  %v3103_v32 = vld [vmem:[#allocation4 + $0x68] sm:$0xff] }
 0x2a2   : > { %2881 = vst [vmem:[#allocation4 + $0x81] sm:$0xff] %v2794_v44  ;;  %v2763_v43 = vadd.f32 %v8586_v19, %v2724_v30  ;;  %v2624_v4 = vadd.f32 %v8621_v59, %v2463_v58  ;;  %v6278_v45 = vadd.f32 %v6277_v1, %v6276_v41  ;;  %v3799_v12 = vpack.c.bf16 %v3103_v32, %v3102_v52  ;;  %v3040_v41 = vld [vmem:[#allocation4 + $0x62] sm:$0xff] }
 0x2a3   : > { %6703 = vmatpush3.bf16.msra.mxu0 %v7169_v13  ;;  %v6279_v22 = vpop.f32.mrf.mxu1  ;;  %v3815_v14 = vpack.c.bf16 %v2794_v44, %v2793_v38  ;;  %v6169_v59 = vadd.f32 %v8522_v28, %v8520_v54  ;;  %v2631_v44 = vpop.f32.mrf.mxu0 }
 0x2a4   : > { %6704 = vmatprep.subr.bf16.mxu0 %v7172_v40  ;;  %v2795_v31 = vmax.f32 %v2763_v43, 0.0  ;;  %v2725_v39 = vmul.f32 %v8582_v27, %v2624_v4  ;;  %v2468_v25 = vadd.f32 %v6278_v45, %v8518_v2  ;;  %4706 = vmatprep.mubr.bf16.mxu0 %v3799_v12  ;;  %v8650_v2 = vld [vmem:[#allocation13 + $0x18] sm:$0xff]  }
 0x2a5   : > { %4554 = vmatmul.mubr.bf16.gmra.mxu1 %v3799_v12  ;;  %v6280_v51 = vpop.f32.mrf.mxu1  ;;  %4707 = vmatmul.mubr.bf16.gmra.mxu0 %v8642_v62  ;;  %v3041_v40 = vld [vmem:[#allocation4 + $0x6a] sm:$0xff]  ;;  %v3104_v54 = vld [vmem:[#allocation4 + $0x78] sm:$0xff] }
 0x2a6   : > { %4561 = vmatprep.mubr.bf16.mxu1 %v3815_v14  ;;  %2882 = vst [vmem:[#allocation4 + $0x91] sm:$0xff] %v2795_v31  ;;  %v2764_v38 = vadd.f32 %v8586_v19, %v2725_v39  ;;  %v2629_v34 = vadd.f32 %v2628_v33, %v2468_v25  ;;  %v6281_v57 = vadd.f32 %v6280_v51, %v6279_v22 }
 0x2a7   : > { %6705 = vmatpush3.bf16.msra.mxu0 %v7173_v21  ;;  %v6282_v8 = vpop.f32.mrf.mxu1  ;;  %v8654_v52 = vpack.c.bf16 %v3041_v40, %v3040_v41  ;;  %v8659_v21 = vpop.f32.mrf.mxu0  ;;  %v6175_v22 = vadd.f32 %v8530_v16, %v8526_v11 }
 0x2a8   : > { %6706 = vmatprep.subr.bf16.mxu0 %v7176_v17  ;;  %v2796_v24 = vmax.f32 %v2764_v38, 0.0  ;;  %v2726_v37 = vmul.f32 %v8582_v27, %v2629_v34  ;;  %v2471_v13 = vadd.f32 %v6281_v57, %v6169_v59 }
 0x2a9   : > { %v6283_v30 = vpop.f32.mrf.mxu1  ;;  %v3105_v28 = vld [vmem:[#allocation4 + $0x80] sm:$0xff]  ;;  %v2644_v34 = vpop.f32.mrf.mxu0 }
 0x2aa   : > { %2883 = vst [vmem:[#allocation4 + $0x99] sm:$0xff] %v2796_v24  ;;  %v2765_v58 = vadd.f32 %v8586_v19, %v2726_v37  ;;  %v2632_v47 = vadd.f32 %v2631_v44, %v2471_v13  ;;  %v6284_v7 = vadd.f32 %v6283_v30, %v6282_v8  ;;  %v3808_v33 = vpack.c.bf16 %v3105_v28, %v3104_v54  ;;  %v3042_v59 = vld [vmem:[#allocation4 + $0x7a] sm:$0xff]  ;;  %v3043_v38 = vld [vmem:[#allocation4 + $0x82] sm:$0xff] }
 0x2ab   : > { %6707 = vmatpush3.bf16.msra.mxu0 %v7177_v56  ;;  %v6285_v1 = vpop.f32.mrf.mxu1  ;;  %v3824_v32 = vpack.c.bf16 %v2796_v24, %v2795_v31  ;;  %v8670_v13 = vpack.c.bf16 %v3043_v38, %v3042_v59  ;;  %v6875_v54 = vpop.f32.mrf.mxu0 }
 0x2ac   : > { %6936 = vmatprep.subr.bf16.mxu0 %v8650_v2  ;;  %v2797_v43 = vmax.f32 %v2765_v58, 0.0  ;;  %v2727_v4 = vmul.f32 %v8582_v27, %v2632_v47  ;;  %v2476_v45 = vadd.f32 %v6284_v7, %v8524_v48  ;;  %4714 = vmatprep.mubr.bf16.mxu0 %v3808_v33 }
 0x2ad   : > { %4562 = vmatmul.mubr.bf16.gmra.mxu1 %v3808_v33  ;;  %v6286_v12 = vpop.f32.mrf.mxu1  ;;  %4715 = vmatmul.mubr.bf16.gmra.mxu0 %v8654_v52  ;;  %v3106_v56 = vld [vmem:[#allocation4 + $0x90] sm:$0xff] }
 0x2ae   : > { %4569 = vmatprep.mubr.bf16.mxu1 %v3824_v32  ;;  %2884 = vst [vmem:[#allocation4 + $0xa9] sm:$0xff] %v2797_v43  ;;  %v2766_v14 = vadd.f32 %v8586_v19, %v2727_v4  ;;  %v2637_v17 = vadd.f32 %v8632_v15, %v2476_v45  ;;  %v6287_v31 = vadd.f32 %v6286_v12, %v6285_v1  ;;  %v2647_v45 = vpop.f32.mrf.mxu0 }
 0x2af   : > { %v6288_v39 = vpop.f32.mrf.mxu1 }
 0x2b0   : > { %v2798_v25 = vmax.f32 %v2766_v14, 0.0  ;;  %v2728_v48 = vmul.f32 %v8582_v27, %v2637_v17  ;;  %v2479_v51 = vadd.f32 %v6287_v31, %v6175_v22 }
 0x2b1   : > { %v6289_v57 = vpop.f32.mrf.mxu1  ;;  %v3107_v8 = vld [vmem:[#allocation4 + $0x98] sm:$0xff] }
 0x2b2   : > { %2885 = vst [vmem:[#allocation4 + $0xb1] sm:$0xff] %v2798_v25  ;;  %v2767_v11 = vadd.f32 %v8586_v19, %v2728_v48  ;;  %v2640_v16 = vadd.f32 %v6871_v53, %v2479_v51  ;;  %v6290_v24 = vadd.f32 %v6289_v57, %v6288_v39  ;;  %v8668_v37 = vpack.c.bf16 %v3107_v8, %v3106_v56  ;;  %v3045_v4 = vld [vmem:[#allocation4 + $0x9a] sm:$0xff]  ;;  %v8690_v57 = vpop.f32.mrf.mxu0 }
 0x2b3   : > { %v6291_v15 = vpop.f32.mrf.mxu1  ;;  %v3833_v41 = vpack.c.bf16 %v2798_v25, %v2797_v43  ;;  %v6181_v53 = vadd.f32 %v8542_v10, %v8538_v18  ;;  %v3044_v43 = vld [vmem:[#allocation4 + $0x92] sm:$0xff]  ;;  %v6187_v56 = vadd.f32 %v8554_v5, %v8550_v36 }
 0x2b4   : > { %v2799_v40 = vmax.f32 %v2767_v11, 0.0  ;;  %v2729_v44 = vmul.f32 %v8582_v27, %v2640_v16  ;;  %v2484_v30 = vadd.f32 %v6290_v24, %v8534_v49  ;;  %4722 = vmatprep.mubr.bf16.mxu0 %v8668_v37  ;;  %v8684_v25 = vpack.c.bf16 %v3045_v4, %v3044_v43 }
 0x2b5   : > { %4570 = vmatmul.mubr.bf16.gmra.mxu1 %v8668_v37  ;;  %v6292_v28 = vpop.f32.mrf.mxu1  ;;  %4723 = vmatmul.mubr.bf16.gmra.mxu0 %v8670_v13  ;;  %v3108_v22 = vld [vmem:[#allocation4 + $0xa8] sm:$0xff] }
 0x2b6   : > { %4577 = vmatprep.mubr.bf16.mxu1 %v3833_v41  ;;  %2886 = vst [vmem:[#allocation4 + $0xc1] sm:$0xff] %v2799_v40  ;;  %v2768_v58 = vadd.f32 %v8586_v19, %v2729_v44  ;;  %v2645_v47 = vadd.f32 %v2644_v34, %v2484_v30  ;;  %v6293_v7 = vadd.f32 %v6292_v28, %v6291_v15  ;;  %v2660_v30 = vpop.f32.mrf.mxu0 }
 0x2b7   : > { %v6294_v33 = vpop.f32.mrf.mxu1 }
 0x2b8   : > { %v2800_v1 = vmax.f32 %v2768_v58, 0.0  ;;  %v2730_v49 = vmul.f32 %v8582_v27, %v2645_v47  ;;  %v2487_v32 = vadd.f32 %v6293_v7, %v6181_v53  ;;  %v6879_v4 = vpop.f32.mrf.mxu0 }
 0x2b9   : > { %v6295_v12 = vpop.f32.mrf.mxu1  ;;  %v3109_v14 = vld [vmem:[#allocation4 + $0xb0] sm:$0xff] }
 0x2ba   : > { %2887 = vst [vmem:[#allocation4 + $0xc9] sm:$0xff] %v2800_v1  ;;  %v2769_v17 = vadd.f32 %v8586_v19, %v2730_v49  ;;  %v2648_v18 = vadd.f32 %v2647_v45, %v2487_v32  ;;  %v6296_v10 = vadd.f32 %v6295_v12, %v6294_v33  ;;  %v8682_v31 = vpack.c.bf16 %v3109_v14, %v3108_v22  ;;  %v3047_v44 = vld [vmem:[#allocation4 + $0xb2] sm:$0xff] }
 0x2bb   : > { %v6297_v39 = vpop.f32.mrf.mxu1  ;;  %v3842_v48 = vpack.c.bf16 %v2800_v1, %v2799_v40  ;;  %v3046_v40 = vld [vmem:[#allocation4 + $0xaa] sm:$0xff] }
 0x2bc   : > { %v2801_v51 = vmax.f32 %v2769_v17, 0.0  ;;  %v2731_v59 = vmul.f32 %v8582_v27, %v2648_v18  ;;  %v2492_v38 = vadd.f32 %v6296_v10, %v8546_v63  ;;  %4730 = vmatprep.mubr.bf16.mxu0 %v8682_v31  ;;  %v8701_v33 = vpack.c.bf16 %v3047_v44, %v3046_v40 }
 0x2bd   : > { %4578 = vmatmul.mubr.bf16.gmra.mxu1 %v8682_v31  ;;  %v6298_v34 = vpop.f32.mrf.mxu1  ;;  %4731 = vmatmul.mubr.bf16.gmra.mxu0 %v8684_v25  ;;  %v3110_v53 = vld [vmem:[#allocation4 + $0xc0] sm:$0xff] }
 0x2be   : > { %4585 = vmatprep.mubr.bf16.mxu1 %v3842_v48  ;;  %2888 = vst [vmem:[#allocation4 + $0xd9] sm:$0xff] %v2801_v51  ;;  %v2770_v8 = vadd.f32 %v8586_v19, %v2731_v59  ;;  %v2653_v11 = vadd.f32 %v8659_v21, %v2492_v38  ;;  %v6299_v16 = vadd.f32 %v6298_v34, %v6297_v39 }
 0x2bf   : > { %v6300_v63 = vpop.f32.mrf.mxu1 }
 0x2c0   : > { %v2802_v24 = vmax.f32 %v2770_v8, 0.0  ;;  %v2732_v15 = vmul.f32 %v8582_v27, %v2653_v11  ;;  %v2495_v41 = vadd.f32 %v6299_v16, %v6187_v56 }
 0x2c1   : > { %v6301_v28 = vpop.f32.mrf.mxu1  ;;  %v3111_v58 = vld [vmem:[#allocation4 + $0xc8] sm:$0xff] }
 0x2c2   : > { %2889 = vst [vmem:[#allocation4 + $0xe1] sm:$0xff] %v2802_v24  ;;  %v2771_v36 = vadd.f32 %v8586_v19, %v2732_v15  ;;  %v2656_v5 = vadd.f32 %v6875_v54, %v2495_v41  ;;  %v6302_v47 = vadd.f32 %v6301_v28, %v6300_v63  ;;  %v8699_v7 = vpack.c.bf16 %v3111_v58, %v3110_v53  ;;  %v3048_v39 = vld [vmem:[#allocation4 + $0xc2] sm:$0xff]  ;;  %v3049_v48 = vld [vmem:[#allocation4 + $0xca] sm:$0xff] }
 0x2c3   : > { %v6303_v21 = vpop.f32.mrf.mxu1  ;;  %v3851_v1 = vpack.c.bf16 %v2802_v24, %v2801_v51  ;;  %v6193_v54 = vadd.f32 %v8566_v9, %v8562_v60  ;;  %v2663_v51 = vpop.f32.mrf.mxu0  ;;  %v8718_v16 = vpack.c.bf16 %v3049_v48, %v3048_v39 }
 0x2c4   : > { %v2803_v49 = vmax.f32 %v2771_v36, 0.0  ;;  %v2733_v32 = vmul.f32 %v8582_v27, %v2656_v5  ;;  %v2500_v43 = vadd.f32 %v6302_v47, %v8558_v35  ;;  %4738 = vmatprep.mubr.bf16.mxu0 %v8699_v7 }
 0x2c5   : > { %4586 = vmatmul.mubr.bf16.gmra.mxu1 %v8699_v7  ;;  %v6304_v45 = vpop.f32.mrf.mxu1  ;;  %4739 = vmatmul.mubr.bf16.gmra.mxu0 %v8701_v33  ;;  %v3112_v38 = vld [vmem:[#allocation4 + $0xd8] sm:$0xff]  ;;  %v8725_v44 = vpop.f32.mrf.mxu0 }
 0x2c6   : > { %4593 = vmatprep.mubr.bf16.mxu1 %v3851_v1  ;;  %2890 = vst [vmem:[#allocation4 + $0xf1] sm:$0xff] %v2803_v49  ;;  %v2772_v12 = vadd.f32 %v8586_v19, %v2733_v32  ;;  %v2661_v22 = vadd.f32 %v2660_v30, %v2500_v43  ;;  %v6305_v14 = vadd.f32 %v6304_v45, %v6303_v21 }
 0x2c7   : > { %v6306_v17 = vpop.f32.mrf.mxu1  ;;  %v6199_v30 = vadd.f32 %v8576_v46, %v8572_v3 }
 0x2c8   : > { %v8711_v18 = vmax.f32 %v2772_v12, 0.0  ;;  %v2734_v35 = vmul.f32 %v8582_v27, %v2661_v22  ;;  %v2503_v10 = vadd.f32 %v6305_v14, %v6193_v54 }
 0x2c9   : > { %v6307_v59 = vpop.f32.mrf.mxu1  ;;  %v3113_v34 = vld [vmem:[#allocation4 + $0xe0] sm:$0xff] }
 0x2ca   : > { %2891 = vst [vmem:[#allocation4 + $0xf9] sm:$0xff] %v8711_v18  ;;  %v2773_v60 = vadd.f32 %v8586_v19, %v2734_v35  ;;  %v2664_v9 = vadd.f32 %v2663_v51, %v2503_v10  ;;  %v6308_v56 = vadd.f32 %v6307_v59, %v6306_v17  ;;  %v8716_v8 = vpack.c.bf16 %v3113_v34, %v3112_v38  ;;  %v3050_v21 = vld [vmem:[#allocation4 + $0xda] sm:$0xff]  ;;  %v3051_v1 = vld [vmem:[#allocation4 + $0xe2] sm:$0xff] }
 0x2cb   : > { %v6309_v11 = vpop.f32.mrf.mxu1  ;;  %v3860_v63 = vpack.c.bf16 %v8711_v18, %v2803_v49  ;;  %v2676_v49 = vpop.f32.mrf.mxu0  ;;  %v8739_v22 = vpack.c.bf16 %v3051_v1, %v3050_v21 }
 0x2cc   : > { %v2805_v24 = vmax.f32 %v2773_v60, 0.0  ;;  %v2735_v15 = vmul.f32 %v8582_v27, %v2664_v9  ;;  %v2508_v41 = vadd.f32 %v6308_v56, %v8570_v20  ;;  %4746 = vmatprep.mubr.bf16.mxu0 %v8716_v8 }
 0x2cd   : > { %4594 = vmatmul.mubr.bf16.gmra.mxu1 %v8716_v8  ;;  %v6310_v40 = vpop.f32.mrf.mxu1  ;;  %4747 = vmatmul.mubr.bf16.gmra.mxu0 %v8718_v16  ;;  %v3114_v43 = vld [vmem:[#allocation4 + $0xf0] sm:$0xff]  ;;  %v6883_v39 = vpop.f32.mrf.mxu0 }
 0x2ce   : > { %4601 = vmatprep.mubr.bf16.mxu1 %v3860_v63  ;;  %2892 = vst [vmem:[#allocation4 + $0x109] sm:$0xff] %v2805_v24  ;;  %v2774_v28 = vadd.f32 %v8586_v19, %v2735_v15  ;;  %v2669_v53 = vadd.f32 %v8690_v57, %v2508_v41  ;;  %v6311_v58 = vadd.f32 %v6310_v40, %v6309_v11 }
 0x2cf   : > { %v6312_v20 = vpop.f32.mrf.mxu1  ;;  %v2679_v63 = vpop.f32.mrf.mxu0 }
 0x2d0   : > { %v8732_v36 = vmax.f32 %v2774_v28, 0.0  ;;  %v2736_v5 = vmul.f32 %v8582_v27, %v2669_v53  ;;  %v2511_v47 = vadd.f32 %v6311_v58, %v6199_v30 }
 0x2d1   : > { %v6313_v32 = vpop.f32.mrf.mxu1  ;;  %v3115_v45 = vld [vmem:[#allocation4 + $0xf8] sm:$0xff]  ;;  %v8766_v1 = vpop.f32.mrf.mxu0 }
 0x2d2   : > { %2893 = vst [vmem:[#allocation4 + $0x111] sm:$0xff] %v8732_v36  ;;  %v2775_v3 = vadd.f32 %v8586_v19, %v2736_v5  ;;  %v2672_v46 = vadd.f32 %v6879_v4, %v2511_v47  ;;  %v6314_v54 = vadd.f32 %v6313_v32, %v6312_v20  ;;  %v8737_v57 = vpack.c.bf16 %v3115_v45, %v3114_v43  ;;  %v3052_v56 = vld [vmem:[#allocation4 + $0xf2] sm:$0xff]  ;;  %v3053_v11 = vld [vmem:[#allocation4 + $0xfa] sm:$0xff] }
 0x2d3   : > { %v6315_v12 = vpop.f32.mrf.mxu1  ;;  %v3869_v14 = vpack.c.bf16 %v8732_v36, %v2805_v24  ;;  %v6205_v4 = vadd.f32 %v8536_v6, %v8532_v26  ;;  %v8757_v53 = vpack.c.bf16 %v3053_v11, %v3052_v56 }
 0x2d4   : > { %v2807_v17 = vmax.f32 %v2775_v3, 0.0  ;;  %v2737_v35 = vmul.f32 %v8582_v27, %v2672_v46  ;;  %v2516_v10 = vadd.f32 %v6314_v54, %v8528_v23  ;;  %4754 = vmatprep.mubr.bf16.mxu0 %v8737_v57 }
 0x2d5   : > { %4602 = vmatmul.mubr.bf16.gmra.mxu1 %v8737_v57  ;;  %v6316_v48 = vpop.f32.mrf.mxu1  ;;  %4755 = vmatmul.mubr.bf16.gmra.mxu0 %v8739_v22  ;;  %v3116_v15 = vld [vmem:[#allocation4 + $0x108] sm:$0xff] }
 0x2d6   : > { %4609 = vmatprep.mubr.bf16.mxu1 %v3869_v14  ;;  %2894 = vst [vmem:[#allocation4 + $0x121] sm:$0xff] %v2807_v17  ;;  %v2776_v51 = vadd.f32 %v8586_v19, %v2737_v35  ;;  %v2677_v59 = vadd.f32 %v2676_v49, %v2516_v10  ;;  %v6317_v38 = vadd.f32 %v6316_v48, %v6315_v12 }
 0x2d7   : > { %v6318_v34 = vpop.f32.mrf.mxu1  ;;  %v6211_v49 = vadd.f32 %v8548_v0, %v8544_v55 }
 0x2d8   : > { %v8750_v60 = vmax.f32 %v2776_v51, 0.0  ;;  %v2738_v23 = vmul.f32 %v8582_v27, %v2677_v59  ;;  %v2519_v9 = vadd.f32 %v6317_v38, %v6205_v4 }
 0x2d9   : > { %v6319_v24 = vpop.f32.mrf.mxu1  ;;  %v3117_v41 = vld [vmem:[#allocation4 + $0x110] sm:$0xff] }
 0x2da   : > { %2895 = vst [vmem:[#allocation4 + $0x129] sm:$0xff] %v8750_v60  ;;  %v2777_v26 = vadd.f32 %v8586_v19, %v2738_v23  ;;  %v2680_v6 = vadd.f32 %v2679_v63, %v2519_v9  ;;  %v6320_v40 = vadd.f32 %v6319_v24, %v6318_v34  ;;  %v8755_v30 = vpack.c.bf16 %v3117_v41, %v3116_v15  ;;  %v3054_v12 = vld [vmem:[#allocation4 + $0x10a] sm:$0xff]  ;;  %v3055_v14 = vld [vmem:[#allocation4 + $0x112] sm:$0xff]  ;;  %v9373_v63 = vld [vmem:[#allocation18_spill] sm:$0xff] }
 0x2db   : > { %v6321_v28 = vpop.f32.mrf.mxu1  ;;  %v8760_v58 = vpack.c.bf16 %v8750_v60, %v2807_v17  ;;  %v2692_v17 = vpop.f32.mrf.mxu0  ;;  %v8778_v59 = vpack.c.bf16 %v3055_v14, %v3054_v12 }
 0x2dc   : > { %v2809_v20 = vmax.f32 %v2777_v26, 0.0  ;;  %v2739_v5 = vmul.f32 %v8582_v27, %v2680_v6  ;;  %v2524_v47 = vadd.f32 %v6320_v40, %v8540_v29  ;;  %4762 = vmatprep.mubr.bf16.mxu0 %v8755_v30 }
 0x2dd   : > { %4610 = vmatmul.mubr.bf16.gmra.mxu1 %v8755_v30  ;;  %v6322_v21 = vpop.f32.mrf.mxu1  ;;  %4763 = vmatmul.mubr.bf16.gmra.mxu0 %v8757_v53  ;;  %v3118_v10 = vld [vmem:[#allocation4 + $0x120] sm:$0xff]  ;;  %v6887_v56 = vpop.f32.mrf.mxu0 }
 0x2de   : > { %4617 = vmatprep.mubr.bf16.mxu1 %v8760_v58  ;;  %2896 = vst [vmem:[#allocation4 + $0x139] sm:$0xff] %v2809_v20  ;;  %v2778_v32 = vadd.f32 %v8586_v19, %v2739_v5  ;;  %v2685_v43 = vadd.f32 %v8725_v44, %v2524_v47  ;;  %v6323_v29 = vadd.f32 %v6322_v21, %v6321_v28 }
 0x2df   : > { %v6324_v45 = vpop.f32.mrf.mxu1  ;;  %v2695_v47 = vpop.f32.mrf.mxu0 }
 0x2e0   : > { %v2810_v3 = vmax.f32 %v2778_v32, 0.0  ;;  %v2740_v46 = vmul.f32 %v8582_v27, %v2685_v43  ;;  %v2527_v54 = vadd.f32 %v6323_v29, %v6211_v49 }
 0x2e1   : > { %v6325_v35 = vpop.f32.mrf.mxu1  ;;  %v3119_v48 = vld [vmem:[#allocation4 + $0x128] sm:$0xff] }
 0x2e2   : > { %2897 = vst [vmem:[#allocation4 + $0x141] sm:$0xff] %v2810_v3  ;;  %v2779_v55 = vadd.f32 %v8586_v19, %v2740_v46  ;;  %v2688_v0 = vadd.f32 %v6883_v39, %v2527_v54  ;;  %v6326_v4 = vadd.f32 %v6325_v35, %v6324_v45  ;;  %v8776_v51 = vpack.c.bf16 %v3119_v48, %v3118_v10  ;;  %v9372_v39 = vld [vmem:[#allocation17_spill] sm:$0xff]  ;;  %v3057_v5 = vld [vmem:[#allocation4 + $0x12a] sm:$0xff]  ;;  %v9374_v35 = vld [vmem:[#allocation19_spill] sm:$0xff] }
 0x2e3   : > { %v6327_v44 = vpop.f32.mrf.mxu1  ;;  %v8780_v38 = vpack.c.bf16 %v2810_v3, %v2809_v20  ;;  %v6217_v24 = vadd.f32 %v9373_v63, %v9372_v39  ;;  %v3056_v20 = vld [vmem:[#allocation4 + $0x122] sm:$0xff] }
 0x2e4   : > { %v2811_v34 = vmax.f32 %v2779_v55, 0.0  ;;  %v2741_v23 = vmul.f32 %v8582_v27, %v2688_v0  ;;  %v2532_v9 = vadd.f32 %v6326_v4, %v8552_v42  ;;  %4770 = vmatprep.mubr.bf16.mxu0 %v8776_v51  ;;  %v8795_v54 = vpack.c.bf16 %v3057_v5, %v3056_v20  ;;  %v9375_v55 = vld [vmem:[#allocation20_spill] sm:$0xff]  ;;  %v9376_v0 = vld [vmem:[#allocation21_spill] sm:$0xff] }
 0x2e5   : > { %4618 = vmatmul.mubr.bf16.gmra.mxu1 %v8776_v51  ;;  %v6328_v11 = vpop.f32.mrf.mxu1  ;;  %4771 = vmatmul.mubr.bf16.gmra.mxu0 %v8778_v59  ;;  %v3120_v49 = vld [vmem:[#allocation4 + $0x138] sm:$0xff]  ;;  %v6223_v4 = vadd.f32 %v9376_v0, %v9375_v55  ;;  %v3161_v55 = vld [vmem:[#allocation4 + $0x21] sm:$0xff] }
 0x2e6   : > { %4625 = vmatprep.mubr.bf16.mxu1 %v8780_v38  ;;  %2898 = vst [vmem:[#allocation4 + $0x151] sm:$0xff] %v2811_v34  ;;  %v2780_v15 = vadd.f32 %v8586_v19, %v2741_v23  ;;  %v2693_v41 = vadd.f32 %v2692_v17, %v2532_v9  ;;  %v6329_v26 = vadd.f32 %v6328_v11, %v6327_v44 }
 0x2e7   : > { %v6330_v6 = vpop.f32.mrf.mxu1 }
 0x2e8   : > { %v2812_v42 = vmax.f32 %v2780_v15, 0.0  ;;  %v2742_v40 = vmul.f32 %v8582_v27, %v2693_v41  ;;  %v2535_v28 = vadd.f32 %v6329_v26, %v6217_v24 }
 0x2e9   : > { %v6331_v21 = vpop.f32.mrf.mxu1  ;;  %v3121_v32 = vld [vmem:[#allocation4 + $0x140] sm:$0xff] }
 0x2ea   : > { %2899 = vst [vmem:[#allocation4 + $0x159] sm:$0xff] %v2812_v42  ;;  %v2781_v43 = vadd.f32 %v8586_v19, %v2742_v40  ;;  %v2696_v29 = vadd.f32 %v2695_v47, %v2535_v28  ;;  %v6332_v45 = vadd.f32 %v6331_v21, %v6330_v6  ;;  %v8793_v3 = vpack.c.bf16 %v3121_v32, %v3120_v49  ;;  %v3058_v24 = vld [vmem:[#allocation4 + $0x13a] sm:$0xff]  ;;  %v3059_v15 = vld [vmem:[#allocation4 + $0x142] sm:$0xff] }
 0x2eb   : > { %v6333_v46 = vpop.f32.mrf.mxu1  ;;  %v8797_v12 = vpack.c.bf16 %v2812_v42, %v2811_v34  ;;  %v3224_v49 = vld [vmem:[#allocation4 + $0x1a] sm:$0xff] }
 0x2ec   : > { %v2813_v14 = vmax.f32 %v2781_v43, 0.0  ;;  %v2743_v17 = vmul.f32 %v8582_v27, %v2696_v29  ;;  %v2540_v10 = vadd.f32 %v6332_v45, %v9374_v35  ;;  %4778 = vmatprep.mubr.bf16.mxu0 %v8793_v3  ;;  %v3225_v45 = vld [vmem:[#allocation4 + $0x22] sm:$0xff] }
 0x2ed   : > { %4626 = vmatmul.mubr.bf16.gmra.mxu1 %v8793_v3  ;;  %v6334_v48 = vpop.f32.mrf.mxu1  ;;  %4779 = vmatmul.mubr.bf16.gmra.mxu0 %v8795_v54  ;;  %v3122_v41 = vld [vmem:[#allocation4 + $0x150] sm:$0xff] }
 0x2ee   : > { %4633 = vmatprep.mubr.bf16.mxu1 %v8797_v12  ;;  %2900 = vst [vmem:[#allocation4 + $0x169] sm:$0xff] %v2813_v14  ;;  %v2782_v44 = vadd.f32 %v8586_v19, %v2743_v17  ;;  %v2701_v34 = vadd.f32 %v8766_v1, %v2540_v10  ;;  %v6335_v23 = vadd.f32 %v6334_v48, %v6333_v46 }
 0x2ef   : > { %v6372_v9 = vpop.f32.mrf.mxu1  ;;  %v8815_v1 = vpack.c.bf16 %v3059_v15, %v3058_v24  ;;  %v3774_v48 = vpack.c.bf16 %v3225_v45, %v3224_v49  ;;  %v3353_v24 = vld [vmem:[#allocation4 + $0x31] sm:$0xff]  ;;  %v7180_v15 = vld [vmem:[#allocation11 + $0x230] sm:$0xff]  }
 0x2f0   : > { %v2814_v11 = vmax.f32 %v2782_v44, 0.0  ;;  %v2744_v39 = vmul.f32 %v8582_v27, %v2701_v34  ;;  %v2543_v63 = vadd.f32 %v6335_v23, %v6223_v4  ;;  %v7197_v27 = vld [vmem:[%s9345_s2] ss:$0 sm:$0xff]  ;;  %v3160_v44 = vld [vmem:[#allocation4 + $0x19] sm:$0xff]  ;;  %v3357_v45 = vld [vmem:[#allocation4 + $0x61] sm:$0xff] }
 0x2f1   : > { %v3123_v26 = vld [vmem:[#allocation4 + $0x158] sm:$0xff]  ;;  %v6373_v20 = vpop.f32.mrf.mxu1  ;;  %v7184_v49 = vld [vmem:[#allocation11 + $0x218] sm:$0xff]  }
 0x2f2   : > { %2901 = vst [vmem:[#allocation4 + $0x171] sm:$0xff] %v2814_v11  ;;  %v2783_v6 = vadd.f32 %v8586_v19, %v2744_v39  ;;  %v2704_v42 = vadd.f32 %v6887_v56, %v2543_v63  ;;  %v8811_v40 = vpack.c.bf16 %v3123_v26, %v3122_v41  ;;  %v8813_v28 = vpack.c.bf16 %v2814_v11, %v2813_v14  ;;  %v7198_v19 = vld [vmem:[#allocation10] ss:$0 sm:$0xff]  ;;  %v3060_v43 = vld [vmem:[#allocation4 + $0x152] sm:$0xff]  ;;  %v3061_v29 = vld [vmem:[#allocation4 + $0x15a] sm:$0xff] }
 0x2f3   : > { %v8817_v5 = vadd.f32 %v6373_v20, %v6372_v9  ;;  %v8830_v10 = vpack.c.bf16 %v3061_v29, %v3060_v43  ;;  %v3354_v9 = vld [vmem:[#allocation4 + $0x39] sm:$0xff]  ;;  %v3773_v39 = vpack.c.bf16 %v3161_v55, %v3160_v44  ;;  %v3289_v20 = vld [vmem:[#allocation4 + $0x30] sm:$0xff]  ;;  %v3291_v43 = vld [vmem:[#allocation4 + $0x48] sm:$0xff] }
 0x2f4   : > { %v2815_v47 = vmax.f32 %v2783_v6, 0.0  ;;  %v2745_v21 = vmul.f32 %v7197_v27, %v2704_v42  ;;  %4786 = vmatprep.mubr.bf16.mxu0 %v8811_v40  ;;  %v3776_v41 = vpack.c.bf16 %v3354_v9, %v3353_v24  ;;  %v7181_v26 = vld [vmem:[#allocation11 + $0x228] sm:$0xff]   ;;  %v3356_v42 = vld [vmem:[#allocation4 + $0x51] sm:$0xff]  ;;  %v3355_v27 = vld [vmem:[#allocation4 + $0x49] sm:$0xff] }
 0x2f5   : > { %4634 = vmatmul.mubr.bf16.gmra.mxu1 %v8811_v40  ;;  %4787 = vmatmul.mubr.bf16.gmra.mxu0 %v8815_v1  ;;  %v3124_v46 = vld [vmem:[#allocation4 + $0x168] sm:$0xff]  ;;  %v3290_v6 = vld [vmem:[#allocation4 + $0x38] sm:$0xff] }
 0x2f6   : > { %4641 = vmatprep.mubr.bf16.mxu1 %v8813_v28  ;;  %2902 = vst [vmem:[#allocation4 + $0x181] sm:$0xff] %v2815_v47  ;;  %v2784_v56 = vadd.f32 %v7198_v19, %v2745_v21  ;;  %v7182_v21 = vld [vmem:[#allocation13 + $0x10] sm:$0xff]   ;;  %v3785_v19 = vpack.c.bf16 %v3356_v42, %v3355_v27  ;;  %v3359_v44 = vld [vmem:[#allocation4 + $0x79] sm:$0xff] }
 0x2f7   : > { %v3360_v55 = vld [vmem:[#allocation4 + $0x81] sm:$0xff]  ;;  %v3362_v9 = vld [vmem:[#allocation4 + $0x99] sm:$0xff] }
 0x2f8   : > { %v2816_v32 = vmax.f32 %v2784_v56, 0.0  ;;  %v7183_v56 = vld [vmem:[#allocation11 + $0x220] sm:$0xff]  }
 0x2f9   : > { %v3125_v14 = vld [vmem:[#allocation4 + $0x170] sm:$0xff]  ;;  %v3367_v27 = vld [vmem:[#allocation4 + $0xd9] sm:$0xff] }
 0x2fa   : > { %2903 = vst [vmem:[#allocation4 + $0x189] sm:$0xff] %v2816_v32  ;;  %v8826_v17 = vpack.c.bf16 %v3125_v14, %v3124_v46  ;;  %v8828_v35 = vpack.c.bf16 %v2816_v32, %v2815_v47  ;;  %v3062_v0 = vld [vmem:[#allocation4 + $0x16a] sm:$0xff]  ;;  %v3063_v4 = vld [vmem:[#allocation4 + $0x172] sm:$0xff]  ;;  %v3775_v47 = vpack.c.bf16 %v3290_v6, %v3289_v20  ;;  %v3365_v20 = vld [vmem:[#allocation4 + $0xc1] sm:$0xff] }
 0x2fb   : > { %v8837_v63 = vpack.c.bf16 %v3063_v4, %v3062_v0  ;;  %v3358_v32 = vld [vmem:[#allocation4 + $0x69] sm:$0xff]  ;;  %v7188_v46 = vld [vmem:[#allocation13] sm:$0xff]   ;;  %v3293_v0 = vld [vmem:[#allocation4 + $0x60] sm:$0xff] }
 0x2fc   : > { %4794 = vmatprep.mubr.bf16.mxu0 %v8826_v17  ;;  %v3794_v14 = vpack.c.bf16 %v3358_v32, %v3357_v45  ;;  %v3363_v6 = vld [vmem:[#allocation4 + $0xa9] sm:$0xff]  ;;  %v3181_v32 = vld [vmem:[#allocation4 + $0x111] sm:$0xff] }
 0x2fd   : > { %4642 = vmatmul.mubr.bf16.gmra.mxu1 %v8826_v17  ;;  %4795 = vmatmul.mubr.bf16.gmra.mxu0 %v8830_v10  ;;  %v3126_v34 = vld [vmem:[#allocation4 + $0x180] sm:$0xff] }
 0x2fe   : > { %4843 = vmatprep.mubr.bf16.mxu1 %v3774_v48  ;;  %v7187_v48 = vld [vmem:[#allocation11 + $0x208] sm:$0xff]  }
 0x301   : > { %v3127_v23 = vld [vmem:[#allocation4 + $0x188] sm:$0xff] }
 0x302   : > { %v8835_v11 = vpack.c.bf16 %v3127_v23, %v3126_v34  ;;  %v3803_v34 = vpack.c.bf16 %v3360_v55, %v3359_v44  ;;  %v7189_v23 = vld [vmem:[#allocation11 + $0x200] sm:$0xff]   ;;  %v3182_v44 = vld [vmem:[#allocation4 + $0x121] sm:$0xff] }
 0x304   : > { %4802 = vmatprep.mubr.bf16.mxu0 %v8835_v11 }
 0x305   : > { %4844 = vmatmul.mubr.bf16.vlgmr.msra.gmra.mxu1 %v3773_v39  ;;  %4803 = vmatmul.mubr.bf16.gmra.mxu0 %v8837_v63  ;;  %v3295_v39 = vld [vmem:[#allocation4 + $0x78] sm:$0xff] }
 0x306   : > { %4851 = vmatprep.mubr.bf16.mxu1 %v8628_v61  ;;  %5004 = vmatprep.mubr.bf16.mxu0 %v3776_v41  ;;  %v3292_v61 = vld [vmem:[#allocation4 + $0x50] sm:$0xff] }
 0x307   : > { %6889 = vmatpush3.bf16.msra.mxu1 %v8604_v50  ;;  %v7185_v50 = vld [vmem:[#allocation13 + $0x8] sm:$0xff]   ;;  %v3784_v29 = vpack.c.bf16 %v3292_v61, %v3291_v43 }
 0x308   : > { %6890 = vmatprep.subr.bf16.mxu1 %v7180_v15 }
 0x30b   : > { %6891 = vmatpush3.bf16.msra.mxu1 %v7180_v15  ;;  %v3361_v15 = vld [vmem:[#allocation4 + $0x91] sm:$0xff] }
 0x30c   : > { %6892 = vmatprep.subr.bf16.mxu1 %v7181_v26 }
 0x30d   : > { %4852 = vmatmul.mubr.bf16.gmra.mxu1 %v3776_v41  ;;  %5005 = vmatmul.mubr.bf16.vlgmr.msra.gmra.mxu0 %v3775_v47  ;;  %v3812_v41 = vpack.c.bf16 %v3362_v9, %v3361_v15 }
 0x30e   : > { %4859 = vmatprep.mubr.bf16.mxu1 %v8642_v62  ;;  %6937 = vmatpush3.bf16.msra.mxu0 %v8650_v2  ;;  %v7186_v62 = vld [vmem:[#allocation11 + $0x210] sm:$0xff]  }
 0x30f   : > { %5012 = vmatprep.mubr.bf16.mxu0 %v3785_v19  ;;  %6893 = vmatpush3.bf16.msra.mxu1 %v7181_v26  ;;  %v3294_v2 = vld [vmem:[#allocation4 + $0x68] sm:$0xff]  ;;  %v3364_v26 = vld [vmem:[#allocation4 + $0xb1] sm:$0xff] }
 0x310   : > { %6938 = vmatprep.subr.bf16.mxu0 %v7182_v21  ;;  %6894 = vmatprep.subr.bf16.mxu1 %v7183_v56  ;;  %v3793_v4 = vpack.c.bf16 %v3294_v2, %v3293_v0  ;;  %v3821_v42 = vpack.c.bf16 %v3364_v26, %v3363_v6 }
 0x312   : > { %6939 = vmatpush3.bf16.msra.mxu0 %v7182_v21 }
 0x313   : > { %6895 = vmatpush3.bf16.msra.mxu1 %v7183_v56  ;;  %6940 = vmatprep.subr.bf16.mxu0 %v7185_v50  ;;  %v3371_v56 = vld [vmem:[#allocation4 + $0x109] sm:$0xff] }
 0x314   : > { %6896 = vmatprep.subr.bf16.mxu1 %v7184_v49 }
 0x315   : > { %4860 = vmatmul.mubr.bf16.gmra.mxu1 %v3785_v19  ;;  %5013 = vmatmul.mubr.bf16.gmra.mxu0 %v3784_v29  ;;  %v6375_v19 = vpop.f32.mrf.mxu1 }
 0x316   : > { %4867 = vmatprep.mubr.bf16.mxu1 %v8654_v52  ;;  %5020 = vmatprep.mubr.bf16.mxu0 %v3794_v14  ;;  %v3296_v52 = vld [vmem:[#allocation4 + $0x80] sm:$0xff] }
 0x317   : > { %6941 = vmatpush3.bf16.msra.mxu0 %v7185_v50  ;;  %6897 = vmatpush3.bf16.msra.mxu1 %v7184_v49  ;;  %v3802_v24 = vpack.c.bf16 %v3296_v52, %v3295_v39 }
 0x318   : > { %6942 = vmatprep.subr.bf16.mxu0 %v7188_v46  ;;  %6898 = vmatprep.subr.bf16.mxu1 %v7186_v62 }
 0x31b   : > { %6943 = vmatpush3.bf16.msra.mxu0 %v7188_v46  ;;  %6899 = vmatpush3.bf16.msra.mxu1 %v7186_v62 }
 0x31c   : > { %6900 = vmatprep.subr.bf16.mxu1 %v7187_v48 }
 0x31d   : > { %4868 = vmatmul.mubr.bf16.gmra.mxu1 %v3794_v14  ;;  %5021 = vmatmul.mubr.bf16.gmra.mxu0 %v3793_v4  ;;  %v3863_v14 = vpack.c.bf16 %v3181_v32, %v3371_v56 }
 0x31e   : > { %4875 = vmatprep.mubr.bf16.mxu1 %v8670_v13  ;;  %5028 = vmatprep.mubr.bf16.mxu0 %v3803_v34  ;;  %v3366_v13 = vld [vmem:[#allocation4 + $0xc9] sm:$0xff] }
 0x31f   : > { %6901 = vmatpush3.bf16.msra.mxu1 %v7187_v48  ;;  %v3830_v47 = vpack.c.bf16 %v3366_v13, %v3365_v20 }
 0x320   : > { %6902 = vmatprep.subr.bf16.mxu1 %v7189_v23 }
 0x323   : > { %6903 = vmatpush3.bf16.msra.mxu1 %v7189_v23 }
 0x325   : > { %4876 = vmatmul.mubr.bf16.gmra.mxu1 %v3803_v34  ;;  %5029 = vmatmul.mubr.bf16.gmra.mxu0 %v3802_v24  ;;  %v3872_v24 = vpack.c.bf16 %v8750_v60, %v3182_v44 }
 0x326   : > { %4883 = vmatprep.mubr.bf16.mxu1 %v8684_v25  ;;  %5036 = vmatprep.mubr.bf16.mxu0 %v3812_v41  ;;  %v3368_v25 = vld [vmem:[#allocation4 + $0xe1] sm:$0xff] }
 0x327   : > { %v3839_v21 = vpack.c.bf16 %v3368_v25, %v3367_v27 }
 0x32d   : > { %4884 = vmatmul.mubr.bf16.gmra.mxu1 %v3812_v41  ;;  %5037 = vmatmul.mubr.bf16.gmra.mxu0 %v8668_v37  ;;  %v3369_v37 = vld [vmem:[#allocation4 + $0xf1] sm:$0xff] }
 0x32e   : > { %4891 = vmatprep.mubr.bf16.mxu1 %v8701_v33  ;;  %5044 = vmatprep.mubr.bf16.mxu0 %v3821_v42  ;;  %v3848_v33 = vpack.c.bf16 %v8711_v18, %v3369_v37 }
 0x335   : > { %4892 = vmatmul.mubr.bf16.gmra.mxu1 %v3821_v42  ;;  %5045 = vmatmul.mubr.bf16.gmra.mxu0 %v8682_v31  ;;  %v3179_v31 = vld [vmem:[#allocation4 + $0xf9] sm:$0xff] }
 0x336   : > { %4899 = vmatprep.mubr.bf16.mxu1 %v8718_v16  ;;  %5052 = vmatprep.mubr.bf16.mxu0 %v3830_v47  ;;  %v6376_v16 = vpop.f32.mrf.mxu1  ;;  %v3854_v50 = vpack.c.bf16 %v3179_v31, %v3369_v37 }
 0x337   : > { %v6377_v2 = vadd.f32 %v6376_v16, %v6375_v19 }
 0x33d   : > { %4900 = vmatmul.mubr.bf16.gmra.mxu1 %v3830_v47  ;;  %5053 = vmatmul.mubr.bf16.gmra.mxu0 %v8699_v7  ;;  %v3857_v7 = vpack.c.bf16 %v8732_v36, %v3371_v56 }
 0x33e   : > { %4907 = vmatprep.mubr.bf16.mxu1 %v8739_v22  ;;  %5060 = vmatprep.mubr.bf16.mxu0 %v3839_v21 }
 0x345   : > { %4908 = vmatmul.mubr.bf16.gmra.mxu1 %v3839_v21  ;;  %5061 = vmatmul.mubr.bf16.gmra.mxu0 %v8716_v8 }
 0x346   : > { %4915 = vmatprep.mubr.bf16.mxu1 %v8757_v53  ;;  %5068 = vmatprep.mubr.bf16.mxu0 %v3848_v33 }
 0x34c   : > { %v6378_v61 = vpop.f32.mrf.mxu1 }
 0x34d   : > { %4916 = vmatmul.mubr.bf16.gmra.mxu1 %v3854_v50  ;;  %v6484_v22 = vpop.f32.mrf.mxu0  ;;  %5069 = vmatmul.mubr.bf16.gmra.mxu0 %v8737_v57 }
 0x34e   : > { %4923 = vmatprep.mubr.bf16.mxu1 %v8778_v59  ;;  %5076 = vmatprep.mubr.bf16.mxu0 %v3857_v7  ;;  %v6379_v18 = vpop.f32.mrf.mxu1 }
 0x34f   : > { %v6380_v49 = vadd.f32 %v6379_v18, %v6378_v61  ;;  %v6485_v8 = vpop.f32.mrf.mxu0 }
 0x350   : > { %v6486_v53 = vadd.f32 %v6485_v8, %v6484_v22  ;;  %v6381_v43 = vpop.f32.mrf.mxu1 }
 0x351   : > { %v6487_v29 = vpop.f32.mrf.mxu0 }
 0x352   : > { %v8861_v45 = vadd.f32 %v6486_v53, %v8817_v5  ;;  %v6382_v46 = vpop.f32.mrf.mxu1 }
 0x353   : > { %v6383_v62 = vadd.f32 %v6382_v46, %v6381_v43  ;;  %v6488_v36 = vpop.f32.mrf.mxu0 }
 0x354   : > { %v6489_v48 = vadd.f32 %v6488_v36, %v6487_v29  ;;  %v3255_v36 = vld [vmem:[#allocation4 + $0x18a] sm:$0xff] }
 0x355   : > { %v6384_v57 = vpop.f32.mrf.mxu1  ;;  %4924 = vmatmul.mubr.bf16.gmra.mxu1 %v3863_v14  ;;  %v6490_v59 = vpop.f32.mrf.mxu0  ;;  %5077 = vmatmul.mubr.bf16.gmra.mxu0 %v8755_v30 }
 0x356   : > { %4931 = vmatprep.mubr.bf16.mxu1 %v8795_v54  ;;  %v8865_v55 = vadd.f32 %v6489_v48, %v6377_v2  ;;  %5084 = vmatprep.mubr.bf16.mxu0 %v8760_v58 }
 0x357   : > { %v6385_v0 = vpop.f32.mrf.mxu1  ;;  %v6491_v4 = vpop.f32.mrf.mxu0 }
 0x358   : > { %v6386_v5 = vadd.f32 %v6385_v0, %v6384_v57  ;;  %v6492_v34 = vadd.f32 %v6491_v4, %v6490_v59 }
 0x359   : > { %v6387_v23 = vpop.f32.mrf.mxu1  ;;  %v6493_v52 = vpop.f32.mrf.mxu0 }
 0x35a   : > { %v8868_v9 = vadd.f32 %v6492_v34, %v6380_v49 }
 0x35b   : > { %v6388_v39 = vpop.f32.mrf.mxu1  ;;  %v6494_v30 = vpop.f32.mrf.mxu0 }
 0x35c   : > { %v6389_v15 = vadd.f32 %v6388_v39, %v6387_v23  ;;  %v6495_v41 = vadd.f32 %v6494_v30, %v6493_v52  ;;  %v3383_v52 = vld [vmem:[#allocation4 + $0x199] sm:$0xff]  ;;  %v3384_v39 = vld [vmem:[#allocation4 + $0x1a1] sm:$0xff] }
 0x35d   : > { %v6390_v54 = vpop.f32.mrf.mxu1  ;;  %4932 = vmatmul.mubr.bf16.gmra.mxu1 %v3872_v24  ;;  %v6496_v26 = vpop.f32.mrf.mxu0  ;;  %5085 = vmatmul.mubr.bf16.gmra.mxu0 %v8776_v51  ;;  %v3417_v30 = vld [vmem:[#allocation4 + $0x32] sm:$0xff] }
 0x35e   : > { %4939 = vmatprep.mubr.bf16.mxu1 %v8815_v1  ;;  %v8873_v58 = vadd.f32 %v6495_v41, %v6383_v62  ;;  %5092 = vmatprep.mubr.bf16.mxu0 %v8780_v38  ;;  %v3254_v62 = vld [vmem:[#allocation4 + $0x182] sm:$0xff]  ;;  %v3418_v41 = vld [vmem:[#allocation4 + $0x3a] sm:$0xff] }
 0x35f   : > { %v6391_v6 = vpop.f32.mrf.mxu1  ;;  %v6497_v13 = vpop.f32.mrf.mxu0 }
 0x360   : > { %v6392_v42 = vadd.f32 %v6391_v6, %v6390_v54  ;;  %v6498_v20 = vadd.f32 %v6497_v13, %v6496_v26  ;;  %v3777_v13 = vpack.c.bf16 %v3418_v41, %v3417_v30 }
 0x361   : > { %v6393_v47 = vpop.f32.mrf.mxu1  ;;  %v6499_v60 = vpop.f32.mrf.mxu0 }
 0x362   : > { %v8876_v25 = vadd.f32 %v6498_v20, %v6386_v5 }
 0x363   : > { %v6394_v27 = vpop.f32.mrf.mxu1  ;;  %v6500_v37 = vpop.f32.mrf.mxu0 }
 0x364   : > { %v6395_v21 = vadd.f32 %v6394_v27, %v6393_v47  ;;  %v6501_v33 = vadd.f32 %v6500_v37, %v6499_v60  ;;  %v3419_v37 = vld [vmem:[#allocation4 + $0x4a] sm:$0xff] }
 0x365   : > { %v6396_v19 = vpop.f32.mrf.mxu1  ;;  %4940 = vmatmul.mubr.bf16.gmra.mxu1 %v8780_v38  ;;  %v6502_v51 = vpop.f32.mrf.mxu0  ;;  %5093 = vmatmul.mubr.bf16.gmra.mxu0 %v8793_v3 }
 0x366   : > { %4947 = vmatprep.mubr.bf16.mxu1 %v8830_v10  ;;  %v8881_v1 = vadd.f32 %v6501_v33, %v6389_v15  ;;  %5100 = vmatprep.mubr.bf16.mxu0 %v8797_v12 }
 0x367   : > { %v6397_v31 = vpop.f32.mrf.mxu1  ;;  %v6503_v56 = vpop.f32.mrf.mxu0 }
 0x368   : > { %v6398_v16 = vadd.f32 %v6397_v31, %v6396_v19  ;;  %v6504_v50 = vadd.f32 %v6503_v56, %v6502_v51  ;;  %v3420_v51 = vld [vmem:[#allocation4 + $0x52] sm:$0xff] }
 0x369   : > { %v6399_v61 = vpop.f32.mrf.mxu1  ;;  %v6505_v7 = vpop.f32.mrf.mxu0  ;;  %v5372_v31 = vld [vmem:[%s7578_s21] sm:$0xff] }
 0x36a   : > { %v8884_v22 = vadd.f32 %v6504_v50, %v6392_v42 }
 0x36b   : > { %v6400_v18 = vpop.f32.mrf.mxu1  ;;  %v6506_v38 = vpop.f32.mrf.mxu0 }
 0x36c   : > { %v6401_v49 = vadd.f32 %v6400_v18, %v6399_v61  ;;  %v6507_v8 = vadd.f32 %v6506_v38, %v6505_v7  ;;  %v3421_v61 = vld [vmem:[#allocation4 + $0x62] sm:$0xff]  ;;  %v3422_v7 = vld [vmem:[#allocation4 + $0x6a] sm:$0xff] }
 0x36d   : > { %v6402_v32 = vpop.f32.mrf.mxu1  ;;  %4948 = vmatmul.mubr.bf16.gmra.mxu1 %v8797_v12  ;;  %v6508_v3 = vpop.f32.mrf.mxu0  ;;  %5101 = vmatmul.mubr.bf16.gmra.mxu0 %v8811_v40  ;;  %v8894_v40 = vpack.c.bf16 %v3255_v36, %v3254_v62 }
 0x36e   : > { %4955 = vmatprep.mubr.bf16.mxu1 %v8837_v63  ;;  %v8889_v10 = vadd.f32 %v6507_v8, %v6395_v21  ;;  %5108 = vmatprep.mubr.bf16.mxu0 %v8813_v28  ;;  %v3786_v8 = vpack.c.bf16 %v3420_v51, %v3419_v37  ;;  %v3427_v37 = vld [vmem:[#allocation4 + $0xaa] sm:$0xff] }
 0x36f   : > { %v6403_v53 = vpop.f32.mrf.mxu1  ;;  %v6509_v29 = vpop.f32.mrf.mxu0 }
 0x370   : > { %v6404_v43 = vadd.f32 %v6403_v53, %v6402_v32  ;;  %v6510_v46 = vadd.f32 %v6509_v29, %v6508_v3 }
 0x371   : > { %v6405_v14 = vpop.f32.mrf.mxu1  ;;  %v6511_v2 = vpop.f32.mrf.mxu0 }
 0x372   : > { %v8892_v48 = vadd.f32 %v6510_v46, %v6398_v16  ;;  %v5373_v16 = vld [vmem:[%s7578_s21 + $0x8] sm:$0xff] }
 0x373   : > { %v6406_v12 = vpop.f32.mrf.mxu1  ;;  %v6512_v59 = vpop.f32.mrf.mxu0  ;;  %v5404_v32 = vpack.c.bf16 %v5373_v16, %v5372_v31  ;;  %v3428_v16 = vld [vmem:[#allocation4 + $0xb2] sm:$0xff] }
 0x374   : > { %v6407_v57 = vadd.f32 %v6406_v12, %v6405_v14  ;;  %v6513_v63 = vadd.f32 %v6512_v59, %v6511_v2  ;;  %v3423_v2 = vld [vmem:[#allocation4 + $0x7a] sm:$0xff] }
 0x375   : > { %v6408_v0 = vpop.f32.mrf.mxu1  ;;  %4956 = vmatmul.mubr.bf16.gmra.mxu1 %v8813_v28  ;;  %v6514_v5 = vpop.f32.mrf.mxu0  ;;  %5109 = vmatmul.mubr.bf16.gmra.mxu0 %v8826_v17  ;;  %v3911_v17 = vpack.c.bf16 %v3384_v39, %v3383_v52  ;;  %v5374_v12 = vld [vmem:[%s7578_s21 + $0x10] sm:$0xff]  ;;  %v3425_v52 = vld [vmem:[#allocation4 + $0x92] sm:$0xff] }
 0x376   : > { %4963 = vmatprep.mubr.bf16.mxu1 %v8894_v40  ;;  %v8899_v4 = vadd.f32 %v6513_v63, %v6401_v49  ;;  %5116 = vmatprep.mubr.bf16.mxu0 %v8828_v35  ;;  %v3426_v39 = vld [vmem:[#allocation4 + $0x9a] sm:$0xff] }
 0x377   : > { %v6409_v44 = vpop.f32.mrf.mxu1  ;;  %v6515_v23 = vpop.f32.mrf.mxu0 }
 0x378   : > { %v6410_v34 = vadd.f32 %v6409_v44, %v6408_v0  ;;  %v6516_v24 = vadd.f32 %v6515_v23, %v6514_v5  ;;  %v3424_v0 = vld [vmem:[#allocation4 + $0x82] sm:$0xff]  ;;  %v5376_v5 = vld [vmem:[%s7578_s21 + $0x20] sm:$0xff]  ;;  %v5377_v44 = vld [vmem:[%s7578_s21 + $0x28] sm:$0xff] }
 0x379   : > { %v6411_v15 = vpop.f32.mrf.mxu1  ;;  %v6517_v54 = vpop.f32.mrf.mxu0 }
 0x37a   : > { %v8902_v28 = vadd.f32 %v6516_v24, %v6404_v43  ;;  %v3795_v43 = vpack.c.bf16 %v3422_v7, %v3421_v61 }
 0x37b   : > { %v6412_v26 = vpop.f32.mrf.mxu1  ;;  %v6518_v42 = vpop.f32.mrf.mxu0 }
 0x37c   : > { %v6413_v6 = vadd.f32 %v6412_v26, %v6411_v15  ;;  %v6519_v20 = vadd.f32 %v6518_v42, %v6517_v54  ;;  %v3804_v54 = vpack.c.bf16 %v3424_v0, %v3423_v2  ;;  %v5406_v26 = vpack.c.bf16 %v5377_v44, %v5376_v5  ;;  %v5383_v0 = vld [vmem:[%s7578_s21 + $0x58] sm:$0xff] }
 0x37d   : > { %v6414_v47 = vpop.f32.mrf.mxu1  ;;  %4964 = vmatmul.mubr.bf16.gmra.mxu1 %v8828_v35  ;;  %v6520_v60 = vpop.f32.mrf.mxu0  ;;  %5117 = vmatmul.mubr.bf16.gmra.mxu0 %v8835_v11  ;;  %v7199_v35 = vld [vmem:[#allocation4] sm:$0xff]  ;;  %v3813_v42 = vpack.c.bf16 %v3426_v39, %v3425_v52  ;;  %v5385_v52 = vld [vmem:[%s7578_s21 + $0x68] sm:$0xff] }
 0x37e   : > { %6904 = vmatprep.mubr.bf16.mxu1 %v3777_v13  ;;  %v8906_v27 = vadd.f32 %v6519_v20, %v6407_v57  ;;  %5124 = vmatprep.mubr.bf16.mxu0 %v3911_v17  ;;  %v3910_v49 = vpack.c.bf16 %v7199_v35, %v7199_v35  ;;  %v5375_v57 = vld [vmem:[%s7578_s21 + $0x18] sm:$0xff] }
 0x37f   : > { %v6415_v21 = vpop.f32.mrf.mxu1  ;;  %v6521_v19 = vpop.f32.mrf.mxu0  ;;  %v5405_v15 = vpack.c.bf16 %v5375_v57, %v5374_v12  ;;  %v3430_v35 = vld [vmem:[#allocation4 + $0xca] sm:$0xff] }
 0x380   : > { %v6416_v33 = vadd.f32 %v6415_v21, %v6414_v47  ;;  %v6522_v56 = vadd.f32 %v6521_v19, %v6520_v60  ;;  %v5379_v19 = vld [vmem:[%s7578_s21 + $0x38] sm:$0xff] }
 0x381   : > { %v6417_v50 = vpop.f32.mrf.mxu1  ;;  %v6523_v18 = vpop.f32.mrf.mxu0 }
 0x382   : > { %v8910_v38 = vadd.f32 %v6522_v56, %v6410_v34  ;;  %v5380_v56 = vld [vmem:[%s7578_s21 + $0x40] sm:$0xff] }
 0x383   : > { %v6418_v11 = vpop.f32.mrf.mxu1  ;;  %v6524_v53 = vpop.f32.mrf.mxu0 }
 0x384   : > { %v6419_v3 = vadd.f32 %v6418_v11, %v6417_v50  ;;  %v6525_v29 = vadd.f32 %v6524_v53, %v6523_v18  ;;  %v5381_v50 = vld [vmem:[%s7578_s21 + $0x48] sm:$0xff]  ;;  %v3429_v18 = vld [vmem:[#allocation4 + $0xc2] sm:$0xff] }
 0x385   : > { %v6420_v46 = vpop.f32.mrf.mxu1  ;;  %6905 = vmatmul.mubr.bf16.vlgmr.msra.gmra.mxu1 %v3786_v8  ;;  %v6526_v14 = vpop.f32.mrf.mxu0  ;;  %5125 = vmatmul.mubr.bf16.gmra.mxu0 %v3910_v49  ;;  %v5408_v53 = vpack.c.bf16 %v5381_v50, %v5380_v56  ;;  %v5386_v56 = vld [vmem:[%s7578_s21 + $0x70] sm:$0xff]  ;;  %v5387_v50 = vld [vmem:[%s7578_s21 + $0x78] sm:$0xff] }
 0x386   : > { %6908 = vmatprep.mubr.bf16.mxu1 %v3795_v43  ;;  %v8912_v62 = vadd.f32 %v6525_v29, %v6413_v6  ;;  %6944 = vmatprep.mubr.msk.bf16.mxu0 %vm437_vm0, %v5404_v32 }
 0x387   : > { %v6421_v36 = vpop.f32.mrf.mxu1  ;;  %v6527_v63 = vpop.f32.mrf.mxu0 }
 0x388   : > { %v6422_v59 = vadd.f32 %v6421_v36, %v6420_v46  ;;  %v6528_v34 = vadd.f32 %v6527_v63, %v6526_v14  ;;  %v3831_v46 = vpack.c.bf16 %v3430_v35, %v3429_v18  ;;  %v5382_v63 = vld [vmem:[%s7578_s21 + $0x50] sm:$0xff]  ;;  %v3436_v18 = vld [vmem:[#allocation4 + $0x112] sm:$0xff] }
 0x389   : > { %v6423_v23 = vpop.f32.mrf.mxu1  ;;  %v6529_v24 = vpop.f32.mrf.mxu0  ;;  %v5388_v35 = vld [vmem:[%s7578_s21 + $0x80] sm:$0xff] }
 0x38a   : > { %v8919_v30 = vadd.f32 %v6528_v34, %v6416_v33  ;;  %v5378_v33 = vld [vmem:[%s7578_s21 + $0x30] sm:$0xff] }
 0x38b   : > { %v6424_v41 = vpop.f32.mrf.mxu1  ;;  %v6530_v6 = vpop.f32.mrf.mxu0  ;;  %v5407_v11 = vpack.c.bf16 %v5379_v19, %v5378_v33  ;;  %v3432_v34 = vld [vmem:[#allocation4 + $0xe2] sm:$0xff] }
 0x38c   : > { %v6425_v17 = vadd.f32 %v6424_v41, %v6423_v23  ;;  %v6531_v13 = vadd.f32 %v6530_v6, %v6529_v24  ;;  %v5384_v23 = vld [vmem:[%s7578_s21 + $0x60] sm:$0xff]  ;;  %v3434_v41 = vld [vmem:[#allocation4 + $0xfa] sm:$0xff] }
 0x38d   : > { %v6426_v20 = vpop.f32.mrf.mxu1  ;;  %6909 = vmatmul.mubr.bf16.gmra.mxu1 %v3804_v54  ;;  %v6532_v47 = vpop.f32.mrf.mxu0  ;;  %6945 = vmatmul.mubr.msk.bf16.vlgmr.msra.gmra.mxu0 %vm437_vm0, %v5405_v15  ;;  %v3433_v15 = vld [vmem:[#allocation4 + $0xf2] sm:$0xff] }
 0x38e   : > { %6912 = vmatprep.mubr.bf16.mxu1 %v3813_v42  ;;  %v8922_v60 = vadd.f32 %v6531_v13, %v6419_v3  ;;  %6948 = vmatprep.mubr.msk.bf16.mxu0 %vm437_vm0, %v5406_v26  ;;  %v3822_v3 = vpack.c.bf16 %v3428_v16, %v3427_v37  ;;  %v5409_v26 = vpack.c.bf16 %v5383_v0, %v5382_v63  ;;  %v3435_v16 = vld [vmem:[#allocation4 + $0x10a] sm:$0xff] }
 0x38f   : > { %v6427_v21 = vpop.f32.mrf.mxu1  ;;  %v6533_v31 = vpop.f32.mrf.mxu0  ;;  %v5410_v13 = vpack.c.bf16 %v5385_v52, %v5384_v23  ;;  %v3439_v52 = vld [vmem:[#allocation4 + $0x13a] sm:$0xff] }
 0x390   : > { %v6428_v51 = vadd.f32 %v6427_v21, %v6426_v20  ;;  %v6534_v61 = vadd.f32 %v6533_v31, %v6532_v47  ;;  %v3849_v21 = vpack.c.bf16 %v3434_v41, %v3433_v15 }
 0x391   : > { %v6429_v7 = vpop.f32.mrf.mxu1  ;;  %v6535_v49 = vpop.f32.mrf.mxu0 }
 0x392   : > { %v8929_v8 = vadd.f32 %v6534_v61, %v6422_v59  ;;  %v3431_v59 = vld [vmem:[#allocation4 + $0xda] sm:$0xff] }
 0x393   : > { %v6430_v32 = vpop.f32.mrf.mxu1  ;;  %v6536_v29 = vpop.f32.mrf.mxu0  ;;  %v3840_v42 = vpack.c.bf16 %v3432_v34, %v3431_v59 }
 0x394   : > { %v6431_v43 = vadd.f32 %v6430_v32, %v6429_v7  ;;  %v6537_v14 = vadd.f32 %v6536_v29, %v6535_v49  ;;  %v5389_v49 = vld [vmem:[%s7578_s21 + $0x88] sm:$0xff] }
 0x395   : > { %v6432_v36 = vpop.f32.mrf.mxu1  ;;  %6913 = vmatmul.mubr.bf16.gmra.mxu1 %v3822_v3  ;;  %v6538_v2 = vpop.f32.mrf.mxu0  ;;  %6949 = vmatmul.mubr.msk.bf16.gmra.mxu0 %vm437_vm0, %v5407_v11  ;;  %v3437_v3 = vld [vmem:[#allocation4 + $0x122] sm:$0xff] }
 0x396   : > { %6916 = vmatprep.mubr.bf16.mxu1 %v3831_v46  ;;  %v8932_v12 = vadd.f32 %v6537_v14, %v6425_v17  ;;  %6952 = vmatprep.mubr.msk.bf16.mxu0 %vm437_vm0, %v5408_v53  ;;  %v3438_v53 = vld [vmem:[#allocation4 + $0x12a] sm:$0xff]  ;;  %v5411_v46 = vpack.c.bf16 %v5387_v50, %v5386_v56 }
 0x397   : > { %v6433_v57 = vpop.f32.mrf.mxu1  ;;  %v6539_v44 = vpop.f32.mrf.mxu0  ;;  %v3867_v63 = vpack.c.bf16 %v3438_v53, %v3437_v3  ;;  %v5394_v3 = vld [vmem:[%s7578_s21 + $0xb0] sm:$0xff]  ;;  %v5395_v53 = vld [vmem:[%s7578_s21 + $0xb8] sm:$0xff] }
 0x398   : > { %v6434_v5 = vadd.f32 %v6433_v57, %v6432_v36  ;;  %v6540_v39 = vadd.f32 %v6539_v44, %v6538_v2  ;;  %v3858_v36 = vpack.c.bf16 %v3436_v18, %v3435_v16  ;;  %v5412_v2 = vpack.c.bf16 %v5389_v49, %v5388_v35 }
 0x399   : > { %v6435_v24 = vpop.f32.mrf.mxu1  ;;  %v6541_v54 = vpop.f32.mrf.mxu0 }
 0x39a   : > { %v8939_v6 = vadd.f32 %v6540_v39, %v6428_v51  ;;  %v5390_v39 = vld [vmem:[%s7578_s21 + $0x90] sm:$0xff] }
 0x39b   : > { %v6436_v17 = vpop.f32.mrf.mxu1  ;;  %v6542_v47 = vpop.f32.mrf.mxu0 }
 0x39c   : > { %v6437_v20 = vadd.f32 %v6436_v17, %v6435_v24  ;;  %v6543_v37 = vadd.f32 %v6542_v47, %v6541_v54  ;;  %v5391_v24 = vld [vmem:[%s7578_s21 + $0x98] sm:$0xff]  ;;  %v5393_v17 = vld [vmem:[%s7578_s21 + $0xa8] sm:$0xff] }
 0x39d   : > { %v6438_v33 = vpop.f32.mrf.mxu1  ;;  %6917 = vmatmul.mubr.bf16.gmra.mxu1 %v3840_v42  ;;  %v6544_v19 = vpop.f32.mrf.mxu0  ;;  %6953 = vmatmul.mubr.msk.bf16.gmra.mxu0 %vm437_vm0, %v5409_v26  ;;  %v3440_v54 = vld [vmem:[#allocation4 + $0x142] sm:$0xff]  ;;  %v5392_v26 = vld [vmem:[%s7578_s21 + $0xa0] sm:$0xff] }
 0x39e   : > { %6920 = vmatprep.mubr.bf16.mxu1 %v3849_v21  ;;  %v8942_v31 = vadd.f32 %v6543_v37, %v6431_v43  ;;  %6956 = vmatprep.mubr.msk.bf16.mxu0 %vm437_vm0, %v5410_v13  ;;  %v3441_v47 = vld [vmem:[#allocation4 + $0x152] sm:$0xff]  ;;  %v3442_v21 = vld [vmem:[#allocation4 + $0x15a] sm:$0xff]  ;;  %v5414_v16 = vpack.c.bf16 %v5393_v17, %v5392_v26 }
 0x39f   : > { %v6439_v51 = vpop.f32.mrf.mxu1  ;;  %v6545_v7 = vpop.f32.mrf.mxu0  ;;  %v3447_v17 = vld [vmem:[#allocation4 + $0x19a] sm:$0xff] }
 0x3a0   : > { %v6440_v61 = vadd.f32 %v6439_v51, %v6438_v33  ;;  %v6546_v11 = vadd.f32 %v6545_v7, %v6544_v19  ;;  %v5413_v33 = vpack.c.bf16 %v5391_v24, %v5390_v39  ;;  %v3876_v51 = vpack.c.bf16 %v3440_v54, %v3439_v52 }
 0x3a1   : > { %v6441_v32 = vpop.f32.mrf.mxu1  ;;  %v6547_v29 = vpop.f32.mrf.mxu0  ;;  %v3885_v7 = vpack.c.bf16 %v3442_v21, %v3441_v47  ;;  %v5398_v47 = vld [vmem:[%s7578_s21 + $0xd0] sm:$0xff]  ;;  %v5399_v21 = vld [vmem:[%s7578_s21 + $0xd8] sm:$0xff] }
 0x3a2   : > { %v8949_v14 = vadd.f32 %v6546_v11, %v6434_v5 }
 0x3a3   : > { %v6442_v43 = vpop.f32.mrf.mxu1  ;;  %v6548_v59 = vpop.f32.mrf.mxu0 }
 0x3a4   : > { %v6443_v57 = vadd.f32 %v6442_v43, %v6441_v32  ;;  %v6549_v0 = vadd.f32 %v6548_v59, %v6547_v29  ;;  %v3443_v32 = vld [vmem:[#allocation4 + $0x16a] sm:$0xff]  ;;  %v3444_v43 = vld [vmem:[#allocation4 + $0x172] sm:$0xff] }
 0x3a5   : > { %v6444_v44 = vpop.f32.mrf.mxu1  ;;  %6921 = vmatmul.mubr.bf16.gmra.mxu1 %v3858_v36  ;;  %v6550_v34 = vpop.f32.mrf.mxu0  ;;  %6957 = vmatmul.mubr.msk.bf16.gmra.mxu0 %vm437_vm0, %v5411_v46  ;;  %v5396_v36 = vld [vmem:[%s7578_s21 + $0xc0] sm:$0xff] }
 0x3a6   : > { %6924 = vmatprep.mubr.bf16.mxu1 %v3867_v63  ;;  %v8952_v23 = vadd.f32 %v6549_v0, %v6437_v20  ;;  %6960 = vmatprep.mubr.msk.bf16.mxu0 %vm437_vm0, %v5412_v2  ;;  %v5397_v2 = vld [vmem:[%s7578_s21 + $0xc8] sm:$0xff] }
 0x3a7   : > { %v6445_v5 = vpop.f32.mrf.mxu1  ;;  %v6551_v41 = vpop.f32.mrf.mxu0  ;;  %v5416_v52 = vpack.c.bf16 %v5397_v2, %v5396_v36  ;;  %v5402_v2 = vld [vmem:[%s7578_s21 + $0xf0] sm:$0xff] }
 0x3a8   : > { %v6446_v15 = vadd.f32 %v6445_v5, %v6444_v44  ;;  %v6552_v42 = vadd.f32 %v6551_v41, %v6550_v34  ;;  %v5415_v44 = vpack.c.bf16 %v5395_v53, %v5394_v3 }
 0x3a9   : > { %v6447_v13 = vpop.f32.mrf.mxu1  ;;  %v6553_v37 = vpop.f32.mrf.mxu0 }
 0x3aa   : > { %v8959_v19 = vadd.f32 %v6552_v42, %v6440_v61 }
 0x3ab   : > { %v6448_v20 = vpop.f32.mrf.mxu1  ;;  %v6554_v50 = vpop.f32.mrf.mxu0 }
 0x3ac   : > { %v6449_v56 = vadd.f32 %v6448_v20, %v6447_v13  ;;  %v6555_v18 = vadd.f32 %v6554_v50, %v6553_v37  ;;  %v5400_v20 = vld [vmem:[%s7578_s21 + $0xe0] sm:$0xff] }
 0x3ad   : > { %v6450_v35 = vpop.f32.mrf.mxu1  ;;  %6925 = vmatmul.mubr.bf16.gmra.mxu1 %v3876_v51  ;;  %v6556_v49 = vpop.f32.mrf.mxu0  ;;  %6961 = vmatmul.mubr.msk.bf16.gmra.mxu0 %vm437_vm0, %v5413_v33  ;;  %v5401_v51 = vld [vmem:[%s7578_s21 + $0xe8] sm:$0xff] }
 0x3ae   : > { %6928 = vmatprep.mubr.bf16.mxu1 %v3885_v7  ;;  %v8962_v11 = vadd.f32 %v6555_v18, %v6443_v57  ;;  %6964 = vmatprep.mubr.msk.bf16.mxu0 %vm437_vm0, %v5414_v16  ;;  %v3894_v57 = vpack.c.bf16 %v3444_v43, %v3443_v32 }
 0x3af   : > { %v6451_v61 = vpop.f32.mrf.mxu1  ;;  %v6557_v46 = vpop.f32.mrf.mxu0 }
 0x3b0   : > { %v6452_v29 = vadd.f32 %v6451_v61, %v6450_v35  ;;  %v6558_v59 = vadd.f32 %v6557_v46, %v6556_v49  ;;  %v5418_v49 = vpack.c.bf16 %v5401_v51, %v5400_v20 }
 0x3b1   : > { %v6453_v63 = vpop.f32.mrf.mxu1  ;;  %v6559_v0 = vpop.f32.mrf.mxu0 }
 0x3b2   : > { %v8969_v34 = vadd.f32 %v6558_v59, %v6446_v15  ;;  %v3448_v15 = vld [vmem:[#allocation4 + $0x1a2] sm:$0xff] }
 0x3b3   : > { %v6454_v5 = vpop.f32.mrf.mxu1  ;;  %v6560_v24 = vpop.f32.mrf.mxu0  ;;  %v3912_v7 = vpack.c.bf16 %v3448_v15, %v3447_v17  ;;  %v5403_v59 = vld [vmem:[%s7578_s21 + $0xf8] sm:$0xff] }
 0x3b4   : > { %v6455_v39 = vadd.f32 %v6454_v5, %v6453_v63  ;;  %v6561_v41 = vadd.f32 %v6560_v24, %v6559_v0 }
 0x3b5   : > { %v6456_v54 = vpop.f32.mrf.mxu1  ;;  %6929 = vmatmul.mubr.bf16.gmra.mxu1 %v3894_v57  ;;  %v6562_v26 = vpop.f32.mrf.mxu0  ;;  %6965 = vmatmul.mubr.msk.bf16.gmra.mxu0 %vm437_vm0, %v5415_v44  ;;  %v5419_v57 = vpack.c.bf16 %v5403_v59, %v5402_v2 }
 0x3b6   : > { %6932 = vmatprep.mubr.bf16.mxu1 %v8894_v40  ;;  %v8973_v42 = vadd.f32 %v6561_v41, %v6449_v56  ;;  %6968 = vmatprep.mubr.msk.bf16.mxu0 %vm437_vm0, %v5416_v52  ;;  %v5417_v40 = vpack.c.bf16 %v5399_v21, %v5398_v47 }
 0x3b7   : > { %v6457_v13 = vpop.f32.mrf.mxu1  ;;  %v6563_v33 = vpop.f32.mrf.mxu0 }
 0x3b8   : > { %v6458_v37 = vadd.f32 %v6457_v13, %v6456_v54  ;;  %v6564_v16 = vadd.f32 %v6563_v33, %v6562_v26 }
 0x3b9   : > { %v6459_v50 = vpop.f32.mrf.mxu1  ;;  %v6565_v18 = vpop.f32.mrf.mxu0 }
 0x3ba   : > { %v8980_v35 = vadd.f32 %v6564_v16, %v6452_v29 }
 0x3bb   : > { %v6460_v56 = vpop.f32.mrf.mxu1  ;;  %v6566_v32 = vpop.f32.mrf.mxu0 }
 0x3bc   : > { %v6461_v61 = vadd.f32 %v6460_v56, %v6459_v50  ;;  %v6567_v3 = vadd.f32 %v6566_v32, %v6565_v18 }
 0x3bd   : > { %v6462_v53 = vpop.f32.mrf.mxu1  ;;  %6933 = vmatmul.mubr.bf16.gmra.mxu1 %v3912_v7  ;;  %v6568_v46 = vpop.f32.mrf.mxu0  ;;  %6969 = vmatmul.mubr.msk.bf16.gmra.mxu0 %vm437_vm0, %v5417_v40 }
 0x3be   : > { %v8983_v43 = vadd.f32 %v6567_v3, %v6455_v39  ;;  %6972 = vmatprep.mubr.msk.bf16.mxu0 %vm437_vm0, %v5418_v49 }
 0x3bf   : > { %v6463_v36 = vpop.f32.mrf.mxu1  ;;  %v6569_v29 = vpop.f32.mrf.mxu0 }
 0x3c0   : > { %v6464_v63 = vadd.f32 %v6463_v36, %v6462_v53  ;;  %v6570_v0 = vadd.f32 %v6569_v29, %v6568_v46 }
 0x3c1   : > { %v6465_v44 = vpop.f32.mrf.mxu1  ;;  %v6571_v5 = vpop.f32.mrf.mxu0 }
 0x3c2   : > { %v8988_v52 = vadd.f32 %v6570_v0, %v6458_v37 }
 0x3c3   : > { %v6466_v24 = vpop.f32.mrf.mxu1  ;;  %v6572_v54 = vpop.f32.mrf.mxu0 }
 0x3c4   : > { %v6467_v41 = vadd.f32 %v6466_v24, %v6465_v44  ;;  %v6573_v26 = vadd.f32 %v6572_v54, %v6571_v5 }
 0x3c5   : > { %v6596_v17 = vpop.f32.mrf.mxu1  ;;  %v6574_v39 = vpop.f32.mrf.mxu0  ;;  %6973 = vmatmul.mubr.msk.bf16.gmra.mxu0 %vm437_vm0, %v5419_v57 }
 0x3c6   : > { %v8991_v15 = vadd.f32 %v6573_v26, %v6461_v61 }
 0x3c7   : > { %v6597_v13 = vpop.f32.mrf.mxu1  ;;  %v6575_v47 = vpop.f32.mrf.mxu0 }
 0x3c8   : > { %v6598_v21 = vadd.f32 %v6597_v13, %v6596_v17  ;;  %v6576_v33 = vadd.f32 %v6575_v47, %v6574_v39 }
 0x3c9   : > { %v6599_v20 = vpop.f32.mrf.mxu1  ;;  %v6577_v16 = vpop.f32.mrf.mxu0 }
 0x3ca   : > { %v4846_v51 = vadd.f32 %v6598_v21, %v8861_v45  ;;  %v8994_v37 = vadd.f32 %v6576_v33, %v6464_v63 }
 0x3cb   : > { %v6600_v50 = vpop.f32.mrf.mxu1  ;;  %v6578_v7 = vpop.f32.mrf.mxu0 }
 0x3cc   : > { %v6601_v18 = vadd.f32 %v6600_v50, %v6599_v20  ;;  %v6579_v40 = vadd.f32 %v6578_v7, %v6577_v16 }
 0x3cd   : > { %v6602_v56 = vpop.f32.mrf.mxu1  ;;  %v6708_v32 = vpop.f32.mrf.mxu0 }
 0x3ce   : > { %v4849_v49 = vadd.f32 %v6601_v18, %v8865_v55  ;;  %v8997_v61 = vadd.f32 %v6579_v40, %v6467_v41 }
 0x3cf   : > { %v6603_v3 = vpop.f32.mrf.mxu1  ;;  %v6709_v46 = vpop.f32.mrf.mxu0 }
 0x3d0   : > { %v6604_v53 = vadd.f32 %v6603_v3, %v6602_v56  ;;  %v6710_v36 = vadd.f32 %v6709_v46, %v6708_v32 }
 0x3d1   : > { %v6605_v2 = vpop.f32.mrf.mxu1  ;;  %v6711_v59 = vpop.f32.mrf.mxu0 }
 0x3d2   : > { %v4854_v45 = vadd.f32 %v6604_v53, %v8868_v9  ;;  %v9000_v29 = vadd.f32 %v6710_v36, %v4846_v51 }
 0x3d3   : > { %v6606_v63 = vpop.f32.mrf.mxu1  ;;  %v6712_v44 = vpop.f32.mrf.mxu0 }
 0x3d4   : > { %v6607_v0 = vadd.f32 %v6606_v63, %v6605_v2  ;;  %v6713_v5 = vadd.f32 %v6712_v44, %v6711_v59 }
 0x3d5   : > { %v6608_v57 = vpop.f32.mrf.mxu1  ;;  %v6714_v24 = vpop.f32.mrf.mxu0 }
 0x3d6   : > { %v4857_v55 = vadd.f32 %v6607_v0, %v8873_v58  ;;  %v9003_v54 = vadd.f32 %v6713_v5, %v4849_v49 }
 0x3d7   : > { %v6609_v41 = vpop.f32.mrf.mxu1  ;;  %v6715_v17 = vpop.f32.mrf.mxu0 }
 0x3d8   : > { %v6610_v26 = vadd.f32 %v6609_v41, %v6608_v57  ;;  %v6716_v39 = vadd.f32 %v6715_v17, %v6714_v24 }
 0x3d9   : > { %v6611_v13 = vpop.f32.mrf.mxu1  ;;  %v6717_v47 = vpop.f32.mrf.mxu0 }
 0x3da   : > { %v4862_v9 = vadd.f32 %v6610_v26, %v8876_v25  ;;  %v9006_v33 = vadd.f32 %v6716_v39, %v4854_v45 }
 0x3db   : > { %v6612_v21 = vpop.f32.mrf.mxu1  ;;  %v6718_v51 = vpop.f32.mrf.mxu0 }
 0x3dc   : > { %v6613_v20 = vadd.f32 %v6612_v21, %v6611_v13  ;;  %v6719_v16 = vadd.f32 %v6718_v51, %v6717_v47 }
 0x3dd   : > { %v6614_v50 = vpop.f32.mrf.mxu1  ;;  %v6720_v7 = vpop.f32.mrf.mxu0 }
 0x3de   : > { %v4865_v58 = vadd.f32 %v6613_v20, %v8881_v1  ;;  %v9009_v40 = vadd.f32 %v6719_v16, %v4857_v55 }
 0x3df   : > { %v6615_v18 = vpop.f32.mrf.mxu1  ;;  %v6721_v49 = vpop.f32.mrf.mxu0 }
 0x3e0   : > { %v6616_v56 = vadd.f32 %v6615_v18, %v6614_v50  ;;  %v6722_v32 = vadd.f32 %v6721_v49, %v6720_v7 }
 0x3e1   : > { %v6617_v3 = vpop.f32.mrf.mxu1  ;;  %v6723_v53 = vpop.f32.mrf.mxu0 }
 0x3e2   : > { %v4870_v25 = vadd.f32 %v6616_v56, %v8884_v22  ;;  %v9012_v36 = vadd.f32 %v6722_v32, %v4862_v9 }
 0x3e3   : > { %v6618_v46 = vpop.f32.mrf.mxu1  ;;  %v6724_v45 = vpop.f32.mrf.mxu0 }
 0x3e4   : > { %v6619_v2 = vadd.f32 %v6618_v46, %v6617_v3  ;;  %v6725_v59 = vadd.f32 %v6724_v45, %v6723_v53 }
 0x3e5   : > { %v6620_v63 = vpop.f32.mrf.mxu1  ;;  %v6726_v0 = vpop.f32.mrf.mxu0 }
 0x3e6   : > { %v4873_v1 = vadd.f32 %v6619_v2, %v8889_v10  ;;  %v9015_v5 = vadd.f32 %v6725_v59, %v4865_v58 }
 0x3e7   : > { %v6621_v44 = vpop.f32.mrf.mxu1  ;;  %v6727_v55 = vpop.f32.mrf.mxu0 }
 0x3e8   : > { %v6622_v57 = vadd.f32 %v6621_v44, %v6620_v63  ;;  %v6728_v24 = vadd.f32 %v6727_v55, %v6726_v0 }
 0x3e9   : > { %v6623_v41 = vpop.f32.mrf.mxu1  ;;  %v6729_v26 = vpop.f32.mrf.mxu0 }
 0x3ea   : > { %v4878_v22 = vadd.f32 %v6622_v57, %v8892_v48  ;;  %v9018_v39 = vadd.f32 %v6728_v24, %v4870_v25 }
 0x3eb   : > { %v6624_v17 = vpop.f32.mrf.mxu1  ;;  %v6730_v9 = vpop.f32.mrf.mxu0 }
 0x3ec   : > { %v6625_v13 = vadd.f32 %v6624_v17, %v6623_v41  ;;  %v6731_v47 = vadd.f32 %v6730_v9, %v6729_v26 }
 0x3ed   : > { %v6626_v21 = vpop.f32.mrf.mxu1  ;;  %v6732_v20 = vpop.f32.mrf.mxu0 }
 0x3ee   : > { %v4881_v10 = vadd.f32 %v6625_v13, %v8899_v4  ;;  %v9021_v16 = vadd.f32 %v6731_v47, %v4873_v1 }
 0x3ef   : > { %v6627_v51 = vpop.f32.mrf.mxu1  ;;  %v6733_v58 = vpop.f32.mrf.mxu0 }
 0x3f0   : > { %v6628_v50 = vadd.f32 %v6627_v51, %v6626_v21  ;;  %v6734_v7 = vadd.f32 %v6733_v58, %v6732_v20 }
 0x3f1   : > { %v6629_v18 = vpop.f32.mrf.mxu1  ;;  %v6735_v56 = vpop.f32.mrf.mxu0 }
 0x3f2   : > { %v4886_v48 = vadd.f32 %v6628_v50, %v8902_v28  ;;  %v9024_v32 = vadd.f32 %v6734_v7, %v4878_v22 }
 0x3f3   : > { %v6630_v49 = vpop.f32.mrf.mxu1  ;;  %v6736_v25 = vpop.f32.mrf.mxu0 }
 0x3f4   : > { %v6631_v3 = vadd.f32 %v6630_v49, %v6629_v18  ;;  %v6737_v53 = vadd.f32 %v6736_v25, %v6735_v56 }
 0x3f5   : > { %v6632_v46 = vpop.f32.mrf.mxu1  ;;  %v6738_v2 = vpop.f32.mrf.mxu0 }
 0x3f6   : > { %v4889_v4 = vadd.f32 %v6631_v3, %v8906_v27  ;;  %v9027_v59 = vadd.f32 %v6737_v53, %v4881_v10 }
 0x3f7   : > { %v6633_v45 = vpop.f32.mrf.mxu1  ;;  %v6739_v1 = vpop.f32.mrf.mxu0 }
 0x3f8   : > { %v6634_v63 = vadd.f32 %v6633_v45, %v6632_v46  ;;  %v6740_v0 = vadd.f32 %v6739_v1, %v6738_v2 }
 0x3f9   : > { %v6635_v44 = vpop.f32.mrf.mxu1  ;;  %v6741_v57 = vpop.f32.mrf.mxu0 }
 0x3fa   : > { %v4894_v28 = vadd.f32 %v6634_v63, %v8910_v38  ;;  %v9030_v24 = vadd.f32 %v6740_v0, %v4886_v48 }
 0x3fb   : > { %v6636_v55 = vpop.f32.mrf.mxu1  ;;  %v6742_v22 = vpop.f32.mrf.mxu0 }
 0x3fc   : > { %v6637_v41 = vadd.f32 %v6636_v55, %v6635_v44  ;;  %v6743_v26 = vadd.f32 %v6742_v22, %v6741_v57 }
 0x3fd   : > { %v6638_v17 = vpop.f32.mrf.mxu1  ;;  %v6744_v13 = vpop.f32.mrf.mxu0 }
 0x3fe   : > { %v4897_v27 = vadd.f32 %v6637_v41, %v8912_v62  ;;  %v9033_v47 = vadd.f32 %v6743_v26, %v4889_v4 }
 0x3ff   : > { %v6639_v9 = vpop.f32.mrf.mxu1  ;;  %v6745_v10 = vpop.f32.mrf.mxu0 }
 0x400   : > { %v6640_v21 = vadd.f32 %v6639_v9, %v6638_v17  ;;  %v6746_v20 = vadd.f32 %v6745_v10, %v6744_v13 }
 0x401   : > { %v6641_v51 = vpop.f32.mrf.mxu1  ;;  %v6747_v50 = vpop.f32.mrf.mxu0 }
 0x402   : > { %v4902_v38 = vadd.f32 %v6640_v21, %v8919_v30  ;;  %v9036_v7 = vadd.f32 %v6746_v20, %v4894_v28 }
 0x403   : > { %v6642_v58 = vpop.f32.mrf.mxu1  ;;  %v6748_v48 = vpop.f32.mrf.mxu0 }
 0x404   : > { %v6643_v18 = vadd.f32 %v6642_v58, %v6641_v51  ;;  %v6749_v56 = vadd.f32 %v6748_v48, %v6747_v50 }
 0x405   : > { %v6644_v49 = vpop.f32.mrf.mxu1  ;;  %v6750_v3 = vpop.f32.mrf.mxu0 }
 0x406   : > { %v4905_v62 = vadd.f32 %v6643_v18, %v8922_v60  ;;  %v9039_v53 = vadd.f32 %v6749_v56, %v4897_v27 }
 0x407   : > { %v6645_v25 = vpop.f32.mrf.mxu1  ;;  %v6751_v4 = vpop.f32.mrf.mxu0 }
 0x408   : > { %v6646_v46 = vadd.f32 %v6645_v25, %v6644_v49  ;;  %v6752_v2 = vadd.f32 %v6751_v4, %v6750_v3 }
 0x409   : > { %v6647_v45 = vpop.f32.mrf.mxu1  ;;  %v6753_v63 = vpop.f32.mrf.mxu0 }
 0x40a   : > { %v4910_v30 = vadd.f32 %v6646_v46, %v8929_v8  ;;  %v9042_v0 = vadd.f32 %v6752_v2, %v4902_v38 }
 0x40b   : > { %v6648_v1 = vpop.f32.mrf.mxu1  ;;  %v6754_v28 = vpop.f32.mrf.mxu0 }
 0x40c   : > { %v6649_v44 = vadd.f32 %v6648_v1, %v6647_v45  ;;  %v6755_v57 = vadd.f32 %v6754_v28, %v6753_v63 }
 0x40d   : > { %v6650_v55 = vpop.f32.mrf.mxu1  ;;  %v6756_v41 = vpop.f32.mrf.mxu0 }
 0x40e   : > { %v4913_v60 = vadd.f32 %v6649_v44, %v8932_v12  ;;  %v9045_v26 = vadd.f32 %v6755_v57, %v4905_v62 }
 0x40f   : > { %v6651_v22 = vpop.f32.mrf.mxu1  ;;  %v6757_v27 = vpop.f32.mrf.mxu0 }
 0x410   : > { %v6652_v17 = vadd.f32 %v6651_v22, %v6650_v55  ;;  %v6758_v13 = vadd.f32 %v6757_v27, %v6756_v41 }
 0x411   : > { %v6653_v9 = vpop.f32.mrf.mxu1  ;;  %v6759_v21 = vpop.f32.mrf.mxu0 }
 0x412   : > { %v4918_v8 = vadd.f32 %v6652_v17, %v8939_v6  ;;  %v9048_v20 = vadd.f32 %v6758_v13, %v4910_v30 }
 0x413   : > { %v6654_v10 = vpop.f32.mrf.mxu1  ;;  %v6760_v38 = vpop.f32.mrf.mxu0 }
 0x414   : > { %v6655_v51 = vadd.f32 %v6654_v10, %v6653_v9  ;;  %v6761_v50 = vadd.f32 %v6760_v38, %v6759_v21 }
 0x415   : > { %v6656_v58 = vpop.f32.mrf.mxu1  ;;  %v6762_v18 = vpop.f32.mrf.mxu0 }
 0x416   : > { %v4921_v12 = vadd.f32 %v6655_v51, %v8942_v31  ;;  %v9051_v56 = vadd.f32 %v6761_v50, %v4913_v60 }
 0x417   : > { %v6657_v48 = vpop.f32.mrf.mxu1  ;;  %v6763_v62 = vpop.f32.mrf.mxu0 }
 0x418   : > { %v6658_v49 = vadd.f32 %v6657_v48, %v6656_v58  ;;  %v6764_v3 = vadd.f32 %v6763_v62, %v6762_v18 }
 0x419   : > { %v6659_v25 = vpop.f32.mrf.mxu1  ;;  %v6765_v46 = vpop.f32.mrf.mxu0 }
 0x41a   : > { %v4926_v6 = vadd.f32 %v6658_v49, %v8949_v14  ;;  %v9054_v2 = vadd.f32 %v6764_v3, %v4918_v8 }
 0x41b   : > { %v6660_v4 = vpop.f32.mrf.mxu1  ;;  %v6766_v30 = vpop.f32.mrf.mxu0 }
 0x41c   : > { %v6661_v45 = vadd.f32 %v6660_v4, %v6659_v25  ;;  %v6767_v63 = vadd.f32 %v6766_v30, %v6765_v46 }
 0x41d   : > { %v6662_v1 = vpop.f32.mrf.mxu1  ;;  %v6768_v44 = vpop.f32.mrf.mxu0 }
 0x41e   : > { %v4929_v31 = vadd.f32 %v6661_v45, %v8952_v23  ;;  %v9057_v57 = vadd.f32 %v6767_v63, %v4921_v12 }
 0x41f   : > { %v6663_v28 = vpop.f32.mrf.mxu1  ;;  %v6769_v60 = vpop.f32.mrf.mxu0 }
 0x420   : > { %v6664_v55 = vadd.f32 %v6663_v28, %v6662_v1  ;;  %v6770_v41 = vadd.f32 %v6769_v60, %v6768_v44 }
 0x421   : > { %v6665_v22 = vpop.f32.mrf.mxu1  ;;  %v6771_v17 = vpop.f32.mrf.mxu0 }
 0x422   : > { %v4934_v14 = vadd.f32 %v6664_v55, %v8959_v19  ;;  %v9060_v13 = vadd.f32 %v6770_v41, %v4926_v6 }
 0x423   : > { %v6666_v27 = vpop.f32.mrf.mxu1  ;;  %v6772_v8 = vpop.f32.mrf.mxu0 }
 0x424   : > { %v6667_v9 = vadd.f32 %v6666_v27, %v6665_v22  ;;  %v6773_v21 = vadd.f32 %v6772_v8, %v6771_v17 }
 0x425   : > { %v6668_v10 = vpop.f32.mrf.mxu1  ;;  %v6774_v51 = vpop.f32.mrf.mxu0 }
 0x426   : > { %v4937_v23 = vadd.f32 %v6667_v9, %v8962_v11  ;;  %v9063_v50 = vadd.f32 %v6773_v21, %v4929_v31 }
 0x427   : > { %v6669_v38 = vpop.f32.mrf.mxu1  ;;  %v6775_v12 = vpop.f32.mrf.mxu0 }
 0x428   : > { %v6670_v58 = vadd.f32 %v6669_v38, %v6668_v10  ;;  %v6776_v18 = vadd.f32 %v6775_v12, %v6774_v51 }
 0x429   : > { %v6671_v48 = vpop.f32.mrf.mxu1  ;;  %v6777_v49 = vpop.f32.mrf.mxu0 }
 0x42a   : > { %v4942_v19 = vadd.f32 %v6670_v58, %v8969_v34  ;;  %v9066_v3 = vadd.f32 %v6776_v18, %v4934_v14 }
 0x42b   : > { %v6672_v62 = vpop.f32.mrf.mxu1  ;;  %v6778_v6 = vpop.f32.mrf.mxu0 }
 0x42c   : > { %v6673_v25 = vadd.f32 %v6672_v62, %v6671_v48  ;;  %v6779_v46 = vadd.f32 %v6778_v6, %v6777_v49 }
 0x42d   : > { %v6674_v4 = vpop.f32.mrf.mxu1  ;;  %v6780_v45 = vpop.f32.mrf.mxu0 }
 0x42e   : > { %v4945_v11 = vadd.f32 %v6673_v25, %v8973_v42  ;;  %v9069_v63 = vadd.f32 %v6779_v46, %v4937_v23 }
 0x42f   : > { %v6675_v30 = vpop.f32.mrf.mxu1  ;;  %v6781_v31 = vpop.f32.mrf.mxu0 }
 0x430   : > { %v6676_v1 = vadd.f32 %v6675_v30, %v6674_v4  ;;  %v6782_v44 = vadd.f32 %v6781_v31, %v6780_v45 }
 0x431   : > { %v6677_v28 = vpop.f32.mrf.mxu1  ;;  %v6783_v55 = vpop.f32.mrf.mxu0 }
 0x432   : > { %v4950_v34 = vadd.f32 %v6676_v1, %v8980_v35  ;;  %v9072_v41 = vadd.f32 %v6782_v44, %v4942_v19 }
 0x433   : > { %v6678_v60 = vpop.f32.mrf.mxu1  ;;  %v6784_v14 = vpop.f32.mrf.mxu0 }
 0x434   : > { %v6679_v22 = vadd.f32 %v6678_v60, %v6677_v28  ;;  %v6785_v17 = vadd.f32 %v6784_v14, %v6783_v55 }
 0x435   : > { %v6680_v27 = vpop.f32.mrf.mxu1  ;;  %v6786_v9 = vpop.f32.mrf.mxu0 }
 0x436   : > { %v4953_v42 = vadd.f32 %v6679_v22, %v8983_v43  ;;  %v9075_v21 = vadd.f32 %v6785_v17, %v4945_v11  ;;  %v9104_v17 = vld [vmem:[%s9348_s5] ss:$0 sm:$0xff] }
 0x437   : > { %v6681_v8 = vpop.f32.mrf.mxu1  ;;  %v6787_v23 = vpop.f32.mrf.mxu0 }
 0x438   : > { %v6682_v10 = vadd.f32 %v6681_v8, %v6680_v27  ;;  %v6788_v51 = vadd.f32 %v6787_v23, %v6786_v9 }
 0x439   : > { %v6683_v38 = vpop.f32.mrf.mxu1  ;;  %v6789_v58 = vpop.f32.mrf.mxu0 }
 0x43a   : > { %v4958_v35 = vadd.f32 %v6682_v10, %v8988_v52  ;;  %v9078_v18 = vadd.f32 %v6788_v51, %v4950_v34 }
 0x43b   : > { %v6684_v12 = vpop.f32.mrf.mxu1  ;;  %v6790_v19 = vpop.f32.mrf.mxu0 }
 0x43c   : > { %v6685_v48 = vadd.f32 %v6684_v12, %v6683_v38  ;;  %v6791_v49 = vadd.f32 %v6790_v19, %v6789_v58  ;;  %v9122_v38 = vld [vmem:[%s9349_s6] ss:$0 sm:$0xff] }
 0x43d   : > { %v9080_v62 = vpop.f32.mrf.mxu1  ;;  %v6792_v25 = vpop.f32.mrf.mxu0 }
 0x43e   : > { %v4961_v43 = vadd.f32 %v6685_v48, %v8991_v15  ;;  %v9085_v46 = vadd.f32 %v6791_v49, %v4953_v42 }
 0x43f   : > { %v9083_v6 = vpop.f32.mrf.mxu1  ;;  %v6793_v4 = vpop.f32.mrf.mxu0 }
 0x440   : > { %v6794_v11 = vadd.f32 %v6793_v4, %v6792_v25 }
 0x441   : > { %v9087_v52 = vpop.f32.mrf.mxu1  ;;  %v6795_v45 = vpop.f32.mrf.mxu0 }
 0x442   : > { %v9091_v1 = vadd.f32 %v6794_v11, %v4958_v35 }
 0x443   : > { %v9089_v30 = vpop.f32.mrf.mxu1  ;;  %v6796_v31 = vpop.f32.mrf.mxu0 }
 0x444   : > { %v6797_v44 = vadd.f32 %v6796_v31, %v6795_v45 }
 0x445   : > { %v6906_v28 = vpop.f32.mrf.mxu1  ;;  %v9093_v34 = vpop.f32.mrf.mxu0 }
 0x446   : > { %v9095_v55 = vadd.f32 %v6797_v44, %v4961_v43  ;;  %v5176_v22 = vadd.f32 %v6906_v28, %v9006_v33  ;;  %v9115_v33 = vld [vmem:[%s9351_s8] ss:$0 sm:$0xff] }
 0x447   : > { %v5167_v15 = vpop.f32.mrf.mxu1  ;;  %v9097_v60 = vpop.f32.mrf.mxu0 }
 0x448   : > { %v5168_v42 = vadd.f32 %v5167_v15, %v9000_v29  ;;  %v5303_v23 = vmul.f32 %v9104_v17, %v5176_v22 }
 0x449   : > { %v6907_v14 = vpop.f32.mrf.mxu1  ;;  %v9106_v27 = vpop.f32.mrf.mxu0 }
 0x44a   : > { %v5179_v8 = vadd.f32 %v6907_v14, %v9009_v40  ;;  %v9128_v40 = vld [vmem:[%s9352_s9] ss:$0 sm:$0xff]  ;;  %v5301_v58 = vmul.f32 %v9104_v17, %v5168_v42  ;;  %v5342_v25 = vadd.f32 %v9122_v38, %v5303_v23 }
 0x44b   : > { %v5170_v9 = vpop.f32.mrf.mxu1  ;;  %v9110_v10 = vpop.f32.mrf.mxu0 }
 0x44c   : > { %v5171_v29 = vadd.f32 %v5170_v9, %v9003_v54  ;;  %v5304_v19 = vmul.f32 %v9104_v17, %v5179_v8  ;;  %v5340_v28 = vadd.f32 %v9122_v38, %v5301_v58 }
 0x44d   : > { %v6910_v51 = vpop.f32.mrf.mxu1  ;;  %v6946_v35 = vpop.f32.mrf.mxu0 }
 0x44e   : > { %v5670_v12 = vmul.f32 %v6946_v35, %v9115_v33  ;;  %v5192_v49 = vadd.f32 %v6910_v51, %v9018_v39  ;;  %v5302_v45 = vmul.f32 %v9104_v17, %v5171_v29  ;;  %v5343_v42 = vadd.f32 %v9122_v38, %v5304_v19 }
 0x44f   : > { %v5183_v48 = vpop.f32.mrf.mxu1  ;;  %v5534_v43 = vpop.f32.mrf.mxu0 }
 0x450   : > { %v5709_v54 = vadd.f32 %v9128_v40, %v5670_v12  ;;  %v5668_v4 = vmul.f32 %v9115_v33, %v5534_v43  ;;  %v5184_v31 = vadd.f32 %v5183_v48, %v9012_v36  ;;  %v5307_v9 = vmul.f32 %v9104_v17, %v5192_v49 }
 0x451   : > { %v6911_v11 = vpop.f32.mrf.mxu1  ;;  %v6947_v44 = vpop.f32.mrf.mxu0  ;;  %v5341_v12 = vadd.f32 %v9122_v38, %v5302_v45 }
 0x452   : > { %v5741_v15 = vadd.f32 %v5709_v54, %v5342_v25  ;;  %v5707_v22 = vadd.f32 %v9128_v40, %v5668_v4  ;;  %v5671_v39 = vmul.f32 %v6947_v44, %v9115_v33  ;;  %v5195_v36 = vadd.f32 %v6911_v11, %v9021_v16 }
 0x453   : > { %v5186_v14 = vpop.f32.mrf.mxu1  ;;  %v5537_v8 = vpop.f32.mrf.mxu0  ;;  %v5305_v48 = vmul.f32 %v9104_v17, %v5184_v31  ;;  %v5346_v11 = vadd.f32 %v9122_v38, %v5307_v9 }
 0x454   : > { %v5773_v23 = vmax.f32 %v5741_v15, 0.0  ;;  %v5739_v51 = vadd.f32 %v5707_v22, %v5340_v28  ;;  %v5710_v29 = vadd.f32 %v9128_v40, %v5671_v39  ;;  %v5669_v35 = vmul.f32 %v9115_v33, %v5537_v8 }
 0x455   : > { %v6914_v58 = vpop.f32.mrf.mxu1  ;;  %v5187_v19 = vadd.f32 %v5186_v14, %v9015_v5  ;;  %v6950_v49 = vpop.f32.mrf.mxu0  ;;  %v5308_v44 = vmul.f32 %v9104_v17, %v5195_v36  ;;  %v5344_v14 = vadd.f32 %v9122_v38, %v5305_v48 }
 0x456   : > { %5805 = vst [vmem:[%s9147_s18 + $0x10] sm:$0xff] %v5773_v23  ;;  %v5771_v43 = vmax.f32 %v5739_v51, 0.0  ;;  %v5742_v25 = vadd.f32 %v5710_v29, %v5343_v42  ;;  %v5708_v16 = vadd.f32 %v9128_v40, %v5669_v35  ;;  %v5674_v54 = vmul.f32 %v6950_v49, %v9115_v33 }
 0x457   : > { %v5199_v4 = vpop.f32.mrf.mxu1  ;;  %v5208_v45 = vadd.f32 %v6914_v58, %v9030_v24  ;;  %v5550_v28 = vpop.f32.mrf.mxu0  ;;  %v5306_v42 = vmul.f32 %v9104_v17, %v5187_v19  ;;  %v5347_v35 = vadd.f32 %v9122_v38, %v5308_v44 }
 0x458   : > { %5803 = vst [vmem:[%s9147_s18] sm:$0xff] %v5771_v43  ;;  %v5774_v31 = vmax.f32 %v5742_v25, 0.0  ;;  %v5740_v5 = vadd.f32 %v5708_v16, %v5341_v12  ;;  %v5713_v15 = vadd.f32 %v9128_v40, %v5674_v54  ;;  %v5672_v22 = vmul.f32 %v9115_v33, %v5550_v28 }
 0x459   : > { %v6915_v39 = vpop.f32.mrf.mxu1  ;;  %v5200_v9 = vadd.f32 %v5199_v4, %v9024_v32  ;;  %v6951_v8 = vpop.f32.mrf.mxu0  ;;  %v5311_v58 = vmul.f32 %v9104_v17, %v5208_v45  ;;  %v5345_v16 = vadd.f32 %v9122_v38, %v5306_v42 }
 0x45a   : > { %5806 = vst [vmem:[%s9147_s18 + $0x18] sm:$0xff] %v5774_v31  ;;  %v5772_v36 = vmax.f32 %v5740_v5, 0.0  ;;  %v5745_v24 = vadd.f32 %v5713_v15, %v5346_v11  ;;  %v5711_v23 = vadd.f32 %v9128_v40, %v5672_v22  ;;  %v5675_v51 = vmul.f32 %v6951_v8, %v9115_v33 }
 0x45b   : > { %v5202_v29 = vpop.f32.mrf.mxu1  ;;  %v5211_v12 = vadd.f32 %v6915_v39, %v9033_v47  ;;  %v5553_v48 = vpop.f32.mrf.mxu0  ;;  %v5309_v54 = vmul.f32 %v9104_v17, %v5200_v9  ;;  %v5350_v5 = vadd.f32 %v9122_v38, %v5311_v58 }
 0x45c   : > { %5804 = vst [vmem:[%s9147_s18 + $0x8] sm:$0xff] %v5772_v36  ;;  %v5777_v19 = vmax.f32 %v5745_v24, 0.0  ;;  %v5743_v32 = vadd.f32 %v5711_v23, %v5344_v14  ;;  %v5714_v49 = vadd.f32 %v9128_v40, %v5675_v51  ;;  %v5673_v43 = vmul.f32 %v9115_v33, %v5553_v48 }
 0x45d   : > { %v6918_v25 = vpop.f32.mrf.mxu1  ;;  %v5203_v4 = vadd.f32 %v5202_v29, %v9027_v59  ;;  %v6954_v11 = vpop.f32.mrf.mxu0  ;;  %v5312_v15 = vmul.f32 %v9104_v17, %v5211_v12  ;;  %v5348_v36 = vadd.f32 %v9122_v38, %v5309_v54 }
 0x45e   : > { %5809 = vst [vmem:[%s9147_s18 + $0x30] sm:$0xff] %v5777_v19  ;;  %v5775_v44 = vmax.f32 %v5743_v32, 0.0  ;;  %v5746_v47 = vadd.f32 %v5714_v49, %v5347_v35  ;;  %v5712_v45 = vadd.f32 %v9128_v40, %v5673_v43  ;;  %v5678_v28 = vmul.f32 %v6954_v11, %v9115_v33 }
 0x45f   : > { %v5215_v31 = vpop.f32.mrf.mxu1  ;;  %v5224_v22 = vadd.f32 %v6918_v25, %v9042_v0  ;;  %v5566_v39 = vpop.f32.mrf.mxu0  ;;  %v5310_v24 = vmul.f32 %v9104_v17, %v5203_v4  ;;  %v5351_v48 = vadd.f32 %v9122_v38, %v5312_v15 }
 0x460   : > { %5807 = vst [vmem:[%s9147_s18 + $0x20] sm:$0xff] %v5775_v44  ;;  %v5778_v14 = vmax.f32 %v5746_v47, 0.0  ;;  %v5744_v59 = vadd.f32 %v5712_v45, %v5345_v16  ;;  %v5717_v42 = vadd.f32 %v9128_v40, %v5678_v28  ;;  %v5676_v9 = vmul.f32 %v9115_v33, %v5566_v39 }
 0x461   : > { %v6919_v8 = vpop.f32.mrf.mxu1  ;;  %v5216_v23 = vadd.f32 %v5215_v31, %v9036_v7  ;;  %v6955_v51 = vpop.f32.mrf.mxu0  ;;  %v5315_v19 = vmul.f32 %v9104_v17, %v5224_v22  ;;  %v5349_v4 = vadd.f32 %v9122_v38, %v5310_v24 }
 0x462   : > { %5810 = vst [vmem:[%s9147_s18 + $0x38] sm:$0xff] %v5778_v14  ;;  %v5776_v29 = vmax.f32 %v5744_v59, 0.0  ;;  %v5749_v0 = vadd.f32 %v5717_v42, %v5350_v5  ;;  %v5715_v35 = vadd.f32 %v9128_v40, %v5676_v9  ;;  %v5679_v58 = vmul.f32 %v6955_v51, %v9115_v33 }
 0x463   : > { %v5218_v12 = vpop.f32.mrf.mxu1  ;;  %v5227_v32 = vadd.f32 %v6919_v8, %v9045_v26  ;;  %v5569_v49 = vpop.f32.mrf.mxu0  ;;  %v5313_v11 = vmul.f32 %v9104_v17, %v5216_v23  ;;  %v5354_v15 = vadd.f32 %v9122_v38, %v5315_v19 }
 0x464   : > { %5808 = vst [vmem:[%s9147_s18 + $0x28] sm:$0xff] %v5776_v29  ;;  %v5781_v43 = vmax.f32 %v5749_v0, 0.0  ;;  %v5747_v7 = vadd.f32 %v5715_v35, %v5348_v36  ;;  %v5718_v25 = vadd.f32 %v9128_v40, %v5679_v58  ;;  %v5677_v16 = vmul.f32 %v9115_v33, %v5569_v49 }
 0x465   : > { %v6922_v54 = vpop.f32.mrf.mxu1  ;;  %v5219_v44 = vadd.f32 %v5218_v12, %v9039_v53  ;;  %v6958_v47 = vpop.f32.mrf.mxu0  ;;  %v5316_v22 = vmul.f32 %v9104_v17, %v5227_v32  ;;  %v5352_v36 = vadd.f32 %v9122_v38, %v5313_v11 }
 0x466   : > { %5813 = vst [vmem:[%s9147_s18 + $0x50] sm:$0xff] %v5781_v43  ;;  %v5779_v45 = vmax.f32 %v5747_v7, 0.0  ;;  %v5750_v26 = vadd.f32 %v5718_v25, %v5351_v48  ;;  %v5716_v28 = vadd.f32 %v9128_v40, %v5677_v16  ;;  %v5682_v31 = vmul.f32 %v6958_v47, %v9115_v33 }
 0x467   : > { %v5231_v5 = vpop.f32.mrf.mxu1  ;;  %v5240_v39 = vadd.f32 %v6922_v54, %v9054_v2  ;;  %v5582_v14 = vpop.f32.mrf.mxu0  ;;  %v5314_v24 = vmul.f32 %v9104_v17, %v5219_v44  ;;  %v5355_v12 = vadd.f32 %v9122_v38, %v5316_v22 }
 0x468   : > { %5811 = vst [vmem:[%s9147_s18 + $0x40] sm:$0xff] %v5779_v45  ;;  %v5782_v59 = vmax.f32 %v5750_v26, 0.0  ;;  %v5748_v53 = vadd.f32 %v5716_v28, %v5349_v4  ;;  %v5721_v42 = vadd.f32 %v9128_v40, %v5682_v31  ;;  %v5680_v9 = vmul.f32 %v9115_v33, %v5582_v14 }
 0x469   : > { %v6923_v8 = vpop.f32.mrf.mxu1  ;;  %v5232_v23 = vadd.f32 %v5231_v5, %v9048_v20  ;;  %v6959_v51 = vpop.f32.mrf.mxu0  ;;  %v5319_v48 = vmul.f32 %v9104_v17, %v5240_v39  ;;  %v5353_v16 = vadd.f32 %v9122_v38, %v5314_v24 }
 0x46a   : > { %5814 = vst [vmem:[%s9147_s18 + $0x58] sm:$0xff] %v5782_v59  ;;  %v5780_v29 = vmax.f32 %v5748_v53, 0.0  ;;  %v5753_v2 = vadd.f32 %v5721_v42, %v5354_v15  ;;  %v5719_v0 = vadd.f32 %v9128_v40, %v5680_v9  ;;  %v5683_v35 = vmul.f32 %v6959_v51, %v9115_v33 }
 0x46b   : > { %v5234_v58 = vpop.f32.mrf.mxu1  ;;  %v5243_v19 = vadd.f32 %v6923_v8, %v9057_v57  ;;  %v5585_v32 = vpop.f32.mrf.mxu0  ;;  %v5317_v54 = vmul.f32 %v9104_v17, %v5232_v23  ;;  %v5358_v28 = vadd.f32 %v9122_v38, %v5319_v48  ;;  %v6688_v53 = vadd.f32 %v9083_v6, %v9080_v62 }
 0x46c   : > { %5812 = vst [vmem:[%s9147_s18 + $0x48] sm:$0xff] %v5780_v29  ;;  %v5785_v49 = vmax.f32 %v5753_v2, 0.0  ;;  %v5751_v20 = vadd.f32 %v5719_v0, %v5352_v36  ;;  %v5722_v43 = vadd.f32 %v9128_v40, %v5683_v35  ;;  %v5681_v7 = vmul.f32 %v9115_v33, %v5585_v32 }
 0x46d   : > { %v6926_v25 = vpop.f32.mrf.mxu1  ;;  %v5235_v4 = vadd.f32 %v5234_v58, %v9051_v56  ;;  %v6962_v11 = vpop.f32.mrf.mxu0  ;;  %v5320_v31 = vmul.f32 %v9104_v17, %v5243_v19  ;;  %v5356_v42 = vadd.f32 %v9122_v38, %v5317_v54  ;;  %v4966_v19 = vadd.f32 %v6688_v53, %v8994_v37 }
 0x46e   : > { %5817 = vst [vmem:[%s9147_s18 + $0x70] sm:$0xff] %v5785_v49  ;;  %v5783_v44 = vmax.f32 %v5751_v20, 0.0  ;;  %v5754_v57 = vadd.f32 %v5722_v43, %v5355_v12  ;;  %v5720_v47 = vadd.f32 %v9128_v40, %v5681_v7  ;;  %v5686_v45 = vmul.f32 %v6962_v11, %v9115_v33 }
 0x46f   : > { %v5247_v26 = vpop.f32.mrf.mxu1  ;;  %v5256_v5 = vadd.f32 %v6926_v25, %v9066_v3  ;;  %v5598_v15 = vpop.f32.mrf.mxu0  ;;  %v5318_v9 = vmul.f32 %v9104_v17, %v5235_v4  ;;  %v5359_v2 = vadd.f32 %v9122_v38, %v5320_v31  ;;  %v6800_v4 = vadd.f32 %v9097_v60, %v9093_v34 }
 0x470   : > { %5815 = vst [vmem:[%s9147_s18 + $0x60] sm:$0xff] %v5783_v44  ;;  %v5786_v22 = vmax.f32 %v5754_v57, 0.0  ;;  %v5752_v56 = vadd.f32 %v5720_v47, %v5353_v16  ;;  %v5725_v39 = vadd.f32 %v9128_v40, %v5686_v45  ;;  %v5684_v14 = vmul.f32 %v9115_v33, %v5598_v15 }
 0x471   : > { %v6927_v59 = vpop.f32.mrf.mxu1  ;;  %v5248_v8 = vadd.f32 %v5247_v26, %v9060_v13  ;;  %v6963_v3 = vpop.f32.mrf.mxu0  ;;  %v5323_v62 = vmul.f32 %v9104_v17, %v5256_v5  ;;  %v5357_v32 = vadd.f32 %v9122_v38, %v5318_v9  ;;  %v6691_v31 = vadd.f32 %v9089_v30, %v9087_v52 }
 0x472   : > { %5818 = vst [vmem:[%s9147_s18 + $0x78] sm:$0xff] %v5786_v22  ;;  %v5784_v36 = vmax.f32 %v5752_v56, 0.0  ;;  %v5757_v24 = vadd.f32 %v5725_v39, %v5358_v28  ;;  %v5723_v23 = vadd.f32 %v9128_v40, %v5684_v14  ;;  %v5687_v51 = vmul.f32 %v6963_v3, %v9115_v33 }
 0x473   : > { %v5250_v29 = vpop.f32.mrf.mxu1  ;;  %v5259_v6 = vadd.f32 %v6927_v59, %v9069_v63  ;;  %v5601_v0 = vpop.f32.mrf.mxu0  ;;  %v5321_v49 = vmul.f32 %v9104_v17, %v5248_v8  ;;  %v5362_v37 = vadd.f32 %v9122_v38, %v5323_v62 }
 0x474   : > { %5816 = vst [vmem:[%s9147_s18 + $0x68] sm:$0xff] %v5784_v36  ;;  %v5789_v35 = vmax.f32 %v5757_v24, 0.0  ;;  %v5755_v13 = vadd.f32 %v5723_v23, %v5356_v42  ;;  %v5726_v58 = vadd.f32 %v9128_v40, %v5687_v51  ;;  %v5685_v12 = vmul.f32 %v9115_v33, %v5601_v0 }
 0x475   : > { %v6930_v48 = vpop.f32.mrf.mxu1  ;;  %v5251_v20 = vadd.f32 %v5250_v29, %v9063_v50  ;;  %v6966_v43 = vpop.f32.mrf.mxu0  ;;  %v5324_v11 = vmul.f32 %v9104_v17, %v5259_v6  ;;  %v5360_v34 = vadd.f32 %v9122_v38, %v5321_v49  ;;  %v5127_v42 = vadd.f32 %v6800_v4, %v4966_v19 }
 0x476   : > { %5821 = vst [vmem:[%s9147_s18 + $0x90] sm:$0xff] %v5789_v35  ;;  %v5787_v63 = vmax.f32 %v5755_v13, 0.0  ;;  %v5758_v7 = vadd.f32 %v5726_v58, %v5359_v2  ;;  %v5724_v25 = vadd.f32 %v9128_v40, %v5685_v12  ;;  %v5690_v16 = vmul.f32 %v6966_v43, %v9115_v33 }
 0x477   : > { %v5263_v54 = vpop.f32.mrf.mxu1  ;;  %v5272_v44 = vadd.f32 %v6930_v48, %v9078_v18  ;;  %v5614_v50 = vpop.f32.mrf.mxu0  ;;  %v5322_v60 = vmul.f32 %v9104_v17, %v5251_v20  ;;  %v5363_v59 = vadd.f32 %v9122_v38, %v5324_v11  ;;  %v6803_v24 = vadd.f32 %v9110_v10, %v9106_v27 }
 0x478   : > { %5819 = vst [vmem:[%s9147_s18 + $0x80] sm:$0xff] %v5787_v63  ;;  %v5790_v57 = vmax.f32 %v5758_v7, 0.0  ;;  %v5756_v47 = vadd.f32 %v5724_v25, %v5357_v32  ;;  %v5729_v45 = vadd.f32 %v9128_v40, %v5690_v16  ;;  %v5688_v26 = vmul.f32 %v9115_v33, %v5614_v50 }
 0x479   : > { %v6931_v28 = vpop.f32.mrf.mxu1  ;;  %v5264_v5 = vadd.f32 %v5263_v54, %v9072_v41  ;;  %v6967_v18 = vpop.f32.mrf.mxu0  ;;  %v5327_v52 = vmul.f32 %v9104_v17, %v5272_v44  ;;  %v5361_v23 = vadd.f32 %v9122_v38, %v5322_v60  ;;  %v4969_v13 = vadd.f32 %v6691_v31, %v8997_v61 }
 0x47a   : > { %5822 = vst [vmem:[%s9147_s18 + $0x98] sm:$0xff] %v5790_v57  ;;  %v5788_v15 = vmax.f32 %v5756_v47, 0.0  ;;  %v5761_v22 = vadd.f32 %v5729_v45, %v5362_v37  ;;  %v5727_v56 = vadd.f32 %v9128_v40, %v5688_v26  ;;  %v5691_v39 = vmul.f32 %v6967_v18, %v9115_v33 }
 0x47b   : > { %v5266_v14 = vpop.f32.mrf.mxu1  ;;  %v5275_v30 = vadd.f32 %v6931_v28, %v9085_v46  ;;  %v5617_v53 = vpop.f32.mrf.mxu0  ;;  %v5325_v51 = vmul.f32 %v9104_v17, %v5264_v5  ;;  %v5366_v27 = vadd.f32 %v9122_v38, %v5327_v52  ;;  %v5130_v63 = vadd.f32 %v6803_v24, %v4969_v13 }
 0x47c   : > { %5820 = vst [vmem:[%s9147_s18 + $0x88] sm:$0xff] %v5788_v15  ;;  %v5793_v41 = vmax.f32 %v5761_v22, 0.0  ;;  %v5759_v9 = vadd.f32 %v5727_v56, %v5360_v34  ;;  %v5730_v8 = vadd.f32 %v9128_v40, %v5691_v39  ;;  %v5689_v3 = vmul.f32 %v9115_v33, %v5617_v53 }
 0x47d   : > { %v6934_v36 = vpop.f32.mrf.mxu1  ;;  %v5267_v46 = vadd.f32 %v5266_v14, %v9075_v21  ;;  %v6970_v29 = vpop.f32.mrf.mxu0  ;;  %v5328_v10 = vmul.f32 %v9104_v17, %v5275_v30  ;;  %v5364_v20 = vadd.f32 %v9122_v38, %v5325_v51 }
 0x47e   : > { %5825 = vst [vmem:[%s9147_s18 + $0xb0] sm:$0xff] %v5793_v41  ;;  %v5791_v2 = vmax.f32 %v5759_v9, 0.0  ;;  %v5762_v62 = vadd.f32 %v5730_v8, %v5363_v59  ;;  %v5728_v6 = vadd.f32 %v9128_v40, %v5689_v3  ;;  %v5694_v0 = vmul.f32 %v6970_v29, %v9115_v33 }
 0x47f   : > { %v5279_v35 = vpop.f32.mrf.mxu1  ;;  %v5288_v58 = vadd.f32 %v6934_v36, %v5127_v42  ;;  %v5630_v12 = vpop.f32.mrf.mxu0  ;;  %v5326_v61 = vmul.f32 %v9104_v17, %v5267_v46  ;;  %v5367_v11 = vadd.f32 %v9122_v38, %v5328_v10 }
 0x480   : > { %5823 = vst [vmem:[%s9147_s18 + $0xa0] sm:$0xff] %v5791_v2  ;;  %v5794_v21 = vmax.f32 %v5762_v62, 0.0  ;;  %v5760_v48 = vadd.f32 %v5728_v6, %v5361_v23  ;;  %v5733_v19 = vadd.f32 %v9128_v40, %v5694_v0  ;;  %v5692_v32 = vmul.f32 %v9115_v33, %v5630_v12 }
 0x481   : > { %v6935_v49 = vpop.f32.mrf.mxu1  ;;  %v5280_v43 = vadd.f32 %v5279_v35, %v9091_v1  ;;  %v6971_v7 = vpop.f32.mrf.mxu0  ;;  %v5331_v44 = vmul.f32 %v9104_v17, %v5288_v58  ;;  %v5365_v28 = vadd.f32 %v9122_v38, %v5326_v61 }
 0x482   : > { %5826 = vst [vmem:[%s9147_s18 + $0xb8] sm:$0xff] %v5794_v21  ;;  %v5792_v25 = vmax.f32 %v5760_v48, 0.0  ;;  %v5765_v16 = vadd.f32 %v5733_v19, %v5366_v27  ;;  %v5731_v54 = vadd.f32 %v9128_v40, %v5692_v32  ;;  %v5695_v4 = vmul.f32 %v6971_v7, %v9115_v33 }
 0x483   : > { %v5282_v37 = vpop.f32.mrf.mxu1  ;;  %v5291_v50 = vadd.f32 %v6935_v49, %v5130_v63  ;;  %v5633_v57 = vpop.f32.mrf.mxu0  ;;  %v5329_v31 = vmul.f32 %v9104_v17, %v5280_v43  ;;  %v5370_v56 = vadd.f32 %v9122_v38, %v5331_v44 }
 0x484   : > { %5824 = vst [vmem:[%s9147_s18 + $0xa8] sm:$0xff] %v5792_v25  ;;  %v5797_v47 = vmax.f32 %v5765_v16, 0.0  ;;  %v5763_v1 = vadd.f32 %v5731_v54, %v5364_v20  ;;  %v5734_v45 = vadd.f32 %v9128_v40, %v5695_v4  ;;  %v5693_v26 = vmul.f32 %v9115_v33, %v5633_v57 }
 0x485   : > { %v5283_v34 = vadd.f32 %v5282_v37, %v9095_v55  ;;  %v6974_v60 = vpop.f32.mrf.mxu0  ;;  %v5332_v39 = vmul.f32 %v9104_v17, %v5291_v50  ;;  %v5368_v53 = vadd.f32 %v9122_v38, %v5329_v31 }
 0x486   : > { %5829 = vst [vmem:[%s9147_s18 + $0xd0] sm:$0xff] %v5797_v47  ;;  %v5795_v5 = vmax.f32 %v5763_v1, 0.0  ;;  %v5766_v18 = vadd.f32 %v5734_v45, %v5367_v11  ;;  %v5732_v15 = vadd.f32 %v9128_v40, %v5693_v26  ;;  %v5698_v22 = vmul.f32 %v6974_v60, %v9115_v33 }
 0x487   : > { %v5646_v14 = vpop.f32.mrf.mxu0  ;;  %v5330_v42 = vmul.f32 %v9104_v17, %v5283_v34  ;;  %v5371_v24 = vadd.f32 %v9122_v38, %v5332_v39 }
 0x488   : > { %5827 = vst [vmem:[%s9147_s18 + $0xc0] sm:$0xff] %v5795_v5  ;;  %v5798_v59 = vmax.f32 %v5766_v18, 0.0  ;;  %v5764_v52 = vadd.f32 %v5732_v15, %v5365_v28  ;;  %v5737_v55 = vadd.f32 %v9128_v40, %v5698_v22  ;;  %v5696_v30 = vmul.f32 %v9115_v33, %v5646_v14 }
 0x489   : > { %v6975_v41 = vpop.f32.mrf.mxu0  ;;  %v5369_v2 = vadd.f32 %v9122_v38, %v5330_v42 }
 0x48a   : > { %5830 = vst [vmem:[%s9147_s18 + $0xd8] sm:$0xff] %v5798_v59  ;;  %v5796_v9 = vmax.f32 %v5764_v52, 0.0  ;;  %v5769_v8 = vadd.f32 %v5737_v55, %v5370_v56  ;;  %v5735_v3 = vadd.f32 %v9128_v40, %v5696_v30  ;;  %v5699_v36 = vmul.f32 %v6975_v41, %v9115_v33 }
 0x48b   : > { %v5649_v23 = vpop.f32.mrf.mxu0 }
 0x48c   : > { %5828 = vst [vmem:[%s9147_s18 + $0xc8] sm:$0xff] %v5796_v9  ;;  %v5801_v51 = vmax.f32 %v5769_v8, 0.0  ;;  %v5767_v46 = vadd.f32 %v5735_v3, %v5368_v53  ;;  %v5738_v29 = vadd.f32 %v9128_v40, %v5699_v36  ;;  %v5697_v17 = vmul.f32 %v9115_v33, %v5649_v23 }
 0x48e   : > { %5833 = vst [vmem:[%s9147_s18 + $0xf0] sm:$0xff] %v5801_v51  ;;  %v5799_v62 = vmax.f32 %v5767_v46, 0.0  ;;  %v5770_v6 = vadd.f32 %v5738_v29, %v5371_v24  ;;  %v5736_v0 = vadd.f32 %v9128_v40, %v5697_v17 }
 0x490   : > { %5831 = vst [vmem:[%s9147_s18 + $0xe0] sm:$0xff] %v5799_v62  ;;  %v5802_v35 = vmax.f32 %v5770_v6, 0.0  ;;  %v5768_v13 = vadd.f32 %v5736_v0, %v5369_v2 }
 0x492   : > { %5834 = vst [vmem:[%s9147_s18 + $0xf8] sm:$0xff] %v5802_v35  ;;  %v5800_v27 = vmax.f32 %v5768_v13, 0.0 }
 0x494   : > { %5832 = vst [vmem:[%s9147_s18 + $0xe8] sm:$0xff] %v5800_v27 }
 0x495 PF: > { %s9377_s19 = smov %s7529_s13  ;;  %p22_p8 = scmp.ge.s32.totalorder %s7529_s13, 4  }
 0x496   : > { %s9378_s13 = smov %s7366_s14  ;;  %s9379_s14 = smov %s7370_s15 }
 0x497   : > { %s9380_s15 = smov %s7540_s23  ;;  %s9381_s16 = smov %s9377_s19 }
 0x498   :  { %24 = sbr.rel (!%p22_p8) target bundleno = 5 (0x5), region = 120 }
 0x49d   :  { %5856 = vsyncpa [#allocation7], 1 }
 0x49e   :  { %5858 = vsyncpa [#allocation7 + $0x1], 1 }
 0x49f   :  { %5859 = vsyncpa [#allocation9], 1 }
 0x4a0   :  { %5860 = vsyncpa [#allocation12], 1 }

// kernel: _lambda_.3
= control target key start
LH: loop header
LB: loop body
LE: loop exit
PB: predicated region body
PF: predicated region fallthrough
CT: control target
= control target key end

     0   :  { %12 = vsyncpa [#allocation7], 0  ;;  %s9316_s0 = inlined_call_operand.vmem [shape: f32[2,16,16,128], index: 0, kind: input, shape index: {}]   ;;  %s9317_s1 = inlined_call_operand.vmem [shape: bf16[1152,128], index: 1, kind: input, shape index: {}]   ;;  %s9318_s2 = inlined_call_operand.vmem [shape: f32[1,128], index: 2, kind: input, shape index: {}]   ;;  %s9319_s3 = inlined_call_operand.vmem [shape: f32[1,128], index: 3, kind: input, shape index: {}]   ;;  %s9320_s4 = inlined_call_operand.vmem [shape: bf16[1152,128], index: 4, kind: input, shape index: {}]   ;;  %s9321_s5 = inlined_call_operand.vmem [shape: f32[1,128], index: 5, kind: input, shape index: {}]   ;;  %s9322_s6 = inlined_call_operand.vmem [shape: f32[1,128], index: 6, kind: input, shape index: {}]   ;;  %s9323_s7 = inlined_call_operand.hbm [shape: f32[2,16,16,128], index: 7, kind: output, shape index: {}]  }
   0x1   :  { %14 = vsyncpa [#allocation7 + $0x1], 0  ;;  %s7153_s24 = smov 0   ;;  %s7155_s25 = smov 0  }
   0x2   :  { %s7157_s26 = smov 0   ;;  %s7159_s27 = smov 0  }
   0x3 LB: > { %s7174_s28 = sadd.s32 4294967295, %s7106_s27   ;;  %s5656_s29 = sadd.s32 4294967294, %s7106_s27   ;;  %s7106_s27 = sphi %s7159_s27, %s9449_s27   ;;  %s7102_s26 = sphi %s7157_s26, %s9448_s26   ;;  %s7098_s25 = sphi %s7155_s25, %s9447_s25   ;;  %s7094_s24 = sphi %s7153_s24, %s9446_s24  }
   0x4   : > { %s7178_s30 = sadd.s32 1, %s7106_s27   ;;  %s179_s8 = sadd.s32 1, %s7102_s26 }
   0x5   : > { %s176_s9 = ssub.s32 %s7106_s27, %s7178_s30  ;;  %p189_p0 = scmp.ne.s32.totalorder %s7102_s26, %s7098_s25 }
   0x6   : > { %p177_p1 = scmp.eq.s32.totalorder %s176_s9, 0  ;;  %p190_p2 = scmp.eq.s32.totalorder %s7174_s28, 1 }
   0x7   : > { %p195_p3 = scmp.ne.s32.totalorder %s7098_s25, %s7094_s24  ;;  %p196_p4 = scmp.eq.s32.totalorder %s5656_s29, 1 }
   0x8   : > { %s7189_s10 = scalar_select %p177_p1, %s7102_s26, %s179_s8  }
   0x9   : > { %p7191_p5 = por %p190_p2, %p189_p0  ;;  %p7195_p6 = por %p196_p4, %p195_p3 }
   0xa   : > { %p5659_p7 = scmp.ge.s32.totalorder %s7106_s27, 1  ;;  %p240_p8 = scmp.lt.s32.totalorder %s7106_s27, 3 }
   0xc   : > { %p241_p9 = pnand %p5659_p7, %p240_p8 }
   0xe   : > { %244 = sbr.rel (%p241_p9) target bundleno = 1077 (0x435), region = 48 }
  0x13   : > { %v7204_v0 = vld [vmem:[%s9317_s1 + $0x78] sm:$0xff]   ;;  %v7108_v2 = vmov 0.0   ;;  %v6904_v5 = vld [vmem:[%s9317_s1 + $0x70] sm:$0xff]   ;;  %v6908_v9 = vld [vmem:[%s9317_s1 + $0x68] sm:$0xff]   ;;  %p272_p10 = scmp.lt.s32.totalorder %s7174_s28, 1  ;;  %v7109_v41 = vmov 0.0|0.0  }
  0x14   : > { %v7209_v1 = vld [vmem:[%s9317_s1 + $0xf8] sm:$0xff]   ;;  %278 = vst [vmem:[#allocation2] sm:$0xff] %v7108_v2  ;;  %279 = vst [vmem:[#allocation2 + $0x8] sm:$0xff] %v7108_v2  ;;  %5818 = vmatprep.subr.bf16.mxu0 %v7204_v0  ;;  %v6905_v6 = vld [vmem:[%s9317_s1 + $0xf0] sm:$0xff]   ;;  %s5817_s13 = sshll.u32 %s7174_s28, 12  ;;  %s7110_s19 = smov [#allocation6]  }
  0x15   : > { %280 = vst [vmem:[#allocation2 + $0x10] sm:$0x3] %v7108_v2  ;;  %281 = vst [vmem:[#allocation2 + $0x18] sm:$0xff] %v7108_v2  ;;  %v6902_v3 = vld [vmem:[%s9317_s1 + $0x38] sm:$0xff]   ;;  %5930 = vmatprep.subr.bf16.mxu1 %v7209_v1  ;;  %v6906_v7 = vld [vmem:[%s9317_s1 + $0x30] sm:$0xff]   ;;  %s273_s17 = scalar_select %p272_p10, %s7174_s28, 1 }
  0x16   : > { %282 = vst [vmem:[#allocation2 + $0x20] sm:$0xff] %v7108_v2  ;;  %283 = vst [vmem:[#allocation2 + $0x28] sm:$0x3] %v7108_v2  ;;  %v6903_v4 = vld [vmem:[%s9317_s1 + $0xb8] sm:$0xff]   ;;  %5819 = vmatpush3.bf16.msra.mxu0 %v6902_v3  ;;  %v6907_v8 = vld [vmem:[%s9317_s1 + $0xb0] sm:$0xff]   ;;  %s9268_s18 = scalar_lea.hbm %s9323_s7, %s5817_s13  ;;  %s7050_s20 = sshll.u32 %s7110_s19, 4  ;;  %s7051_s20 = int_to_ptr.vmem [resolvable:$false] %s7050_s20 }
  0x17   : > { %284 = vst [vmem:[#allocation2 + $0x30] sm:$0xff] %v7108_v2  ;;  %285 = vst [vmem:[#allocation2 + $0x38] sm:$0xff] %v7108_v2  ;;  %5931 = vmatpush3.bf16.msra.mxu1 %v6903_v4  ;;  %5820 = vmatprep.subr.bf16.mxu0 %v6904_v5  ;;  %v6909_v10 = vld [vmem:[%s9317_s1 + $0xe8] sm:$0xff]   ;;  %v6912_v13 = vld [vmem:[%s9317_s1 + $0x60] sm:$0xff]   ;;  %s5816_s9 = sshll.u32 %s273_s17, 8  ;;  %s269_s17 = sand.u32 1, %s7098_s25  }
  0x18   : > { %286 = vst [vmem:[#allocation2 + $0x40] sm:$0x3] %v7108_v2  ;;  %287 = vst [vmem:[#allocation2 + $0x48] sm:$0xff] %v7108_v2  ;;  %5932 = vmatprep.subr.bf16.mxu1 %v6905_v6  ;;  %v6910_v11 = vld [vmem:[%s9317_s1 + $0x28] sm:$0xff]   ;;  %v6913_v14 = vld [vmem:[%s9317_s1 + $0xe0] sm:$0xff]   ;;  %s7410_s22 = scalar_lea.vmem %s9316_s0, %s5816_s9  ;;  %s5660_s8 = sshll.u32 %s269_s17, 8 }
  0x19   : > { %288 = vst [vmem:[#allocation2 + $0x50] sm:$0xff] %v7108_v2  ;;  %289 = vst [vmem:[#allocation2 + $0x58] sm:$0x3] %v7108_v2  ;;  %v6911_v12 = vld [vmem:[%s9317_s1 + $0xa8] sm:$0xff]   ;;  %v6914_v15 = vld [vmem:[%s9317_s1 + $0x20] sm:$0xff]   ;;  %s9063_s9 = scalar_lea.vmem [#allocation6], %s5660_s8 }
  0x1a   : > { %290 = vst [vmem:[#allocation2 + $0x60] sm:$0xff] %v7108_v2  ;;  %291 = vst [vmem:[#allocation2 + $0x68] sm:$0xff] %v7108_v2  ;;  %5821 = vmatpush3.bf16.msra.mxu0 %v6906_v7  ;;  %v6915_v16 = vld [vmem:[%s9317_s1 + $0xa0] sm:$0xff]   ;;  %v6916_v17 = vld [vmem:[%s9317_s1 + $0x58] sm:$0xff]   ;;  %s5594_s14 = sshll.u32 %s9063_s9, 4  ;;  %s9276_s28 = scalar_lea.sflag [#allocation7], %s269_s17  ;;  %s9270_s14 = int_to_ptr.vmem [resolvable:$true] %s5594_s14 }
  0x1b   : > { %292 = vst [vmem:[#allocation2 + $0x70] sm:$0x3] %v7108_v2  ;;  %293 = vst [vmem:[#allocation2 + $0x78] sm:$0xff] %v7108_v2  ;;  %5933 = vmatpush3.bf16.msra.mxu1 %v6907_v8  ;;  %5822 = vmatprep.subr.bf16.mxu0 %v6908_v9  ;;  %v6917_v18 = vld [vmem:[%s9317_s1 + $0xd8] sm:$0xff]   ;;  %v6920_v21 = vld [vmem:[%s9317_s1 + $0x50] sm:$0xff]   ;;  %s7052_s21 = scalar_lea.vmem %s7051_s20, 8192  ;;  %p7053_p0 = scmp.lt.s32.totalorder %s9270_s14, %s7051_s20 }
  0x1c   : > { %294 = vst [vmem:[#allocation2 + $0x80] sm:$0xff] %v7108_v2  ;;  %295 = vst [vmem:[#allocation2 + $0x88] sm:$0x3] %v7108_v2  ;;  %5934 = vmatprep.subr.bf16.mxu1 %v6909_v10  ;;  %v6918_v19 = vld [vmem:[%s9317_s1 + $0x18] sm:$0xff]   ;;  %v6921_v22 = vld [vmem:[%s9317_s1 + $0xd0] sm:$0xff]  }
  0x1d   : > { %296 = vst [vmem:[#allocation2 + $0x90] sm:$0xff] %v7108_v2  ;;  %297 = vst [vmem:[#allocation2 + $0x98] sm:$0xff] %v7108_v2  ;;  %v6919_v20 = vld [vmem:[%s9317_s1 + $0x98] sm:$0xff]   ;;  %v6922_v23 = vld [vmem:[%s9317_s1 + $0x10] sm:$0xff]  }
  0x1e   : > { %298 = vst [vmem:[#allocation2 + $0xa0] sm:$0x3] %v7108_v2  ;;  %299 = vst [vmem:[#allocation2 + $0xa8] sm:$0xff] %v7108_v2  ;;  %5823 = vmatpush3.bf16.msra.mxu0 %v6910_v11  ;;  %v6923_v24 = vld [vmem:[%s9317_s1 + $0x90] sm:$0xff]   ;;  %v6924_v25 = vld [vmem:[%s9317_s1 + $0x48] sm:$0xff]  }
  0x1f   : > { %300 = vst [vmem:[#allocation2 + $0xb0] sm:$0xff] %v7108_v2  ;;  %301 = vst [vmem:[#allocation2 + $0xb8] sm:$0x3] %v7108_v2  ;;  %5935 = vmatpush3.bf16.msra.mxu1 %v6911_v12  ;;  %5824 = vmatprep.subr.bf16.mxu0 %v6912_v13  ;;  %v6925_v26 = vld [vmem:[%s9317_s1 + $0xc8] sm:$0xff]   ;;  %v6928_v29 = vld [vmem:[%s9317_s1 + $0x40] sm:$0xff]  }
  0x20   : > { %302 = vst [vmem:[#allocation2 + $0xc0] sm:$0xff] %v7108_v2  ;;  %303 = vst [vmem:[#allocation2 + $0xc8] sm:$0xff] %v7108_v2  ;;  %5936 = vmatprep.subr.bf16.mxu1 %v6913_v14  ;;  %v6926_v27 = vld [vmem:[%s9317_s1 + $0x8] sm:$0xff]   ;;  %v6929_v30 = vld [vmem:[%s9317_s1 + $0xc0] sm:$0xff]  }
  0x21   : > { %304 = vst [vmem:[#allocation2 + $0xd0] sm:$0x3] %v7108_v2  ;;  %305 = vst [vmem:[#allocation2 + $0xd8] sm:$0xff] %v7108_v2  ;;  %v6927_v28 = vld [vmem:[%s9317_s1 + $0x88] sm:$0xff]   ;;  %v6930_v31 = vld [vmem:[%s9317_s1] sm:$0xff]  }
  0x22   : > { %306 = vst [vmem:[#allocation2 + $0xe0] sm:$0xff] %v7108_v2  ;;  %307 = vst [vmem:[#allocation2 + $0xe8] sm:$0x3] %v7108_v2  ;;  %5825 = vmatpush3.bf16.msra.mxu0 %v6914_v15  ;;  %v6931_v32 = vld [vmem:[%s9317_s1 + $0x80] sm:$0xff]   ;;  %v462_v34 = vld [vmem:[#allocation2 + $0x9] sm:$0xff] }
  0x23   : > { %308 = vst [vmem:[#allocation2 + $0xf0] sm:$0xff] %v7108_v2  ;;  %309 = vst [vmem:[#allocation2 + $0xf8] sm:$0xff] %v7108_v2  ;;  %5937 = vmatpush3.bf16.msra.mxu1 %v6915_v16  ;;  %5826 = vmatprep.subr.bf16.mxu0 %v6916_v17  ;;  %v461_v33 = vld [vmem:[#allocation2 + $0x1] sm:$0xff]  ;;  %v6932_v38 = vld [vmem:[%s9317_s1 + $0x178] sm:$0xff]  }
  0x24   : > { %310 = vst [vmem:[#allocation2 + $0x100] sm:$0x3] %v7108_v2  ;;  %311 = vst [vmem:[#allocation2 + $0x108] sm:$0xff] %v7108_v2  ;;  %5938 = vmatprep.subr.bf16.mxu1 %v6917_v18  ;;  %v332_v35 = vld [vmem:[%s7410_s22] sm:$0xff]  ;;  %v1263_v36 = vpack.c.bf16 %v462_v34, %v461_v33  ;;  %v333_v37 = vld [vmem:[%s7410_s22 + $0x8] sm:$0xff] }
  0x25   : > { %312 = vst [vmem:[#allocation2 + $0x110] sm:$0xff] %v7108_v2  ;;  %313 = vst [vmem:[#allocation2 + $0x118] sm:$0x3] %v7108_v2  ;;  %v7423_v39 = vpack.c.bf16 %v333_v37, %v332_v35  ;;  %v6933_v40 = vld [vmem:[%s9317_s1 + $0x138] sm:$0xff]   ;;  %v525_v42 = vld [vmem:[#allocation2 + $0x2] sm:$0xff] }
  0x26   : > { %314 = vst [vmem:[#allocation2 + $0x120] sm:$0xff] %v7108_v2  ;;  %315 = vst [vmem:[#allocation2 + $0x128] sm:$0xff] %v7108_v2  ;;  %5827 = vmatpush3.bf16.msra.mxu0 %v6918_v19  ;;  %2014 = vmatprep.mubr.bf16.mxu0 %v1263_v36  ;;  %v526_v43 = vld [vmem:[#allocation2 + $0xa] sm:$0xff]  ;;  %v335_v45 = vld [vmem:[%s7410_s22 + $0x18] sm:$0xff] }
  0x27   : > { %316 = vst [vmem:[#allocation2 + $0x130] sm:$0x3] %v7108_v2  ;;  %317 = vst [vmem:[#allocation2 + $0x138] sm:$0xff] %v7108_v2  ;;  %5939 = vmatpush3.bf16.msra.mxu1 %v6919_v20  ;;  %5828 = vmatprep.subr.bf16.mxu0 %v6920_v21  ;;  %v334_v44 = vld [vmem:[%s7410_s22 + $0x10] sm:$0xff]  ;;  %v336_v46 = vld [vmem:[%s7410_s22 + $0x20] sm:$0xff]  ;;  %v1264_v56 = vpack.c.bf16 %v526_v43, %v525_v42 }
  0x28   : > { %318 = vst [vmem:[#allocation2 + $0x140] sm:$0xff] %v7108_v2  ;;  %319 = vst [vmem:[#allocation2 + $0x148] sm:$0x3] %v7108_v2  ;;  %5940 = vmatprep.subr.bf16.mxu1 %v6921_v22  ;;  %v337_v47 = vld [vmem:[%s7410_s22 + $0x28] sm:$0xff]  ;;  %v6934_v48 = vld [vmem:[%s9317_s1 + $0x170] sm:$0xff]   ;;  %v7453_v57 = vpack.c.bf16 %v335_v45, %v334_v44 }
  0x29   : > { %320 = vst [vmem:[#allocation2 + $0x150] sm:$0xff] %v7108_v2  ;;  %321 = vst [vmem:[#allocation2 + $0x158] sm:$0xff] %v7108_v2  ;;  %v6935_v49 = vld [vmem:[%s9317_s1 + $0x130] sm:$0xff]   ;;  %v7443_v51 = vld [vmem:[%s7410_s22 + $0x38] sm:$0xff]  ;;  %v7473_v6 = vpack.c.bf16 %v337_v47, %v336_v46 }
  0x2a   : > { %322 = vst [vmem:[#allocation2 + $0x160] sm:$0x3] %v7108_v2  ;;  %323 = vst [vmem:[#allocation2 + $0x168] sm:$0xff] %v7108_v2  ;;  %5829 = vmatpush3.bf16.msra.mxu0 %v6922_v23  ;;  %v7440_v50 = vld [vmem:[%s7410_s22 + $0x30] sm:$0xff]  ;;  %v7448_v53 = vld [vmem:[%s7410_s22 + $0x40] sm:$0xff] }
  0x2b   : > { %324 = vst [vmem:[#allocation2 + $0x170] sm:$0xff] %v7108_v2  ;;  %325 = vst [vmem:[#allocation2 + $0x178] sm:$0x3] %v7108_v2  ;;  %5941 = vmatpush3.bf16.msra.mxu1 %v6923_v24  ;;  %5830 = vmatprep.subr.bf16.mxu0 %v6924_v25  ;;  %v7451_v54 = vld [vmem:[%s7410_s22 + $0x48] sm:$0xff]  ;;  %v7476_v7 = vld [vmem:[%s7410_s22 + $0x58] sm:$0xff] }
  0x2c   : > { %326 = vst [vmem:[#allocation2 + $0x180] sm:$0xff] %v7108_v2  ;;  %327 = vst [vmem:[#allocation2 + $0x188] sm:$0xff] %v7108_v2  ;;  %5942 = vmatprep.subr.bf16.mxu1 %v6925_v26  ;;  %v6936_v59 = vld [vmem:[%s9317_s1 + $0x168] sm:$0xff]   ;;  %v7482_v9 = vld [vmem:[%s7410_s22 + $0x60] sm:$0xff]  ;;  %v7531_v26 = vpack.c.bf16 %v7443_v51, %v7440_v50  ;;  %v7556_v36 = vpack.c.bf16 %v7451_v54, %v7448_v53 }
  0x2d   : > { %328 = vst [vmem:[#allocation2 + $0x190] sm:$0x3] %v7108_v2  ;;  %329 = vst [vmem:[#allocation2 + $0x198] sm:$0xff] %v7108_v2  ;;  %v6937_v60 = vld [vmem:[%s9317_s1 + $0x128] sm:$0xff]   ;;  %v6938_v11 = vld [vmem:[%s9317_s1 + $0x160] sm:$0xff]  }
  0x2e   : > { %330 = vst [vmem:[#allocation2 + $0x1a0] sm:$0xff] %v7108_v2  ;;  %331 = vst [vmem:[#allocation2 + $0x1a8] sm:$0x3] %v7108_v2  ;;  %5831 = vmatpush3.bf16.msra.mxu0 %v6926_v27  ;;  %v7485_v10 = vld [vmem:[%s7410_s22 + $0x68] sm:$0xff]  ;;  %v6939_v14 = vld [vmem:[%s9317_s1 + $0x120] sm:$0xff]  }
  0x2f   : > { %2897 = vst [vmem:[#allocation4] sm:$0xff] %v7108_v2  ;;  %2898 = vst [vmem:[#allocation4 + $0x8] sm:$0xff] %v7108_v2  ;;  %5943 = vmatpush3.bf16.msra.mxu1 %v6927_v28  ;;  %5832 = vmatprep.subr.bf16.mxu0 %v6928_v29  ;;  %v7497_v15 = vld [vmem:[%s7410_s22 + $0x70] sm:$0xff]  ;;  %v7502_v17 = vld [vmem:[%s7410_s22 + $0x78] sm:$0xff] }
  0x30   : > { %2899 = vst [vmem:[#allocation4 + $0x10] sm:$0x3] %v7108_v2  ;;  %2900 = vst [vmem:[#allocation4 + $0x18] sm:$0xff] %v7108_v2  ;;  %5944 = vmatprep.subr.bf16.mxu1 %v6929_v30  ;;  %v7506_v18 = vld [vmem:[%s7410_s22 + $0x80] sm:$0xff]  ;;  %v7509_v19 = vld [vmem:[%s7410_s22 + $0x88] sm:$0xff] }
  0x31   : > { %2901 = vst [vmem:[#allocation4 + $0x20] sm:$0xff] %v7108_v2  ;;  %2902 = vst [vmem:[#allocation4 + $0x28] sm:$0x3] %v7108_v2  ;;  %v6940_v21 = vld [vmem:[%s9317_s1 + $0x158] sm:$0xff]   ;;  %v7522_v23 = vld [vmem:[%s7410_s22 + $0x90] sm:$0xff] }
  0x32   : > { %2903 = vst [vmem:[#allocation4 + $0x30] sm:$0xff] %v7108_v2  ;;  %2904 = vst [vmem:[#allocation4 + $0x38] sm:$0xff] %v7108_v2  ;;  %5833 = vmatpush3.bf16.msra.mxu0 %v6930_v31  ;;  %v6941_v22 = vld [vmem:[%s9317_s1 + $0x118] sm:$0xff]   ;;  %v7538_v28 = vld [vmem:[%s7410_s22 + $0xa0] sm:$0xff] }
  0x33   : > { %2905 = vst [vmem:[#allocation4 + $0x40] sm:$0x3] %v7108_v2  ;;  %2906 = vst [vmem:[#allocation4 + $0x48] sm:$0xff] %v7108_v2  ;;  %5945 = vmatpush3.bf16.msra.mxu1 %v6931_v32  ;;  %6042 = vmatprep.subr.bf16.mxu0 %v6932_v38  ;;  %v7525_v24 = vld [vmem:[%s7410_s22 + $0x98] sm:$0xff]  ;;  %v7541_v29 = vld [vmem:[%s7410_s22 + $0xa8] sm:$0xff] }
  0x34   : > { %2907 = vst [vmem:[#allocation4 + $0x50] sm:$0xff] %v7108_v2  ;;  %2908 = vst [vmem:[#allocation4 + $0x58] sm:$0x3] %v7108_v2  ;;  %v6942_v34 = vld [vmem:[%s9317_s1 + $0x150] sm:$0xff]   ;;  %v7570_v42 = vld [vmem:[%s7410_s22 + $0xc0] sm:$0xff] }
  0x35   : > { %2909 = vst [vmem:[#allocation4 + $0x60] sm:$0xff] %v7108_v2  ;;  %2910 = vst [vmem:[#allocation4 + $0x68] sm:$0xff] %v7108_v2  ;;  %2015 = vmatmul.mubr.bf16.vlgmr.msra.gmra.mxu0 %v7109_v41  ;;  %v7567_v41 = vld [vmem:[%s7410_s22 + $0xb8] sm:$0xff] }
  0x36   : > { %2911 = vst [vmem:[#allocation4 + $0x70] sm:$0x3] %v7108_v2  ;;  %2912 = vst [vmem:[#allocation4 + $0x78] sm:$0xff] %v7108_v2  ;;  %6043 = vmatpush3.bf16.msra.mxu0 %v6933_v40  ;;  %2022 = vmatprep.mubr.bf16.mxu0 %v7423_v39  ;;  %v7564_v40 = vld [vmem:[%s7410_s22 + $0xb0] sm:$0xff] }
  0x37   : > { %2913 = vst [vmem:[#allocation4 + $0x80] sm:$0xff] %v7108_v2  ;;  %2914 = vst [vmem:[#allocation4 + $0x88] sm:$0x3] %v7108_v2  ;;  %6044 = vmatprep.subr.bf16.mxu0 %v6934_v48  ;;  %v6944_v48 = vld [vmem:[%s9317_s1 + $0x148] sm:$0xff]  }
  0x38   : > { %2915 = vst [vmem:[#allocation4 + $0x90] sm:$0xff] %v7108_v2  ;;  %2916 = vst [vmem:[#allocation4 + $0x98] sm:$0xff] %v7108_v2 }
  0x39   : > { %2917 = vst [vmem:[#allocation4 + $0xa0] sm:$0x3] %v7108_v2  ;;  %2918 = vst [vmem:[#allocation4 + $0xa8] sm:$0xff] %v7108_v2 }
  0x3a   : > { %2919 = vst [vmem:[#allocation4 + $0xb0] sm:$0xff] %v7108_v2  ;;  %2920 = vst [vmem:[#allocation4 + $0xb8] sm:$0x3] %v7108_v2  ;;  %6045 = vmatpush3.bf16.msra.mxu0 %v6935_v49  ;;  %v6945_v49 = vld [vmem:[%s9317_s1 + $0x108] sm:$0xff]  }
  0x3b   : > { %2921 = vst [vmem:[#allocation4 + $0xc0] sm:$0xff] %v7108_v2  ;;  %2922 = vst [vmem:[#allocation4 + $0xc8] sm:$0xff] %v7108_v2  ;;  %6046 = vmatprep.subr.bf16.mxu0 %v6936_v59 }
  0x3c   : > { %2923 = vst [vmem:[#allocation4 + $0xd0] sm:$0x3] %v7108_v2  ;;  %2924 = vst [vmem:[#allocation4 + $0xd8] sm:$0xff] %v7108_v2 }
  0x3d   : > { %2925 = vst [vmem:[#allocation4 + $0xe0] sm:$0xff] %v7108_v2  ;;  %2926 = vst [vmem:[#allocation4 + $0xe8] sm:$0x3] %v7108_v2 }
  0x3e   : > { %2927 = vst [vmem:[#allocation4 + $0xf0] sm:$0xff] %v7108_v2  ;;  %2928 = vst [vmem:[#allocation4 + $0xf8] sm:$0xff] %v7108_v2  ;;  %6047 = vmatpush3.bf16.msra.mxu0 %v6937_v60 }
  0x3f   : > { %2929 = vst [vmem:[#allocation4 + $0x100] sm:$0x3] %v7108_v2  ;;  %2930 = vst [vmem:[#allocation4 + $0x108] sm:$0xff] %v7108_v2  ;;  %6048 = vmatprep.subr.bf16.mxu0 %v6938_v11  ;;  %v360_v11 = vld [vmem:[%s7410_s22 + $0xe0] sm:$0xff] }
  0x40   : > { %2931 = vst [vmem:[#allocation4 + $0x110] sm:$0xff] %v7108_v2  ;;  %2932 = vst [vmem:[#allocation4 + $0x118] sm:$0x3] %v7108_v2 }
  0x41   : > { %2933 = vst [vmem:[#allocation4 + $0x120] sm:$0xff] %v7108_v2  ;;  %2934 = vst [vmem:[#allocation4 + $0x128] sm:$0xff] %v7108_v2 }
  0x42   : > { %2935 = vst [vmem:[#allocation4 + $0x130] sm:$0x3] %v7108_v2  ;;  %2936 = vst [vmem:[#allocation4 + $0x138] sm:$0xff] %v7108_v2  ;;  %6049 = vmatpush3.bf16.msra.mxu0 %v6939_v14 }
  0x43   : > { %2937 = vst [vmem:[#allocation4 + $0x140] sm:$0xff] %v7108_v2  ;;  %2938 = vst [vmem:[#allocation4 + $0x148] sm:$0x3] %v7108_v2  ;;  %6050 = vmatprep.subr.bf16.mxu0 %v6940_v21 }
  0x44   : > { %2939 = vst [vmem:[#allocation4 + $0x150] sm:$0xff] %v7108_v2  ;;  %2940 = vst [vmem:[#allocation4 + $0x158] sm:$0xff] %v7108_v2 }
  0x45   : > { %2941 = vst [vmem:[#allocation4 + $0x160] sm:$0x3] %v7108_v2  ;;  %2942 = vst [vmem:[#allocation4 + $0x168] sm:$0xff] %v7108_v2 }
  0x46   : > { %2943 = vst [vmem:[#allocation4 + $0x170] sm:$0xff] %v7108_v2  ;;  %2944 = vst [vmem:[#allocation4 + $0x178] sm:$0x3] %v7108_v2  ;;  %6051 = vmatpush3.bf16.msra.mxu0 %v6941_v22 }
  0x47   : > { %2945 = vst [vmem:[#allocation4 + $0x180] sm:$0xff] %v7108_v2  ;;  %2946 = vst [vmem:[#allocation4 + $0x188] sm:$0xff] %v7108_v2  ;;  %6052 = vmatprep.subr.bf16.mxu0 %v6942_v34 }
  0x48   : > { %2947 = vst [vmem:[#allocation4 + $0x190] sm:$0x3] %v7108_v2  ;;  %2948 = vst [vmem:[#allocation4 + $0x198] sm:$0xff] %v7108_v2 }
  0x49   : > { %2949 = vst [vmem:[#allocation4 + $0x1a0] sm:$0xff] %v7108_v2  ;;  %2950 = vst [vmem:[#allocation4 + $0x1a8] sm:$0x3] %v7108_v2  ;;  %v7467_v2 = vld [vmem:[%s7410_s22 + $0x50] sm:$0xff] }
  0x4a   : > { %365 = vst [vmem:[#allocation2 + $0x19] sm:$0xff] %v332_v35  ;;  %366 = vst [vmem:[#allocation2 + $0x21] sm:$0xff] %v333_v37  ;;  %v6943_v37 = vld [vmem:[%s9317_s1 + $0x110] sm:$0xff]  }
  0x4b   : > { %367 = vst [vmem:[#allocation2 + $0x31] sm:$0xff] %v334_v44  ;;  %368 = vst [vmem:[#allocation2 + $0x39] sm:$0xff] %v335_v45  ;;  %6053 = vmatpush3.bf16.msra.mxu0 %v6943_v37  ;;  %v7577_v45 = vld [vmem:[%s7410_s22 + $0xc8] sm:$0xff]  ;;  %v7668_v37 = vpack.c.bf16 %v7502_v17, %v7497_v15 }
  0x4c   : > { %369 = vst [vmem:[#allocation2 + $0x49] sm:$0xff] %v336_v46  ;;  %370 = vst [vmem:[#allocation2 + $0x51] sm:$0xff] %v337_v47  ;;  %6054 = vmatprep.subr.bf16.mxu0 %v6944_v48 }
  0x4d   : > { %371 = vst [vmem:[#allocation2 + $0x61] sm:$0xff] %v7440_v50  ;;  %372 = vst [vmem:[#allocation2 + $0x69] sm:$0xff] %v7443_v51  ;;  %v6946_v50 = vld [vmem:[%s9317_s1 + $0x1f8] sm:$0xff]  }
  0x4e   : > { %373 = vst [vmem:[#allocation2 + $0x79] sm:$0xff] %v7448_v53  ;;  %374 = vst [vmem:[#allocation2 + $0x81] sm:$0xff] %v7451_v54  ;;  %v6947_v51 = vld [vmem:[%s9317_s1 + $0x1b8] sm:$0xff]   ;;  %v7599_v53 = vpack.c.bf16 %v7476_v7, %v7467_v2  ;;  %6154 = vmatprep.subr.bf16.mxu1 %v6946_v50  ;;  %v6948_v54 = vld [vmem:[%s9317_s1 + $0x1f0] sm:$0xff]  }
  0x4f   : > { %375 = vst [vmem:[#allocation2 + $0x91] sm:$0xff] %v7467_v2  ;;  %376 = vst [vmem:[#allocation2 + $0x99] sm:$0xff] %v7476_v7  ;;  %6055 = vmatpush3.bf16.msra.mxu0 %v6945_v49  ;;  %v6951_v2 = vld [vmem:[%s9317_s1 + $0x1a8] sm:$0xff]   ;;  %v7634_v7 = vpack.c.bf16 %v7485_v10, %v7482_v9 }
  0x50   : > { %377 = vst [vmem:[#allocation2 + $0xa9] sm:$0xff] %v7482_v9  ;;  %378 = vst [vmem:[#allocation2 + $0xb1] sm:$0xff] %v7485_v10  ;;  %v6954_v9 = vld [vmem:[%s9317_s1 + $0x140] sm:$0xff]  }
  0x51   : > { %v589_v52 = vld [vmem:[#allocation2 + $0x18] sm:$0xff]  ;;  %v590_v55 = vld [vmem:[#allocation2 + $0x20] sm:$0xff]  ;;  %379 = vst [vmem:[#allocation2 + $0xc1] sm:$0xff] %v7497_v15  ;;  %380 = vst [vmem:[#allocation2 + $0xc9] sm:$0xff] %v7502_v17  ;;  %6056 = vmatprep.subr.bf16.mxu0 %v6954_v9 }
  0x52   : > { %v1265_v58 = vpack.c.bf16 %v590_v55, %v589_v52  ;;  %v591_v61 = vld [vmem:[#allocation2 + $0x30] sm:$0xff]  ;;  %v592_v62 = vld [vmem:[#allocation2 + $0x38] sm:$0xff]  ;;  %v528_v1 = vld [vmem:[#allocation2 + $0x22] sm:$0xff]  ;;  %381 = vst [vmem:[#allocation2 + $0xd9] sm:$0xff] %v7506_v18 }
  0x53   : > { %v7463_v63 = vpack.c.bf16 %v592_v62, %v591_v61  ;;  %v527_v0 = vld [vmem:[#allocation2 + $0x1a] sm:$0xff]  ;;  %v593_v3 = vld [vmem:[#allocation2 + $0x48] sm:$0xff]  ;;  %v594_v4 = vld [vmem:[#allocation2 + $0x50] sm:$0xff]  ;;  %382 = vst [vmem:[#allocation2 + $0xe1] sm:$0xff] %v7509_v19 }
  0x54   : > { %2175 = vmatprep.mubr.bf16.mxu1 %v1265_v58  ;;  %2023 = vmatmul.mubr.bf16.gmra.mxu0 %v1265_v58  ;;  %v7471_v5 = vpack.c.bf16 %v528_v1, %v527_v0  ;;  %v7478_v8 = vpack.c.bf16 %v594_v4, %v593_v3  ;;  %v529_v12 = vld [vmem:[#allocation2 + $0x32] sm:$0xff]  ;;  %v530_v13 = vld [vmem:[#allocation2 + $0x3a] sm:$0xff]  ;;  %v596_v20 = vld [vmem:[#allocation2 + $0x68] sm:$0xff]  ;;  %383 = vst [vmem:[#allocation2 + $0xf1] sm:$0xff] %v7522_v23 }
  0x55   : > { %2176 = vmatmul.mubr.bf16.vlgmr.msra.gmra.mxu1 %v1264_v56  ;;  %2030 = vmatprep.mubr.bf16.mxu0 %v7453_v57  ;;  %v595_v16 = vld [vmem:[#allocation2 + $0x60] sm:$0xff]  ;;  %v7527_v25 = vpack.c.bf16 %v530_v13, %v529_v12  ;;  %384 = vst [vmem:[#allocation2 + $0xf9] sm:$0xff] %v7525_v24  ;;  %385 = vst [vmem:[#allocation2 + $0x109] sm:$0xff] %v7538_v28  ;;  %v531_v30 = vld [vmem:[#allocation2 + $0x4a] sm:$0xff] }
  0x56   : > { %2183 = vmatprep.mubr.bf16.mxu1 %v7463_v63  ;;  %v7535_v27 = vpack.c.bf16 %v596_v20, %v595_v16  ;;  %386 = vst [vmem:[#allocation2 + $0x111] sm:$0xff] %v7541_v29  ;;  %v532_v31 = vld [vmem:[#allocation2 + $0x52] sm:$0xff]  ;;  %v598_v33 = vld [vmem:[#allocation2 + $0x80] sm:$0xff]  ;;  %387 = vst [vmem:[#allocation2 + $0x121] sm:$0xff] %v7564_v40  ;;  %6155 = vmatpush3.bf16.msra.mxu1 %v6947_v51 }
  0x57   : > { %v597_v32 = vld [vmem:[#allocation2 + $0x78] sm:$0xff]  ;;  %v7552_v35 = vpack.c.bf16 %v532_v31, %v531_v30  ;;  %388 = vst [vmem:[#allocation2 + $0x129] sm:$0xff] %v7567_v41  ;;  %389 = vst [vmem:[#allocation2 + $0x139] sm:$0xff] %v7570_v42  ;;  %v533_v43 = vld [vmem:[#allocation2 + $0x62] sm:$0xff]  ;;  %6156 = vmatprep.subr.bf16.mxu1 %v6948_v54 }
  0x58   : > { %v7561_v38 = vpack.c.bf16 %v598_v33, %v597_v32  ;;  %v534_v44 = vld [vmem:[#allocation2 + $0x6a] sm:$0xff]  ;;  %v600_v47 = vld [vmem:[#allocation2 + $0x98] sm:$0xff]  ;;  %390 = vst [vmem:[#allocation2 + $0x141] sm:$0xff] %v7577_v45  ;;  %v536_v60 = vld [vmem:[#allocation2 + $0x82] sm:$0xff] }
  0x59   : > { %v599_v46 = vld [vmem:[#allocation2 + $0x90] sm:$0xff]  ;;  %v7595_v52 = vpack.c.bf16 %v534_v44, %v533_v43  ;;  %v7611_v58 = vld [vmem:[%s7410_s22 + $0xd8] sm:$0xff]  ;;  %v601_v61 = vld [vmem:[#allocation2 + $0xa8] sm:$0xff]  ;;  %393 = vst [vmem:[#allocation2 + $0x169] sm:$0xff] %v360_v11 }
  0x5a   : > { %v7605_v55 = vld [vmem:[%s7410_s22 + $0xd0] sm:$0xff]  ;;  %v7607_v56 = vpack.c.bf16 %v600_v47, %v599_v46  ;;  %v535_v59 = vld [vmem:[#allocation2 + $0x7a] sm:$0xff]  ;;  %392 = vst [vmem:[#allocation2 + $0x159] sm:$0xff] %v7611_v58  ;;  %v6950_v1 = vld [vmem:[%s9317_s1 + $0x1e8] sm:$0xff]  }
  0x5b   : > { %391 = vst [vmem:[#allocation2 + $0x151] sm:$0xff] %v7605_v55  ;;  %v602_v62 = vld [vmem:[#allocation2 + $0xb0] sm:$0xff]  ;;  %v6952_v3 = vld [vmem:[%s9317_s1 + $0x1e0] sm:$0xff]   ;;  %v7630_v4 = vpack.c.bf16 %v536_v60, %v535_v59  ;;  %v361_v12 = vld [vmem:[%s7410_s22 + $0xe8] sm:$0xff] }
  0x5c   : > { %2031 = vmatmul.mubr.bf16.gmra.mxu0 %v7463_v63  ;;  %v6949_v0 = vld [vmem:[%s9317_s1 + $0x1b0] sm:$0xff]   ;;  %v7638_v13 = vpack.c.bf16 %v602_v62, %v601_v61  ;;  %394 = vst [vmem:[#allocation2 + $0x171] sm:$0xff] %v361_v12  ;;  %v7640_v14 = vpack.c.bf16 %v361_v12, %v360_v11  ;;  %v6953_v16 = vld [vmem:[%s9317_s1 + $0x1a0] sm:$0xff]   ;;  %v604_v22 = vld [vmem:[#allocation2 + $0xc8] sm:$0xff]  ;;  %v7705_v61 = vpack.c.bf16 %v7509_v19, %v7506_v18 }
  0x5d   : > { %2184 = vmatmul.mubr.bf16.gmra.mxu1 %v7471_v5  ;;  %2038 = vmatprep.mubr.bf16.mxu0 %v7473_v6  ;;  %v537_v20 = vld [vmem:[#allocation2 + $0x92] sm:$0xff]  ;;  %v538_v21 = vld [vmem:[#allocation2 + $0x9a] sm:$0xff]  ;;  %v539_v48 = vld [vmem:[#allocation2 + $0xaa] sm:$0xff]  ;;  %v7721_v11 = vpack.c.bf16 %v7525_v24, %v7522_v23  ;;  %v7733_v23 = vpack.c.bf16 %v7541_v29, %v7538_v28  ;;  %v7745_v28 = vpack.c.bf16 %v7567_v41, %v7564_v40 }
  0x5e   : > { %2191 = vmatprep.mubr.bf16.mxu1 %v7478_v8  ;;  %6157 = vmatpush3.bf16.msra.mxu1 %v6949_v0  ;;  %v603_v10 = vld [vmem:[#allocation2 + $0xc0] sm:$0xff]  ;;  %v6956_v31 = vld [vmem:[%s9317_s1 + $0x1d8] sm:$0xff]   ;;  %v6958_v33 = vld [vmem:[%s9317_s1 + $0x1d0] sm:$0xff]   ;;  %v7664_v34 = vpack.c.bf16 %v538_v21, %v537_v20  ;;  %v7757_v40 = vpack.c.bf16 %v7577_v45, %v7570_v42  ;;  %v7769_v42 = vpack.c.bf16 %v7611_v58, %v7605_v55 }
  0x5f   : > { %6158 = vmatprep.subr.bf16.mxu1 %v6950_v1  ;;  %v6955_v30 = vld [vmem:[%s9317_s1 + $0x100] sm:$0xff]   ;;  %v6957_v32 = vld [vmem:[%s9317_s1 + $0x198] sm:$0xff]   ;;  %v7671_v43 = vld [vmem:[%s7410_s22 + $0xf0] sm:$0xff]  ;;  %v7673_v44 = vpack.c.bf16 %v604_v22, %v603_v10 }
  0x60   : > { %6057 = vmatpush3.bf16.msra.mxu0 %v6955_v30  ;;  %v7676_v46 = vld [vmem:[%s7410_s22 + $0xf8] sm:$0xff]  ;;  %395 = vst [vmem:[#allocation2 + $0x181] sm:$0xff] %v7671_v43  ;;  %v6959_v47 = vld [vmem:[%s9317_s1 + $0x190] sm:$0xff]   ;;  %v6960_v17 = vld [vmem:[%s9317_s1 + $0x1c8] sm:$0xff]  }
  0x61   : > { %396 = vst [vmem:[#allocation2 + $0x189] sm:$0xff] %v7676_v46  ;;  %v540_v15 = vld [vmem:[#allocation2 + $0xb2] sm:$0xff]  ;;  %v606_v50 = vld [vmem:[#allocation2 + $0xe0] sm:$0xff]  ;;  %v6961_v51 = vld [vmem:[%s9317_s1 + $0x188] sm:$0xff]  }
  0x62   : > { %6159 = vmatpush3.bf16.msra.mxu1 %v6951_v2  ;;  %v605_v49 = vld [vmem:[#allocation2 + $0xd8] sm:$0xff]  ;;  %v6962_v54 = vld [vmem:[%s9317_s1 + $0x1c0] sm:$0xff]   ;;  %v7701_v60 = vpack.c.bf16 %v540_v15, %v539_v48  ;;  %v542_v2 = vld [vmem:[#allocation2 + $0xca] sm:$0xff] }
  0x63   : > { %6160 = vmatprep.subr.bf16.mxu1 %v6952_v3  ;;  %v7699_v59 = vld [vmem:[%s9317_s1 + $0x238] sm:$0xff]   ;;  %v7707_v62 = vpack.c.bf16 %v606_v50, %v605_v49  ;;  %v6963_v0 = vld [vmem:[%s9317_s1 + $0x180] sm:$0xff]   ;;  %v607_v18 = vld [vmem:[#allocation2 + $0xf0] sm:$0xff] }
  0x64   : > { %2039 = vmatmul.mubr.bf16.gmra.mxu0 %v7478_v8  ;;  %6762 = vmatprep.subr.bf16.mxu0 %v7699_v59  ;;  %v541_v1 = vld [vmem:[#allocation2 + $0xc2] sm:$0xff]  ;;  %v608_v19 = vld [vmem:[#allocation2 + $0xf8] sm:$0xff]  ;;  %v610_v9 = vld [vmem:[#allocation2 + $0x110] sm:$0xff] }
  0x65   : > { %2192 = vmatmul.mubr.bf16.gmra.mxu1 %v7527_v25  ;;  %2046 = vmatprep.mubr.bf16.mxu0 %v7531_v26  ;;  %v7717_v3 = vpack.c.bf16 %v542_v2, %v541_v1  ;;  %v7723_v12 = vpack.c.bf16 %v608_v19, %v607_v18  ;;  %v544_v20 = vld [vmem:[#allocation2 + $0xe2] sm:$0xff]  ;;  %v545_v22 = vld [vmem:[#allocation2 + $0xf2] sm:$0xff]  ;;  %v546_v30 = vld [vmem:[#allocation2 + $0xfa] sm:$0xff] }
  0x66   : > { %2199 = vmatprep.mubr.bf16.mxu1 %v7535_v27  ;;  %6161 = vmatpush3.bf16.msra.mxu1 %v6953_v16  ;;  %v543_v16 = vld [vmem:[#allocation2 + $0xda] sm:$0xff]  ;;  %v609_v21 = vld [vmem:[#allocation2 + $0x108] sm:$0xff]  ;;  %v548_v48 = vld [vmem:[#allocation2 + $0x112] sm:$0xff] }
  0x67   : > { %6162 = vmatprep.subr.bf16.mxu1 %v6956_v31  ;;  %v7729_v10 = vpack.c.bf16 %v544_v20, %v543_v16  ;;  %v7735_v24 = vpack.c.bf16 %v610_v9, %v609_v21  ;;  %v611_v31 = vld [vmem:[#allocation2 + $0x120] sm:$0xff]  ;;  %v613_v15 = vld [vmem:[#allocation2 + $0x138] sm:$0xff]  ;;  %v617_v19 = vld [vmem:[#allocation2 + $0x168] sm:$0xff] }
  0x68   : > { %v549_v50 = vld [vmem:[#allocation2 + $0x122] sm:$0xff]  ;;  %v551_v2 = vld [vmem:[#allocation2 + $0x13a] sm:$0xff]  ;;  %v618_v16 = vld [vmem:[#allocation2 + $0x170] sm:$0xff] }
  0x69   : > { %v552_v18 = vld [vmem:[#allocation2 + $0x142] sm:$0xff]  ;;  %v7779_v21 = vpack.c.bf16 %v618_v16, %v617_v19  ;;  %v553_v55 = vld [vmem:[#allocation2 + $0x152] sm:$0xff]  ;;  %v554_v58 = vld [vmem:[#allocation2 + $0x15a] sm:$0xff] }
  0x6a   : > { %6163 = vmatpush3.bf16.msra.mxu1 %v6957_v32  ;;  %v612_v32 = vld [vmem:[#allocation2 + $0x128] sm:$0xff]  ;;  %v7777_v20 = vpack.c.bf16 %v552_v18, %v551_v2  ;;  %v619_v9 = vld [vmem:[#allocation2 + $0x180] sm:$0xff]  ;;  %v6973_v16 = vld [vmem:[%s9320_s4 + $0x38] sm:$0xff]  }
  0x6b   : > { %6164 = vmatprep.subr.bf16.mxu1 %v6958_v33  ;;  %v7741_v33 = vpack.c.bf16 %v546_v30, %v545_v22  ;;  %v7747_v29 = vpack.c.bf16 %v612_v32, %v611_v31  ;;  %v620_v22 = vld [vmem:[#allocation2 + $0x188] sm:$0xff]  ;;  %v7785_v30 = vpack.c.bf16 %v554_v58, %v553_v55 }
  0x6c   : > { %2047 = vmatmul.mubr.bf16.gmra.mxu0 %v7535_v27  ;;  %v7787_v31 = vpack.c.bf16 %v620_v22, %v619_v9  ;;  %v555_v32 = vld [vmem:[#allocation2 + $0x16a] sm:$0xff] }
  0x6d   : > { %2200 = vmatmul.mubr.bf16.gmra.mxu1 %v7552_v35  ;;  %2054 = vmatprep.mubr.bf16.mxu0 %v7556_v36 }
  0x6e   : > { %2207 = vmatprep.mubr.bf16.mxu1 %v7561_v38  ;;  %6165 = vmatpush3.bf16.msra.mxu1 %v6959_v47  ;;  %v547_v47 = vld [vmem:[#allocation2 + $0x10a] sm:$0xff] }
  0x6f   : > { %6166 = vmatprep.subr.bf16.mxu1 %v6960_v17  ;;  %v614_v17 = vld [vmem:[#allocation2 + $0x140] sm:$0xff]  ;;  %v7753_v49 = vpack.c.bf16 %v548_v48, %v547_v47  ;;  %v556_v47 = vld [vmem:[#allocation2 + $0x172] sm:$0xff] }
  0x70   : > { %v7759_v41 = vpack.c.bf16 %v614_v17, %v613_v15  ;;  %v7793_v48 = vpack.c.bf16 %v556_v47, %v555_v32  ;;  %v6965_v15 = vld [vmem:[%s9317_s1 + $0x230] sm:$0xff]   ;;  %v6967_v17 = vld [vmem:[%s9317_s1 + $0x220] sm:$0xff]  }
  0x72   : > { %6167 = vmatpush3.bf16.msra.mxu1 %v6961_v51  ;;  %v550_v51 = vld [vmem:[#allocation2 + $0x12a] sm:$0xff] }
  0x73   : > { %6168 = vmatprep.subr.bf16.mxu1 %v6962_v54  ;;  %v615_v54 = vld [vmem:[#allocation2 + $0x150] sm:$0xff]  ;;  %v7765_v1 = vpack.c.bf16 %v550_v51, %v549_v50 }
  0x74   : > { %2055 = vmatmul.mubr.bf16.gmra.mxu0 %v7561_v38 }
  0x75   : > { %2208 = vmatmul.mubr.bf16.gmra.mxu1 %v7595_v52  ;;  %2062 = vmatprep.mubr.bf16.mxu0 %v7599_v53 }
  0x76   : > { %2215 = vmatprep.mubr.bf16.mxu1 %v7607_v56  ;;  %6169 = vmatpush3.bf16.msra.mxu1 %v6963_v0  ;;  %v616_v0 = vld [vmem:[#allocation2 + $0x158] sm:$0xff] }
  0x77   : > { %v7771_v45 = vpack.c.bf16 %v616_v0, %v615_v54 }
  0x7c   : > { %2063 = vmatmul.mubr.bf16.gmra.mxu0 %v7607_v56 }
  0x7d   : > { %2216 = vmatmul.mubr.bf16.gmra.mxu1 %v7630_v4  ;;  %2070 = vmatprep.mubr.bf16.mxu0 %v7634_v7 }
  0x7e   : > { %2223 = vmatprep.mubr.bf16.mxu1 %v7638_v13 }
  0x84   : > { %2071 = vmatmul.mubr.bf16.gmra.mxu0 %v7638_v13 }
  0x85   : > { %2224 = vmatmul.mubr.bf16.gmra.mxu1 %v7664_v34  ;;  %2078 = vmatprep.mubr.bf16.mxu0 %v7668_v37 }
  0x86   : > { %2231 = vmatprep.mubr.bf16.mxu1 %v7673_v44 }
  0x8c   : > { %2079 = vmatmul.mubr.bf16.gmra.mxu0 %v7673_v44 }
  0x8d   : > { %2232 = vmatmul.mubr.bf16.gmra.mxu1 %v7701_v60  ;;  %2086 = vmatprep.mubr.bf16.mxu0 %v7705_v61 }
  0x8e   : > { %2239 = vmatprep.mubr.bf16.mxu1 %v7707_v62 }
  0x94   : > { %2087 = vmatmul.mubr.bf16.gmra.mxu0 %v7707_v62 }
  0x95   : > { %2240 = vmatmul.mubr.bf16.gmra.mxu1 %v7717_v3  ;;  %2094 = vmatprep.mubr.bf16.mxu0 %v7721_v11 }
  0x96   : > { %2247 = vmatprep.mubr.bf16.mxu1 %v7723_v12 }
  0x9c   : > { %2095 = vmatmul.mubr.bf16.gmra.mxu0 %v7723_v12 }
  0x9d   : > { %2248 = vmatmul.mubr.bf16.gmra.mxu1 %v7729_v10  ;;  %2102 = vmatprep.mubr.bf16.mxu0 %v7733_v23 }
  0x9e   : > { %2255 = vmatprep.mubr.bf16.mxu1 %v7735_v24 }
  0xa4   : > { %2103 = vmatmul.mubr.bf16.gmra.mxu0 %v7735_v24 }
  0xa5   : > { %2256 = vmatmul.mubr.bf16.gmra.mxu1 %v7741_v33  ;;  %2110 = vmatprep.mubr.bf16.mxu0 %v7745_v28 }
  0xa6   : > { %2263 = vmatprep.mubr.bf16.mxu1 %v7747_v29 }
  0xac   : > { %2111 = vmatmul.mubr.bf16.gmra.mxu0 %v7747_v29 }
  0xad   : > { %2264 = vmatmul.mubr.bf16.gmra.mxu1 %v7753_v49  ;;  %2118 = vmatprep.mubr.bf16.mxu0 %v7757_v40 }
  0xae   : > { %2271 = vmatprep.mubr.bf16.mxu1 %v7759_v41 }
  0xb4   : > { %2119 = vmatmul.mubr.bf16.gmra.mxu0 %v7759_v41 }
  0xb5   : > { %2272 = vmatmul.mubr.bf16.gmra.mxu1 %v7765_v1  ;;  %2126 = vmatprep.mubr.bf16.mxu0 %v7769_v42 }
  0xb6   : > { %2279 = vmatprep.mubr.bf16.mxu1 %v7771_v45 }
  0xbc   : > { %2127 = vmatmul.mubr.bf16.gmra.mxu0 %v7771_v45 }
  0xbd   : > { %2280 = vmatmul.mubr.bf16.gmra.mxu1 %v7777_v20  ;;  %2134 = vmatprep.mubr.bf16.mxu0 %v7640_v14 }
  0xbe   : > { %2287 = vmatprep.mubr.bf16.mxu1 %v7779_v21 }
  0xc4   : > { %2135 = vmatmul.mubr.bf16.gmra.mxu0 %v7779_v21 }
  0xc5   : > { %2288 = vmatmul.mubr.bf16.gmra.mxu1 %v7785_v30  ;;  %2336 = vmatprep.mubr.bf16.mxu0 %v7471_v5  ;;  %v6966_v5 = vld [vmem:[%s9317_s1 + $0x228] sm:$0xff]  }
  0xc6   : > { %2295 = vmatprep.mubr.bf16.mxu1 %v7787_v31 }
  0xcc   : > { %2337 = vmatmul.mubr.bf16.vlgmr.msra.gmra.mxu0 %v7423_v39  ;;  %v6968_v39 = vld [vmem:[%s9317_s1 + $0x218] sm:$0xff]  }
  0xcd   : > { %2296 = vmatmul.mubr.bf16.gmra.mxu1 %v7793_v48  ;;  %6763 = vmatpush3.bf16.msra.mxu0 %v7699_v59 }
  0xce   : > { %2497 = vmatprep.mubr.bf16.mxu1 %v7453_v57  ;;  %2344 = vmatprep.mubr.bf16.mxu0 %v7527_v25  ;;  %v6969_v25 = vld [vmem:[%s9317_s1 + $0x210] sm:$0xff]  }
  0xcf   : > { %6764 = vmatprep.subr.bf16.mxu0 %v6965_v15 }
  0xd1   : > { %6765 = vmatpush3.bf16.msra.mxu0 %v6965_v15 }
  0xd2   : > { %6766 = vmatprep.subr.bf16.mxu0 %v6966_v5 }
  0xd4   : > { %2345 = vmatmul.mubr.bf16.gmra.mxu0 %v7453_v57  ;;  %v6970_v57 = vld [vmem:[%s9317_s1 + $0x208] sm:$0xff]  }
  0xd5   : > { %2498 = vmatmul.mubr.bf16.vlgmr.msra.gmra.mxu1 %v7463_v63  ;;  %2352 = vmatprep.mubr.bf16.mxu0 %v7552_v35  ;;  %v6971_v63 = vld [vmem:[%s9317_s1 + $0x200] sm:$0xff]  }
  0xd6   : > { %2505 = vmatprep.mubr.bf16.mxu1 %v7473_v6  ;;  %6767 = vmatpush3.bf16.msra.mxu0 %v6966_v5 }
  0xd7   : > { %6768 = vmatprep.subr.bf16.mxu0 %v6967_v17 }
  0xda   : > { %6769 = vmatpush3.bf16.msra.mxu0 %v6967_v17 }
  0xdb   : > { %6770 = vmatprep.subr.bf16.mxu0 %v6968_v39 }
  0xdc   : > { %2353 = vmatmul.mubr.bf16.gmra.mxu0 %v7473_v6 }
  0xdd   : > { %2506 = vmatmul.mubr.bf16.gmra.mxu1 %v7478_v8  ;;  %2360 = vmatprep.mubr.bf16.mxu0 %v7595_v52 }
  0xde   : > { %2513 = vmatprep.mubr.bf16.mxu1 %v7531_v26  ;;  %6771 = vmatpush3.bf16.msra.mxu0 %v6968_v39 }
  0xdf   : > { %6772 = vmatprep.subr.bf16.mxu0 %v6969_v25 }
  0xe2   : > { %6773 = vmatpush3.bf16.msra.mxu0 %v6969_v25 }
  0xe3   : > { %6774 = vmatprep.subr.bf16.mxu0 %v6970_v57 }
  0xe4   : > { %2361 = vmatmul.mubr.bf16.gmra.mxu0 %v7531_v26 }
  0xe5   : > { %2514 = vmatmul.mubr.bf16.gmra.mxu1 %v7535_v27  ;;  %2368 = vmatprep.mubr.bf16.mxu0 %v7630_v4 }
  0xe6   : > { %2521 = vmatprep.mubr.bf16.mxu1 %v7556_v36  ;;  %6775 = vmatpush3.bf16.msra.mxu0 %v6970_v57 }
  0xe7   : > { %6776 = vmatprep.subr.bf16.mxu0 %v6971_v63 }
  0xea   : > { %6777 = vmatpush3.bf16.msra.mxu0 %v6971_v63 }
  0xec   : > { %2369 = vmatmul.mubr.bf16.gmra.mxu0 %v7556_v36 }
  0xed   : > { %2522 = vmatmul.mubr.bf16.gmra.mxu1 %v7561_v38  ;;  %2376 = vmatprep.mubr.bf16.mxu0 %v7664_v34 }
  0xee   : > { %2529 = vmatprep.mubr.bf16.mxu1 %v7599_v53 }
  0xf4   : > { %2377 = vmatmul.mubr.bf16.gmra.mxu0 %v7599_v53 }
  0xf5   : > { %2530 = vmatmul.mubr.bf16.gmra.mxu1 %v7607_v56  ;;  %2384 = vmatprep.mubr.bf16.mxu0 %v7701_v60  ;;  %v5834_v6 = vpop.f32.mrf.mxu0 }
  0xf6   : > { %2537 = vmatprep.mubr.bf16.mxu1 %v7634_v7 }
  0xf7   : > { %v5835_v8 = vpop.f32.mrf.mxu0 }
  0xf8   : > { %v5836_v26 = vadd.f32 %v5835_v8, %v5834_v6 }
  0xf9   : > { %v5837_v27 = vpop.f32.mrf.mxu0 }
  0xfb   : > { %v5838_v35 = vpop.f32.mrf.mxu0 }
  0xfc   : > { %2385 = vmatmul.mubr.bf16.gmra.mxu0 %v7634_v7  ;;  %v5839_v36 = vadd.f32 %v5838_v35, %v5837_v27 }
  0xfd   : > { %2538 = vmatmul.mubr.bf16.gmra.mxu1 %v7638_v13  ;;  %2392 = vmatprep.mubr.bf16.mxu0 %v7717_v3 }
  0xfe   : > { %2545 = vmatprep.mubr.bf16.mxu1 %v7668_v37 }
 0x104   : > { %2393 = vmatmul.mubr.bf16.gmra.mxu0 %v7668_v37 }
 0x105   : > { %2546 = vmatmul.mubr.bf16.gmra.mxu1 %v7673_v44  ;;  %2400 = vmatprep.mubr.bf16.mxu0 %v7729_v10 }
 0x106   : > { %2553 = vmatprep.mubr.bf16.mxu1 %v7705_v61 }
 0x10c   : > { %2401 = vmatmul.mubr.bf16.gmra.mxu0 %v7705_v61 }
 0x10d   : > { %2554 = vmatmul.mubr.bf16.gmra.mxu1 %v7707_v62  ;;  %2408 = vmatprep.mubr.bf16.mxu0 %v7741_v33 }
 0x10e   : > { %2561 = vmatprep.mubr.bf16.mxu1 %v7721_v11 }
 0x114   : > { %v5840_v38 = vpop.f32.mrf.mxu0  ;;  %2409 = vmatmul.mubr.bf16.gmra.mxu0 %v7721_v11 }
 0x115   : > { %v5946_v52 = vpop.f32.mrf.mxu1  ;;  %2562 = vmatmul.mubr.bf16.gmra.mxu1 %v7723_v12  ;;  %2416 = vmatprep.mubr.bf16.mxu0 %v7753_v49 }
 0x116   : > { %2569 = vmatprep.mubr.bf16.mxu1 %v7733_v23  ;;  %v5841_v53 = vpop.f32.mrf.mxu0 }
 0x117   : > { %v5947_v56 = vpop.f32.mrf.mxu1  ;;  %v5842_v4 = vadd.f32 %v5841_v53, %v5840_v38 }
 0x118   : > { %v5948_v7 = vadd.f32 %v5947_v56, %v5946_v52  ;;  %v5843_v13 = vpop.f32.mrf.mxu0 }
 0x119   : > { %v5949_v34 = vpop.f32.mrf.mxu1 }
 0x11a   : > { %v7857_v37 = vadd.f32 %v5948_v7, %v5836_v26  ;;  %v5844_v44 = vpop.f32.mrf.mxu0 }
 0x11b   : > { %v5950_v59 = vpop.f32.mrf.mxu1  ;;  %v5845_v60 = vadd.f32 %v5844_v44, %v5843_v13 }
 0x11c   : > { %v5951_v61 = vadd.f32 %v5950_v59, %v5949_v34  ;;  %v5846_v62 = vpop.f32.mrf.mxu0  ;;  %2417 = vmatmul.mubr.bf16.gmra.mxu0 %v7733_v23  ;;  %v747_v34 = vld [vmem:[#allocation2 + $0x182] sm:$0xff] }
 0x11d   : > { %v5952_v3 = vpop.f32.mrf.mxu1  ;;  %2570 = vmatmul.mubr.bf16.gmra.mxu1 %v7735_v24  ;;  %2424 = vmatprep.mubr.bf16.mxu0 %v7765_v1  ;;  %v6972_v1 = vld [vmem:[%s9320_s4 + $0x78] sm:$0xff]  }
 0x11e   : > { %v7862_v11 = vadd.f32 %v5951_v61, %v5839_v36  ;;  %2577 = vmatprep.mubr.bf16.mxu1 %v7745_v28  ;;  %v5847_v12 = vpop.f32.mrf.mxu0  ;;  %6290 = vmatprep.subr.bf16.mxu1 %v6972_v1 }
 0x11f   : > { %v5953_v10 = vpop.f32.mrf.mxu1  ;;  %v5848_v33 = vadd.f32 %v5847_v12, %v5846_v62  ;;  %6291 = vmatpush3.bf16.msra.mxu1 %v6973_v16  ;;  %v1395_v12 = vpack.c.bf16 %v7676_v46, %v7671_v43  ;;  %v876_v43 = vld [vmem:[#allocation2 + $0x199] sm:$0xff]  ;;  %v877_v46 = vld [vmem:[#allocation2 + $0x1a1] sm:$0xff] }
 0x120   : > { %v5954_v49 = vadd.f32 %v5953_v10, %v5952_v3  ;;  %v5849_v50 = vpop.f32.mrf.mxu0 }
 0x121   : > { %v5955_v51 = vpop.f32.mrf.mxu1 }
 0x122   : > { %v7865_v54 = vadd.f32 %v5954_v49, %v5842_v4  ;;  %v5850_v0 = vpop.f32.mrf.mxu0  ;;  %v6975_v4 = vld [vmem:[%s9320_s4 + $0x30] sm:$0xff]  }
 0x123   : > { %v5956_v2 = vpop.f32.mrf.mxu1  ;;  %v5851_v23 = vadd.f32 %v5850_v0, %v5849_v50 }
 0x124   : > { %v5957_v18 = vadd.f32 %v5956_v2, %v5955_v51  ;;  %v5852_v19 = vpop.f32.mrf.mxu0  ;;  %2425 = vmatmul.mubr.bf16.gmra.mxu0 %v7745_v28 }
 0x125   : > { %v5958_v24 = vpop.f32.mrf.mxu1  ;;  %2578 = vmatmul.mubr.bf16.gmra.mxu1 %v7747_v29  ;;  %2432 = vmatprep.mubr.bf16.mxu0 %v7777_v20 }
 0x126   : > { %v7876_v55 = vadd.f32 %v5957_v18, %v5845_v60  ;;  %2585 = vmatprep.mubr.bf16.mxu1 %v7757_v40  ;;  %v5853_v58 = vpop.f32.mrf.mxu0  ;;  %v911_v18 = vld [vmem:[#allocation2 + $0x3a] sm:$0xff] }
 0x127   : > { %v5959_v9 = vpop.f32.mrf.mxu1  ;;  %v5854_v28 = vadd.f32 %v5853_v58, %v5852_v19 }
 0x128   : > { %v5960_v22 = vadd.f32 %v5959_v9, %v5958_v24  ;;  %v5855_v29 = vpop.f32.mrf.mxu0 }
 0x129   : > { %v5961_v20 = vpop.f32.mrf.mxu1 }
 0x12a   : > { %v7879_v32 = vadd.f32 %v5960_v22, %v5848_v33  ;;  %v5856_v47 = vpop.f32.mrf.mxu0 }
 0x12b   : > { %v5962_v15 = vpop.f32.mrf.mxu1  ;;  %v5857_v5 = vadd.f32 %v5856_v47, %v5855_v29 }
 0x12c   : > { %v5963_v17 = vadd.f32 %v5962_v15, %v5961_v20  ;;  %v5858_v39 = vpop.f32.mrf.mxu0  ;;  %2433 = vmatmul.mubr.bf16.gmra.mxu0 %v7757_v40  ;;  %v912_v15 = vld [vmem:[#allocation2 + $0x4a] sm:$0xff] }
 0x12d   : > { %v5964_v25 = vpop.f32.mrf.mxu1  ;;  %2586 = vmatmul.mubr.bf16.gmra.mxu1 %v7759_v41  ;;  %2440 = vmatprep.mubr.bf16.mxu0 %v7785_v30  ;;  %v6974_v30 = vld [vmem:[%s9320_s4 + $0x70] sm:$0xff]  }
 0x12e   : > { %v7884_v57 = vadd.f32 %v5963_v17, %v5851_v23  ;;  %2593 = vmatprep.mubr.bf16.mxu1 %v7769_v42  ;;  %v5859_v63 = vpop.f32.mrf.mxu0  ;;  %6292 = vmatprep.subr.bf16.mxu1 %v6974_v30  ;;  %v910_v23 = vld [vmem:[#allocation2 + $0x32] sm:$0xff] }
 0x12f   : > { %v5965_v6 = vpop.f32.mrf.mxu1  ;;  %v5860_v8 = vadd.f32 %v5859_v63, %v5858_v39  ;;  %6293 = vmatpush3.bf16.msra.mxu1 %v6975_v4  ;;  %v1270_v9 = vpack.c.bf16 %v911_v18, %v910_v23  ;;  %v913_v17 = vld [vmem:[#allocation2 + $0x52] sm:$0xff]  ;;  %v6976_v39 = vld [vmem:[%s9320_s4 + $0x68] sm:$0xff]  }
 0x130   : > { %v5966_v26 = vadd.f32 %v5965_v6, %v5964_v25  ;;  %v5861_v27 = vpop.f32.mrf.mxu0  ;;  %v6977_v25 = vld [vmem:[%s9320_s4 + $0x28] sm:$0xff]   ;;  %6294 = vmatprep.subr.bf16.mxu1 %v6976_v39 }
 0x131   : > { %v5967_v35 = vpop.f32.mrf.mxu1 }
 0x132   : > { %v7887_v36 = vadd.f32 %v5966_v26, %v5854_v28  ;;  %v5862_v38 = vpop.f32.mrf.mxu0  ;;  %v915_v26 = vld [vmem:[#allocation2 + $0x6a] sm:$0xff] }
 0x133   : > { %v5968_v52 = vpop.f32.mrf.mxu1  ;;  %v5863_v40 = vadd.f32 %v5862_v38, %v5861_v27  ;;  %6295 = vmatpush3.bf16.msra.mxu1 %v6977_v25 }
 0x134   : > { %v5969_v53 = vadd.f32 %v5968_v52, %v5967_v35  ;;  %v5864_v56 = vpop.f32.mrf.mxu0  ;;  %2441 = vmatmul.mubr.bf16.gmra.mxu0 %v7769_v42  ;;  %v748_v42 = vld [vmem:[#allocation2 + $0x18a] sm:$0xff]  ;;  %v1279_v52 = vpack.c.bf16 %v913_v17, %v912_v15 }
 0x135   : > { %v5970_v41 = vpop.f32.mrf.mxu1  ;;  %2594 = vmatmul.mubr.bf16.gmra.mxu1 %v7771_v45  ;;  %2448 = vmatprep.mubr.bf16.mxu0 %v7793_v48  ;;  %v7901_v61 = vpack.c.bf16 %v748_v42, %v747_v34  ;;  %v923_v15 = vld [vmem:[#allocation2 + $0xca] sm:$0xff] }
 0x136   : > { %v7898_v7 = vadd.f32 %v5969_v53, %v5857_v5  ;;  %2601 = vmatprep.mubr.bf16.mxu1 %v7640_v14  ;;  %v5865_v13 = vpop.f32.mrf.mxu0  ;;  %v7044_v53 = vld [vmem:[#allocation2] sm:$0xff] }
 0x137   : > { %v5971_v44 = vpop.f32.mrf.mxu1  ;;  %v5866_v59 = vadd.f32 %v5865_v13, %v5864_v56  ;;  %v7923_v56 = vpack.c.bf16 %v7044_v53, %v7044_v53 }
 0x138   : > { %v5972_v45 = vadd.f32 %v5971_v44, %v5970_v41  ;;  %v5867_v48 = vpop.f32.mrf.mxu0 }
 0x139   : > { %v5973_v60 = vpop.f32.mrf.mxu1 }
 0x13a   : > { %v7903_v62 = vadd.f32 %v5972_v45, %v5860_v8  ;;  %v5868_v3 = vpop.f32.mrf.mxu0  ;;  %v914_v8 = vld [vmem:[#allocation2 + $0x62] sm:$0xff]  ;;  %v916_v45 = vld [vmem:[#allocation2 + $0x7a] sm:$0xff] }
 0x13b   : > { %v5974_v10 = vpop.f32.mrf.mxu1  ;;  %v5869_v33 = vadd.f32 %v5868_v3, %v5867_v48  ;;  %v1288_v41 = vpack.c.bf16 %v915_v26, %v914_v8  ;;  %v917_v48 = vld [vmem:[#allocation2 + $0x82] sm:$0xff] }
 0x13c   : > { %v5975_v49 = vadd.f32 %v5974_v10, %v5973_v60  ;;  %v5870_v50 = vpop.f32.mrf.mxu0  ;;  %2449 = vmatmul.mubr.bf16.gmra.mxu0 %v7640_v14  ;;  %v919_v10 = vld [vmem:[#allocation2 + $0x9a] sm:$0xff] }
 0x13d   : > { %v5976_v51 = vpop.f32.mrf.mxu1  ;;  %2602 = vmatmul.mubr.bf16.gmra.mxu1 %v7779_v21  ;;  %2456 = vmatprep.mubr.bf16.mxu0 %v7901_v61  ;;  %v1404_v21 = vpack.c.bf16 %v877_v46, %v876_v43 }
 0x13e   : > { %v7910_v0 = vadd.f32 %v5975_v49, %v5863_v40  ;;  %2609 = vmatprep.mubr.bf16.mxu1 %v1395_v12  ;;  %v5871_v2 = vpop.f32.mrf.mxu0 }
 0x13f   : > { %v5977_v19 = vpop.f32.mrf.mxu1  ;;  %v5872_v24 = vadd.f32 %v5871_v2, %v5870_v50  ;;  %v1297_v2 = vpack.c.bf16 %v917_v48, %v916_v45 }
 0x140   : > { %v5978_v1 = vadd.f32 %v5977_v19, %v5976_v51  ;;  %v5873_v16 = vpop.f32.mrf.mxu0 }
 0x141   : > { %v5979_v58 = vpop.f32.mrf.mxu1 }
 0x142   : > { %v7912_v14 = vadd.f32 %v5978_v1, %v5866_v59  ;;  %v5874_v28 = vpop.f32.mrf.mxu0 }
 0x143   : > { %v5980_v22 = vpop.f32.mrf.mxu1  ;;  %v5875_v29 = vadd.f32 %v5874_v28, %v5873_v16  ;;  %v921_v28 = vld [vmem:[#allocation2 + $0xb2] sm:$0xff] }
 0x144   : > { %v5981_v20 = vadd.f32 %v5980_v22, %v5979_v58  ;;  %v5876_v47 = vpop.f32.mrf.mxu0  ;;  %2457 = vmatmul.mubr.bf16.gmra.mxu0 %v1395_v12  ;;  %v918_v12 = vld [vmem:[#allocation2 + $0x92] sm:$0xff]  ;;  %v920_v58 = vld [vmem:[#allocation2 + $0xaa] sm:$0xff]  ;;  %v6979_v22 = vld [vmem:[%s9320_s4 + $0x20] sm:$0xff]  }
 0x145   : > { %v5982_v5 = vpop.f32.mrf.mxu1  ;;  %2610 = vmatmul.mubr.bf16.gmra.mxu1 %v7787_v31  ;;  %6778 = vmatprep.mubr.bf16.mxu0 %v1270_v9  ;;  %v1306_v18 = vpack.c.bf16 %v919_v10, %v918_v12 }
 0x146   : > { %v7921_v63 = vadd.f32 %v5981_v20, %v5869_v33  ;;  %2617 = vmatprep.mubr.bf16.mxu1 %v1404_v21  ;;  %v5877_v6 = vpop.f32.mrf.mxu0  ;;  %v6978_v21 = vld [vmem:[%s9320_s4 + $0x60] sm:$0xff]  }
 0x147   : > { %v5983_v27 = vpop.f32.mrf.mxu1  ;;  %v5878_v35 = vadd.f32 %v5877_v6, %v5876_v47  ;;  %v922_v47 = vld [vmem:[#allocation2 + $0xc2] sm:$0xff]  ;;  %6296 = vmatprep.subr.bf16.mxu1 %v6978_v21  ;;  %v1315_v6 = vpack.c.bf16 %v921_v28, %v920_v58  ;;  %v931_v21 = vld [vmem:[#allocation2 + $0x12a] sm:$0xff] }
 0x148   : > { %v5984_v31 = vadd.f32 %v5983_v27, %v5982_v5  ;;  %v5879_v38 = vpop.f32.mrf.mxu0  ;;  %6297 = vmatpush3.bf16.msra.mxu1 %v6979_v22  ;;  %v1324_v26 = vpack.c.bf16 %v923_v15, %v922_v47  ;;  %v930_v28 = vld [vmem:[#allocation2 + $0x122] sm:$0xff] }
 0x149   : > { %v5985_v40 = vpop.f32.mrf.mxu1 }
 0x14a   : > { %v7925_v30 = vadd.f32 %v5984_v31, %v5872_v24  ;;  %v5880_v4 = vpop.f32.mrf.mxu0 }
 0x14b   : > { %v5986_v13 = vpop.f32.mrf.mxu1  ;;  %v5881_v34 = vadd.f32 %v5880_v4, %v5879_v38  ;;  %v925_v4 = vld [vmem:[#allocation2 + $0xe2] sm:$0xff] }
 0x14c   : > { %v5987_v42 = vadd.f32 %v5986_v13, %v5985_v40  ;;  %v5882_v44 = vpop.f32.mrf.mxu0  ;;  %6779 = vmatmul.mubr.bf16.vlgmr.msra.gmra.mxu0 %v1279_v52 }
 0x14d   : > { %v5988_v59 = vpop.f32.mrf.mxu1  ;;  %2618 = vmatmul.mubr.bf16.gmra.mxu1 %v7923_v56  ;;  %6782 = vmatprep.mubr.bf16.mxu0 %v1288_v41  ;;  %v924_v41 = vld [vmem:[#allocation2 + $0xda] sm:$0xff] }
 0x14e   : > { %v7928_v60 = vadd.f32 %v5987_v42, %v5875_v29  ;;  %v5883_v3 = vpop.f32.mrf.mxu0  ;;  %v926_v42 = vld [vmem:[#allocation2 + $0xf2] sm:$0xff]  ;;  %v1333_v12 = vpack.c.bf16 %v925_v4, %v924_v41 }
 0x14f   : > { %v5989_v33 = vpop.f32.mrf.mxu1  ;;  %v5884_v49 = vadd.f32 %v5883_v3, %v5882_v44  ;;  %v927_v44 = vld [vmem:[#allocation2 + $0xfa] sm:$0xff]  ;;  %v934_v4 = vld [vmem:[#allocation2 + $0x152] sm:$0xff] }
 0x150   : > { %v5990_v50 = vadd.f32 %v5989_v33, %v5988_v59  ;;  %v5885_v51 = vpop.f32.mrf.mxu0  ;;  %v1342_v33 = vpack.c.bf16 %v927_v44, %v926_v42 }
 0x151   : > { %v5991_v23 = vpop.f32.mrf.mxu1 }
 0x152   : > { %v7930_v19 = vadd.f32 %v5990_v50, %v5878_v35  ;;  %v5886_v24 = vpop.f32.mrf.mxu0 }
 0x153   : > { %v5992_v43 = vpop.f32.mrf.mxu1  ;;  %v5887_v46 = vadd.f32 %v5886_v24, %v5885_v51  ;;  %v928_v24 = vld [vmem:[#allocation2 + $0x10a] sm:$0xff] }
 0x154   : > { %v5993_v1 = vadd.f32 %v5992_v43, %v5991_v23  ;;  %v5888_v16 = vpop.f32.mrf.mxu0  ;;  %6783 = vmatmul.mubr.bf16.gmra.mxu0 %v1297_v2 }
 0x155   : > { %v5994_v9 = vpop.f32.mrf.mxu1  ;;  %6786 = vmatprep.mubr.bf16.mxu0 %v1306_v18 }
 0x156   : > { %v7938_v29 = vadd.f32 %v5993_v1, %v5881_v34  ;;  %v5889_v20 = vpop.f32.mrf.mxu0  ;;  %v6980_v1 = vld [vmem:[%s9320_s4 + $0x58] sm:$0xff]  }
 0x157   : > { %v5995_v5 = vpop.f32.mrf.mxu1  ;;  %v5890_v17 = vadd.f32 %v5889_v20, %v5888_v16  ;;  %v6981_v16 = vld [vmem:[%s9320_s4 + $0x18] sm:$0xff]   ;;  %6298 = vmatprep.subr.bf16.mxu1 %v6980_v1 }
 0x158   : > { %v5996_v39 = vadd.f32 %v5995_v5, %v5994_v9  ;;  %v5891_v25 = vpop.f32.mrf.mxu0  ;;  %6299 = vmatpush3.bf16.msra.mxu1 %v6981_v16 }
 0x159   : > { %v5997_v8 = vpop.f32.mrf.mxu1 }
 0x15a   : > { %v7940_v27 = vadd.f32 %v5996_v39, %v5884_v49  ;;  %v5892_v35 = vpop.f32.mrf.mxu0  ;;  %v1360_v39 = vpack.c.bf16 %v931_v21, %v930_v28 }
 0x15b   : > { %v5998_v31 = vpop.f32.mrf.mxu1  ;;  %v5893_v38 = vadd.f32 %v5892_v35, %v5891_v25 }
 0x15c   : > { %v5999_v52 = vadd.f32 %v5998_v31, %v5997_v8  ;;  %v5894_v40 = vpop.f32.mrf.mxu0  ;;  %6787 = vmatmul.mubr.bf16.gmra.mxu0 %v1315_v6 }
 0x15d   : > { %v6000_v53 = vpop.f32.mrf.mxu1  ;;  %6790 = vmatprep.mubr.bf16.mxu0 %v1324_v26 }
 0x15e   : > { %v7942_v13 = vadd.f32 %v5999_v52, %v5887_v46  ;;  %v5895_v34 = vpop.f32.mrf.mxu0  ;;  %v929_v46 = vld [vmem:[#allocation2 + $0x112] sm:$0xff]  ;;  %v932_v52 = vld [vmem:[#allocation2 + $0x13a] sm:$0xff] }
 0x15f   : > { %v6001_v59 = vpop.f32.mrf.mxu1  ;;  %v5896_v45 = vadd.f32 %v5895_v34, %v5894_v40  ;;  %v1351_v5 = vpack.c.bf16 %v929_v46, %v928_v24  ;;  %v933_v40 = vld [vmem:[#allocation2 + $0x142] sm:$0xff]  ;;  %v935_v34 = vld [vmem:[#allocation2 + $0x15a] sm:$0xff]  ;;  %v937_v24 = vld [vmem:[#allocation2 + $0x172] sm:$0xff] }
 0x160   : > { %v6002_v48 = vadd.f32 %v6001_v59, %v6000_v53  ;;  %v5897_v3 = vpop.f32.mrf.mxu0  ;;  %v6983_v46 = vld [vmem:[%s9320_s4 + $0x10] sm:$0xff]  }
 0x161   : > { %v6003_v10 = vpop.f32.mrf.mxu1 }
 0x162   : > { %v7944_v49 = vadd.f32 %v6002_v48, %v5890_v17  ;;  %v5898_v50 = vpop.f32.mrf.mxu0  ;;  %v1369_v48 = vpack.c.bf16 %v933_v40, %v932_v52 }
 0x163   : > { %v6004_v51 = vpop.f32.mrf.mxu1  ;;  %v5899_v2 = vadd.f32 %v5898_v50, %v5897_v3 }
 0x164   : > { %v6005_v23 = vadd.f32 %v6004_v51, %v6003_v10  ;;  %v5900_v18 = vpop.f32.mrf.mxu0  ;;  %6791 = vmatmul.mubr.bf16.gmra.mxu0 %v1333_v12  ;;  %v1378_v12 = vpack.c.bf16 %v935_v34, %v934_v4 }
 0x165   : > { %v6006_v43 = vpop.f32.mrf.mxu1  ;;  %6794 = vmatprep.mubr.bf16.mxu0 %v1342_v33 }
 0x166   : > { %v7952_v58 = vadd.f32 %v6005_v23, %v5893_v38  ;;  %v5901_v9 = vpop.f32.mrf.mxu0 }
 0x167   : > { %v6007_v22 = vpop.f32.mrf.mxu1  ;;  %v5902_v20 = vadd.f32 %v5901_v9, %v5900_v18  ;;  %v936_v18 = vld [vmem:[#allocation2 + $0x16a] sm:$0xff] }
 0x168   : > { %v6008_v47 = vadd.f32 %v6007_v22, %v6006_v43  ;;  %v5903_v15 = vpop.f32.mrf.mxu0  ;;  %v6982_v43 = vld [vmem:[%s9320_s4 + $0x50] sm:$0xff]  }
 0x169   : > { %v6009_v17 = vpop.f32.mrf.mxu1  ;;  %6300 = vmatprep.subr.bf16.mxu1 %v6982_v43 }
 0x16a   : > { %v7954_v25 = vadd.f32 %v6008_v47, %v5896_v45  ;;  %v5904_v6 = vpop.f32.mrf.mxu0  ;;  %6301 = vmatpush3.bf16.msra.mxu1 %v6983_v46 }
 0x16b   : > { %v6010_v8 = vpop.f32.mrf.mxu1  ;;  %v5905_v26 = vadd.f32 %v5904_v6, %v5903_v15 }
 0x16c   : > { %v6011_v35 = vadd.f32 %v6010_v8, %v6009_v17  ;;  %v5906_v31 = vpop.f32.mrf.mxu0  ;;  %6795 = vmatmul.mubr.bf16.gmra.mxu0 %v1351_v5 }
 0x16d   : > { %v6012_v38 = vpop.f32.mrf.mxu1  ;;  %6798 = vmatprep.mubr.bf16.mxu0 %v1360_v39 }
 0x16e   : > { %v7956_v53 = vadd.f32 %v6011_v35, %v5899_v2  ;;  %v5907_v41 = vpop.f32.mrf.mxu0 }
 0x16f   : > { %v6013_v42 = vpop.f32.mrf.mxu1  ;;  %v5908_v44 = vadd.f32 %v5907_v41, %v5906_v31  ;;  %v941_v31 = vld [vmem:[#allocation2 + $0x1a2] sm:$0xff] }
 0x170   : > { %v6014_v59 = vadd.f32 %v6013_v42, %v6012_v38  ;;  %v5909_v45 = vpop.f32.mrf.mxu0 }
 0x171   : > { %v6015_v3 = vpop.f32.mrf.mxu1 }
 0x172   : > { %v7958_v10 = vadd.f32 %v6014_v59, %v5902_v20  ;;  %v5910_v33 = vpop.f32.mrf.mxu0  ;;  %v1387_v20 = vpack.c.bf16 %v937_v24, %v936_v18 }
 0x173   : > { %v6016_v50 = vpop.f32.mrf.mxu1  ;;  %v5911_v5 = vadd.f32 %v5910_v33, %v5909_v45 }
 0x174   : > { %v6017_v51 = vadd.f32 %v6016_v50, %v6015_v3  ;;  %v5912_v23 = vpop.f32.mrf.mxu0  ;;  %6799 = vmatmul.mubr.bf16.gmra.mxu0 %v1369_v48  ;;  %v6984_v50 = vld [vmem:[%s9320_s4 + $0x48] sm:$0xff]  }
 0x175   : > { %v6018_v2 = vpop.f32.mrf.mxu1  ;;  %6802 = vmatprep.mubr.bf16.mxu0 %v1378_v12  ;;  %6302 = vmatprep.subr.bf16.mxu1 %v6984_v50  ;;  %v6991_v50 = vld [vmem:[%s9320_s4 + $0xe8] sm:$0xff]  }
 0x176   : > { %v7966_v1 = vadd.f32 %v6017_v51, %v5905_v26  ;;  %v5913_v16 = vpop.f32.mrf.mxu0  ;;  %v940_v26 = vld [vmem:[#allocation2 + $0x19a] sm:$0xff]  ;;  %v6985_v51 = vld [vmem:[%s9320_s4 + $0x8] sm:$0xff]  }
 0x177   : > { %v6019_v9 = vpop.f32.mrf.mxu1  ;;  %v5914_v28 = vadd.f32 %v5913_v16, %v5912_v23  ;;  %v1405_v42 = vpack.c.bf16 %v941_v31, %v940_v26  ;;  %6303 = vmatpush3.bf16.msra.mxu1 %v6985_v51 }
 0x178   : > { %v6020_v21 = vadd.f32 %v6019_v9, %v6018_v2  ;;  %v5915_v22 = vpop.f32.mrf.mxu0 }
 0x179   : > { %v6021_v47 = vpop.f32.mrf.mxu1 }
 0x17a   : > { %v7968_v15 = vadd.f32 %v6020_v21, %v5908_v44  ;;  %v5916_v17 = vpop.f32.mrf.mxu0 }
 0x17b   : > { %v6022_v39 = vpop.f32.mrf.mxu1  ;;  %v5917_v45 = vadd.f32 %v5916_v17, %v5915_v22  ;;  %v6986_v17 = vld [vmem:[%s9320_s4 + $0xf8] sm:$0xff]  }
 0x17c   : > { %v6023_v6 = vadd.f32 %v6022_v39, %v6021_v47  ;;  %v5918_v8 = vpop.f32.mrf.mxu0  ;;  %6803 = vmatmul.mubr.bf16.gmra.mxu0 %v1387_v20  ;;  %v6987_v39 = vld [vmem:[%s9320_s4 + $0xb8] sm:$0xff]   ;;  %6402 = vmatprep.subr.bf16.mxu0 %v6986_v17  ;;  %v6995_v17 = vld [vmem:[%s9320_s4 + $0xa0] sm:$0xff]  }
 0x17d   : > { %v6024_v35 = vpop.f32.mrf.mxu1  ;;  %6806 = vmatprep.mubr.bf16.mxu0 %v7901_v61  ;;  %6403 = vmatpush3.bf16.msra.mxu0 %v6987_v39 }
 0x17e   : > { %v7971_v38 = vadd.f32 %v6023_v6, %v5911_v5  ;;  %v5919_v52 = vpop.f32.mrf.mxu0 }
 0x17f   : > { %v6025_v40 = vpop.f32.mrf.mxu1  ;;  %v5920_v41 = vadd.f32 %v5919_v52, %v5918_v8 }
 0x180   : > { %v6026_v4 = vadd.f32 %v6025_v40, %v6024_v35  ;;  %v5921_v34 = vpop.f32.mrf.mxu0 }
 0x181   : > { %v6027_v44 = vpop.f32.mrf.mxu1 }
 0x182   : > { %v7973_v59 = vadd.f32 %v6026_v4, %v5914_v28  ;;  %v5922_v48 = vpop.f32.mrf.mxu0  ;;  %v6988_v4 = vld [vmem:[%s9320_s4 + $0xf0] sm:$0xff]  }
 0x183   : > { %v6028_v3 = vpop.f32.mrf.mxu1  ;;  %v5923_v28 = vadd.f32 %v5922_v48, %v5921_v34  ;;  %v6989_v34 = vld [vmem:[%s9320_s4 + $0xb0] sm:$0xff]   ;;  %6404 = vmatprep.subr.bf16.mxu0 %v6988_v4 }
 0x184   : > { %v6029_v12 = vadd.f32 %v6028_v3, %v6027_v44  ;;  %v5924_v33 = vpop.f32.mrf.mxu0  ;;  %6807 = vmatmul.mubr.bf16.gmra.mxu0 %v1405_v42 }
 0x185   : > { %v6030_v61 = vpop.f32.mrf.mxu1  ;;  %6405 = vmatpush3.bf16.msra.mxu0 %v6989_v34 }
 0x186   : > { %v7981_v23 = vadd.f32 %v6029_v12, %v5917_v45  ;;  %v5925_v18 = vpop.f32.mrf.mxu0  ;;  %6406 = vmatprep.subr.bf16.mxu0 %v6991_v50  ;;  %v6999_v50 = vld [vmem:[%s9320_s4 + $0x90] sm:$0xff]  }
 0x187   : > { %v6031_v2 = vpop.f32.mrf.mxu1  ;;  %v5926_v24 = vadd.f32 %v5925_v18, %v5924_v33 }
 0x188   : > { %v6032_v43 = vadd.f32 %v6031_v2, %v6030_v61  ;;  %v5927_v46 = vpop.f32.mrf.mxu0  ;;  %v6993_v2 = vld [vmem:[%s9320_s4 + $0xa8] sm:$0xff]  }
 0x189   : > { %v6033_v16 = vpop.f32.mrf.mxu1  ;;  %6407 = vmatpush3.bf16.msra.mxu0 %v6993_v2 }
 0x18a   : > { %v7983_v9 = vadd.f32 %v6032_v43, %v5920_v41  ;;  %v5928_v21 = vpop.f32.mrf.mxu0 }
 0x18b   : > { %v6034_v22 = vpop.f32.mrf.mxu1  ;;  %v5929_v44 = vadd.f32 %v5928_v21, %v5927_v46  ;;  %v6990_v46 = vld [vmem:[%s9320_s4 + $0x40] sm:$0xff]  }
 0x18c   : > { %v6035_v20 = vadd.f32 %v6034_v22, %v6033_v16  ;;  %v6058_v47 = vpop.f32.mrf.mxu0  ;;  %6304 = vmatprep.subr.bf16.mxu1 %v6990_v46 }
 0x18d   : > { %v6036_v5 = vpop.f32.mrf.mxu1 }
 0x18e   : > { %v7991_v6 = vadd.f32 %v6035_v20, %v5923_v28  ;;  %v6059_v8 = vpop.f32.mrf.mxu0  ;;  %v6994_v20 = vld [vmem:[%s9320_s4 + $0xe0] sm:$0xff]  }
 0x18f   : > { %v6037_v35 = vpop.f32.mrf.mxu1  ;;  %v6060_v26 = vadd.f32 %v6059_v8, %v6058_v47  ;;  %6408 = vmatprep.subr.bf16.mxu0 %v6994_v20 }
 0x190   : > { %v6038_v31 = vadd.f32 %v6037_v35, %v6036_v5  ;;  %v6061_v52 = vpop.f32.mrf.mxu0  ;;  %6409 = vmatpush3.bf16.msra.mxu0 %v6995_v17 }
 0x191   : > { %v6039_v40 = vpop.f32.mrf.mxu1  ;;  %v2339_v41 = vadd.f32 %v6060_v26, %v7857_v37 }
 0x192   : > { %v8000_v42 = vadd.f32 %v6038_v31, %v5926_v24  ;;  %v6062_v45 = vpop.f32.mrf.mxu0  ;;  %v3049_v31 = vld [vmem:[#allocation4 + $0x9] sm:$0xff] }
 0x193   : > { %v6040_v48 = vpop.f32.mrf.mxu1  ;;  %v6063_v3 = vadd.f32 %v6062_v45, %v6061_v52  ;;  %v6997_v45 = vld [vmem:[%s9320_s4 + $0x98] sm:$0xff]  }
 0x194   : > { %9326 = vst [vmem:[#allocation9_spill] sm:$0xff] %v8000_v42  ;;  %v6041_v12 = vadd.f32 %v6040_v48, %v6039_v40  ;;  %v6064_v33 = vpop.f32.mrf.mxu0 }
 0x195   : > { %v6170_v61 = vpop.f32.mrf.mxu1  ;;  %v2342_v37 = vadd.f32 %v6063_v3, %v7862_v11  ;;  %v6992_v11 = vld [vmem:[%s9320_s4] sm:$0xff]  }
 0x196   : > { %v8006_v51 = vadd.f32 %v6041_v12, %v5929_v44  ;;  %v6065_v18 = vpop.f32.mrf.mxu0  ;;  %6305 = vmatpush3.bf16.msra.mxu1 %v6992_v11  ;;  %v7002_v11 = vld [vmem:[%s9320_s4 + $0x88] sm:$0xff]  }
 0x197   : > { %v6171_v24 = vpop.f32.mrf.mxu1  ;;  %v6066_v43 = vadd.f32 %v6065_v18, %v6064_v33 }
 0x198   : > { %9327 = vst [vmem:[#allocation10_spill] sm:$0xff] %v8006_v51  ;;  %v6172_v16 = vadd.f32 %v6171_v24, %v6170_v61  ;;  %v6067_v28 = vpop.f32.mrf.mxu0  ;;  %v6998_v61 = vld [vmem:[%s9320_s4 + $0xd0] sm:$0xff]  }
 0x199   : > { %v6173_v21 = vpop.f32.mrf.mxu1  ;;  %v8018_v22 = vadd.f32 %v6066_v43, %v7865_v54  ;;  %v3048_v54 = vld [vmem:[#allocation4 + $0x1] sm:$0xff]  ;;  %v7000_v43 = vld [vmem:[%s9320_s4 + $0xc8] sm:$0xff]  }
 0x19a   : > { %v6068_v47 = vpop.f32.mrf.mxu0  ;;  %v8023_v5 = vadd.f32 %v6172_v16, %v2339_v41  ;;  %v6996_v41 = vld [vmem:[%s9320_s4 + $0xd8] sm:$0xff]   ;;  %v3850_v4 = vpack.c.bf16 %v3049_v31, %v3048_v54 }
 0x19b   : > { %v6174_v39 = vpop.f32.mrf.mxu1  ;;  %v6069_v8 = vadd.f32 %v6068_v47, %v6067_v28  ;;  %6410 = vmatprep.subr.bf16.mxu0 %v6996_v41 }
 0x19c   : > { %v6175_v35 = vadd.f32 %v6174_v39, %v6173_v21  ;;  %v6070_v26 = vpop.f32.mrf.mxu0  ;;  %4601 = vmatprep.mubr.bf16.mxu1 %v3850_v4  ;;  %6411 = vmatpush3.bf16.msra.mxu0 %v6997_v45  ;;  %v7001_v21 = vld [vmem:[%s9320_s4 + $0x178] sm:$0xff]   ;;  %v7004_v39 = vld [vmem:[%s9320_s4 + $0xc0] sm:$0xff]  }
 0x19d   : > { %v8028_v52 = vpop.f32.mrf.mxu1  ;;  %v8031_v40 = vadd.f32 %v6069_v8, %v7876_v55  ;;  %4602 = vmatmul.mubr.bf16.vlgmr.msra.gmra.mxu1 %v7923_v56  ;;  %6412 = vmatprep.subr.bf16.mxu0 %v6998_v61 }
 0x19e   : > { %v6071_v34 = vpop.f32.mrf.mxu0  ;;  %v8036_v44 = vadd.f32 %v6175_v35, %v2342_v37  ;;  %6514 = vmatprep.subr.bf16.mxu1 %v7001_v21  ;;  %v7005_v35 = vld [vmem:[%s9320_s4 + $0x80] sm:$0xff]   ;;  %v7006_v21 = vld [vmem:[%s9320_s4 + $0x170] sm:$0xff]  }
 0x19f   : > { %v8041_v48 = vpop.f32.mrf.mxu1  ;;  %v6072_v3 = vadd.f32 %v6071_v34, %v6070_v26 }
 0x1a0   : > { %v6073_v12 = vpop.f32.mrf.mxu0  ;;  %6413 = vmatpush3.bf16.msra.mxu0 %v6999_v50 }
 0x1a1   : > { %v8044_v55 = vpop.f32.mrf.mxu1  ;;  %v8047_v33 = vadd.f32 %v6072_v3, %v7879_v32  ;;  %6414 = vmatprep.subr.bf16.mxu0 %v7000_v43 }
 0x1a2   : > { %v6074_v37 = vpop.f32.mrf.mxu0 }
 0x1a3   : > { %v8055_v18 = vpop.f32.mrf.mxu1  ;;  %v6075_v2 = vadd.f32 %v6074_v37, %v6073_v12 }
 0x1a4   : > { %v6076_v24 = vpop.f32.mrf.mxu0  ;;  %6415 = vmatpush3.bf16.msra.mxu0 %v7002_v11 }
 0x1a5   : > { %v8057_v56 = vpop.f32.mrf.mxu1  ;;  %v8060_v32 = vadd.f32 %v6075_v2, %v7884_v57  ;;  %v7003_v57 = vld [vmem:[%s9320_s4 + $0x138] sm:$0xff]   ;;  %6416 = vmatprep.subr.bf16.mxu0 %v7004_v39 }
 0x1a6   : > { %v6077_v46 = vpop.f32.mrf.mxu0  ;;  %6515 = vmatpush3.bf16.msra.mxu1 %v7003_v57 }
 0x1a7   : > { %v8068_v16 = vpop.f32.mrf.mxu1  ;;  %v6078_v28 = vadd.f32 %v6077_v46, %v6076_v24  ;;  %6516 = vmatprep.subr.bf16.mxu1 %v7006_v21 }
 0x1a8   : > { %v6079_v20 = vpop.f32.mrf.mxu0  ;;  %6417 = vmatpush3.bf16.msra.mxu0 %v7005_v35 }
 0x1a9   : > { %v8076_v47 = vpop.f32.mrf.mxu1  ;;  %v8079_v17 = vadd.f32 %v6078_v28, %v7887_v36 }
 0x1aa   : > { %v6080_v8 = vpop.f32.mrf.mxu0 }
 0x1ab   : > { %v8087_v26 = vpop.f32.mrf.mxu1  ;;  %v6081_v54 = vadd.f32 %v6080_v8, %v6079_v20 }
 0x1ac   : > { %v6082_v31 = vpop.f32.mrf.mxu0 }
 0x1ad   : > { %v8089_v41 = vpop.f32.mrf.mxu1  ;;  %v8092_v36 = vadd.f32 %v6081_v54, %v7898_v7 }
 0x1ae   : > { %v6083_v4 = vpop.f32.mrf.mxu0 }
 0x1af   : > { %v8094_v34 = vpop.f32.mrf.mxu1  ;;  %v6084_v45 = vadd.f32 %v6083_v4, %v6082_v31 }
 0x1b0   : > { %v6085_v3 = vpop.f32.mrf.mxu0 }
 0x1b1   : > { %v8096_v12 = vpop.f32.mrf.mxu1  ;;  %v8099_v61 = vadd.f32 %v6084_v45, %v7903_v62  ;;  %v7007_v62 = vld [vmem:[%s9320_s4 + $0x130] sm:$0xff]  }
 0x1b2   : > { %v6086_v37 = vpop.f32.mrf.mxu0  ;;  %6517 = vmatpush3.bf16.msra.mxu1 %v7007_v62 }
 0x1b3   : > { %v8101_v50 = vpop.f32.mrf.mxu1  ;;  %v6087_v2 = vadd.f32 %v6086_v37, %v6085_v3 }
 0x1b4   : > { %v6088_v24 = vpop.f32.mrf.mxu0 }
 0x1b5   : > { %v8103_v43 = vpop.f32.mrf.mxu1  ;;  %v8106_v7 = vadd.f32 %v6087_v2, %v7910_v0 }
 0x1b6   : > { %v6089_v46 = vpop.f32.mrf.mxu0 }
 0x1b7   : > { %9328 = vst [vmem:[#allocation11_spill] sm:$0xff] %v8106_v7  ;;  %v8108_v11 = vpop.f32.mrf.mxu1  ;;  %v6090_v28 = vadd.f32 %v6089_v46, %v6088_v24 }
 0x1b8   : > { %v6091_v57 = vpop.f32.mrf.mxu0 }
 0x1b9   : > { %v8116_v20 = vpop.f32.mrf.mxu1  ;;  %v8119_v39 = vadd.f32 %v6090_v28, %v7912_v14 }
 0x1ba   : > { %v6092_v0 = vpop.f32.mrf.mxu0 }
 0x1bb   : > { %v8121_v8 = vpop.f32.mrf.mxu1  ;;  %v6093_v35 = vadd.f32 %v6092_v0, %v6091_v57 }
 0x1bc   : > { %v6094_v54 = vpop.f32.mrf.mxu0 }
 0x1bd   : > { %v8123_v31 = vpop.f32.mrf.mxu1  ;;  %v8126_v4 = vadd.f32 %v6093_v35, %v7921_v63 }
 0x1be   : > { %v6095_v45 = vpop.f32.mrf.mxu0 }
 0x1bf   : > { %v8128_v3 = vpop.f32.mrf.mxu1  ;;  %v6096_v37 = vadd.f32 %v6095_v45, %v6094_v54  ;;  %v7008_v45 = vld [vmem:[%s9320_s4 + $0x168] sm:$0xff]  }
 0x1c0   : > { %v6097_v2 = vpop.f32.mrf.mxu0  ;;  %6518 = vmatprep.subr.bf16.mxu1 %v7008_v45 }
 0x1c1   : > { %v8130_v24 = vpop.f32.mrf.mxu1  ;;  %v8133_v14 = vadd.f32 %v6096_v37, %v7925_v30  ;;  %v7009_v30 = vld [vmem:[%s9320_s4 + $0x128] sm:$0xff]  }
 0x1c2   : > { %v6098_v46 = vpop.f32.mrf.mxu0  ;;  %6519 = vmatpush3.bf16.msra.mxu1 %v7009_v30 }
 0x1c3   : > { %9329 = vst [vmem:[#allocation12_spill] sm:$0xff] %v8133_v14  ;;  %v8135_v28 = vpop.f32.mrf.mxu1  ;;  %v6099_v21 = vadd.f32 %v6098_v46, %v6097_v2 }
 0x1c4   : > { %v6100_v62 = vpop.f32.mrf.mxu0 }
 0x1c5   : > { %v8137_v57 = vpop.f32.mrf.mxu1  ;;  %v8140_v63 = vadd.f32 %v6099_v21, %v7928_v60 }
 0x1c6   : > { %v6101_v0 = vpop.f32.mrf.mxu0 }
 0x1c7   : > { %9330 = vst [vmem:[#allocation13_spill] sm:$0xff] %v8140_v63  ;;  %v8142_v35 = vpop.f32.mrf.mxu1  ;;  %v6102_v54 = vadd.f32 %v6101_v0, %v6100_v62 }
 0x1c8   : > { %9331 = vst [vmem:[#allocation14_spill] sm:$0xff] %v8142_v35  ;;  %v6103_v37 = vpop.f32.mrf.mxu0 }
 0x1c9   : > { %v8150_v2 = vpop.f32.mrf.mxu1  ;;  %v8153_v46 = vadd.f32 %v6102_v54, %v7930_v19 }
 0x1ca   : > { %9332 = vst [vmem:[#allocation15_spill] sm:$0xff] %v8150_v2  ;;  %v6104_v60 = vpop.f32.mrf.mxu0 }
 0x1cb   : > { %v8155_v21 = vpop.f32.mrf.mxu1  ;;  %v6105_v62 = vadd.f32 %v6104_v60, %v6103_v37  ;;  %v7010_v37 = vld [vmem:[%s9320_s4 + $0x160] sm:$0xff]  }
 0x1cc   : > { %v6106_v0 = vpop.f32.mrf.mxu0  ;;  %6520 = vmatprep.subr.bf16.mxu1 %v7010_v37 }
 0x1cd   : > { %v8157_v51 = vpop.f32.mrf.mxu1  ;;  %v8160_v42 = vadd.f32 %v6105_v62, %v7938_v29  ;;  %v7011_v29 = vld [vmem:[%s9320_s4 + $0x120] sm:$0xff]  }
 0x1ce   : > { %v6107_v63 = vpop.f32.mrf.mxu0  ;;  %6521 = vmatpush3.bf16.msra.mxu1 %v7011_v29 }
 0x1cf   : > { %9333 = vst [vmem:[#allocation16_spill] sm:$0xff] %v8160_v42  ;;  %v8162_v14 = vpop.f32.mrf.mxu1  ;;  %v6108_v7 = vadd.f32 %v6107_v63, %v6106_v0 }
 0x1d0   : > { %v6109_v2 = vpop.f32.mrf.mxu0 }
 0x1d1   : > { %v8164_v35 = vpop.f32.mrf.mxu1  ;;  %v8167_v19 = vadd.f32 %v6108_v7, %v7940_v27 }
 0x1d2   : > { %v6110_v54 = vpop.f32.mrf.mxu0 }
 0x1d3   : > { %9334 = vst [vmem:[#allocation17_spill] sm:$0xff] %v8167_v19  ;;  %v8169_v45 = vpop.f32.mrf.mxu1  ;;  %v6111_v30 = vadd.f32 %v6110_v54, %v6109_v2  ;;  %v7012_v54 = vld [vmem:[%s9320_s4 + $0x1f8] sm:$0xff]  }
 0x1d4   : > { %v6112_v60 = vpop.f32.mrf.mxu0  ;;  %6626 = vmatprep.subr.bf16.mxu0 %v7012_v54  ;;  %v7015_v54 = vld [vmem:[%s9320_s4 + $0x118] sm:$0xff]  }
 0x1d5   : > { %v8177_v63 = vpop.f32.mrf.mxu1  ;;  %v8180_v62 = vadd.f32 %v6111_v30, %v7942_v13 }
 0x1d6   : > { %9335 = vst [vmem:[#allocation18_spill] sm:$0xff] %v8177_v63  ;;  %v6113_v27 = vpop.f32.mrf.mxu0 }
 0x1d7   : > { %9336 = vst [vmem:[#allocation19_spill] sm:$0xff] %v8180_v62  ;;  %v8182_v7 = vpop.f32.mrf.mxu1  ;;  %v6114_v2 = vadd.f32 %v6113_v27, %v6112_v60 }
 0x1d8   : > { %9337 = vst [vmem:[#allocation20_spill] sm:$0xff] %v8182_v7  ;;  %v6115_v0 = vpop.f32.mrf.mxu0 }
 0x1d9   : > { %v8187_v19 = vpop.f32.mrf.mxu1  ;;  %v8190_v42 = vadd.f32 %v6114_v2, %v7944_v49  ;;  %v7014_v49 = vld [vmem:[%s9320_s4 + $0x158] sm:$0xff]  }
 0x1da   : > { %9338 = vst [vmem:[#allocation21_spill] sm:$0xff] %v8187_v19  ;;  %v6116_v63 = vpop.f32.mrf.mxu0  ;;  %6522 = vmatprep.subr.bf16.mxu1 %v7014_v49 }
 0x1db   : > { %9339 = vst [vmem:[#allocation22_spill] sm:$0xff] %v8190_v42  ;;  %v8192_v13 = vpop.f32.mrf.mxu1  ;;  %v6117_v30 = vadd.f32 %v6116_v63, %v6115_v0  ;;  %6523 = vmatpush3.bf16.msra.mxu1 %v7015_v54 }
 0x1dc   : > { %9340 = vst [vmem:[#allocation23_spill] sm:$0xff] %v8192_v13  ;;  %v6118_v37 = vpop.f32.mrf.mxu0 }
 0x1dd   : > { %v8194_v29 = vpop.f32.mrf.mxu1  ;;  %v8197_v60 = vadd.f32 %v6117_v30, %v7952_v58 }
 0x1de   : > { %v6119_v27 = vpop.f32.mrf.mxu0 }
 0x1df   : > { %9341 = vst [vmem:[#allocation24_spill] sm:$0xff] %v8197_v60  ;;  %v8199_v62 = vpop.f32.mrf.mxu1  ;;  %v6120_v7 = vadd.f32 %v6119_v27, %v6118_v37 }
 0x1e0   : > { %9342 = vst [vmem:[#allocation25_spill] sm:$0xff] %v8199_v62  ;;  %v6121_v2 = vpop.f32.mrf.mxu0 }
 0x1e1   : > { %v8207_v63 = vpop.f32.mrf.mxu1  ;;  %v8210_v0 = vadd.f32 %v6120_v7, %v7954_v25 }
 0x1e2   : > { %9343 = vst [vmem:[#allocation26_spill] sm:$0xff] %v8207_v63  ;;  %v6122_v58 = vpop.f32.mrf.mxu0 }
 0x1e3   : > { %9344 = vst [vmem:[#allocation27_spill] sm:$0xff] %v8210_v0  ;;  %v8212_v30 = vpop.f32.mrf.mxu1  ;;  %v6123_v37 = vadd.f32 %v6122_v58, %v6121_v2 }
 0x1e4   : > { %v6124_v27 = vpop.f32.mrf.mxu0 }
 0x1e5   : > { %v8214_v60 = vpop.f32.mrf.mxu1  ;;  %v8217_v13 = vadd.f32 %v6123_v37, %v7956_v53 }
 0x1e6   : > { %9345 = vst [vmem:[#allocation28_spill] sm:$0xff] %v8214_v60  ;;  %v6125_v19 = vpop.f32.mrf.mxu0 }
 0x1e7   : > { %9346 = vst [vmem:[#allocation29_spill] sm:$0xff] %v8217_v13  ;;  %v8219_v42 = vpop.f32.mrf.mxu1  ;;  %v6126_v62 = vadd.f32 %v6125_v19, %v6124_v27  ;;  %v7018_v19 = vld [vmem:[%s9320_s4 + $0x150] sm:$0xff]  }
 0x1e8   : > { %v6127_v63 = vpop.f32.mrf.mxu0  ;;  %6524 = vmatprep.subr.bf16.mxu1 %v7018_v19 }
 0x1e9   : > { %v8222_v25 = vadd.f32 %v6126_v62, %v7958_v10  ;;  %v8224_v49 = vpop.f32.mrf.mxu1  ;;  %v7019_v10 = vld [vmem:[%s9320_s4 + $0x110] sm:$0xff]  }
 0x1ea   : > { %v6128_v7 = vpop.f32.mrf.mxu0  ;;  %6525 = vmatpush3.bf16.msra.mxu1 %v7019_v10 }
 0x1eb   : > { %v6129_v54 = vadd.f32 %v6128_v7, %v6127_v63  ;;  %v8229_v60 = vpop.f32.mrf.mxu1 }
 0x1ec   : > { %v6130_v0 = vpop.f32.mrf.mxu0  ;;  %9348 = vst [vmem:[#allocation31_spill] sm:$0xff] %v8229_v60 }
 0x1ed   : > { %v8227_v2 = vadd.f32 %v6129_v54, %v7966_v1  ;;  %v8240_v1 = vpop.f32.mrf.mxu1 }
 0x1ee   : > { %v6131_v58 = vpop.f32.mrf.mxu0 }
 0x1ef   : > { %9347 = vst [vmem:[#allocation30_spill] sm:$0xff] %v8227_v2  ;;  %v6132_v53 = vadd.f32 %v6131_v58, %v6130_v0  ;;  %v8245_v58 = vpop.f32.mrf.mxu1 }
 0x1f0   : > { %v6133_v37 = vpop.f32.mrf.mxu0 }
 0x1f1   : > { %v8238_v62 = vadd.f32 %v6132_v53, %v7968_v15  ;;  %v8250_v53 = vpop.f32.mrf.mxu1 }
 0x1f2   : > { %v6134_v63 = vpop.f32.mrf.mxu0 }
 0x1f3   : > { %9349 = vst [vmem:[#allocation32_spill] sm:$0xff] %v8238_v62  ;;  %v6135_v27 = vadd.f32 %v6134_v63, %v6133_v37  ;;  %v8255_v63 = vpop.f32.mrf.mxu1 }
 0x1f4   : > { %v6136_v7 = vpop.f32.mrf.mxu0 }
 0x1f5   : > { %v8243_v0 = vadd.f32 %v6135_v27, %v7971_v38  ;;  %v7022_v27 = vld [vmem:[%s9320_s4 + $0x148] sm:$0xff]  }
 0x1f6   : > { %v6137_v54 = vpop.f32.mrf.mxu0  ;;  %6526 = vmatprep.subr.bf16.mxu1 %v7022_v27  ;;  %v6181_v27 = vadd.f32 %v8055_v18, %v8044_v55 }
 0x1f7   : > { %9350 = vst [vmem:[#allocation33_spill] sm:$0xff] %v8243_v0  ;;  %v6138_v13 = vadd.f32 %v6137_v54, %v6136_v7 }
 0x1f8   : > { %v6139_v2 = vpop.f32.mrf.mxu0 }
 0x1f9   : > { %v8248_v60 = vadd.f32 %v6138_v13, %v7973_v59  ;;  %v7023_v59 = vld [vmem:[%s9320_s4 + $0x108] sm:$0xff]  }
 0x1fa   : > { %v6140_v15 = vpop.f32.mrf.mxu0  ;;  %6527 = vmatpush3.bf16.msra.mxu1 %v7023_v59 }
 0x1fb   : > { %v6141_v19 = vadd.f32 %v6140_v15, %v6139_v2 }
 0x1fc   : > { %v6142_v10 = vpop.f32.mrf.mxu0 }
 0x1fd   : > { %v8253_v62 = vadd.f32 %v6141_v19, %v7981_v23  ;;  %v8266_v23 = vpop.f32.mrf.mxu1 }
 0x1fe   : > { %v6143_v37 = vpop.f32.mrf.mxu0 }
 0x1ff   : > { %v6144_v38 = vadd.f32 %v6143_v37, %v6142_v10  ;;  %v6178_v37 = vadd.f32 %v8041_v48, %v8028_v52  ;;  %v8277_v0 = vpop.f32.mrf.mxu1  ;;  %v6190_v48 = vadd.f32 %v8094_v34, %v8089_v41  ;;  %v6184_v41 = vadd.f32 %v8068_v16, %v8057_v56 }
 0x200   : > { %v6145_v7 = vpop.f32.mrf.mxu0 }
 0x201   : > { %v8264_v13 = vadd.f32 %v6144_v38, %v7983_v9  ;;  %v2508_v59 = vadd.f32 %v6178_v37, %v8018_v22 }
 0x202   : > { %v6146_v2 = vpop.f32.mrf.mxu0 }
 0x203   : > { %9351 = vst [vmem:[#allocation34_spill] sm:$0xff] %v8264_v13  ;;  %v6147_v54 = vadd.f32 %v6146_v2, %v6145_v7  ;;  %v8285_v7 = vpop.f32.mrf.mxu1  ;;  %v8291_v2 = vld [vmem:[%s9318_s2] ss:$0 sm:$0xff] }
 0x204   : > { %v8268_v15 = vpop.f32.mrf.mxu0 }
 0x205   : > { %v8271_v19 = vadd.f32 %v6147_v54, %v7991_v6  ;;  %v8298_v54 = vld [vmem:[%s9319_s3] ss:$0 sm:$0xff]  ;;  %v8300_v18 = vpop.f32.mrf.mxu1 }
 0x206   : > { %v8273_v10 = vpop.f32.mrf.mxu0 }
 0x207   : > { %9352 = vst [vmem:[#allocation35_spill] sm:$0xff] %v8271_v19  ;;  %v2511_v19 = vadd.f32 %v6181_v27, %v8031_v40  ;;  %v2524_v27 = vadd.f32 %v6190_v48, %v8079_v17 }
 0x208   : > { %v8279_v9 = vpop.f32.mrf.mxu0 }
 0x209   : > { %9353 = vst [vmem:[#allocation36_spill] sm:$0xff] %v8279_v9 }
 0x20a   : > { %v8281_v38 = vpop.f32.mrf.mxu0 }
 0x20b   : > { %9354 = vst [vmem:[#allocation37_spill] sm:$0xff] %v8281_v38 }
 0x20c   : > { %v6780_v6 = vpop.f32.mrf.mxu0 }
 0x20d   : > { %v2669_v52 = vadd.f32 %v6780_v6, %v2508_v59  ;;  %v7026_v59 = vld [vmem:[%s9320_s4 + $0x140] sm:$0xff]  }
 0x20e   : > { %v2660_v55 = vpop.f32.mrf.mxu0  ;;  %v7027_v6 = vld [vmem:[%s9320_s4 + $0x100] sm:$0xff]   ;;  %6528 = vmatprep.subr.bf16.mxu1 %v7026_v59  ;;  %v2516_v59 = vadd.f32 %v6184_v41, %v8047_v33 }
 0x20f   : > { %v2796_v22 = vmul.f32 %v8291_v2, %v2669_v52  ;;  %v2661_v37 = vadd.f32 %v2660_v55, %v8023_v5  ;;  %v6193_v5 = vadd.f32 %v8101_v50, %v8096_v12  ;;  %6529 = vmatpush3.bf16.msra.mxu1 %v7027_v6  ;;  %v8318_v55 = vpop.f32.mrf.mxu1 }
 0x210   : > { %v6781_v34 = vpop.f32.mrf.mxu0 }
 0x211   : > { %v2835_v13 = vadd.f32 %v8298_v54, %v2796_v22  ;;  %v2794_v52 = vmul.f32 %v8291_v2, %v2661_v37  ;;  %v2672_v38 = vadd.f32 %v6781_v34, %v2511_v19  ;;  %v6187_v19 = vadd.f32 %v8087_v26, %v8076_v47 }
 0x212   : > { %v2663_v40 = vpop.f32.mrf.mxu0 }
 0x213   : > { %v2867_v56 = vmax.f32 %v2835_v13, 0.0  ;;  %v2833_v16 = vadd.f32 %v8298_v54, %v2794_v52  ;;  %v2797_v9 = vmul.f32 %v8291_v2, %v2672_v38  ;;  %v2664_v22 = vadd.f32 %v2663_v40, %v8036_v44  ;;  %v8331_v44 = vpop.f32.mrf.mxu1 }
 0x214   : > { %v6784_v37 = vpop.f32.mrf.mxu0  ;;  %v6202_v13 = vadd.f32 %v8128_v3, %v8123_v31  ;;  %v2527_v38 = vadd.f32 %v6193_v5, %v8092_v36  ;;  %v2519_v52 = vadd.f32 %v6187_v19, %v8060_v32  ;;  %v6205_v40 = vadd.f32 %v8135_v28, %v8130_v24 }
 0x215   : > { %2954 = vst [vmem:[#allocation4 + $0x31] sm:$0xff] %v2867_v56  ;;  %v2865_v12 = vmax.f32 %v2833_v16, 0.0  ;;  %v2836_v17 = vadd.f32 %v8298_v54, %v2797_v9  ;;  %v2795_v50 = vmul.f32 %v8291_v2, %v2664_v22  ;;  %v2685_v48 = vadd.f32 %v6784_v37, %v2524_v27  ;;  %v8345_v37 = vpop.f32.mrf.mxu1 }
 0x216   : > { %v2676_v34 = vpop.f32.mrf.mxu0  ;;  %v6196_v9 = vadd.f32 %v8108_v11, %v8103_v43  ;;  %v2540_v16 = vadd.f32 %v6202_v13, %v8119_v39  ;;  %v6214_v13 = vadd.f32 %v8162_v14, %v8157_v51  ;;  %v9355_v51 = vld [vmem:[#allocation14_spill] sm:$0xff] }
 0x217   : > { %2952 = vst [vmem:[#allocation4 + $0x19] sm:$0xff] %v2865_v12  ;;  %v2868_v47 = vmax.f32 %v2836_v17, 0.0  ;;  %v2834_v26 = vadd.f32 %v8298_v54, %v2795_v50  ;;  %v2800_v33 = vmul.f32 %v8291_v2, %v2685_v48  ;;  %v2677_v41 = vadd.f32 %v2676_v34, %v2516_v59 }
 0x218   : > { %v6785_v6 = vpop.f32.mrf.mxu0  ;;  %v6199_v59 = vadd.f32 %v8121_v8, %v8116_v20  ;;  %v2532_v24 = vadd.f32 %v6196_v9, %v8099_v61  ;;  %v9356_v9 = vld [vmem:[#allocation11_spill] sm:$0xff] }
 0x219   : > { %2955 = vst [vmem:[#allocation4 + $0x39] sm:$0xff] %v2868_v47  ;;  %v2866_v31 = vmax.f32 %v2834_v26, 0.0  ;;  %v2839_v3 = vadd.f32 %v8298_v54, %v2800_v33  ;;  %v2798_v36 = vmul.f32 %v8291_v2, %v2677_v41  ;;  %v2688_v5 = vadd.f32 %v6785_v6, %v2527_v38  ;;  %v3112_v26 = vld [vmem:[#allocation4 + $0x2] sm:$0xff]  ;;  %v3113_v33 = vld [vmem:[#allocation4 + $0xa] sm:$0xff] }
 0x21a   : > { %v2679_v27 = vpop.f32.mrf.mxu0  ;;  %v8343_v22 = vpack.c.bf16 %v2868_v47, %v2867_v56  ;;  %v2543_v38 = vadd.f32 %v6205_v40, %v8126_v4  ;;  %v8357_v47 = vpop.f32.mrf.mxu1  ;;  %v8364_v41 = vld [vmem:[%s9320_s4 + $0x238] sm:$0xff]   ;;  %v6208_v4 = vadd.f32 %v9355_v51, %v8137_v57  ;;  %v2535_v6 = vadd.f32 %v6199_v59, %v9356_v9 }
 0x21b   : > { %2953 = vst [vmem:[#allocation4 + $0x21] sm:$0xff] %v2866_v31  ;;  %v2871_v43 = vmax.f32 %v2839_v3, 0.0  ;;  %v2837_v32 = vadd.f32 %v8298_v54, %v2798_v36  ;;  %v2801_v11 = vmul.f32 %v8291_v2, %v2688_v5  ;;  %v2680_v19 = vadd.f32 %v2679_v27, %v2519_v52  ;;  %6810 = vmatprep.subr.bf16.mxu1 %v8364_v41 }
 0x21c   : > { %v6788_v17 = vpop.f32.mrf.mxu0  ;;  %v3859_v28 = vpack.c.bf16 %v2866_v31, %v2865_v12  ;;  %v6217_v5 = vadd.f32 %v8169_v45, %v8164_v35  ;;  %v2556_v27 = vadd.f32 %v6214_v13, %v8153_v46  ;;  %v9357_v45 = vld [vmem:[#allocation15_spill] sm:$0xff] }
 0x21d   : > { %2958 = vst [vmem:[#allocation4 + $0x61] sm:$0xff] %v2871_v43  ;;  %v2869_v39 = vmax.f32 %v2837_v32, 0.0  ;;  %v2840_v56 = vadd.f32 %v8298_v54, %v2801_v11  ;;  %v2799_v50 = vmul.f32 %v8291_v2, %v2680_v19  ;;  %v2701_v48 = vadd.f32 %v6788_v17, %v2540_v16  ;;  %v8379_v11 = vpop.f32.mrf.mxu1 }
 0x21e   : > { %v2692_v34 = vpop.f32.mrf.mxu0  ;;  %4609 = vmatprep.mubr.bf16.mxu1 %v3859_v28  ;;  %v3851_v16 = vpack.c.bf16 %v3113_v33, %v3112_v26  ;;  %v3176_v28 = vld [vmem:[#allocation4 + $0x18] sm:$0xff]  ;;  %v6211_v46 = vadd.f32 %v8155_v21, %v9357_v45  ;;  %v7016_v21 = vld [vmem:[%s9320_s4 + $0x1f0] sm:$0xff]  }
 0x21f   : > { %2956 = vst [vmem:[#allocation4 + $0x49] sm:$0xff] %v2869_v39  ;;  %v2872_v20 = vmax.f32 %v2840_v56, 0.0  ;;  %v2838_v61 = vadd.f32 %v8298_v54, %v2799_v50  ;;  %v2804_v8 = vmul.f32 %v8291_v2, %v2701_v48  ;;  %v2693_v12 = vadd.f32 %v2692_v34, %v2532_v24  ;;  %v7013_v34 = vld [vmem:[%s9320_s4 + $0x1b8] sm:$0xff]   ;;  %v8405_v9 = vpop.f32.mrf.mxu1  ;;  %v7020_v45 = vld [vmem:[%s9320_s4 + $0x1e8] sm:$0xff]  }
 0x220   : > { %v6789_v14 = vpop.f32.mrf.mxu0  ;;  %v3179_v35 = vld [vmem:[#allocation4 + $0x38] sm:$0xff] }
 0x221   : > { %2959 = vst [vmem:[#allocation4 + $0x69] sm:$0xff] %v2872_v20  ;;  %v2870_v52 = vmax.f32 %v2838_v61, 0.0  ;;  %v8370_v31 = vadd.f32 %v8298_v54, %v2804_v8  ;;  %v2802_v3 = vmul.f32 %v8291_v2, %v2693_v12  ;;  %v2704_v36 = vadd.f32 %v6789_v14, %v2543_v38  ;;  %v3178_v12 = vld [vmem:[#allocation4 + $0x30] sm:$0xff] }
 0x222   : > { %v2695_v40 = vpop.f32.mrf.mxu0  ;;  %v3177_v57 = vld [vmem:[#allocation4 + $0x20] sm:$0xff]  ;;  %v8377_v32 = vpack.c.bf16 %v2872_v20, %v2871_v43  ;;  %v9358_v43 = vld [vmem:[#allocation12_spill] sm:$0xff]  ;;  %v8402_v51 = vpack.c.bf16 %v3179_v35, %v3178_v12 }
 0x223   : > { %2957 = vst [vmem:[#allocation4 + $0x51] sm:$0xff] %v2870_v52  ;;  %v2875_v19 = vmax.f32 %v8370_v31, 0.0  ;;  %v8383_v59 = vadd.f32 %v8298_v54, %v2802_v3  ;;  %v2805_v17 = vmul.f32 %v8291_v2, %v2704_v36  ;;  %v2696_v24 = vadd.f32 %v2695_v40, %v2535_v6  ;;  %v9362_v36 = vld [vmem:[#allocation20_spill] sm:$0xff] }
 0x224   : > { %v6792_v56 = vpop.f32.mrf.mxu0  ;;  %v3852_v50 = vpack.c.bf16 %v3177_v57, %v3176_v28  ;;  %v2548_v48 = vadd.f32 %v6208_v4, %v9358_v43  ;;  %v8389_v13 = vpack.c.bf16 %v2870_v52, %v2869_v39  ;;  %v9359_v39 = vld [vmem:[#allocation25_spill] sm:$0xff]  ;;  %v9360_v4 = vld [vmem:[#allocation16_spill] sm:$0xff]  ;;  %v3114_v28 = vld [vmem:[#allocation4 + $0x1a] sm:$0xff] }
 0x225   : > { %2962 = vst [vmem:[#allocation4 + $0x91] sm:$0xff] %v2875_v19  ;;  %v2873_v38 = vmax.f32 %v8383_v59, 0.0  ;;  %v2844_v20 = vadd.f32 %v8298_v54, %v2805_v17  ;;  %v2803_v61 = vmul.f32 %v8291_v2, %v2696_v24  ;;  %v2717_v8 = vadd.f32 %v6792_v56, %v2556_v27  ;;  %v9363_v57 = vld [vmem:[#allocation13_spill] sm:$0xff]  ;;  %v7017_v59 = vld [vmem:[%s9320_s4 + $0x1b0] sm:$0xff]   ;;  %v9365_v43 = vld [vmem:[#allocation22_spill] sm:$0xff] }
 0x226   : > { %v6226_v26 = vadd.f32 %v9359_v39, %v8194_v29  ;;  %4762 = vmatprep.mubr.bf16.mxu0 %v3852_v50  ;;  %v2708_v33 = vpop.f32.mrf.mxu0  ;;  %4610 = vmatmul.mubr.bf16.gmra.mxu1 %v3852_v50  ;;  %v2559_v14 = vadd.f32 %v6217_v5, %v9360_v4  ;;  %v9361_v29 = vld [vmem:[#allocation18_spill] sm:$0xff]  ;;  %v2551_v5 = vadd.f32 %v6211_v46, %v9363_v57  ;;  %v3115_v35 = vld [vmem:[#allocation4 + $0x22] sm:$0xff] }
 0x227   : > { %2960 = vst [vmem:[#allocation4 + $0x79] sm:$0xff] %v2873_v38  ;;  %v2876_v6 = vmax.f32 %v2844_v20, 0.0  ;;  %v2842_v52 = vadd.f32 %v8298_v54, %v2803_v61  ;;  %v2808_v31 = vmul.f32 %v8291_v2, %v2717_v8  ;;  %v2709_v3 = vadd.f32 %v2708_v33, %v2548_v48  ;;  %4763 = vmatmul.mubr.bf16.vlgmr.msra.gmra.mxu0 %v3851_v16  ;;  %v9364_v46 = vld [vmem:[#allocation26_spill] sm:$0xff]  ;;  %v8429_v20 = vpop.f32.mrf.mxu1  ;;  %v9366_v33 = vld [vmem:[#allocation21_spill] sm:$0xff]  ;;  %v9367_v4 = vld [vmem:[#allocation23_spill] sm:$0xff] }
 0x228   : > { %4617 = vmatprep.mubr.bf16.mxu1 %v8343_v22  ;;  %v6220_v40 = vadd.f32 %v9362_v36, %v9361_v29  ;;  %4770 = vmatprep.mubr.bf16.mxu0 %v8402_v51  ;;  %v6793_v27 = vpop.f32.mrf.mxu0  ;;  %v6229_v56 = vadd.f32 %v8212_v30, %v9364_v46  ;;  %v2572_v48 = vadd.f32 %v6226_v26, %v9365_v43  ;;  %v3180_v57 = vld [vmem:[#allocation4 + $0x48] sm:$0xff]  ;;  %v7025_v43 = vld [vmem:[%s9320_s4 + $0x1a0] sm:$0xff]  }
 0x229   : > { %6627 = vmatpush3.bf16.msra.mxu0 %v7013_v34  ;;  %2963 = vst [vmem:[#allocation4 + $0x99] sm:$0xff] %v2876_v6  ;;  %v2874_v17 = vmax.f32 %v2842_v52, 0.0  ;;  %v8418_v24 = vadd.f32 %v8298_v54, %v2808_v31  ;;  %v2806_v22 = vmul.f32 %v8291_v2, %v2709_v3  ;;  %v2720_v16 = vadd.f32 %v6793_v27, %v2559_v14  ;;  %v9368_v52 = vld [vmem:[#allocation17_spill] sm:$0xff]  ;;  %v7021_v31 = vld [vmem:[%s9320_s4 + $0x1a8] sm:$0xff]  }
 0x22a   : > { %6628 = vmatprep.subr.bf16.mxu0 %v7016_v21  ;;  %v2711_v50 = vpop.f32.mrf.mxu0  ;;  %v8427_v34 = vpack.c.bf16 %v2876_v6, %v2875_v19  ;;  %v3181_v39 = vld [vmem:[#allocation4 + $0x50] sm:$0xff]  ;;  %v6223_v30 = vadd.f32 %v9367_v4, %v9366_v33  ;;  %v2564_v26 = vadd.f32 %v6220_v40, %v9368_v52  ;;  %v8439_v19 = vpack.c.bf16 %v3115_v35, %v3114_v28 }
 0x22b   : > { %2961 = vst [vmem:[#allocation4 + $0x81] sm:$0xff] %v2874_v17  ;;  %v2879_v61 = vmax.f32 %v8418_v24, 0.0  ;;  %v8433_v8 = vadd.f32 %v8298_v54, %v2806_v22  ;;  %v2809_v12 = vmul.f32 %v8291_v2, %v2720_v16  ;;  %v2712_v21 = vadd.f32 %v2711_v50, %v2551_v5  ;;  %v8458_v22 = vpop.f32.mrf.mxu1 }
 0x22c   : > { %v6796_v14 = vpop.f32.mrf.mxu0  ;;  %v8441_v6 = vpack.c.bf16 %v2874_v17, %v2873_v38  ;;  %v7024_v38 = vld [vmem:[%s9320_s4 + $0x1e0] sm:$0xff]   ;;  %v6238_v40 = vadd.f32 %v8245_v58, %v8240_v1  ;;  %v9369_v17 = vld [vmem:[#allocation24_spill] sm:$0xff]  ;;  %v6241_v33 = vadd.f32 %v8255_v63, %v8250_v53 }
 0x22d   : > { %6629 = vmatpush3.bf16.msra.mxu0 %v7017_v59  ;;  %2966 = vst [vmem:[#allocation4 + $0xc1] sm:$0xff] %v2879_v61  ;;  %v2877_v3 = vmax.f32 %v8433_v8, 0.0  ;;  %v2848_v29 = vadd.f32 %v8298_v54, %v2809_v12  ;;  %v2807_v36 = vmul.f32 %v8291_v2, %v2712_v21  ;;  %v2733_v27 = vadd.f32 %v6796_v14, %v2572_v48  ;;  %v9370_v1 = vld [vmem:[#allocation28_spill] sm:$0xff]  ;;  %v3116_v21 = vld [vmem:[#allocation4 + $0x32] sm:$0xff]  ;;  %v8483_v52 = vpop.f32.mrf.mxu1 }
 0x22e   : > { %6630 = vmatprep.subr.bf16.mxu0 %v7020_v45  ;;  %v2724_v5 = vpop.f32.mrf.mxu0  ;;  %4618 = vmatmul.mubr.bf16.gmra.mxu1 %v8402_v51  ;;  %v8455_v59 = vpack.c.bf16 %v3181_v39, %v3180_v57  ;;  %v2575_v24 = vadd.f32 %v6229_v56, %v9369_v17  ;;  %v6232_v58 = vadd.f32 %v8219_v42, %v9370_v1  ;;  %v9371_v56 = vld [vmem:[#allocation19_spill] sm:$0xff]  ;;  %v7028_v39 = vld [vmem:[%s9320_s4 + $0x1d8] sm:$0xff]  }
 0x22f   : > { %2964 = vst [vmem:[#allocation4 + $0xa9] sm:$0xff] %v2877_v3  ;;  %v2880_v16 = vmax.f32 %v2848_v29, 0.0  ;;  %v2846_v28 = vadd.f32 %v8298_v54, %v2807_v36  ;;  %v2812_v35 = vmul.f32 %v8291_v2, %v2733_v27  ;;  %v2725_v45 = vadd.f32 %v2724_v5, %v2564_v26  ;;  %4771 = vmatmul.mubr.bf16.gmra.mxu0 %v8439_v19  ;;  %v3117_v42 = vld [vmem:[#allocation4 + $0x3a] sm:$0xff]  ;;  %v3183_v27 = vld [vmem:[#allocation4 + $0x68] sm:$0xff] }
 0x230   : > { %4625 = vmatprep.mubr.bf16.mxu1 %v8389_v13  ;;  %4778 = vmatprep.mubr.bf16.mxu0 %v8455_v59  ;;  %v6797_v46 = vpop.f32.mrf.mxu0  ;;  %v2567_v50 = vadd.f32 %v6223_v30, %v9371_v56  ;;  %v2588_v30 = vadd.f32 %v6238_v40, %v8222_v25  ;;  %v9372_v57 = vld [vmem:[#allocation31_spill] sm:$0xff]  ;;  %v7029_v5 = vld [vmem:[%s9320_s4 + $0x198] sm:$0xff]  }
 0x231   : > { %6631 = vmatpush3.bf16.msra.mxu0 %v7021_v31  ;;  %2967 = vst [vmem:[#allocation4 + $0xc9] sm:$0xff] %v2880_v16  ;;  %v2878_v48 = vmax.f32 %v2846_v28, 0.0  ;;  %v8472_v8 = vadd.f32 %v8298_v54, %v2812_v35  ;;  %v2810_v13 = vmul.f32 %v8291_v2, %v2725_v45  ;;  %v2736_v12 = vadd.f32 %v6797_v46, %v2575_v24  ;;  %v3182_v28 = vld [vmem:[#allocation4 + $0x60] sm:$0xff]  ;;  %v9374_v46 = vld [vmem:[#allocation30_spill] sm:$0xff] }
 0x232   : > { %6632 = vmatprep.subr.bf16.mxu0 %v7024_v38  ;;  %v2727_v4 = vpop.f32.mrf.mxu0  ;;  %v8481_v14 = vpack.c.bf16 %v2880_v16, %v2879_v61  ;;  %v6235_v53 = vadd.f32 %v9372_v57, %v8224_v49  ;;  %v9373_v38 = vld [vmem:[#allocation27_spill] sm:$0xff]  ;;  %v8493_v61 = vpack.c.bf16 %v3117_v42, %v3116_v21  ;;  %v6244_v35 = vadd.f32 %v8277_v0, %v8266_v23 }
 0x233   : > { %2965 = vst [vmem:[#allocation4 + $0xb1] sm:$0xff] %v2878_v48  ;;  %v2883_v26 = vmax.f32 %v8472_v8, 0.0  ;;  %v8487_v31 = vadd.f32 %v8298_v54, %v2810_v13  ;;  %v2813_v29 = vmul.f32 %v8291_v2, %v2736_v12  ;;  %v2728_v36 = vadd.f32 %v2727_v4, %v2567_v50  ;;  %v6261_v50 = vpop.f32.mrf.mxu1  ;;  %v7031_v12 = vld [vmem:[%s9320_s4 + $0x190] sm:$0xff]  }
 0x234   : > { %v6800_v63 = vpop.f32.mrf.mxu0  ;;  %v2580_v25 = vadd.f32 %v6232_v58, %v9373_v38  ;;  %v8495_v40 = vpack.c.bf16 %v2878_v48, %v2877_v3  ;;  %v7030_v3 = vld [vmem:[%s9320_s4 + $0x1d0] sm:$0xff]   ;;  %v6250_v45 = vadd.f32 %v8331_v44, %v8318_v55  ;;  %v8511_v58 = vpack.c.bf16 %v3183_v27, %v3182_v28  ;;  %v9375_v55 = vld [vmem:[#allocation29_spill] sm:$0xff] }
 0x235   : > { %6633 = vmatpush3.bf16.msra.mxu0 %v7025_v43  ;;  %2970 = vst [vmem:[#allocation4 + $0xf1] sm:$0xff] %v2883_v26  ;;  %v2881_v17 = vmax.f32 %v8487_v31, 0.0  ;;  %v2852_v24 = vadd.f32 %v8298_v54, %v2813_v29  ;;  %v2811_v16 = vmul.f32 %v8291_v2, %v2728_v36  ;;  %v2749_v49 = vadd.f32 %v6800_v63, %v2588_v30  ;;  %v9376_v29 = vld [vmem:[#allocation32_spill] sm:$0xff]  ;;  %v6263_v57 = vpop.f32.mrf.mxu1 }
 0x236   : > { %6634 = vmatprep.subr.bf16.mxu0 %v7028_v39  ;;  %v2740_v1 = vpop.f32.mrf.mxu0  ;;  %4626 = vmatmul.mubr.bf16.gmra.mxu1 %v8455_v59  ;;  %v2591_v56 = vadd.f32 %v6241_v33, %v9374_v46  ;;  %v6253_v0 = vadd.f32 %v8357_v47, %v8345_v37  ;;  %v2583_v44 = vadd.f32 %v6235_v53, %v9375_v55  ;;  %v3118_v33 = vld [vmem:[#allocation4 + $0x4a] sm:$0xff]  ;;  %v3119_v37 = vld [vmem:[#allocation4 + $0x52] sm:$0xff] }
 0x237   : > { %2968 = vst [vmem:[#allocation4 + $0xd9] sm:$0xff] %v2881_v17  ;;  %v2884_v43 = vmax.f32 %v2852_v24, 0.0  ;;  %v2850_v48 = vadd.f32 %v8298_v54, %v2811_v16  ;;  %v2816_v8 = vmul.f32 %v8291_v2, %v2749_v49  ;;  %v2741_v13 = vadd.f32 %v2740_v1, %v2580_v25  ;;  %4779 = vmatmul.mubr.bf16.gmra.mxu0 %v8493_v61  ;;  %v7032_v47 = vld [vmem:[%s9320_s4 + $0x1c8] sm:$0xff]   ;;  %v9378_v1 = vld [vmem:[#allocation36_spill] sm:$0xff]  ;;  %v9379_v46 = vld [vmem:[#allocation37_spill] sm:$0xff] }
 0x238   : > { %4633 = vmatprep.mubr.bf16.mxu1 %v8377_v32  ;;  %4786 = vmatprep.mubr.bf16.mxu0 %v8511_v58  ;;  %v6801_v23 = vpop.f32.mrf.mxu0  ;;  %v6150_v4 = vadd.f32 %v8273_v10, %v8268_v15  ;;  %v2604_v31 = vadd.f32 %v6250_v45, %v8248_v60  ;;  %v2596_v36 = vadd.f32 %v6244_v35, %v9376_v29  ;;  %v7034_v16 = vld [vmem:[%s9320_s4 + $0x188] sm:$0xff]  }
 0x239   : > { %6635 = vmatpush3.bf16.msra.mxu0 %v7029_v5  ;;  %2971 = vst [vmem:[#allocation4 + $0xf9] sm:$0xff] %v2884_v43  ;;  %v2882_v21 = vmax.f32 %v2850_v48, 0.0  ;;  %v8526_v42 = vadd.f32 %v8298_v54, %v2816_v8  ;;  %v2814_v32 = vmul.f32 %v8291_v2, %v2741_v13  ;;  %v2752_v39 = vadd.f32 %v6801_v23, %v2591_v56  ;;  %v3185_v5 = vld [vmem:[#allocation4 + $0x80] sm:$0xff]  ;;  %v6264_v8 = vpop.f32.mrf.mxu1 }
 0x23a   : > { %6636 = vmatprep.subr.bf16.mxu0 %v7030_v3  ;;  %v2743_v30 = vpop.f32.mrf.mxu0  ;;  %v8536_v27 = vpack.c.bf16 %v2884_v43, %v2883_v26  ;;  %v6247_v15 = vadd.f32 %v8300_v18, %v8285_v7  ;;  %v8545_v60 = vpack.c.bf16 %v3119_v37, %v3118_v33  ;;  %v2607_v26 = vadd.f32 %v6253_v0, %v8253_v62  ;;  %v3184_v18 = vld [vmem:[#allocation4 + $0x78] sm:$0xff]  ;;  %v7035_v62 = vld [vmem:[%s9320_s4 + $0x1c0] sm:$0xff]   ;;  %v3120_v33 = vld [vmem:[#allocation4 + $0x62] sm:$0xff] }
 0x23b   : > { %2969 = vst [vmem:[#allocation4 + $0xe1] sm:$0xff] %v2882_v21  ;;  %v2887_v53 = vmax.f32 %v8526_v42, 0.0  ;;  %v8540_v63 = vadd.f32 %v8298_v54, %v2814_v32  ;;  %v2817_v38 = vmul.f32 %v8291_v2, %v2752_v39  ;;  %v2744_v25 = vadd.f32 %v2743_v30, %v2583_v44  ;;  %v9380_v44 = vld [vmem:[#allocation33_spill] sm:$0xff] }
 0x23c   : > { %v6804_v10 = vpop.f32.mrf.mxu0  ;;  %v8548_v24 = vpack.c.bf16 %v2882_v21, %v2881_v17  ;;  %v9377_v17 = vld [vmem:[#allocation9_spill] sm:$0xff]  ;;  %v6262_v45 = vadd.f32 %v6261_v50, %v8483_v52  ;;  %v6153_v56 = vadd.f32 %v9379_v46, %v9378_v1  ;;  %v8564_v48 = vpack.c.bf16 %v3185_v5, %v3184_v18  ;;  %v9383_v46 = vld [vmem:[#allocation35_spill] sm:$0xff] }
 0x23d   : > { %6637 = vmatpush3.bf16.msra.mxu0 %v7031_v12  ;;  %2974 = vst [vmem:[#allocation4 + $0x121] sm:$0xff] %v2887_v53  ;;  %v2885_v49 = vmax.f32 %v8540_v63, 0.0  ;;  %v2856_v28 = vadd.f32 %v8298_v54, %v2817_v38  ;;  %v2815_v3 = vmul.f32 %v8291_v2, %v2744_v25  ;;  %v2765_v7 = vadd.f32 %v6804_v10, %v2604_v31  ;;  %v7036_v21 = vld [vmem:[%s9320_s4 + $0x180] sm:$0xff]   ;;  %v3187_v25 = vld [vmem:[#allocation4 + $0x98] sm:$0xff] }
 0x23e   : > { %6638 = vmatprep.subr.bf16.mxu0 %v7032_v47  ;;  %v2459_v35 = vadd.f32 %v6150_v4, %v9377_v17  ;;  %v2756_v43 = vpop.f32.mrf.mxu0  ;;  %4634 = vmatmul.mubr.bf16.gmra.mxu1 %v8511_v58  ;;  %v6256_v52 = vadd.f32 %v8405_v9, %v8379_v11  ;;  %v2599_v12 = vadd.f32 %v6247_v15, %v9380_v44  ;;  %v3121_v37 = vld [vmem:[#allocation4 + $0x6a] sm:$0xff]  ;;  %v9381_v11 = vld [vmem:[#allocation10_spill] sm:$0xff] }
 0x23f   : > { %2972 = vst [vmem:[#allocation4 + $0x109] sm:$0xff] %v2885_v49  ;;  %v2888_v13 = vmax.f32 %v2856_v28, 0.0  ;;  %v2854_v0 = vadd.f32 %v8298_v54, %v2815_v3  ;;  %v2820_v23 = vmul.f32 %v8291_v2, %v2765_v7  ;;  %v2757_v55 = vadd.f32 %v2756_v43, %v2596_v36  ;;  %4787 = vmatmul.mubr.bf16.gmra.mxu0 %v8545_v60  ;;  %v9382_v10 = vld [vmem:[#allocation34_spill] sm:$0xff]  ;;  %v3186_v18 = vld [vmem:[#allocation4 + $0x90] sm:$0xff] }
 0x240   : > { %4641 = vmatprep.mubr.bf16.mxu1 %v8441_v6  ;;  %4794 = vmatprep.mubr.bf16.mxu0 %v8564_v48  ;;  %v6805_v50 = vpop.f32.mrf.mxu0  ;;  %v2462_v9 = vadd.f32 %v6153_v56, %v9381_v11  ;;  %v6265_v47 = vadd.f32 %v6264_v8, %v6263_v57  ;;  %v2620_v30 = vadd.f32 %v6262_v45, %v2459_v35  ;;  %v3188_v11 = vld [vmem:[#allocation4 + $0xa8] sm:$0xff] }
 0x241   : > { %6639 = vmatpush3.bf16.msra.mxu0 %v7034_v16  ;;  %2975 = vst [vmem:[#allocation4 + $0x129] sm:$0xff] %v2888_v13  ;;  %v2886_v42 = vmax.f32 %v2854_v0, 0.0  ;;  %v2859_v32 = vadd.f32 %v8298_v54, %v2820_v23  ;;  %v2818_v39 = vmul.f32 %v8291_v2, %v2757_v55  ;;  %v2768_v6 = vadd.f32 %v6805_v50, %v2607_v26  ;;  %v3122_v55 = vld [vmem:[#allocation4 + $0x7a] sm:$0xff] }
 0x242   : > { %6640 = vmatprep.subr.bf16.mxu0 %v7035_v62  ;;  %v2759_v4 = vpop.f32.mrf.mxu0  ;;  %v8580_v31 = vpack.c.bf16 %v2888_v13, %v2887_v53  ;;  %v6259_v5 = vadd.f32 %v8458_v22, %v8429_v20  ;;  %v2612_v26 = vadd.f32 %v6256_v52, %v9382_v10  ;;  %v8587_v16 = vpack.c.bf16 %v3121_v37, %v3120_v33  ;;  %v3123_v52 = vld [vmem:[#allocation4 + $0x82] sm:$0xff] }
 0x243   : > { %2973 = vst [vmem:[#allocation4 + $0x111] sm:$0xff] %v2886_v42  ;;  %v2891_v29 = vmax.f32 %v2859_v32, 0.0  ;;  %v2857_v36 = vadd.f32 %v8298_v54, %v2818_v39  ;;  %v2821_v63 = vmul.f32 %v8291_v2, %v2768_v6  ;;  %v2760_v38 = vadd.f32 %v2759_v4, %v2599_v12 }
 0x244   : > { %v6808_v15 = vpop.f32.mrf.mxu0  ;;  %v8589_v57 = vpack.c.bf16 %v2886_v42, %v2885_v49  ;;  %v8594_v20 = vpack.c.bf16 %v3187_v25, %v3186_v18  ;;  %v2623_v22 = vadd.f32 %v6265_v47, %v2462_v9  ;;  %v2615_v56 = vadd.f32 %v6259_v5, %v9383_v46  ;;  %v3189_v42 = vld [vmem:[#allocation4 + $0xb0] sm:$0xff]  ;;  %v3190_v25 = vld [vmem:[#allocation4 + $0xc0] sm:$0xff]  ;;  %v3195_v18 = vld [vmem:[#allocation4 + $0xf8] sm:$0xff] }
 0x245   : > { %6641 = vmatpush3.bf16.msra.mxu0 %v7036_v21  ;;  %2978 = vst [vmem:[#allocation4 + $0x151] sm:$0xff] %v2891_v29  ;;  %v2889_v53 = vmax.f32 %v2857_v36, 0.0  ;;  %v2860_v28 = vadd.f32 %v8298_v54, %v2821_v63  ;;  %v2819_v3 = vmul.f32 %v8291_v2, %v2760_v38  ;;  %v2781_v7 = vadd.f32 %v6808_v15, %v2620_v30  ;;  %v3191_v36 = vld [vmem:[#allocation4 + $0xc8] sm:$0xff]  ;;  %v3127_v5 = vld [vmem:[#allocation4 + $0xb2] sm:$0xff]  ;;  %v3193_v15 = vld [vmem:[#allocation4 + $0xe0] sm:$0xff] }
 0x246   : > { %v2772_v62 = vpop.f32.mrf.mxu0  ;;  %4642 = vmatmul.mubr.bf16.gmra.mxu1 %v8564_v48  ;;  %v8612_v37 = vpack.c.bf16 %v3123_v52, %v3122_v55  ;;  %v8615_v9 = vpack.c.bf16 %v3189_v42, %v3188_v11  ;;  %v3196_v46 = vld [vmem:[#allocation4 + $0x108] sm:$0xff] }
 0x247   : > { %2976 = vst [vmem:[#allocation4 + $0x139] sm:$0xff] %v2889_v53  ;;  %v2892_v17 = vmax.f32 %v2860_v28, 0.0  ;;  %v2858_v49 = vadd.f32 %v8298_v54, %v2819_v3  ;;  %v2824_v35 = vmul.f32 %v8291_v2, %v2781_v7  ;;  %v2773_v45 = vadd.f32 %v2772_v62, %v2612_v26  ;;  %4795 = vmatmul.mubr.bf16.gmra.mxu0 %v8587_v16  ;;  %v3192_v26 = vld [vmem:[#allocation4 + $0xd8] sm:$0xff]  ;;  %v3129_v3 = vld [vmem:[#allocation4 + $0xca] sm:$0xff] }
 0x248   : > { %4649 = vmatprep.mubr.bf16.mxu1 %v8427_v34  ;;  %4802 = vmatprep.mubr.bf16.mxu0 %v8594_v20  ;;  %v6809_v1 = vpop.f32.mrf.mxu0 }
 0x249   : > { %2979 = vst [vmem:[#allocation4 + $0x159] sm:$0xff] %v2892_v17  ;;  %v2890_v43 = vmax.f32 %v2858_v49, 0.0  ;;  %v2863_v8 = vadd.f32 %v8298_v54, %v2824_v35  ;;  %v2822_v13 = vmul.f32 %v8291_v2, %v2773_v45  ;;  %v2784_v0 = vadd.f32 %v6809_v1, %v2623_v22  ;;  %v3131_v35 = vld [vmem:[#allocation4 + $0xe2] sm:$0xff] }
 0x24a   : > { %v2775_v23 = vpop.f32.mrf.mxu0  ;;  %v8604_v50 = vpack.c.bf16 %v2892_v17, %v2891_v29  ;;  %v3125_v29 = vld [vmem:[#allocation4 + $0x9a] sm:$0xff]  ;;  %v3194_v17 = vld [vmem:[#allocation4 + $0xf0] sm:$0xff] }
 0x24b   : > { %2977 = vst [vmem:[#allocation4 + $0x141] sm:$0xff] %v2890_v43  ;;  %v2895_v44 = vmax.f32 %v2863_v8, 0.0  ;;  %v2861_v34 = vadd.f32 %v8298_v54, %v2822_v13  ;;  %v2825_v12 = vmul.f32 %v8291_v2, %v2784_v0  ;;  %v2776_v21 = vadd.f32 %v2775_v23, %v2615_v56  ;;  %v3197_v45 = vld [vmem:[#allocation4 + $0x110] sm:$0xff]  ;;  %v3199_v8 = vld [vmem:[#allocation4 + $0x128] sm:$0xff]  ;;  %v3198_v0 = vld [vmem:[#allocation4 + $0x120] sm:$0xff] }
 0x24c   : > { %v8608_v32 = vpack.c.bf16 %v2890_v43, %v2889_v53  ;;  %v8634_v53 = vpack.c.bf16 %v3193_v15, %v3192_v26  ;;  %v8644_v49 = vpack.c.bf16 %v3195_v18, %v3194_v17  ;;  %v8652_v56 = vpack.c.bf16 %v3197_v45, %v3196_v46  ;;  %v3132_v43 = vld [vmem:[#allocation4 + $0xf2] sm:$0xff]  ;;  %v3134_v55 = vld [vmem:[#allocation4 + $0x10a] sm:$0xff]  ;;  %v3241_v15 = vld [vmem:[#allocation4 + $0x21] sm:$0xff] }
 0x24d   : > { %2982 = vst [vmem:[#allocation4 + $0x181] sm:$0xff] %v2895_v44  ;;  %v2893_v39 = vmax.f32 %v2861_v34, 0.0  ;;  %v2864_v6 = vadd.f32 %v8298_v54, %v2825_v12  ;;  %v2823_v33 = vmul.f32 %v8291_v2, %v2776_v21  ;;  %v3124_v2 = vld [vmem:[#allocation4 + $0x92] sm:$0xff]  ;;  %v8660_v23 = vpack.c.bf16 %v3199_v8, %v3198_v0  ;;  %v3136_v21 = vld [vmem:[#allocation4 + $0x122] sm:$0xff] }
 0x24e   : > { %4650 = vmatmul.mubr.bf16.gmra.mxu1 %v8594_v20  ;;  %v8623_v38 = vpack.c.bf16 %v3125_v29, %v3124_v2  ;;  %v3200_v34 = vld [vmem:[#allocation4 + $0x138] sm:$0xff]  ;;  %v7037_v17 = vld [vmem:[%s9320_s4 + $0x230] sm:$0xff]   ;;  %v3435_v45 = vld [vmem:[#allocation4 + $0x49] sm:$0xff] }
 0x24f   : > { %2980 = vst [vmem:[#allocation4 + $0x169] sm:$0xff] %v2893_v39  ;;  %v2896_v47 = vmax.f32 %v2864_v6, 0.0  ;;  %v2862_v4 = vadd.f32 %v8298_v54, %v2823_v33  ;;  %4803 = vmatmul.mubr.bf16.gmra.mxu0 %v8612_v37  ;;  %4657 = vmatprep.mubr.bf16.mxu1 %v8495_v40  ;;  %v8626_v54 = vpack.c.bf16 %v3191_v36, %v3190_v25  ;;  %v3126_v40 = vld [vmem:[#allocation4 + $0xaa] sm:$0xff]  ;;  %v7041_v8 = vld [vmem:[%s9320_s4 + $0x210] sm:$0xff]  }
 0x250   : > { %4810 = vmatprep.mubr.bf16.mxu0 %v8615_v9  ;;  %v8631_v10 = vpack.c.bf16 %v3127_v5, %v3126_v40  ;;  %v3203_v42 = vld [vmem:[#allocation4 + $0x158] sm:$0xff]  ;;  %v3202_v6 = vld [vmem:[#allocation4 + $0x150] sm:$0xff] }
 0x251   : > { %2983 = vst [vmem:[#allocation4 + $0x189] sm:$0xff] %v2896_v47  ;;  %v2894_v30 = vmax.f32 %v2862_v4, 0.0  ;;  %v8676_v33 = vpack.c.bf16 %v3203_v42, %v3202_v6  ;;  %v3140_v29 = vld [vmem:[#allocation4 + $0x152] sm:$0xff] }
 0x252   : > { %v3201_v52 = vld [vmem:[#allocation4 + $0x140] sm:$0xff]  ;;  %v3433_v18 = vld [vmem:[#allocation4 + $0x31] sm:$0xff] }
 0x253   : > { %2981 = vst [vmem:[#allocation4 + $0x171] sm:$0xff] %v2894_v30  ;;  %v8621_v63 = vpack.c.bf16 %v2894_v30, %v2893_v39  ;;  %v8668_v12 = vpack.c.bf16 %v3201_v52, %v3200_v34  ;;  %v3138_v11 = vld [vmem:[#allocation4 + $0x13a] sm:$0xff]  ;;  %v7039_v46 = vld [vmem:[%s9320_s4 + $0x220] sm:$0xff]  }
 0x254   : > { %v3206_v40 = vld [vmem:[#allocation4 + $0x180] sm:$0xff] }
 0x256   : > { %4658 = vmatmul.mubr.bf16.gmra.mxu1 %v8615_v9  ;;  %v3204_v30 = vld [vmem:[#allocation4 + $0x168] sm:$0xff] }
 0x257   : > { %4811 = vmatmul.mubr.bf16.gmra.mxu0 %v8623_v38  ;;  %4665 = vmatprep.mubr.bf16.mxu1 %v8481_v14  ;;  %v3128_v14 = vld [vmem:[#allocation4 + $0xc2] sm:$0xff] }
 0x258   : > { %4818 = vmatprep.mubr.bf16.mxu0 %v8626_v54  ;;  %v8641_v22 = vpack.c.bf16 %v3129_v3, %v3128_v14  ;;  %v3207_v36 = vld [vmem:[#allocation4 + $0x188] sm:$0xff]  ;;  %v3434_v14 = vld [vmem:[#allocation4 + $0x39] sm:$0xff] }
 0x259   : > { %v8692_v5 = vpack.c.bf16 %v3207_v36, %v3206_v40 }
 0x25a   : > { %v3205_v47 = vld [vmem:[#allocation4 + $0x170] sm:$0xff] }
 0x25b   : > { %v8684_v2 = vpack.c.bf16 %v3205_v47, %v3204_v30  ;;  %v3143_v26 = vld [vmem:[#allocation4 + $0x172] sm:$0xff]  ;;  %v3451_v30 = vld [vmem:[#allocation4 + $0x109] sm:$0xff] }
 0x25d   : > { %v6306_v28 = vpop.f32.mrf.mxu1 }
 0x25e   : > { %4666 = vmatmul.mubr.bf16.gmra.mxu1 %v8626_v54 }
 0x25f   : > { %4819 = vmatmul.mubr.bf16.gmra.mxu0 %v8631_v10  ;;  %4673 = vmatprep.mubr.bf16.mxu1 %v8548_v24  ;;  %v6307_v7 = vpop.f32.mrf.mxu1  ;;  %v3130_v24 = vld [vmem:[#allocation4 + $0xda] sm:$0xff] }
 0x260   : > { %4826 = vmatprep.mubr.bf16.mxu0 %v8634_v53  ;;  %v8639_v62 = vadd.f32 %v6307_v7, %v6306_v28  ;;  %v8649_v1 = vpack.c.bf16 %v3131_v35, %v3130_v24  ;;  %v3240_v28 = vld [vmem:[#allocation4 + $0x19] sm:$0xff]  ;;  %v3856_v24 = vpack.c.bf16 %v3434_v14, %v3433_v18  ;;  %v3436_v35 = vld [vmem:[#allocation4 + $0x51] sm:$0xff]  ;;  %v3453_v18 = vld [vmem:[#allocation4 + $0x121] sm:$0xff] }
 0x261   : > { %v3853_v3 = vpack.c.bf16 %v3241_v15, %v3240_v28 }
 0x266   : > { %4674 = vmatmul.mubr.bf16.gmra.mxu1 %v8634_v53 }
 0x267   : > { %4827 = vmatmul.mubr.bf16.gmra.mxu0 %v8641_v22  ;;  %4681 = vmatprep.mubr.bf16.mxu1 %v8536_v27  ;;  %v3133_v27 = vld [vmem:[#allocation4 + $0xfa] sm:$0xff] }
 0x268   : > { %4834 = vmatprep.mubr.bf16.mxu0 %v8644_v49  ;;  %v8657_v13 = vpack.c.bf16 %v3133_v27, %v3132_v43  ;;  %v3865_v43 = vpack.c.bf16 %v3436_v35, %v3435_v45  ;;  %v3437_v27 = vld [vmem:[#allocation4 + $0x61] sm:$0xff] }
 0x26e   : > { %4682 = vmatmul.mubr.bf16.gmra.mxu1 %v8644_v49 }
 0x26f   : > { %4835 = vmatmul.mubr.bf16.gmra.mxu0 %v8649_v1  ;;  %4689 = vmatprep.mubr.bf16.mxu1 %v8589_v57  ;;  %v3135_v57 = vld [vmem:[#allocation4 + $0x112] sm:$0xff] }
 0x270   : > { %4842 = vmatprep.mubr.bf16.mxu0 %v8652_v56  ;;  %v8665_v44 = vpack.c.bf16 %v3135_v57, %v3134_v55  ;;  %v3439_v55 = vld [vmem:[#allocation4 + $0x79] sm:$0xff]  ;;  %v7043_v57 = vld [vmem:[%s9320_s4 + $0x200] sm:$0xff]  }
 0x276   : > { %4690 = vmatmul.mubr.bf16.gmra.mxu1 %v8652_v56 }
 0x277   : > { %4843 = vmatmul.mubr.bf16.gmra.mxu0 %v8657_v13  ;;  %4697 = vmatprep.mubr.bf16.mxu1 %v8580_v31  ;;  %v3137_v31 = vld [vmem:[#allocation4 + $0x12a] sm:$0xff] }
 0x278   : > { %4850 = vmatprep.mubr.bf16.mxu0 %v8660_v23  ;;  %v8673_v39 = vpack.c.bf16 %v3137_v31, %v3136_v21  ;;  %v3444_v21 = vld [vmem:[#allocation4 + $0xb1] sm:$0xff]  ;;  %v3443_v31 = vld [vmem:[#allocation4 + $0xa9] sm:$0xff] }
 0x279   : > { %v3901_v42 = vpack.c.bf16 %v3444_v21, %v3443_v31 }
 0x27e   : > { %4698 = vmatmul.mubr.bf16.gmra.mxu1 %v8660_v23 }
 0x27f   : > { %4851 = vmatmul.mubr.bf16.gmra.mxu0 %v8665_v44  ;;  %4705 = vmatprep.mubr.bf16.mxu1 %v8608_v32  ;;  %v3139_v32 = vld [vmem:[#allocation4 + $0x142] sm:$0xff] }
 0x280   : > { %4858 = vmatprep.mubr.bf16.mxu0 %v8668_v12  ;;  %v8681_v4 = vpack.c.bf16 %v3139_v32, %v3138_v11 }
 0x286   : > { %4706 = vmatmul.mubr.bf16.gmra.mxu1 %v8668_v12 }
 0x287   : > { %4859 = vmatmul.mubr.bf16.gmra.mxu0 %v8673_v39  ;;  %4713 = vmatprep.mubr.bf16.mxu1 %v8604_v50  ;;  %v3141_v50 = vld [vmem:[#allocation4 + $0x15a] sm:$0xff] }
 0x288   : > { %4866 = vmatprep.mubr.bf16.mxu0 %v8676_v33  ;;  %v8689_v25 = vpack.c.bf16 %v3141_v50, %v3140_v29 }
 0x28e   : > { %4714 = vmatmul.mubr.bf16.gmra.mxu1 %v8676_v33 }
 0x28f   : > { %4867 = vmatmul.mubr.bf16.gmra.mxu0 %v8681_v4  ;;  %4721 = vmatprep.mubr.bf16.mxu1 %v8621_v63  ;;  %v3142_v63 = vld [vmem:[#allocation4 + $0x16a] sm:$0xff] }
 0x290   : > { %4874 = vmatprep.mubr.bf16.mxu0 %v8684_v2  ;;  %v8697_v7 = vpack.c.bf16 %v3143_v26, %v3142_v63  ;;  %v3454_v63 = vld [vmem:[#allocation4 + $0x129] sm:$0xff] }
 0x296   : > { %4722 = vmatmul.mubr.bf16.gmra.mxu1 %v8684_v2 }
 0x297   : > { %4875 = vmatmul.mubr.bf16.gmra.mxu0 %v8689_v25  ;;  %4923 = vmatprep.mubr.bf16.mxu1 %v8439_v19  ;;  %v7038_v19 = vld [vmem:[%s9320_s4 + $0x228] sm:$0xff]  }
 0x298   : > { %4882 = vmatprep.mubr.bf16.mxu0 %v8692_v5 }
 0x29e   : > { %4924 = vmatmul.mubr.bf16.vlgmr.msra.gmra.mxu1 %v3853_v3 }
 0x29f   : > { %4883 = vmatmul.mubr.bf16.gmra.mxu0 %v8697_v7  ;;  %4931 = vmatprep.mubr.bf16.mxu1 %v8493_v61  ;;  %v3438_v61 = vld [vmem:[#allocation4 + $0x69] sm:$0xff] }
 0x2a0   : > { %5084 = vmatprep.mubr.bf16.mxu0 %v3856_v24  ;;  %6811 = vmatpush3.bf16.msra.mxu1 %v8364_v41  ;;  %v7040_v41 = vld [vmem:[%s9320_s4 + $0x218] sm:$0xff]   ;;  %v3874_v0 = vpack.c.bf16 %v3438_v61, %v3437_v27 }
 0x2a1   : > { %6812 = vmatprep.subr.bf16.mxu1 %v7037_v17  ;;  %v3456_v27 = vld [vmem:[#allocation4 + $0x141] sm:$0xff] }
 0x2a4   : > { %6813 = vmatpush3.bf16.msra.mxu1 %v7037_v17 }
 0x2a5   : > { %6814 = vmatprep.subr.bf16.mxu1 %v7038_v19 }
 0x2a6   : > { %4932 = vmatmul.mubr.bf16.gmra.mxu1 %v3856_v24 }
 0x2a7   : > { %5085 = vmatmul.mubr.bf16.vlgmr.msra.gmra.mxu0 %v8402_v51  ;;  %4939 = vmatprep.mubr.bf16.mxu1 %v8545_v60  ;;  %v7042_v51 = vld [vmem:[%s9320_s4 + $0x208] sm:$0xff]   ;;  %v3440_v60 = vld [vmem:[#allocation4 + $0x81] sm:$0xff] }
 0x2a8   : > { %5092 = vmatprep.mubr.bf16.mxu0 %v3865_v43  ;;  %6815 = vmatpush3.bf16.msra.mxu1 %v7038_v19  ;;  %v3883_v52 = vpack.c.bf16 %v3440_v60, %v3439_v55  ;;  %v3455_v55 = vld [vmem:[#allocation4 + $0x139] sm:$0xff] }
 0x2a9   : > { %6816 = vmatprep.subr.bf16.mxu1 %v7039_v46 }
 0x2ac   : > { %6817 = vmatpush3.bf16.msra.mxu1 %v7039_v46 }
 0x2ad   : > { %6818 = vmatprep.subr.bf16.mxu1 %v7040_v41 }
 0x2ae   : > { %4940 = vmatmul.mubr.bf16.gmra.mxu1 %v3865_v43 }
 0x2af   : > { %5093 = vmatmul.mubr.bf16.gmra.mxu0 %v8455_v59  ;;  %4947 = vmatprep.mubr.bf16.mxu1 %v8587_v16  ;;  %v3442_v59 = vld [vmem:[#allocation4 + $0x99] sm:$0xff]  ;;  %v3441_v16 = vld [vmem:[#allocation4 + $0x91] sm:$0xff] }
 0x2b0   : > { %5100 = vmatprep.mubr.bf16.mxu0 %v3874_v0  ;;  %6819 = vmatpush3.bf16.msra.mxu1 %v7040_v41  ;;  %v3892_v34 = vpack.c.bf16 %v3442_v59, %v3441_v16 }
 0x2b1   : > { %6820 = vmatprep.subr.bf16.mxu1 %v7041_v8 }
 0x2b4   : > { %6821 = vmatpush3.bf16.msra.mxu1 %v7041_v8 }
 0x2b5   : > { %6822 = vmatprep.subr.bf16.mxu1 %v7042_v51 }
 0x2b6   : > { %4948 = vmatmul.mubr.bf16.gmra.mxu1 %v3874_v0 }
 0x2b7   : > { %5101 = vmatmul.mubr.bf16.gmra.mxu0 %v8511_v58  ;;  %4955 = vmatprep.mubr.bf16.mxu1 %v8612_v37  ;;  %v3446_v58 = vld [vmem:[#allocation4 + $0xc9] sm:$0xff]  ;;  %v3445_v37 = vld [vmem:[#allocation4 + $0xc1] sm:$0xff] }
 0x2b8   : > { %5108 = vmatprep.mubr.bf16.mxu0 %v3883_v52  ;;  %6823 = vmatpush3.bf16.msra.mxu1 %v7042_v51  ;;  %v3910_v6 = vpack.c.bf16 %v3446_v58, %v3445_v37  ;;  %v3458_v37 = vld [vmem:[#allocation4 + $0x159] sm:$0xff] }
 0x2b9   : > { %6824 = vmatprep.subr.bf16.mxu1 %v7043_v57 }
 0x2bc   : > { %6825 = vmatpush3.bf16.msra.mxu1 %v7043_v57 }
 0x2be   : > { %4956 = vmatmul.mubr.bf16.gmra.mxu1 %v3883_v52 }
 0x2bf   : > { %5109 = vmatmul.mubr.bf16.gmra.mxu0 %v8564_v48  ;;  %4963 = vmatprep.mubr.bf16.mxu1 %v8623_v38  ;;  %v3448_v48 = vld [vmem:[#allocation4 + $0xe1] sm:$0xff]  ;;  %v3447_v38 = vld [vmem:[#allocation4 + $0xd9] sm:$0xff] }
 0x2c0   : > { %5116 = vmatprep.mubr.bf16.mxu0 %v3892_v34  ;;  %v3919_v11 = vpack.c.bf16 %v3448_v48, %v3447_v38 }
 0x2c6   : > { %4964 = vmatmul.mubr.bf16.gmra.mxu1 %v3892_v34 }
 0x2c7   : > { %5117 = vmatmul.mubr.bf16.gmra.mxu0 %v8594_v20  ;;  %4971 = vmatprep.mubr.bf16.mxu1 %v8631_v10  ;;  %v3450_v20 = vld [vmem:[#allocation4 + $0xf9] sm:$0xff]  ;;  %v3449_v10 = vld [vmem:[#allocation4 + $0xf1] sm:$0xff] }
 0x2c8   : > { %5124 = vmatprep.mubr.bf16.mxu0 %v3901_v42  ;;  %v3928_v32 = vpack.c.bf16 %v3450_v20, %v3449_v10  ;;  %v3457_v20 = vld [vmem:[#allocation4 + $0x151] sm:$0xff] }
 0x2ce   : > { %4972 = vmatmul.mubr.bf16.gmra.mxu1 %v3901_v42 }
 0x2cf   : > { %5125 = vmatmul.mubr.bf16.gmra.mxu0 %v8615_v9  ;;  %4979 = vmatprep.mubr.bf16.mxu1 %v8641_v22  ;;  %v6309_v9 = vpop.f32.mrf.mxu1  ;;  %v3452_v22 = vld [vmem:[#allocation4 + $0x111] sm:$0xff] }
 0x2d0   : > { %5132 = vmatprep.mubr.bf16.mxu0 %v3910_v6  ;;  %v3937_v50 = vpack.c.bf16 %v3452_v22, %v3451_v30 }
 0x2d1   : > { %v6310_v47 = vpop.f32.mrf.mxu1 }
 0x2d2   : > { %v6311_v17 = vadd.f32 %v6310_v47, %v6309_v9 }
 0x2d6   : > { %4980 = vmatmul.mubr.bf16.gmra.mxu1 %v3910_v6 }
 0x2d7   : > { %5133 = vmatmul.mubr.bf16.gmra.mxu0 %v8626_v54  ;;  %4987 = vmatprep.mubr.bf16.mxu1 %v8649_v1 }
 0x2d8   : > { %5140 = vmatprep.mubr.bf16.mxu0 %v3919_v11 }
 0x2de   : > { %4988 = vmatmul.mubr.bf16.gmra.mxu1 %v3919_v11 }
 0x2df   : > { %5141 = vmatmul.mubr.bf16.gmra.mxu0 %v8634_v53  ;;  %4995 = vmatprep.mubr.bf16.mxu1 %v8657_v13 }
 0x2e0   : > { %5148 = vmatprep.mubr.bf16.mxu0 %v3928_v32 }
 0x2e6   : > { %v6312_v29 = vpop.f32.mrf.mxu1  ;;  %4996 = vmatmul.mubr.bf16.gmra.mxu1 %v3928_v32 }
 0x2e7   : > { %v6418_v54 = vpop.f32.mrf.mxu0  ;;  %5149 = vmatmul.mubr.bf16.gmra.mxu0 %v8644_v49  ;;  %5003 = vmatprep.mubr.bf16.mxu1 %v8665_v44  ;;  %v3946_v44 = vpack.c.bf16 %v3454_v63, %v3453_v18 }
 0x2e8   : > { %5156 = vmatprep.mubr.bf16.mxu0 %v3937_v50  ;;  %v6313_v1 = vpop.f32.mrf.mxu1 }
 0x2e9   : > { %v6314_v36 = vadd.f32 %v6313_v1, %v6312_v29  ;;  %v6419_v40 = vpop.f32.mrf.mxu0  ;;  %v3460_v1 = vld [vmem:[#allocation4 + $0x171] sm:$0xff] }
 0x2ea   : > { %v6420_v53 = vadd.f32 %v6419_v40, %v6418_v54  ;;  %v6315_v15 = vpop.f32.mrf.mxu1 }
 0x2eb   : > { %v6421_v13 = vpop.f32.mrf.mxu0 }
 0x2ec   : > { %v8742_v26 = vadd.f32 %v6420_v53, %v8639_v62  ;;  %v6316_v28 = vpop.f32.mrf.mxu1 }
 0x2ed   : > { %v6317_v14 = vadd.f32 %v6316_v28, %v6315_v15  ;;  %v6422_v3 = vpop.f32.mrf.mxu0 }
 0x2ee   : > { %v6423_v24 = vadd.f32 %v6422_v3, %v6421_v13  ;;  %v6318_v49 = vpop.f32.mrf.mxu1  ;;  %5004 = vmatmul.mubr.bf16.gmra.mxu1 %v3937_v50  ;;  %v3459_v13 = vld [vmem:[#allocation4 + $0x169] sm:$0xff] }
 0x2ef   : > { %v6424_v19 = vpop.f32.mrf.mxu0  ;;  %5157 = vmatmul.mubr.bf16.gmra.mxu0 %v8652_v56  ;;  %5011 = vmatprep.mubr.bf16.mxu1 %v8673_v39  ;;  %v3955_v39 = vpack.c.bf16 %v3456_v27, %v3455_v55 }
 0x2f0   : > { %v8746_v35 = vadd.f32 %v6423_v24, %v6311_v17  ;;  %5164 = vmatprep.mubr.bf16.mxu0 %v3946_v44  ;;  %v6319_v45 = vpop.f32.mrf.mxu1 }
 0x2f1   : > { %v6320_v62 = vadd.f32 %v6319_v45, %v6318_v49  ;;  %v6425_v46 = vpop.f32.mrf.mxu0 }
 0x2f2   : > { %v6426_v43 = vadd.f32 %v6425_v46, %v6424_v19  ;;  %v6321_v41 = vpop.f32.mrf.mxu1  ;;  %v3335_v19 = vld [vmem:[#allocation4 + $0x18a] sm:$0xff] }
 0x2f3   : > { %v6427_v61 = vpop.f32.mrf.mxu0 }
 0x2f4   : > { %v8748_v8 = vadd.f32 %v6426_v43, %v6314_v36  ;;  %v6322_v0 = vpop.f32.mrf.mxu1 }
 0x2f5   : > { %v6323_v51 = vadd.f32 %v6322_v0, %v6321_v41  ;;  %v6428_v60 = vpop.f32.mrf.mxu0 }
 0x2f6   : > { %v6429_v57 = vadd.f32 %v6428_v60, %v6427_v61  ;;  %v6324_v56 = vpop.f32.mrf.mxu1  ;;  %5012 = vmatmul.mubr.bf16.gmra.mxu1 %v3946_v44  ;;  %v3334_v44 = vld [vmem:[#allocation4 + $0x182] sm:$0xff] }
 0x2f7   : > { %v6430_v52 = vpop.f32.mrf.mxu0  ;;  %5165 = vmatmul.mubr.bf16.gmra.mxu0 %v8660_v23  ;;  %5019 = vmatprep.mubr.bf16.mxu1 %v8681_v4  ;;  %v3964_v4 = vpack.c.bf16 %v3458_v37, %v3457_v20 }
 0x2f8   : > { %v8752_v59 = vadd.f32 %v6429_v57, %v6317_v14  ;;  %5172 = vmatprep.mubr.bf16.mxu0 %v3955_v39  ;;  %v6325_v16 = vpop.f32.mrf.mxu1 }
 0x2f9   : > { %v6326_v34 = vadd.f32 %v6325_v16, %v6324_v56  ;;  %v6431_v21 = vpop.f32.mrf.mxu0  ;;  %v3464_v16 = vld [vmem:[#allocation4 + $0x1a1] sm:$0xff] }
 0x2fa   : > { %v6432_v31 = vadd.f32 %v6431_v21, %v6430_v52  ;;  %v6327_v42 = vpop.f32.mrf.mxu1  ;;  %v3463_v52 = vld [vmem:[#allocation4 + $0x199] sm:$0xff] }
 0x2fb   : > { %v6433_v58 = vpop.f32.mrf.mxu0 }
 0x2fc   : > { %v8754_v6 = vadd.f32 %v6432_v31, %v6320_v62  ;;  %v6328_v48 = vpop.f32.mrf.mxu1  ;;  %v3462_v62 = vld [vmem:[#allocation4 + $0x189] sm:$0xff]  ;;  %v3497_v31 = vld [vmem:[#allocation4 + $0x32] sm:$0xff] }
 0x2fd   : > { %v6329_v38 = vadd.f32 %v6328_v48, %v6327_v42  ;;  %v6434_v11 = vpop.f32.mrf.mxu0  ;;  %v3498_v42 = vld [vmem:[#allocation4 + $0x3a] sm:$0xff] }
 0x2fe   : > { %v6435_v10 = vadd.f32 %v6434_v11, %v6433_v58  ;;  %v6330_v23 = vpop.f32.mrf.mxu1  ;;  %5020 = vmatmul.mubr.bf16.gmra.mxu1 %v3955_v39  ;;  %v3857_v20 = vpack.c.bf16 %v3498_v42, %v3497_v31 }
 0x2ff   : > { %v6436_v32 = vpop.f32.mrf.mxu0  ;;  %5173 = vmatmul.mubr.bf16.gmra.mxu0 %v8668_v12  ;;  %5027 = vmatprep.mubr.bf16.mxu1 %v8689_v25  ;;  %v3973_v25 = vpack.c.bf16 %v3460_v1, %v3459_v13  ;;  %v7045_v13 = vld [vmem:[#allocation2] sm:$0xff] }
 0x300   : > { %v8758_v9 = vadd.f32 %v6435_v10, %v6323_v51  ;;  %5180 = vmatprep.mubr.bf16.mxu0 %v3964_v4  ;;  %v6331_v22 = vpop.f32.mrf.mxu1 }
 0x301   : > { %v6332_v47 = vadd.f32 %v6331_v22, %v6330_v23  ;;  %v6437_v30 = vpop.f32.mrf.mxu0 }
 0x302   : > { %v6438_v29 = vadd.f32 %v6437_v30, %v6436_v32  ;;  %v6333_v50 = vpop.f32.mrf.mxu1 }
 0x303   : > { %v6439_v54 = vpop.f32.mrf.mxu0 }
 0x304   : > { %v8760_v36 = vadd.f32 %v6438_v29, %v6326_v34  ;;  %v6334_v40 = vpop.f32.mrf.mxu1  ;;  %v3499_v29 = vld [vmem:[#allocation4 + $0x4a] sm:$0xff] }
 0x305   : > { %v6335_v53 = vadd.f32 %v6334_v40, %v6333_v50  ;;  %v6440_v15 = vpop.f32.mrf.mxu0  ;;  %v3500_v50 = vld [vmem:[#allocation4 + $0x52] sm:$0xff]  ;;  %v3501_v40 = vld [vmem:[#allocation4 + $0x62] sm:$0xff] }
 0x306   : > { %v6441_v63 = vadd.f32 %v6440_v15, %v6439_v54  ;;  %v6336_v12 = vpop.f32.mrf.mxu1  ;;  %5028 = vmatmul.mubr.bf16.gmra.mxu1 %v3964_v4 }
 0x307   : > { %v6442_v28 = vpop.f32.mrf.mxu0  ;;  %5181 = vmatmul.mubr.bf16.gmra.mxu0 %v8676_v33  ;;  %5035 = vmatprep.mubr.bf16.mxu1 %v8697_v7  ;;  %v8768_v33 = vpack.c.bf16 %v3335_v19, %v3334_v44  ;;  %v3461_v7 = vld [vmem:[#allocation4 + $0x181] sm:$0xff] }
 0x308   : > { %v8764_v14 = vadd.f32 %v6441_v63, %v6329_v38  ;;  %5188 = vmatprep.mubr.bf16.mxu0 %v3973_v25  ;;  %v6337_v3 = vpop.f32.mrf.mxu1  ;;  %v3982_v51 = vpack.c.bf16 %v3462_v62, %v3461_v7  ;;  %v3991_v38 = vpack.c.bf16 %v3464_v16, %v3463_v52  ;;  %v3990_v63 = vpack.c.bf16 %v7045_v13, %v7045_v13 }
 0x309   : > { %v6338_v18 = vadd.f32 %v6337_v3, %v6336_v12  ;;  %v6443_v17 = vpop.f32.mrf.mxu0 }
 0x30a   : > { %v6444_v24 = vadd.f32 %v6443_v17, %v6442_v28  ;;  %v6339_v49 = vpop.f32.mrf.mxu1 }
 0x30b   : > { %v6445_v45 = vpop.f32.mrf.mxu0 }
 0x30c   : > { %v8766_v46 = vadd.f32 %v6444_v24, %v6332_v47  ;;  %v6340_v43 = vpop.f32.mrf.mxu1 }
 0x30d   : > { %v6341_v41 = vadd.f32 %v6340_v43, %v6339_v49  ;;  %v6446_v61 = vpop.f32.mrf.mxu0  ;;  %v3503_v43 = vld [vmem:[#allocation4 + $0x7a] sm:$0xff] }
 0x30e   : > { %v6447_v27 = vadd.f32 %v6446_v61, %v6445_v45  ;;  %v6342_v0 = vpop.f32.mrf.mxu1  ;;  %5036 = vmatmul.mubr.bf16.gmra.mxu1 %v3973_v25 }
 0x30f   : > { %v6448_v60 = vpop.f32.mrf.mxu0  ;;  %5189 = vmatmul.mubr.bf16.gmra.mxu0 %v8684_v2  ;;  %5043 = vmatprep.mubr.bf16.mxu1 %v8768_v33 }
 0x310   : > { %v8772_v55 = vadd.f32 %v6447_v27, %v6335_v53  ;;  %5196 = vmatprep.mubr.bf16.mxu0 %v3982_v51  ;;  %v6343_v57 = vpop.f32.mrf.mxu1  ;;  %v3502_v53 = vld [vmem:[#allocation4 + $0x6a] sm:$0xff]  ;;  %v3505_v27 = vld [vmem:[#allocation4 + $0x92] sm:$0xff] }
 0x311   : > { %v6344_v56 = vadd.f32 %v6343_v57, %v6342_v0  ;;  %v6449_v39 = vpop.f32.mrf.mxu0  ;;  %v3506_v0 = vld [vmem:[#allocation4 + $0x9a] sm:$0xff] }
 0x312   : > { %v6450_v34 = vadd.f32 %v6449_v39, %v6448_v60  ;;  %v6345_v21 = vpop.f32.mrf.mxu1  ;;  %v3893_v16 = vpack.c.bf16 %v3506_v0, %v3505_v27 }
 0x313   : > { %v6451_v58 = vpop.f32.mrf.mxu0 }
 0x314   : > { %v8774_v37 = vadd.f32 %v6450_v34, %v6338_v18  ;;  %v6346_v48 = vpop.f32.mrf.mxu1  ;;  %v3875_v18 = vpack.c.bf16 %v3502_v53, %v3501_v40 }
 0x315   : > { %v6347_v2 = vadd.f32 %v6346_v48, %v6345_v21  ;;  %v6452_v11 = vpop.f32.mrf.mxu0 }
 0x316   : > { %v6453_v10 = vadd.f32 %v6452_v11, %v6451_v58  ;;  %v6348_v23 = vpop.f32.mrf.mxu1  ;;  %5044 = vmatmul.mubr.bf16.gmra.mxu1 %v3982_v51  ;;  %v3508_v11 = vld [vmem:[#allocation4 + $0xb2] sm:$0xff] }
 0x317   : > { %v6454_v4 = vpop.f32.mrf.mxu0  ;;  %5197 = vmatmul.mubr.bf16.gmra.mxu0 %v8692_v5  ;;  %6826 = vmatprep.mubr.bf16.mxu1 %v3857_v20  ;;  %v3866_v5 = vpack.c.bf16 %v3500_v50, %v3499_v29 }
 0x318   : > { %v8777_v32 = vadd.f32 %v6453_v10, %v6341_v41  ;;  %v6349_v22 = vpop.f32.mrf.mxu1  ;;  %5204 = vmatprep.mubr.bf16.mxu0 %v3991_v38  ;;  %v3504_v41 = vld [vmem:[#allocation4 + $0x82] sm:$0xff] }
 0x319   : > { %v6350_v47 = vadd.f32 %v6349_v22, %v6348_v23  ;;  %v6455_v30 = vpop.f32.mrf.mxu0  ;;  %v3509_v23 = vld [vmem:[#allocation4 + $0xc2] sm:$0xff] }
 0x31a   : > { %v6456_v54 = vadd.f32 %v6455_v30, %v6454_v4  ;;  %v6351_v1 = vpop.f32.mrf.mxu1  ;;  %v3510_v4 = vld [vmem:[#allocation4 + $0xca] sm:$0xff] }
 0x31b   : > { %v6457_v15 = vpop.f32.mrf.mxu0 }
 0x31c   : > { %v8779_v12 = vadd.f32 %v6456_v54, %v6344_v56  ;;  %v6352_v25 = vpop.f32.mrf.mxu1  ;;  %v3884_v56 = vpack.c.bf16 %v3504_v41, %v3503_v43 }
 0x31d   : > { %v6353_v28 = vadd.f32 %v6352_v25, %v6351_v1  ;;  %v6458_v3 = vpop.f32.mrf.mxu0  ;;  %v3911_v1 = vpack.c.bf16 %v3510_v4, %v3509_v23 }
 0x31e   : > { %v6459_v17 = vadd.f32 %v6458_v3, %v6457_v15  ;;  %v6354_v24 = vpop.f32.mrf.mxu1  ;;  %6827 = vmatmul.mubr.bf16.vlgmr.msra.gmra.mxu1 %v3866_v5  ;;  %v3512_v3 = vld [vmem:[#allocation4 + $0xe2] sm:$0xff] }
 0x31f   : > { %v6460_v49 = vpop.f32.mrf.mxu0  ;;  %5205 = vmatmul.mubr.bf16.gmra.mxu0 %v3990_v63  ;;  %6830 = vmatprep.mubr.bf16.mxu1 %v3875_v18 }
 0x320   : > { %v8781_v44 = vadd.f32 %v6459_v17, %v6347_v2  ;;  %v6355_v19 = vpop.f32.mrf.mxu1  ;;  %v3507_v2 = vld [vmem:[#allocation4 + $0xaa] sm:$0xff] }
 0x321   : > { %v6356_v45 = vadd.f32 %v6355_v19, %v6354_v24  ;;  %v6461_v62 = vpop.f32.mrf.mxu0  ;;  %v3902_v29 = vpack.c.bf16 %v3508_v11, %v3507_v2  ;;  %v3513_v24 = vld [vmem:[#allocation4 + $0xf2] sm:$0xff] }
 0x322   : > { %v6462_v61 = vadd.f32 %v6461_v62, %v6460_v49  ;;  %v6357_v7 = vpop.f32.mrf.mxu1  ;;  %v3514_v49 = vld [vmem:[#allocation4 + $0xfa] sm:$0xff] }
 0x323   : > { %v6463_v51 = vpop.f32.mrf.mxu0 }
 0x324   : > { %v8783_v60 = vadd.f32 %v6462_v61, %v6350_v47  ;;  %v6358_v57 = vpop.f32.mrf.mxu1 }
 0x325   : > { %v6359_v39 = vadd.f32 %v6358_v57, %v6357_v7  ;;  %v6464_v52 = vpop.f32.mrf.mxu0  ;;  %v3929_v7 = vpack.c.bf16 %v3514_v49, %v3513_v24 }
 0x326   : > { %v6465_v34 = vadd.f32 %v6464_v52, %v6463_v51  ;;  %v6360_v21 = vpop.f32.mrf.mxu1  ;;  %6831 = vmatmul.mubr.bf16.gmra.mxu1 %v3884_v56 }
 0x327   : > { %v6466_v31 = vpop.f32.mrf.mxu0  ;;  %6834 = vmatprep.mubr.bf16.mxu1 %v3893_v16  ;;  %v3515_v16 = vld [vmem:[#allocation4 + $0x10a] sm:$0xff] }
 0x328   : > { %v8785_v42 = vadd.f32 %v6465_v34, %v6353_v28  ;;  %v6361_v58 = vpop.f32.mrf.mxu1  ;;  %v3511_v28 = vld [vmem:[#allocation4 + $0xda] sm:$0xff]  ;;  %v3516_v34 = vld [vmem:[#allocation4 + $0x112] sm:$0xff] }
 0x329   : > { %v6362_v48 = vadd.f32 %v6361_v58, %v6360_v21  ;;  %v6467_v38 = vpop.f32.mrf.mxu0  ;;  %v3920_v43 = vpack.c.bf16 %v3512_v3, %v3511_v28  ;;  %v3517_v58 = vld [vmem:[#allocation4 + $0x122] sm:$0xff]  ;;  %v3522_v28 = vld [vmem:[#allocation4 + $0x15a] sm:$0xff] }
 0x32a   : > { %v6468_v20 = vadd.f32 %v6467_v38, %v6466_v31  ;;  %v6363_v10 = vpop.f32.mrf.mxu1 }
 0x32b   : > { %v6469_v22 = vpop.f32.mrf.mxu0 }
 0x32c   : > { %v8787_v47 = vadd.f32 %v6468_v20, %v6356_v45  ;;  %v6364_v30 = vpop.f32.mrf.mxu1  ;;  %v3938_v20 = vpack.c.bf16 %v3516_v34, %v3515_v16 }
 0x32d   : > { %v6365_v50 = vadd.f32 %v6364_v30, %v6363_v10  ;;  %v6470_v54 = vpop.f32.mrf.mxu0 }
 0x32e   : > { %v6471_v40 = vadd.f32 %v6470_v54, %v6469_v22  ;;  %v6366_v53 = vpop.f32.mrf.mxu1  ;;  %6835 = vmatmul.mubr.bf16.gmra.mxu1 %v3902_v29 }
 0x32f   : > { %v6472_v15 = vpop.f32.mrf.mxu0  ;;  %6838 = vmatprep.mubr.bf16.mxu1 %v3911_v1 }
 0x330   : > { %v8789_v13 = vadd.f32 %v6471_v40, %v6359_v39  ;;  %v6367_v63 = vpop.f32.mrf.mxu1 }
 0x331   : > { %v6368_v25 = vadd.f32 %v6367_v63, %v6366_v53  ;;  %v6473_v5 = vpop.f32.mrf.mxu0  ;;  %v3519_v53 = vld [vmem:[#allocation4 + $0x13a] sm:$0xff] }
 0x332   : > { %v6474_v18 = vadd.f32 %v6473_v5, %v6472_v15  ;;  %v6369_v17 = vpop.f32.mrf.mxu1  ;;  %v3520_v15 = vld [vmem:[#allocation4 + $0x142] sm:$0xff]  ;;  %v3521_v5 = vld [vmem:[#allocation4 + $0x152] sm:$0xff] }
 0x333   : > { %v6475_v19 = vpop.f32.mrf.mxu0  ;;  %v3956_v24 = vpack.c.bf16 %v3520_v15, %v3519_v53 }
 0x334   : > { %v8791_v45 = vadd.f32 %v6474_v18, %v6362_v48  ;;  %v6370_v62 = vpop.f32.mrf.mxu1  ;;  %v3518_v48 = vld [vmem:[#allocation4 + $0x12a] sm:$0xff] }
 0x335   : > { %v6371_v41 = vadd.f32 %v6370_v62, %v6369_v17  ;;  %v6476_v61 = vpop.f32.mrf.mxu0  ;;  %v3947_v4 = vpack.c.bf16 %v3518_v48, %v3517_v58  ;;  %v3965_v62 = vpack.c.bf16 %v3522_v28, %v3521_v5 }
 0x336   : > { %v6477_v27 = vadd.f32 %v6476_v61, %v6475_v19  ;;  %v6372_v0 = vpop.f32.mrf.mxu1  ;;  %6839 = vmatmul.mubr.bf16.gmra.mxu1 %v3920_v43 }
 0x337   : > { %v6478_v51 = vpop.f32.mrf.mxu0  ;;  %6842 = vmatprep.mubr.bf16.mxu1 %v3929_v7 }
 0x338   : > { %v8793_v57 = vadd.f32 %v6477_v27, %v6365_v50  ;;  %v6373_v56 = vpop.f32.mrf.mxu1 }
 0x339   : > { %v6374_v39 = vadd.f32 %v6373_v56, %v6372_v0  ;;  %v6479_v52 = vpop.f32.mrf.mxu0  ;;  %v3523_v56 = vld [vmem:[#allocation4 + $0x16a] sm:$0xff] }
 0x33a   : > { %v6480_v21 = vadd.f32 %v6479_v52, %v6478_v51  ;;  %v6375_v31 = vpop.f32.mrf.mxu1  ;;  %v3524_v52 = vld [vmem:[#allocation4 + $0x172] sm:$0xff] }
 0x33b   : > { %v6481_v38 = vpop.f32.mrf.mxu0  ;;  %v3974_v58 = vpack.c.bf16 %v3524_v52, %v3523_v56 }
 0x33c   : > { %v8795_v2 = vadd.f32 %v6480_v21, %v6368_v25  ;;  %v6376_v11 = vpop.f32.mrf.mxu1 }
 0x33d   : > { %v6377_v10 = vadd.f32 %v6376_v11, %v6375_v31  ;;  %v6482_v23 = vpop.f32.mrf.mxu0 }
 0x33e   : > { %v6483_v22 = vadd.f32 %v6482_v23, %v6481_v38  ;;  %v6378_v30 = vpop.f32.mrf.mxu1  ;;  %6843 = vmatmul.mubr.bf16.gmra.mxu1 %v3938_v20 }
 0x33f   : > { %v6484_v29 = vpop.f32.mrf.mxu0  ;;  %6846 = vmatprep.mubr.bf16.mxu1 %v3947_v4  ;;  %v3528_v4 = vld [vmem:[#allocation4 + $0x1a2] sm:$0xff] }
 0x340   : > { %v8797_v50 = vadd.f32 %v6483_v22, %v6371_v41  ;;  %v6379_v54 = vpop.f32.mrf.mxu1 }
 0x341   : > { %v6380_v1 = vadd.f32 %v6379_v54, %v6378_v30  ;;  %v6485_v40 = vpop.f32.mrf.mxu0 }
 0x342   : > { %v6486_v63 = vadd.f32 %v6485_v40, %v6484_v29  ;;  %v6381_v25 = vpop.f32.mrf.mxu1 }
 0x343   : > { %v6487_v3 = vpop.f32.mrf.mxu0 }
 0x344   : > { %v8799_v18 = vadd.f32 %v6486_v63, %v6374_v39  ;;  %v6382_v17 = vpop.f32.mrf.mxu1 }
 0x345   : > { %v6383_v49 = vadd.f32 %v6382_v17, %v6381_v25  ;;  %v6488_v19 = vpop.f32.mrf.mxu0 }
 0x346   : > { %v6489_v43 = vadd.f32 %v6488_v19, %v6487_v3  ;;  %v6384_v41 = vpop.f32.mrf.mxu1  ;;  %6847 = vmatmul.mubr.bf16.gmra.mxu1 %v3956_v24 }
 0x347   : > { %v6490_v61 = vpop.f32.mrf.mxu0  ;;  %6850 = vmatprep.mubr.bf16.mxu1 %v3965_v62 }
 0x348   : > { %v8801_v7 = vadd.f32 %v6489_v43, %v6377_v10  ;;  %v6385_v27 = vpop.f32.mrf.mxu1  ;;  %v3527_v10 = vld [vmem:[#allocation4 + $0x19a] sm:$0xff] }
 0x349   : > { %v6386_v0 = vadd.f32 %v6385_v27, %v6384_v41  ;;  %v6491_v51 = vpop.f32.mrf.mxu0  ;;  %v3992_v53 = vpack.c.bf16 %v3528_v4, %v3527_v10 }
 0x34a   : > { %v6492_v16 = vadd.f32 %v6491_v51, %v6490_v61  ;;  %v6387_v39 = vpop.f32.mrf.mxu1 }
 0x34b   : > { %v6493_v34 = vpop.f32.mrf.mxu0 }
 0x34c   : > { %v8803_v21 = vadd.f32 %v6492_v16, %v6380_v1  ;;  %v6388_v31 = vpop.f32.mrf.mxu1 }
 0x34d   : > { %v6389_v48 = vadd.f32 %v6388_v31, %v6387_v39  ;;  %v6494_v38 = vpop.f32.mrf.mxu0 }
 0x34e   : > { %v6495_v11 = vadd.f32 %v6494_v38, %v6493_v34  ;;  %v6390_v20 = vpop.f32.mrf.mxu1  ;;  %6851 = vmatmul.mubr.bf16.gmra.mxu1 %v3974_v58 }
 0x34f   : > { %v6496_v23 = vpop.f32.mrf.mxu0  ;;  %6854 = vmatprep.mubr.bf16.mxu1 %v8768_v33 }
 0x350   : > { %v8806_v22 = vadd.f32 %v6495_v11, %v6383_v49  ;;  %v6391_v30 = vpop.f32.mrf.mxu1 }
 0x351   : > { %v6392_v29 = vadd.f32 %v6391_v30, %v6390_v20  ;;  %v6497_v54 = vpop.f32.mrf.mxu0 }
 0x352   : > { %v6498_v40 = vadd.f32 %v6497_v54, %v6496_v23  ;;  %v6393_v1 = vpop.f32.mrf.mxu1 }
 0x353   : > { %v6499_v15 = vpop.f32.mrf.mxu0 }
 0x354   : > { %v8808_v63 = vadd.f32 %v6498_v40, %v6386_v0  ;;  %v6394_v25 = vpop.f32.mrf.mxu1 }
 0x355   : > { %v6395_v5 = vadd.f32 %v6394_v25, %v6393_v1  ;;  %v6500_v28 = vpop.f32.mrf.mxu0 }
 0x356   : > { %v6501_v3 = vadd.f32 %v6500_v28, %v6499_v15  ;;  %v6396_v17 = vpop.f32.mrf.mxu1  ;;  %6855 = vmatmul.mubr.bf16.gmra.mxu1 %v3992_v53 }
 0x357   : > { %v6502_v33 = vpop.f32.mrf.mxu0 }
 0x358   : > { %v8810_v24 = vadd.f32 %v6501_v3, %v6389_v48  ;;  %v6397_v49 = vpop.f32.mrf.mxu1 }
 0x359   : > { %v6398_v19 = vadd.f32 %v6397_v49, %v6396_v17  ;;  %v6503_v62 = vpop.f32.mrf.mxu0 }
 0x35a   : > { %v6504_v43 = vadd.f32 %v6503_v62, %v6502_v33  ;;  %v6399_v41 = vpop.f32.mrf.mxu1 }
 0x35b   : > { %v6505_v61 = vpop.f32.mrf.mxu0 }
 0x35c   : > { %v8812_v27 = vadd.f32 %v6504_v43, %v6392_v29  ;;  %v6400_v51 = vpop.f32.mrf.mxu1 }
 0x35d   : > { %v6401_v0 = vadd.f32 %v6400_v51, %v6399_v41  ;;  %v6506_v56 = vpop.f32.mrf.mxu0 }
 0x35e   : > { %v6507_v52 = vadd.f32 %v6506_v56, %v6505_v61  ;;  %v6530_v16 = vpop.f32.mrf.mxu1 }
 0x35f   : > { %v6508_v39 = vpop.f32.mrf.mxu0 }
 0x360   : > { %v8814_v34 = vadd.f32 %v6507_v52, %v6395_v5  ;;  %v6531_v31 = vpop.f32.mrf.mxu1 }
 0x361   : > { %v6509_v58 = vpop.f32.mrf.mxu0  ;;  %v6532_v48 = vadd.f32 %v6531_v31, %v6530_v16 }
 0x362   : > { %v6510_v38 = vadd.f32 %v6509_v58, %v6508_v39  ;;  %v6533_v11 = vpop.f32.mrf.mxu1 }
 0x363   : > { %v4926_v20 = vadd.f32 %v6532_v48, %v8742_v26  ;;  %v6511_v23 = vpop.f32.mrf.mxu0 }
 0x364   : > { %v8817_v10 = vadd.f32 %v6510_v38, %v6398_v19  ;;  %v6534_v4 = vpop.f32.mrf.mxu1 }
 0x365   : > { %v6512_v30 = vpop.f32.mrf.mxu0  ;;  %v6535_v29 = vadd.f32 %v6534_v4, %v6533_v11 }
 0x366   : > { %9384 = vst [vmem:[#allocation14_spill] sm:$0xff] %v8817_v10  ;;  %v6513_v54 = vadd.f32 %v6512_v30, %v6511_v23  ;;  %v6536_v40 = vpop.f32.mrf.mxu1 }
 0x367   : > { %v4929_v1 = vadd.f32 %v6535_v29, %v8746_v35  ;;  %v6642_v53 = vpop.f32.mrf.mxu0 }
 0x368   : > { %v8820_v15 = vadd.f32 %v6513_v54, %v6401_v0  ;;  %v6537_v25 = vpop.f32.mrf.mxu1 }
 0x369   : > { %v6538_v5 = vadd.f32 %v6537_v25, %v6536_v40  ;;  %v6643_v28 = vpop.f32.mrf.mxu0 }
 0x36a   : > { %9385 = vst [vmem:[#allocation11_spill] sm:$0xff] %v8820_v15  ;;  %v6644_v3 = vadd.f32 %v6643_v28, %v6642_v53  ;;  %v6539_v17 = vpop.f32.mrf.mxu1 }
 0x36b   : > { %v8823_v26 = vadd.f32 %v6538_v5, %v8748_v8  ;;  %v6645_v33 = vpop.f32.mrf.mxu0 }
 0x36c   : > { %v6540_v49 = vpop.f32.mrf.mxu1  ;;  %v8825_v19 = vadd.f32 %v6644_v3, %v4926_v20 }
 0x36d   : > { %v6541_v62 = vadd.f32 %v6540_v49, %v6539_v17  ;;  %v6646_v43 = vpop.f32.mrf.mxu0 }
 0x36e   : > { %v6647_v41 = vadd.f32 %v6646_v43, %v6645_v33  ;;  %v6542_v61 = vpop.f32.mrf.mxu1 }
 0x36f   : > { %v8828_v35 = vadd.f32 %v6541_v62, %v8752_v59  ;;  %v8830_v51 = vpop.f32.mrf.mxu0 }
 0x370   : > { %v6543_v0 = vpop.f32.mrf.mxu1  ;;  %v8832_v56 = vadd.f32 %v6647_v41, %v4929_v1 }
 0x371   : > { %v6544_v52 = vadd.f32 %v6543_v0, %v6542_v61  ;;  %v8834_v16 = vpop.f32.mrf.mxu0 }
 0x372   : > { %v6545_v8 = vpop.f32.mrf.mxu1 }
 0x373   : > { %v8837_v39 = vadd.f32 %v6544_v52, %v8754_v6  ;;  %v8839_v31 = vpop.f32.mrf.mxu0 }
 0x374   : > { %v6546_v58 = vpop.f32.mrf.mxu1 }
 0x375   : > { %v6547_v48 = vadd.f32 %v6546_v58, %v6545_v8  ;;  %v8841_v38 = vpop.f32.mrf.mxu0 }
 0x376   : > { %v6548_v59 = vpop.f32.mrf.mxu1 }
 0x377   : > { %v8844_v11 = vadd.f32 %v6547_v48, %v8758_v9  ;;  %v8846_v20 = vpop.f32.mrf.mxu0 }
 0x378   : > { %v6549_v23 = vpop.f32.mrf.mxu1 }
 0x379   : > { %v6550_v4 = vadd.f32 %v6549_v23, %v6548_v59  ;;  %v8848_v30 = vpop.f32.mrf.mxu0 }
 0x37a   : > { %v6551_v29 = vpop.f32.mrf.mxu1 }
 0x37b   : > { %v8851_v6 = vadd.f32 %v6550_v4, %v8760_v36  ;;  %v8853_v54 = vpop.f32.mrf.mxu0 }
 0x37c   : > { %v6552_v40 = vpop.f32.mrf.mxu1 }
 0x37d   : > { %v6553_v1 = vadd.f32 %v6552_v40, %v6551_v29  ;;  %v8855_v53 = vpop.f32.mrf.mxu0 }
 0x37e   : > { %v6554_v25 = vpop.f32.mrf.mxu1 }
 0x37f   : > { %v8858_v9 = vadd.f32 %v6553_v1, %v8764_v14  ;;  %v8860_v5 = vpop.f32.mrf.mxu0 }
 0x380   : > { %v6555_v28 = vpop.f32.mrf.mxu1 }
 0x381   : > { %v6556_v3 = vadd.f32 %v6555_v28, %v6554_v25  ;;  %v8862_v17 = vpop.f32.mrf.mxu0 }
 0x382   : > { %v6557_v33 = vpop.f32.mrf.mxu1 }
 0x383   : > { %v8865_v36 = vadd.f32 %v6556_v3, %v8766_v46  ;;  %v8867_v49 = vpop.f32.mrf.mxu0 }
 0x384   : > { %v6558_v62 = vpop.f32.mrf.mxu1 }
 0x385   : > { %v6559_v43 = vadd.f32 %v6558_v62, %v6557_v33  ;;  %v8869_v41 = vpop.f32.mrf.mxu0 }
 0x386   : > { %v6560_v61 = vpop.f32.mrf.mxu1 }
 0x387   : > { %v8872_v14 = vadd.f32 %v6559_v43, %v8772_v55  ;;  %v8874_v0 = vpop.f32.mrf.mxu0 }
 0x388   : > { %v6561_v52 = vpop.f32.mrf.mxu1 }
 0x389   : > { %v6562_v8 = vadd.f32 %v6561_v52, %v6560_v61  ;;  %v8876_v58 = vpop.f32.mrf.mxu0 }
 0x38a   : > { %v6563_v48 = vpop.f32.mrf.mxu1 }
 0x38b   : > { %v8879_v46 = vadd.f32 %v6562_v8, %v8774_v37  ;;  %v8881_v59 = vpop.f32.mrf.mxu0 }
 0x38c   : > { %v6564_v23 = vpop.f32.mrf.mxu1 }
 0x38d   : > { %v6565_v4 = vadd.f32 %v6564_v23, %v6563_v48  ;;  %v8883_v29 = vpop.f32.mrf.mxu0 }
 0x38e   : > { %v6566_v40 = vpop.f32.mrf.mxu1 }
 0x38f   : > { %v8886_v55 = vadd.f32 %v6565_v4, %v8777_v32  ;;  %v8888_v1 = vpop.f32.mrf.mxu0 }
 0x390   : > { %v6567_v25 = vpop.f32.mrf.mxu1 }
 0x391   : > { %v6568_v28 = vadd.f32 %v6567_v25, %v6566_v40  ;;  %v8890_v3 = vpop.f32.mrf.mxu0 }
 0x392   : > { %v6569_v33 = vpop.f32.mrf.mxu1 }
 0x393   : > { %v8893_v37 = vadd.f32 %v6568_v28, %v8779_v12  ;;  %v8895_v62 = vpop.f32.mrf.mxu0 }
 0x394   : > { %v6570_v43 = vpop.f32.mrf.mxu1 }
 0x395   : > { %9386 = vst [vmem:[#allocation15_spill] sm:$0xff] %v8893_v37  ;;  %v6571_v61 = vadd.f32 %v6570_v43, %v6569_v33  ;;  %v8897_v52 = vpop.f32.mrf.mxu0 }
 0x396   : > { %v6572_v8 = vpop.f32.mrf.mxu1 }
 0x397   : > { %v8900_v32 = vadd.f32 %v6571_v61, %v8781_v44  ;;  %v8902_v48 = vpop.f32.mrf.mxu0 }
 0x398   : > { %v6573_v23 = vpop.f32.mrf.mxu1 }
 0x399   : > { %9387 = vst [vmem:[#allocation12_spill] sm:$0xff] %v8900_v32  ;;  %v6574_v4 = vadd.f32 %v6573_v23, %v6572_v8  ;;  %v8904_v40 = vpop.f32.mrf.mxu0 }
 0x39a   : > { %v6575_v25 = vpop.f32.mrf.mxu1 }
 0x39b   : > { %v8907_v12 = vadd.f32 %v6574_v4, %v8783_v60  ;;  %v8909_v28 = vpop.f32.mrf.mxu0 }
 0x39c   : > { %9389 = vst [vmem:[#allocation16_spill] sm:$0xff] %v8909_v28  ;;  %v6576_v15 = vpop.f32.mrf.mxu1 }
 0x39d   : > { %9388 = vst [vmem:[#allocation25_spill] sm:$0xff] %v8907_v12  ;;  %v6577_v33 = vadd.f32 %v6576_v15, %v6575_v25  ;;  %v8911_v43 = vpop.f32.mrf.mxu0 }
 0x39e   : > { %9390 = vst [vmem:[#allocation18_spill] sm:$0xff] %v8911_v43  ;;  %v6578_v10 = vpop.f32.mrf.mxu1 }
 0x39f   : > { %v8914_v44 = vadd.f32 %v6577_v33, %v8785_v42  ;;  %v8916_v61 = vpop.f32.mrf.mxu0 }
 0x3a0   : > { %v6579_v32 = vpop.f32.mrf.mxu1 }
 0x3a1   : > { %9391 = vst [vmem:[#allocation20_spill] sm:$0xff] %v8914_v44  ;;  %v6580_v8 = vadd.f32 %v6579_v32, %v6578_v10  ;;  %v8918_v23 = vpop.f32.mrf.mxu0 }
 0x3a2   : > { %v6581_v37 = vpop.f32.mrf.mxu1 }
 0x3a3   : > { %v8921_v60 = vadd.f32 %v6580_v8, %v8787_v47  ;;  %v8923_v4 = vpop.f32.mrf.mxu0 }
 0x3a4   : > { %v6582_v28 = vpop.f32.mrf.mxu1 }
 0x3a5   : > { %9392 = vst [vmem:[#allocation13_spill] sm:$0xff] %v8921_v60  ;;  %v6583_v15 = vadd.f32 %v6582_v28, %v6581_v37  ;;  %v8925_v25 = vpop.f32.mrf.mxu0 }
 0x3a6   : > { %9393 = vst [vmem:[#allocation26_spill] sm:$0xff] %v8925_v25  ;;  %v6584_v43 = vpop.f32.mrf.mxu1 }
 0x3a7   : > { %v8928_v42 = vadd.f32 %v6583_v15, %v8789_v13  ;;  %v8930_v33 = vpop.f32.mrf.mxu0 }
 0x3a8   : > { %v6585_v44 = vpop.f32.mrf.mxu1 }
 0x3a9   : > { %9394 = vst [vmem:[#allocation22_spill] sm:$0xff] %v8928_v42  ;;  %v6586_v10 = vadd.f32 %v6585_v44, %v6584_v43  ;;  %v8932_v32 = vpop.f32.mrf.mxu0 }
 0x3aa   : > { %9395 = vst [vmem:[#allocation21_spill] sm:$0xff] %v8932_v32  ;;  %v6587_v12 = vpop.f32.mrf.mxu1 }
 0x3ab   : > { %v8935_v47 = vadd.f32 %v6586_v10, %v8791_v45  ;;  %v8937_v8 = vpop.f32.mrf.mxu0 }
 0x3ac   : > { %9397 = vst [vmem:[#allocation17_spill] sm:$0xff] %v8937_v8  ;;  %v6588_v60 = vpop.f32.mrf.mxu1 }
 0x3ad   : > { %9396 = vst [vmem:[#allocation23_spill] sm:$0xff] %v8935_v47  ;;  %v6589_v37 = vadd.f32 %v6588_v60, %v6587_v12  ;;  %v8939_v28 = vpop.f32.mrf.mxu0 }
 0x3ae   : > { %9398 = vst [vmem:[#allocation24_spill] sm:$0xff] %v8939_v28  ;;  %v6590_v25 = vpop.f32.mrf.mxu1 }
 0x3af   : > { %v8942_v13 = vadd.f32 %v6589_v37, %v8793_v57  ;;  %v8944_v15 = vpop.f32.mrf.mxu0 }
 0x3b0   : > { %v6591_v42 = vpop.f32.mrf.mxu1 }
 0x3b1   : > { %9399 = vst [vmem:[#allocation28_spill] sm:$0xff] %v8942_v13  ;;  %v6592_v43 = vadd.f32 %v6591_v42, %v6590_v25  ;;  %v8946_v44 = vpop.f32.mrf.mxu0 }
 0x3b2   : > { %v6593_v32 = vpop.f32.mrf.mxu1 }
 0x3b3   : > { %v8949_v45 = vadd.f32 %v6592_v43, %v8795_v2  ;;  %v8951_v10 = vpop.f32.mrf.mxu0 }
 0x3b4   : > { %v6594_v8 = vpop.f32.mrf.mxu1 }
 0x3b5   : > { %9400 = vst [vmem:[#allocation19_spill] sm:$0xff] %v8949_v45  ;;  %v6595_v12 = vadd.f32 %v6594_v8, %v6593_v32  ;;  %v8953_v60 = vpop.f32.mrf.mxu0 }
 0x3b6   : > { %9401 = vst [vmem:[#allocation31_spill] sm:$0xff] %v8953_v60  ;;  %v6596_v28 = vpop.f32.mrf.mxu1 }
 0x3b7   : > { %v8956_v57 = vadd.f32 %v6595_v12, %v8797_v50  ;;  %v8958_v37 = vpop.f32.mrf.mxu0 }
 0x3b8   : > { %9403 = vst [vmem:[#allocation30_spill] sm:$0xff] %v8958_v37  ;;  %v6597_v13 = vpop.f32.mrf.mxu1 }
 0x3b9   : > { %9402 = vst [vmem:[#allocation27_spill] sm:$0xff] %v8956_v57  ;;  %v6598_v25 = vadd.f32 %v6597_v13, %v6596_v28  ;;  %v8960_v42 = vpop.f32.mrf.mxu0 }
 0x3ba   : > { %9404 = vst [vmem:[#allocation29_spill] sm:$0xff] %v8960_v42  ;;  %v6599_v47 = vpop.f32.mrf.mxu1 }
 0x3bb   : > { %v8963_v2 = vadd.f32 %v6598_v25, %v8799_v18  ;;  %v8965_v45 = vpop.f32.mrf.mxu0 }
 0x3bc   : > { %v6600_v43 = vpop.f32.mrf.mxu1  ;;  %9405 = vst [vmem:[#allocation32_spill] sm:$0xff] %v8965_v45 }
 0x3bd   : > { %v6601_v32 = vadd.f32 %v6600_v43, %v6599_v47  ;;  %v8970_v12 = vpop.f32.mrf.mxu0 }
 0x3be   : > { %v6602_v8 = vpop.f32.mrf.mxu1 }
 0x3bf   : > { %v8968_v60 = vadd.f32 %v6601_v32, %v8801_v7  ;;  %v8975_v42 = vpop.f32.mrf.mxu0 }
 0x3c0   : > { %v6603_v50 = vpop.f32.mrf.mxu1 }
 0x3c1   : > { %9406 = vst [vmem:[#allocation9_spill] sm:$0xff] %v8968_v60  ;;  %v6604_v57 = vadd.f32 %v6603_v50, %v6602_v8  ;;  %v8980_v43 = vpop.f32.mrf.mxu0 }
 0x3c2   : > { %v6605_v37 = vpop.f32.mrf.mxu1 }
 0x3c3   : > { %v8973_v28 = vadd.f32 %v6604_v57, %v8803_v21  ;;  %v8985_v50 = vpop.f32.mrf.mxu0 }
 0x3c4   : > { %v6606_v13 = vpop.f32.mrf.mxu1 }
 0x3c5   : > { %9407 = vst [vmem:[#allocation36_spill] sm:$0xff] %v8973_v28  ;;  %v6607_v18 = vadd.f32 %v6606_v13, %v6605_v37  ;;  %v8990_v13 = vpop.f32.mrf.mxu0 }
 0x3c6   : > { %v6608_v25 = vpop.f32.mrf.mxu1 }
 0x3c7   : > { %v8978_v45 = vadd.f32 %v6607_v18, %v8806_v22 }
 0x3c8   : > { %v6609_v47 = vpop.f32.mrf.mxu1 }
 0x3c9   : > { %9408 = vst [vmem:[#allocation37_spill] sm:$0xff] %v8978_v45  ;;  %v6610_v7 = vadd.f32 %v6609_v47, %v6608_v25 }
 0x3ca   : > { %v6611_v32 = vpop.f32.mrf.mxu1 }
 0x3cb   : > { %v8983_v60 = vadd.f32 %v6610_v7, %v8808_v63  ;;  %v8995_v63 = vpop.f32.mrf.mxu0 }
 0x3cc   : > { %v6612_v8 = vpop.f32.mrf.mxu1 }
 0x3cd   : > { %9409 = vst [vmem:[#allocation33_spill] sm:$0xff] %v8983_v60  ;;  %v6613_v21 = vadd.f32 %v6612_v8, %v6611_v32  ;;  %v6650_v8 = vadd.f32 %v8834_v16, %v8830_v51  ;;  %v9020_v51 = vld [vmem:[%s9321_s5] ss:$0 sm:$0xff] }
 0x3ce   : > { %v6614_v57 = vpop.f32.mrf.mxu1 }
 0x3cf   : > { %v8988_v28 = vadd.f32 %v6613_v21, %v8810_v24  ;;  %v9006_v21 = vpop.f32.mrf.mxu0 }
 0x3d0   : > { %v6615_v37 = vpop.f32.mrf.mxu1 }
 0x3d1   : > { %9410 = vst [vmem:[#allocation10_spill] sm:$0xff] %v8988_v28  ;;  %v6616_v22 = vadd.f32 %v6615_v37, %v6614_v57  ;;  %v6653_v37 = vadd.f32 %v8841_v38, %v8839_v31 }
 0x3d2   : > { %v6617_v18 = vpop.f32.mrf.mxu1 }
 0x3d3   : > { %v8993_v45 = vadd.f32 %v6616_v22, %v8812_v27  ;;  %v9014_v22 = vpop.f32.mrf.mxu0 }
 0x3d4   : > { %v6618_v25 = vpop.f32.mrf.mxu1 }
 0x3d5   : > { %9411 = vst [vmem:[#allocation34_spill] sm:$0xff] %v8993_v45  ;;  %v6619_v47 = vadd.f32 %v6618_v25, %v6617_v18  ;;  %v9026_v25 = vld [vmem:[%s9322_s6] ss:$0 sm:$0xff]  ;;  %v9028_v38 = vpop.f32.mrf.mxu0 }
 0x3d6   : > { %v8997_v7 = vpop.f32.mrf.mxu1 }
 0x3d7   : > { %v9000_v32 = vadd.f32 %v6619_v47, %v8814_v34  ;;  %v5095_v34 = vadd.f32 %v6650_v8, %v8823_v26  ;;  %v5098_v8 = vadd.f32 %v6653_v37, %v8828_v35  ;;  %v5452_v35 = vld [vmem:[%s7410_s22] sm:$0xff] }
 0x3d8   : > { %v9002_v24 = vpop.f32.mrf.mxu1 }
 0x3d9   : > { %9412 = vst [vmem:[#allocation35_spill] sm:$0xff] %v9000_v32  ;;  %v6656_v32 = vadd.f32 %v8848_v30, %v8846_v20  ;;  %v9045_v20 = vpop.f32.mrf.mxu0 }
 0x3da   : > { %v9008_v57 = vpop.f32.mrf.mxu1 }
 0x3db   : > { %9413 = vst [vmem:[#allocation38_spill] sm:$0xff] %v9008_v57 }
 0x3dc   : > { %v9010_v27 = vpop.f32.mrf.mxu1 }
 0x3dd   : > { %9414 = vst [vmem:[#allocation39_spill] sm:$0xff] %v9010_v27 }
 0x3de   : > { %v6828_v18 = vpop.f32.mrf.mxu1 }
 0x3df   : > { %v5256_v16 = vadd.f32 %v6828_v18, %v5095_v34  ;;  %v6662_v34 = vadd.f32 %v8862_v17, %v8860_v5  ;;  %v5454_v18 = vld [vmem:[%s7410_s22 + $0x10] sm:$0xff] }
 0x3e0   : > { %v5247_v31 = vpop.f32.mrf.mxu1 }
 0x3e1   : > { %v5383_v47 = vmul.f32 %v9020_v51, %v5256_v16  ;;  %v5248_v26 = vadd.f32 %v5247_v31, %v8825_v19  ;;  %v6665_v19 = vadd.f32 %v8869_v41, %v8867_v49  ;;  %v5103_v49 = vadd.f32 %v6656_v32, %v8837_v39 }
 0x3e2   : > { %v6829_v45 = vpop.f32.mrf.mxu1 }
 0x3e3   : > { %v5422_v27 = vadd.f32 %v9026_v25, %v5383_v47  ;;  %v5381_v57 = vmul.f32 %v9020_v51, %v5248_v26  ;;  %v5259_v16 = vadd.f32 %v6829_v45, %v5098_v8  ;;  %v6659_v47 = vadd.f32 %v8855_v53, %v8853_v54  ;;  %v5455_v26 = vld [vmem:[%s7410_s22 + $0x18] sm:$0xff]  ;;  %v9061_v53 = vpop.f32.mrf.mxu0 }
 0x3e4   : > { %v5250_v37 = vpop.f32.mrf.mxu1  ;;  %v5111_v45 = vadd.f32 %v6662_v34, %v8851_v6  ;;  %v5114_v54 = vadd.f32 %v6665_v19, %v8858_v9 }
 0x3e5   : > { %v5486_v30 = vadd.f32 %v5454_v18, %v5422_v27  ;;  %v5420_v5 = vadd.f32 %v9026_v25, %v5381_v57  ;;  %v5384_v17 = vmul.f32 %v9020_v51, %v5259_v16  ;;  %v5251_v31 = vadd.f32 %v5250_v37, %v8832_v56  ;;  %v5453_v18 = vld [vmem:[%s7410_s22 + $0x8] sm:$0xff]  ;;  %v5458_v37 = vld [vmem:[%s7410_s22 + $0x30] sm:$0xff] }
 0x3e6   : > { %v6832_v8 = vpop.f32.mrf.mxu1  ;;  %v6674_v57 = vadd.f32 %v8890_v3, %v8888_v1 }
 0x3e7   : > { %v5518_v41 = vmax.f32 %v5486_v30, 0.0  ;;  %v5484_v28 = vadd.f32 %v5452_v35, %v5420_v5  ;;  %v5423_v60 = vadd.f32 %v9026_v25, %v5384_v17  ;;  %v5382_v27 = vmul.f32 %v9020_v51, %v5251_v31  ;;  %v5456_v31 = vld [vmem:[%s7410_s22 + $0x20] sm:$0xff] }
 0x3e8   : > { %v5272_v56 = vadd.f32 %v6832_v8, %v5111_v45  ;;  %v5263_v16 = vpop.f32.mrf.mxu1  ;;  %v5106_v35 = vadd.f32 %v6659_v47, %v8844_v11  ;;  %v5127_v11 = vadd.f32 %v6674_v57, %v8879_v46  ;;  %v9079_v47 = vpop.f32.mrf.mxu0 }
 0x3e9   : > { %5550 = vst [vmem:[%s9063_s9 + $0x10] sm:$0xff] %v5518_v41  ;;  %v5516_v39 = vmax.f32 %v5484_v28, 0.0  ;;  %v5487_v6 = vadd.f32 %v5455_v26, %v5423_v60  ;;  %v5421_v32 = vadd.f32 %v9026_v25, %v5382_v27  ;;  %v5264_v34 = vadd.f32 %v5263_v16, %v5103_v49 }
 0x3ea   : > { %v5387_v1 = vmul.f32 %v9020_v51, %v5272_v56  ;;  %v6833_v3 = vpop.f32.mrf.mxu1  ;;  %v6668_v60 = vadd.f32 %v8876_v58, %v8874_v0  ;;  %v6677_v28 = vadd.f32 %v8897_v52, %v8895_v62  ;;  %v6671_v58 = vadd.f32 %v8883_v29, %v8881_v59  ;;  %v5459_v52 = vld [vmem:[%s7410_s22 + $0x38] sm:$0xff] }
 0x3eb   : > { %5548 = vst [vmem:[%s9063_s9] sm:$0xff] %v5516_v39  ;;  %v5519_v9 = vmax.f32 %v5487_v6, 0.0  ;;  %v5485_v19 = vadd.f32 %v5453_v18, %v5421_v32  ;;  %v5385_v30 = vmul.f32 %v9020_v51, %v5264_v34  ;;  %v5275_v5 = vadd.f32 %v6833_v3, %v5114_v54  ;;  %v5457_v54 = vld [vmem:[%s7410_s22 + $0x28] sm:$0xff]  ;;  %v9095_v6 = vpop.f32.mrf.mxu0 }
 0x3ec   : > { %v5426_v17 = vadd.f32 %v9026_v25, %v5387_v1  ;;  %v5266_v26 = vpop.f32.mrf.mxu1  ;;  %v6686_v56 = vadd.f32 %v8918_v23, %v8916_v61  ;;  %v5119_v59 = vadd.f32 %v6668_v60, %v8865_v36  ;;  %v5130_v39 = vadd.f32 %v6677_v28, %v8886_v55  ;;  %v5462_v23 = vld [vmem:[%s7410_s22 + $0x50] sm:$0xff]  ;;  %v9415_v28 = vld [vmem:[#allocation25_spill] sm:$0xff] }
 0x3ed   : > { %5551 = vst [vmem:[%s9063_s9 + $0x18] sm:$0xff] %v5519_v9  ;;  %v5517_v45 = vmax.f32 %v5485_v19, 0.0  ;;  %v5424_v8 = vadd.f32 %v9026_v25, %v5385_v30  ;;  %v5388_v49 = vmul.f32 %v9020_v51, %v5275_v5  ;;  %v5267_v0 = vadd.f32 %v5266_v26, %v5106_v35  ;;  %v5460_v26 = vld [vmem:[%s7410_s22 + $0x40] sm:$0xff] }
 0x3ee   : > { %v5490_v62 = vadd.f32 %v5458_v37, %v5426_v17  ;;  %v6836_v41 = vpop.f32.mrf.mxu1  ;;  %v6680_v61 = vadd.f32 %v8904_v40, %v8902_v48  ;;  %v5122_v9 = vadd.f32 %v6671_v58, %v8872_v14  ;;  %v5143_v48 = vadd.f32 %v6686_v56, %v9415_v28  ;;  %v9108_v40 = vpop.f32.mrf.mxu0  ;;  %v9423_v28 = vld [vmem:[#allocation31_spill] sm:$0xff] }
 0x3ef   : > { %5549 = vst [vmem:[%s9063_s9 + $0x8] sm:$0xff] %v5517_v45  ;;  %v5488_v27 = vadd.f32 %v5456_v31, %v5424_v8  ;;  %v5427_v46 = vadd.f32 %v9026_v25, %v5388_v49  ;;  %v5386_v57 = vmul.f32 %v9020_v51, %v5267_v0  ;;  %v5288_v18 = vadd.f32 %v6836_v41, %v5127_v11  ;;  %v9416_v45 = vld [vmem:[#allocation16_spill] sm:$0xff]  ;;  %v9417_v8 = vld [vmem:[#allocation18_spill] sm:$0xff] }
 0x3f0   : > { %v5522_v16 = vmax.f32 %v5490_v62, 0.0  ;;  %v5279_v29 = vpop.f32.mrf.mxu1  ;;  %v6683_v49 = vadd.f32 %v9417_v8, %v9416_v45  ;;  %v9418_v0 = vld [vmem:[#allocation26_spill] sm:$0xff] }
 0x3f1   : > { %v5520_v32 = vmax.f32 %v5488_v27, 0.0  ;;  %v5491_v34 = vadd.f32 %v5459_v52, %v5427_v46  ;;  %v5425_v1 = vadd.f32 %v9026_v25, %v5386_v57  ;;  %v5391_v3 = vmul.f32 %v9020_v51, %v5288_v18  ;;  %v5463_v52 = vld [vmem:[%s7410_s22 + $0x58] sm:$0xff]  ;;  %v9419_v27 = vld [vmem:[#allocation15_spill] sm:$0xff] }
 0x3f2   : > { %5554 = vst [vmem:[%s9063_s9 + $0x30] sm:$0xff] %v5522_v16  ;;  %v5280_v35 = vadd.f32 %v5279_v29, %v5119_v59  ;;  %v6837_v36 = vpop.f32.mrf.mxu1  ;;  %v6689_v58 = vadd.f32 %v9418_v0, %v8923_v4  ;;  %v5135_v46 = vadd.f32 %v6680_v61, %v9419_v27  ;;  %v5461_v29 = vld [vmem:[%s7410_s22 + $0x48] sm:$0xff]  ;;  %v9420_v61 = vld [vmem:[#allocation21_spill] sm:$0xff] }
 0x3f3   : > { %5552 = vst [vmem:[%s9063_s9 + $0x20] sm:$0xff] %v5520_v32  ;;  %v5523_v55 = vmax.f32 %v5491_v34, 0.0  ;;  %v5489_v19 = vadd.f32 %v5457_v54, %v5425_v1  ;;  %v5430_v37 = vadd.f32 %v9026_v25, %v5391_v3  ;;  %v5291_v30 = vadd.f32 %v6837_v36, %v5130_v39  ;;  %v9126_v39 = vpop.f32.mrf.mxu0 }
 0x3f4   : > { %v5389_v5 = vmul.f32 %v9020_v51, %v5280_v35  ;;  %v5282_v60 = vpop.f32.mrf.mxu1  ;;  %v6698_v54 = vadd.f32 %v8946_v44, %v8944_v15  ;;  %v5466_v15 = vld [vmem:[%s7410_s22 + $0x70] sm:$0xff]  ;;  %v9421_v44 = vld [vmem:[#allocation20_spill] sm:$0xff] }
 0x3f5   : > { %5555 = vst [vmem:[%s9063_s9 + $0x38] sm:$0xff] %v5523_v55  ;;  %v5521_v17 = vmax.f32 %v5489_v19, 0.0  ;;  %v5494_v31 = vadd.f32 %v5462_v23, %v5430_v37  ;;  %v5392_v14 = vmul.f32 %v9020_v51, %v5291_v30  ;;  %v5283_v11 = vadd.f32 %v5282_v60, %v5122_v9  ;;  %v9422_v55 = vld [vmem:[#allocation12_spill] sm:$0xff] }
 0x3f6   : > { %v5428_v62 = vadd.f32 %v9026_v25, %v5389_v5  ;;  %v6840_v41 = vpop.f32.mrf.mxu1  ;;  %v6692_v23 = vadd.f32 %v9420_v61, %v8930_v33  ;;  %v5146_v36 = vadd.f32 %v6689_v58, %v9421_v44  ;;  %v5138_v19 = vadd.f32 %v6683_v49, %v9422_v55  ;;  %v5464_v33 = vld [vmem:[%s7410_s22 + $0x60] sm:$0xff]  ;;  %v9429_v44 = vld [vmem:[#allocation30_spill] sm:$0xff] }
 0x3f7   : > { %5553 = vst [vmem:[%s9063_s9 + $0x28] sm:$0xff] %v5521_v17  ;;  %v5526_v57 = vmax.f32 %v5494_v31, 0.0  ;;  %v5431_v18 = vadd.f32 %v9026_v25, %v5392_v14  ;;  %v5390_v56 = vmul.f32 %v9020_v51, %v5283_v11  ;;  %v5304_v16 = vadd.f32 %v6840_v41, %v5143_v48  ;;  %v9143_v11 = vpop.f32.mrf.mxu0 }
 0x3f8   : > { %v5492_v59 = vadd.f32 %v5460_v26, %v5428_v62  ;;  %v5295_v4 = vpop.f32.mrf.mxu1  ;;  %v6701_v48 = vadd.f32 %v9423_v28, %v8951_v10  ;;  %v9424_v26 = vld [vmem:[#allocation23_spill] sm:$0xff]  ;;  %v9425_v62 = vld [vmem:[#allocation13_spill] sm:$0xff] }
 0x3f9   : > { %5558 = vst [vmem:[%s9063_s9 + $0x50] sm:$0xff] %v5526_v57  ;;  %v5495_v32 = vadd.f32 %v5463_v52, %v5431_v18  ;;  %v5429_v34 = vadd.f32 %v9026_v25, %v5390_v56  ;;  %v5395_v1 = vmul.f32 %v9020_v51, %v5304_v16  ;;  %v5296_v3 = vadd.f32 %v5295_v4, %v5135_v46  ;;  %v5467_v46 = vld [vmem:[%s7410_s22 + $0x78] sm:$0xff]  ;;  %v9426_v56 = vld [vmem:[#allocation17_spill] sm:$0xff]  ;;  %v5465_v4 = vld [vmem:[%s7410_s22 + $0x68] sm:$0xff] }
 0x3fa   : > { %v5524_v35 = vmax.f32 %v5492_v59, 0.0  ;;  %v6841_v9 = vpop.f32.mrf.mxu1  ;;  %v5159_v14 = vadd.f32 %v6698_v54, %v9424_v26  ;;  %v5151_v52 = vadd.f32 %v6692_v23, %v9425_v62  ;;  %v9427_v16 = vld [vmem:[#allocation24_spill] sm:$0xff]  ;;  %v6710_v59 = vadd.f32 %v8980_v43, %v8975_v42  ;;  %v5470_v43 = vld [vmem:[%s7410_s22 + $0x90] sm:$0xff] }
 0x3fb   : > { %v5527_v37 = vmax.f32 %v5495_v32, 0.0  ;;  %v5493_v30 = vadd.f32 %v5461_v29, %v5429_v34  ;;  %v5434_v5 = vadd.f32 %v9026_v25, %v5395_v1  ;;  %v5393_v60 = vmul.f32 %v9020_v51, %v5296_v3  ;;  %v9428_v34 = vld [vmem:[#allocation28_spill] sm:$0xff]  ;;  %v9159_v3 = vpop.f32.mrf.mxu0 }
 0x3fc   : > { %5556 = vst [vmem:[%s9063_s9 + $0x40] sm:$0xff] %v5524_v35  ;;  %v5307_v17 = vadd.f32 %v6841_v9, %v5146_v36  ;;  %v5298_v31 = vpop.f32.mrf.mxu1  ;;  %v6695_v54 = vadd.f32 %v9427_v16, %v9426_v56  ;;  %v5162_v1 = vadd.f32 %v6701_v48, %v9428_v34  ;;  %v9430_v36 = vld [vmem:[#allocation29_spill] sm:$0xff]  ;;  %v5175_v26 = vadd.f32 %v6710_v59, %v8963_v2 }
 0x3fd   : > { %5559 = vst [vmem:[%s9063_s9 + $0x58] sm:$0xff] %v5527_v37  ;;  %v5525_v45 = vmax.f32 %v5493_v30, 0.0  ;;  %v5498_v8 = vadd.f32 %v5466_v15, %v5434_v5  ;;  %v5432_v49 = vadd.f32 %v9026_v25, %v5393_v60  ;;  %v5299_v0 = vadd.f32 %v5298_v31, %v5138_v19  ;;  %v5468_v48 = vld [vmem:[%s7410_s22 + $0x80] sm:$0xff] }
 0x3fe   : > { %v5396_v58 = vmul.f32 %v9020_v51, %v5307_v17  ;;  %v6844_v10 = vpop.f32.mrf.mxu1  ;;  %v6704_v9 = vadd.f32 %v9430_v36, %v9429_v44  ;;  %v6713_v60 = vadd.f32 %v8990_v13, %v8985_v50  ;;  %v5471_v50 = vld [vmem:[%s7410_s22 + $0x98] sm:$0xff]  ;;  %v9434_v16 = vld [vmem:[#allocation9_spill] sm:$0xff] }
 0x3ff   : > { %5557 = vst [vmem:[%s9063_s9 + $0x48] sm:$0xff] %v5525_v45  ;;  %v5530_v41 = vmax.f32 %v5498_v8, 0.0  ;;  %v5496_v27 = vadd.f32 %v5464_v33, %v5432_v49  ;;  %v5394_v57 = vmul.f32 %v9020_v51, %v5299_v0  ;;  %v5320_v18 = vadd.f32 %v6844_v10, %v5159_v14  ;;  %v9431_v33 = vld [vmem:[#allocation22_spill] sm:$0xff]  ;;  %v6732_v14 = vpop.f32.mrf.mxu0 }
 0x400   : > { %v5435_v29 = vadd.f32 %v9026_v25, %v5396_v58  ;;  %v5311_v32 = vpop.f32.mrf.mxu1  ;;  %v5154_v17 = vadd.f32 %v6695_v54, %v9431_v33  ;;  %v9432_v58 = vld [vmem:[#allocation32_spill] sm:$0xff]  ;;  %v5178_v54 = vadd.f32 %v6713_v60, %v9434_v16  ;;  %v6719_v33 = vadd.f32 %v9028_v38, %v9014_v22  ;;  %v9442_v16 = vld [vmem:[#allocation37_spill] sm:$0xff] }
 0x401   : > { %5562 = vst [vmem:[%s9063_s9 + $0x70] sm:$0xff] %v5530_v41  ;;  %v5528_v61 = vmax.f32 %v5496_v27, 0.0  ;;  %v5433_v23 = vadd.f32 %v9026_v25, %v5394_v57  ;;  %v5399_v35 = vmul.f32 %v9020_v51, %v5320_v18  ;;  %v5312_v15 = vadd.f32 %v5311_v32, %v5151_v52  ;;  %v9433_v52 = vld [vmem:[#allocation19_spill] sm:$0xff]  ;;  %v6733_v59 = vpop.f32.mrf.mxu0  ;;  %v5469_v32 = vld [vmem:[%s7410_s22 + $0x88] sm:$0xff] }
 0x402   : > { %v5499_v42 = vadd.f32 %v5467_v46, %v5435_v29  ;;  %v6845_v55 = vpop.f32.mrf.mxu1  ;;  %v6707_v10 = vadd.f32 %v8970_v12, %v9432_v58  ;;  %v5167_v41 = vadd.f32 %v6704_v9, %v9433_v52  ;;  %v6716_v18 = vadd.f32 %v9006_v21, %v8995_v63  ;;  %v5474_v21 = vld [vmem:[%s7410_s22 + $0xb0] sm:$0xff] }
 0x403   : > { %5560 = vst [vmem:[%s9063_s9 + $0x60] sm:$0xff] %v5528_v61  ;;  %v5497_v19 = vadd.f32 %v5465_v4, %v5433_v23  ;;  %v5438_v37 = vadd.f32 %v9026_v25, %v5399_v35  ;;  %v5397_v30 = vmul.f32 %v9020_v51, %v5312_v15  ;;  %v5323_v5 = vadd.f32 %v6845_v55, %v5162_v1  ;;  %v9435_v35 = vld [vmem:[#allocation27_spill] sm:$0xff] }
 0x404   : > { %v5531_v28 = vmax.f32 %v5499_v42, 0.0  ;;  %v5314_v31 = vpop.f32.mrf.mxu1  ;;  %v6722_v61 = vadd.f32 %v9061_v53, %v9045_v20  ;;  %v5170_v15 = vadd.f32 %v6707_v10, %v9435_v35  ;;  %v5472_v20 = vld [vmem:[%s7410_s22 + $0xa0] sm:$0xff]  ;;  %v6734_v10 = vadd.f32 %v6733_v59, %v6732_v14  ;;  %v9441_v14 = vld [vmem:[#allocation39_spill] sm:$0xff] }
 0x405   : > { %v5529_v45 = vmax.f32 %v5497_v19, 0.0  ;;  %v5502_v8 = vadd.f32 %v5470_v43, %v5438_v37  ;;  %v5436_v49 = vadd.f32 %v9026_v25, %v5397_v30  ;;  %v5400_v0 = vmul.f32 %v9020_v51, %v5323_v5  ;;  %v9436_v19 = vld [vmem:[#allocation36_spill] sm:$0xff]  ;;  %v6735_v30 = vpop.f32.mrf.mxu0 }
 0x406   : > { %5563 = vst [vmem:[%s9063_s9 + $0x78] sm:$0xff] %v5531_v28  ;;  %v5315_v13 = vadd.f32 %v5314_v31, %v5154_v17  ;;  %v6848_v62 = vpop.f32.mrf.mxu1  ;;  %v6725_v43 = vadd.f32 %v9095_v6, %v9079_v47  ;;  %v5183_v37 = vadd.f32 %v6716_v18, %v9436_v19  ;;  %v6622_v47 = vadd.f32 %v9002_v24, %v8997_v7  ;;  %v5475_v17 = vld [vmem:[%s7410_s22 + $0xb8] sm:$0xff]  ;;  %v9437_v31 = vld [vmem:[#allocation33_spill] sm:$0xff] }
 0x407   : > { %5561 = vst [vmem:[%s9063_s9 + $0x68] sm:$0xff] %v5529_v45  ;;  %v5534_v2 = vmax.f32 %v5502_v8, 0.0  ;;  %v5500_v27 = vadd.f32 %v5468_v48, %v5436_v49  ;;  %v5439_v46 = vadd.f32 %v9026_v25, %v5400_v0  ;;  %v5336_v57 = vadd.f32 %v6848_v62, %v5175_v26  ;;  %v6736_v24 = vpop.f32.mrf.mxu0 }
 0x408   : > { %v5398_v12 = vmul.f32 %v9020_v51, %v5315_v13  ;;  %v5327_v56 = vpop.f32.mrf.mxu1  ;;  %v5191_v26 = vadd.f32 %v6722_v61, %v9437_v31  ;;  %v9438_v13 = vld [vmem:[#allocation10_spill] sm:$0xff]  ;;  %v6737_v61 = vadd.f32 %v6736_v24, %v6735_v30  ;;  %v5482_v31 = vld [vmem:[%s7410_s22 + $0xf0] sm:$0xff]  ;;  %v5480_v24 = vld [vmem:[%s7410_s22 + $0xe0] sm:$0xff] }
 0x409   : > { %5566 = vst [vmem:[%s9063_s9 + $0x90] sm:$0xff] %v5534_v2  ;;  %v5532_v29 = vmax.f32 %v5500_v27, 0.0  ;;  %v5503_v4 = vadd.f32 %v5471_v50, %v5439_v46  ;;  %v5403_v34 = vmul.f32 %v9020_v51, %v5336_v57  ;;  %v5328_v1 = vadd.f32 %v5327_v56, %v5167_v41  ;;  %v5473_v50 = vld [vmem:[%s7410_s22 + $0xa8] sm:$0xff] }
 0x40a   : > { %v5437_v63 = vadd.f32 %v9026_v25, %v5398_v12  ;;  %v6849_v23 = vpop.f32.mrf.mxu1  ;;  %v5194_v7 = vadd.f32 %v6725_v43, %v9438_v13  ;;  %v9439_v27 = vld [vmem:[#allocation14_spill] sm:$0xff] }
 0x40b   : > { %5564 = vst [vmem:[%s9063_s9 + $0x80] sm:$0xff] %v5532_v29  ;;  %v5535_v44 = vmax.f32 %v5503_v4, 0.0  ;;  %v5442_v36 = vadd.f32 %v9026_v25, %v5403_v34  ;;  %v5401_v9 = vmul.f32 %v9020_v51, %v5328_v1  ;;  %v5339_v42 = vadd.f32 %v6849_v23, %v5178_v54  ;;  %v9440_v57 = vld [vmem:[#allocation38_spill] sm:$0xff]  ;;  %v5478_v4 = vld [vmem:[%s7410_s22 + $0xd0] sm:$0xff] }
 0x40c   : > { %v5501_v55 = vadd.f32 %v5469_v32, %v5437_v63  ;;  %v5330_v53 = vpop.f32.mrf.mxu1  ;;  %v5046_v46 = vadd.f32 %v6622_v47, %v9439_v27  ;;  %v6625_v18 = vadd.f32 %v9441_v14, %v9440_v57  ;;  %v5186_v54 = vadd.f32 %v6719_v33, %v9442_v16 }
 0x40d   : > { %5567 = vst [vmem:[%s9063_s9 + $0x98] sm:$0xff] %v5535_v44  ;;  %v5506_v5 = vadd.f32 %v5474_v21, %v5442_v36  ;;  %v5440_v60 = vadd.f32 %v9026_v25, %v5401_v9  ;;  %v5404_v28 = vmul.f32 %v9020_v51, %v5339_v42  ;;  %v5331_v48 = vadd.f32 %v5330_v53, %v5170_v15  ;;  %v5476_v21 = vld [vmem:[%s7410_s22 + $0xc0] sm:$0xff]  ;;  %v9443_v42 = vld [vmem:[#allocation11_spill] sm:$0xff] }
 0x40e   : > { %v5533_v6 = vmax.f32 %v5501_v55, 0.0  ;;  %v6852_v45 = vpop.f32.mrf.mxu1  ;;  %v6728_v1 = vadd.f32 %v9126_v39, %v9108_v40  ;;  %v5207_v35 = vadd.f32 %v6734_v10, %v5046_v46  ;;  %v5049_v43 = vadd.f32 %v6625_v18, %v9443_v42  ;;  %v5479_v55 = vld [vmem:[%s7410_s22 + $0xd8] sm:$0xff]  ;;  %v5481_v18 = vld [vmem:[%s7410_s22 + $0xe8] sm:$0xff] }
 0x40f   : > { %v5538_v8 = vmax.f32 %v5506_v5, 0.0  ;;  %v5504_v49 = vadd.f32 %v5472_v20, %v5440_v60  ;;  %v5443_v0 = vadd.f32 %v9026_v25, %v5404_v28  ;;  %v5402_v58 = vmul.f32 %v9020_v51, %v5331_v48  ;;  %v5477_v60 = vld [vmem:[%s7410_s22 + $0xc8] sm:$0xff] }
 0x410   : > { %5565 = vst [vmem:[%s9063_s9 + $0x88] sm:$0xff] %v5533_v6  ;;  %v5352_v22 = vadd.f32 %v6852_v45, %v5191_v26  ;;  %v5343_v38 = vpop.f32.mrf.mxu1  ;;  %v6731_v40 = vadd.f32 %v9159_v3, %v9143_v11  ;;  %v9444_v28 = vld [vmem:[#allocation34_spill] sm:$0xff]  ;;  %v5210_v47 = vadd.f32 %v6737_v61, %v5049_v43 }
 0x411   : > { %5570 = vst [vmem:[%s9063_s9 + $0xb0] sm:$0xff] %v5538_v8  ;;  %v5536_v62 = vmax.f32 %v5504_v49, 0.0  ;;  %v5507_v52 = vadd.f32 %v5475_v17, %v5443_v0  ;;  %v5441_v41 = vadd.f32 %v9026_v25, %v5402_v58  ;;  %v5344_v2 = vadd.f32 %v5343_v38, %v5183_v37  ;;  %v9445_v8 = vld [vmem:[#allocation35_spill] sm:$0xff] }
 0x412   : > { %v5407_v12 = vmul.f32 %v9020_v51, %v5352_v22  ;;  %v6853_v56 = vpop.f32.mrf.mxu1  ;;  %v5199_v48 = vadd.f32 %v6728_v1, %v9444_v28  ;;  %v5202_v49 = vadd.f32 %v6731_v40, %v9445_v8 }
 0x413   : > { %5568 = vst [vmem:[%s9063_s9 + $0xa0] sm:$0xff] %v5536_v62  ;;  %v5539_v59 = vmax.f32 %v5507_v52, 0.0  ;;  %v5505_v29 = vadd.f32 %v5473_v50, %v5441_v41  ;;  %v5405_v32 = vmul.f32 %v9020_v51, %v5344_v2  ;;  %v5355_v34 = vadd.f32 %v6853_v56, %v5194_v7  ;;  %v5483_v2 = vld [vmem:[%s7410_s22 + $0xf8] sm:$0xff]  ;;  %s7046_s22 = scalar_lea.vmem %s9270_s14, 4096 }
 0x414   : > { %v5446_v63 = vadd.f32 %v9026_v25, %v5407_v12  ;;  %v5346_v23 = vpop.f32.mrf.mxu1  ;;  %p7047_p11 = scmp.ne.s32.totalorder %s9270_s14, %s7046_s22  ;;  %p7054_p1 = scmp.lt.s32.totalorder %s7052_s21, %s7046_s22 }
 0x415   : > { %5571 = vst [vmem:[%s9063_s9 + $0xb8] sm:$0xff] %v5539_v59  ;;  %v5537_v15 = vmax.f32 %v5505_v29, 0.0  ;;  %v5444_v44 = vadd.f32 %v9026_v25, %v5405_v32  ;;  %v5408_v36 = vmul.f32 %v9020_v51, %v5355_v34  ;;  %v5347_v9 = vadd.f32 %v5346_v23, %v5186_v54 }
 0x416   : > { %v5510_v39 = vadd.f32 %v5478_v4, %v5446_v63  ;;  %v6856_v20 = vpop.f32.mrf.mxu1  ;;  %p7048_p12 = pnand %p7047_p11, %p7191_p5  ;;  %p7055_p2 = por %p7054_p1, %p7053_p0 }
 0x417   : > { %5569 = vst [vmem:[%s9063_s9 + $0xa8] sm:$0xff] %v5537_v15  ;;  %v5508_v53 = vadd.f32 %v5476_v21, %v5444_v44  ;;  %v5447_v19 = vadd.f32 %v9026_v25, %v5408_v36  ;;  %v5406_v37 = vmul.f32 %v9020_v51, %v5347_v9  ;;  %v5368_v30 = vadd.f32 %v6856_v20, %v5207_v35 }
 0x418   : > { %v5542_v5 = vmax.f32 %v5510_v39, 0.0  ;;  %v5359_v33 = vpop.f32.mrf.mxu1  ;;  %p7049_p13 = pneg %p7048_p12 }
 0x419   : > { %v5540_v11 = vmax.f32 %v5508_v53, 0.0  ;;  %v5511_v3 = vadd.f32 %v5479_v55, %v5447_v19  ;;  %v5445_v6 = vadd.f32 %v9026_v25, %v5406_v37  ;;  %v5411_v17 = vmul.f32 %v9020_v51, %v5368_v30 }
 0x41a   : > { %5574 = vst [vmem:[%s9063_s9 + $0xd0] sm:$0xff] %v5542_v5  ;;  %v5360_v26 = vadd.f32 %v5359_v33, %v5199_v48  ;;  %v6857_v45 = vpop.f32.mrf.mxu1  ;;  %p7056_p3 = pnand %p7055_p2, %p7049_p13 }
 0x41b   : > { %5572 = vst [vmem:[%s9063_s9 + $0xc0] sm:$0xff] %v5540_v11  ;;  %v5543_v0 = vmax.f32 %v5511_v3, 0.0  ;;  %v5509_v58 = vadd.f32 %v5477_v60, %v5445_v6  ;;  %v5450_v10 = vadd.f32 %v9026_v25, %v5411_v17  ;;  %v5371_v50 = vadd.f32 %v6857_v45, %v5210_v47 }
 0x41c   : > { %v5409_v22 = vmul.f32 %v9020_v51, %v5360_v26  ;;  %v5362_v38 = vpop.f32.mrf.mxu1 }
 0x41d   : > { %5575 = vst [vmem:[%s9063_s9 + $0xd8] sm:$0xff] %v5543_v0  ;;  %v5541_v13 = vmax.f32 %v5509_v58, 0.0  ;;  %v5514_v7 = vadd.f32 %v5482_v31, %v5450_v10  ;;  %v5412_v62 = vmul.f32 %v9020_v51, %v5371_v50  ;;  %v5363_v52 = vadd.f32 %v5362_v38, %v5202_v49 }
 0x41e   : > { %v5448_v41 = vadd.f32 %v9026_v25, %v5409_v22 }
 0x41f   : > { %5573 = vst [vmem:[%s9063_s9 + $0xc8] sm:$0xff] %v5541_v13  ;;  %v5546_v27 = vmax.f32 %v5514_v7, 0.0  ;;  %v5451_v46 = vadd.f32 %v9026_v25, %v5412_v62  ;;  %v5410_v57 = vmul.f32 %v9020_v51, %v5363_v52 }
 0x420   : > { %v5512_v14 = vadd.f32 %v5480_v24, %v5448_v41 }
 0x421   : > { %5578 = vst [vmem:[%s9063_s9 + $0xf0] sm:$0xff] %v5546_v27  ;;  %v5515_v12 = vadd.f32 %v5483_v2, %v5451_v46  ;;  %v5449_v56 = vadd.f32 %v9026_v25, %v5410_v57 }
 0x422   : > { %v5544_v16 = vmax.f32 %v5512_v14, 0.0 }
 0x423   : > { %v5547_v54 = vmax.f32 %v5515_v12, 0.0  ;;  %v5513_v59 = vadd.f32 %v5481_v18, %v5449_v56 }
 0x424   : > { %5576 = vst [vmem:[%s9063_s9 + $0xe0] sm:$0xff] %v5544_v16 }
 0x425   : > { %5579 = vst [vmem:[%s9063_s9 + $0xf8] sm:$0xff] %v5547_v54  ;;  %v5545_v51 = vmax.f32 %v5513_v59, 0.0 }
 0x427   : > { %5577 = vst [vmem:[%s9063_s9 + $0xe8] sm:$0xff] %v5545_v51 }
 0x428   : > { %7059 = shalt.err (!%p7056_p3)
}
 0x429   : > { %s7060_s17 = scalar_lea.hbm %s9268_s18, 4096  ;;  %s7064_s8 = scalar_lea.hbm %s9323_s7, 8192 }
 0x42a   : > { %p7061_p4 = scmp.ne.s32.totalorder %s9268_s18, %s7060_s17  ;;  %p7065_p9 = scmp.lt.s32.totalorder %s9268_s18, %s9323_s7 }
 0x42b   : > { %p7066_p10 = scmp.lt.s32.totalorder %s7064_s8, %s7060_s17 }
 0x42c   : > { %p7062_p7 = pnand %p7061_p4, %p7191_p5 }
 0x42d   : > { %p7067_p11 = por %p7066_p10, %p7065_p9 }
 0x42e   : > { %p7063_p8 = pneg %p7062_p7 }
 0x430   : > { %p7068_p12 = pnand %p7067_p11, %p7063_p8 }
 0x432   : > { %7071 = shalt.err (!%p7068_p12)
}
 0x433   : > { %s7111_s15 = smov 128   ;;  %s7112_s16 = smov 8  }
 0x434   : > { %6858 = dma.vmem_to_hbm [thread:$0]  (%p7191_p5), %s9270_s14, 4096, %s9268_s18, %s9276_s28, %s7111_s15, %s7111_s15, %s7112_s16  }
 0x435 PF: > { %p6864_p13 = scmp.ge.s32.totalorder %s7106_s27, 2  ;;  %s5609_s22 = sand.u32 1, %s7094_s24  }
 0x436   : > { %s5610_s19 = scalar_lea.sflag [#allocation7], %s5609_s22 }
 0x437   : > { %p6861_p0 = pnand %p6864_p13, %p7195_p6 }
 0x439   : > { %p6862_p1 = pneg %p6861_p0 }
 0x43b   : > { %7089 = dma.done.wait (%p6862_p1), %s5610_s19, 4096  }
 0x43c   : > { %7091 = vsyncadd (%p6862_p1), %s5610_s19, 4294963200  ;;  %p17_p2 = scmp.ge.s32.totalorder %s7178_s30, 4   ;;  %s9446_s24 = smov %s7098_s25 }
 0x43d   : > { %s9447_s25 = smov %s7102_s26  ;;  %s9448_s26 = smov %s7189_s10 }
 0x43e   : > { %s9449_s27 = smov %s7178_s30  ;;  %19 = sbr.rel (!%p17_p2) target bundleno = 3 (0x3), region = 87 }
 0x443   :  { %5615 = vsyncpa [#allocation7], 1 }
 0x444   :  { %5617 = vsyncpa [#allocation7 + $0x1], 1 }

</bundles_post_ra>
